<compile_context>
chip_gen: v7x
topology: tpu7x:2x2x1
jax: 0.10.0
libtpu: 0.0.40
codegen_flags: <defaults>
</compile_context>

<pallas_src>
import numpy as np
import jax
import jax.numpy as jnp
from jax.experimental import pallas as pl
from jax.experimental.pallas import tpu as pltpu

EPS = 1e-5          # nn.InstanceNorm1d default eps
C_OUT_PAD = 128     # final conv out-channels padded to one full lane width


# ----------------------------------------------------------------------------
# Precomputed 0/1 scatter / gather matrices (built once, outside the kernel)
# ----------------------------------------------------------------------------
def _make_scatter_masks(l_in, out_pad):
    """ConvTranspose1d(k=4, s=2): tap k places input row l at output row 2l+k.
    Returns (4, l_out, l_in) f32; output_padding rows are all-zero rows."""
    l_out = 2 * l_in + 2 + out_pad
    s = np.zeros((4, l_out, l_in), np.float32)
    for k in range(4):
        for l in range(l_in):
            s[k, 2 * l + k, l] = 1.0
    return jnp.asarray(s)


def _make_final_gather_masks(l1):
    """Upsample(x2 nearest) + ConstantPad1d((1,1),0) + Conv1d(k=3, pad=1 replicate):
    out[m] = b + sum_k up[m+k-2] @ Wf_k with up[j] = x[j//2] for 0 <= j < 2*l1.
    Returns (3, 2*l1+2, l1) f32."""
    lf = 2 * l1 + 2
    g = np.zeros((3, lf, l1), np.float32)
    for k in range(3):
        for m in range(lf):
            j = m + k - 2
            if 0 <= j < 2 * l1:
                g[k, m, j // 2] = 1.0
    return jnp.asarray(g)


# ----------------------------------------------------------------------------
# In-kernel building blocks
# ----------------------------------------------------------------------------
def _instance_norm_relu(o):
    """InstanceNorm1d(affine=False, biased var) + ReLU, per sample, f32."""
    mean = jnp.mean(o, axis=0, keepdims=True)
    cent = o - mean
    var = jnp.mean(cent * cent, axis=0, keepdims=True)
    return jnp.maximum(cent * jax.lax.rsqrt(var + EPS), 0.0)


def _up_block(x_flat, w_ref, s_ref, bt, l_in, c_out):
    """ConvTranspose1d(k=4, s=2, bias=False) + InstanceNorm1d + ReLU.

    x_flat: (bt*l_in, c_in) bf16 (samples stacked along rows)
    w_ref:  (c_in, 4*c_out) bf16 (taps concatenated along the lane axis)
    s_ref:  (4, l_out, l_in) f32 precomputed scatter matrices
    Returns a list of bt arrays (l_out, c_out) f32.
    """
    # One wide channel matmul over all 4 taps for the whole batch block (MXU).
    y = jnp.dot(x_flat, w_ref[...], preferred_element_type=jnp.float32)   # (bt*l_in, 4*c_out)
    scat = s_ref[...]                                                     # (4, l_out, l_in)
    outs = []
    for s in range(bt):
        ys = y[s * l_in:(s + 1) * l_in]                                   # (l_in, 4*c_out)
        o = None
        for k in range(4):
            o_k = jnp.dot(scat[k], ys[:, k * c_out:(k + 1) * c_out],
                          preferred_element_type=jnp.float32)             # (l_out, c_out)
            o = o_k if o is None else o + o_k
        # output_padding row(s) come out exactly zero and are (correctly)
        # included in the InstanceNorm statistics, matching PyTorch.
        outs.append(_instance_norm_relu(o))
    return outs


# ----------------------------------------------------------------------------
# Fused decoder kernel (one grid step = `bt` batch elements)
# ----------------------------------------------------------------------------
def _decoder_kernel(d4_ref, d3_ref, d2_ref, d1_ref,
                    w1_ref, w2_ref, w3_ref, wf_ref,
                    s1_ref, s2_ref, s3_ref, g_ref, bf_ref, o_ref):
    bt, l4, _ = d4_ref.shape
    l3, l2, l1 = d3_ref.shape[1], d2_ref.shape[1], d1_ref.shape[1]

    def flat(ref):
        # (bt, L, C) -> (bt*L, C).  bt == 1 path is a plain squeeze (the path
        # exercised at small batch); bt > 1 stacks samples along sublanes.
        if bt == 1:
            return ref[0]
        return jnp.concatenate([ref[s] for s in range(bt)], axis=0)

    def cat_skip(parts, skip_flat):
        # torch.cat((up_out, skip), dim=channels): lane-aligned concat, then the
        # next layer uses its original full-K weight (merged split-K matmul).
        u = parts[0] if bt == 1 else jnp.concatenate(parts, axis=0)
        return jnp.concatenate([u.astype(jnp.bfloat16), skip_flat], axis=-1)

    d4 = flat(d4_ref)            # (bt*l4, 512) bf16
    d3 = flat(d3_ref)            # (bt*l3, 512) bf16
    d2 = flat(d2_ref)            # (bt*l2, 256) bf16
    d1 = flat(d1_ref)            # (bt*l1, 128) bf16

    # up1: ConvT(512->512, k=4, s=2, output_padding=1) + IN + ReLU (+ Dropout(0.5)).
    # TODO(synk): training-mode Dropout(0.5) is stochastic; implemented as eval-mode identity.
    u1 = _up_block(d4, w1_ref, s1_ref, bt, l4, 512)                     # bt x (l3, 512) f32

    # up2: ConvT(cat(u1, d3) -> 256, output_padding=0) + IN + ReLU
    u2 = _up_block(cat_skip(u1, d3), w2_ref, s2_ref, bt, l3, 256)       # bt x (l2, 256) f32

    # up3: ConvT(cat(u2, d2) -> 128, output_padding=1) + IN + ReLU
    u3 = _up_block(cat_skip(u2, d2), w3_ref, s3_ref, bt, l2, 128)       # bt x (l1, 128) f32

    # final: Upsample(x2 nearest) + ConstantPad1d((1,1),0) + Conv1d(k=3, replicate) + Tanh.
    # Replicate padding of the zero edge rows == zero padding (handled in G).
    z = jnp.dot(cat_skip(u3, d1), wf_ref[...],
                preferred_element_type=jnp.float32)                     # (bt*l1, 3*C_OUT_PAD)
    gm = g_ref[...]                                                     # (3, lf, l1)
    bias = bf_ref[...]                                                  # (1, C_OUT_PAD)
    for s in range(bt):
        zs = z[s * l1:(s + 1) * l1]
        acc = bias
        for k in range(3):
            acc = acc + jnp.dot(gm[k], zs[:, k * C_OUT_PAD:(k + 1) * C_OUT_PAD],
                                preferred_element_type=jnp.float32)
        o_ref[s] = jnp.tanh(acc).astype(o_ref.dtype)                    # (lf, 128) bf16


# ----------------------------------------------------------------------------
# Wrapper
# ----------------------------------------------------------------------------
def _pick_bt(b, l4):
    # Grow the MXU M dim toward ~256 rows on the deepest layer, but keep >= 2
    # grid steps when B >= 2 (v7x dual TensorCore) and cap the static unroll of
    # the per-sample scatter/norm stage.
    bt = max(1, min(b, 256 // max(l4, 1)))
    if b >= 2:
        bt = min(bt, -(-b // 2))
    return max(1, min(bt, 8))


def decoder_forward(params, d1, d2, d3, d4, out_channels=12, block_batch=None):
    """Inputs in PyTorch NCL layout; returns NCL (B, out_channels, 2*L1+2)."""
    t = lambda a: jnp.transpose(a, (0, 2, 1)).astype(jnp.bfloat16)
    d1b, d2b, d3b, d4b = t(d1), t(d2), t(d3), t(d4)
    b, l1, _ = d1b.shape
    l2, l3, l4 = d2b.shape[1], d3b.shape[1], d4b.shape[1]
    lf = 2 * l1 + 2

    bt = block_batch if block_batch is not None else _pick_bt(b, l4)
    nblk = -(-b // bt)
    bpad = nblk * bt
    if bpad != b:  # zero-pad the batch; padded samples are sliced off below
        padb = lambda a: jnp.pad(a, ((0, bpad - b), (0, 0), (0, 0)))
        d1b, d2b, d3b, d4b = padb(d1b), padb(d2b), padb(d3b), padb(d4b)

    # Precomputed 0/1 scatter (ConvTranspose) and gather (final conv) matrices.
    s1 = _make_scatter_masks(l4, 1)
    s2 = _make_scatter_masks(l3, 0)
    s3 = _make_scatter_masks(l2, 1)
    g = _make_final_gather_masks(l1)

    def act_spec(l, c):
        return pl.BlockSpec((bt, l, c), lambda i: (i, 0, 0))

    def const_spec(arr):
        # Full-array block, constant index map: DMA'd once per launch.
        return pl.BlockSpec(arr.shape, lambda i, nd=arr.ndim: (0,) * nd)

    y = pl.pallas_call(
        _decoder_kernel,
        out_shape=jax.ShapeDtypeStruct((bpad, lf, C_OUT_PAD), jnp.bfloat16),
        grid=(nblk,),
        in_specs=[
            act_spec(l4, 512), act_spec(l3, 512), act_spec(l2, 256), act_spec(l1, 128),
            const_spec(params["w1"]), const_spec(params["w2"]),
            const_spec(params["w3"]), const_spec(params["wf"]),
            const_spec(s1), const_spec(s2), const_spec(s3), const_spec(g),
            const_spec(params["bf"]),
        ],
        out_specs=pl.BlockSpec((bt, lf, C_OUT_PAD), lambda i: (i, 0, 0)),
        compiler_params=pltpu.CompilerParams(
            dimension_semantics=("parallel",),
            vmem_limit_bytes=32 * 1024 * 1024,
        ),
    )(d4b, d3b, d2b, d1b,
      params["w1"], params["w2"], params["w3"], params["wf"],
      s1, s2, s3, g, params["bf"])

    # Back to NCL f32, drop batch padding and the lane padding of the 12 channels.
    y = y[:b].astype(jnp.float32)
    return jnp.transpose(y, (0, 2, 1))[:, :out_channels, :]


# ----------------------------------------------------------------------------
# Parameter preparation (PyTorch layouts -> kernel layouts, bf16 weights)
# ----------------------------------------------------------------------------
def prepare_params(w1, w2, w3, wf, bf, out_channels=12):
    """w1/w2/w3: PyTorch ConvTranspose1d weights (Cin, Cout, 4);
       wf: PyTorch Conv1d weight (out_channels, 256, 3); bf: (out_channels,)."""
    def wide_ct(w):  # (Cin, Cout, 4) -> (Cin, 4*Cout): taps along the lane axis
        return jnp.concatenate([w[:, :, k] for k in range(4)], axis=1).astype(jnp.bfloat16)

    # Conv1d weight: (out, 256, 3) -> (256, 3*C_OUT_PAD): per-tap (256, 128) blocks.
    wf_t = jnp.transpose(wf, (1, 2, 0))                                    # (256, 3, out)
    wf_p = jnp.pad(wf_t, ((0, 0), (0, 0), (0, C_OUT_PAD - out_channels)))  # (256, 3, 128)
    wf_wide = wf_p.reshape(256, 3 * C_OUT_PAD).astype(jnp.bfloat16)
    bf_p = jnp.pad(bf, (0, C_OUT_PAD - out_channels)).reshape(1, C_OUT_PAD).astype(jnp.float32)

    return {"w1": wide_ct(w1), "w2": wide_ct(w2), "w3": wide_ct(w3),
            "wf": wf_wide, "bf": bf_p}


def init_params(key, out_channels=12):
    k1, k2, k3, k4, k5 = jax.random.split(key, 5)
    w1 = jax.random.normal(k1, (512, 512, 4), jnp.float32) * 0.02     # ConvTranspose1d(512, 512, 4)
    w2 = jax.random.normal(k2, (1024, 256, 4), jnp.float32) * 0.02    # ConvTranspose1d(1024, 256, 4)
    w3 = jax.random.normal(k3, (512, 128, 4), jnp.float32) * 0.02     # ConvTranspose1d(512, 128, 4)
    wf = jax.random.normal(k4, (out_channels, 256, 3), jnp.float32) * 0.02  # Conv1d(256, out, 3)
    bf = jax.random.normal(k5, (out_channels,), jnp.float32) * 0.02
    return prepare_params(w1, w2, w3, wf, bf, out_channels)


if __name__ == "__main__":
    key = jax.random.PRNGKey(0)
    kp, kd1, kd2, kd3, kd4 = jax.random.split(key, 5)

    B = 2
    L4 = 3
    L3 = 2 * L4 + 3   # 9   (ConvT k=4 s=2, output_padding=1)
    L2 = 2 * L3 + 2   # 20  (output_padding=0)
    L1 = 2 * L2 + 3   # 43  (output_padding=1)
    LF = 2 * L1 + 2   # 88  (upsample x2 + pad)

    params = init_params(kp, out_channels=12)
    # Skip-connection channel counts implied by the module:
    d1 = jax.random.normal(kd1, (B, 128, L1), jnp.float32)
    d2 = jax.random.normal(kd2, (B, 256, L2), jnp.float32)
    d3 = jax.random.normal(kd3, (B, 512, L3), jnp.float32)
    d4 = jax.random.normal(kd4, (B, 512, L4), jnp.float32)

    fwd = jax.jit(decoder_forward)   # out_channels / block_batch use static defaults
    out = jax.block_until_ready(fwd(params, d1, d2, d3, d4))

    assert out.shape == (B, 12, LF), out.shape
    assert bool(jnp.all(jnp.isfinite(out)))
    assert bool(jnp.all(jnp.abs(out) <= 1.0))  # tanh output range
    print("KERNEL_OK")
</pallas_src>

<mosaic_0001>
module attributes {stable_mosaic.version = 11 : i64} {
  func.func @_decoder_kernel(%arg0: i32, %arg1: memref<1x3x512xbf16, #tpu.memory_space<vmem>>, %arg2: memref<1x9x512xbf16, #tpu.memory_space<vmem>>, %arg3: memref<1x20x256xbf16, #tpu.memory_space<vmem>>, %arg4: memref<1x43x128xbf16, #tpu.memory_space<vmem>>, %arg5: memref<512x2048xbf16, #tpu.memory_space<vmem>>, %arg6: memref<1024x1024xbf16, #tpu.memory_space<vmem>>, %arg7: memref<512x512xbf16, #tpu.memory_space<vmem>>, %arg8: memref<256x384xbf16, #tpu.memory_space<vmem>>, %arg9: memref<4x9x3xf32, #tpu.memory_space<vmem>>, %arg10: memref<4x20x9xf32, #tpu.memory_space<vmem>>, %arg11: memref<4x43x20xf32, #tpu.memory_space<vmem>>, %arg12: memref<3x88x43xf32, #tpu.memory_space<vmem>>, %arg13: memref<1x128xf32, #tpu.memory_space<vmem>>, %arg14: memref<1x88x128xbf16, #tpu.memory_space<vmem>>) attributes {dimension_semantics = [#tpu.dimension_semantics<parallel>], iteration_bounds = array<i64: 2>, scalar_prefetch = 0 : i64, scratch_operands = 0 : i64, tpu.core_type = #tpu.core_type<tc>, window_params = [{transform_indices = @transform_0, window_bounds = array<i64: 1, 3, 512>}, {transform_indices = @transform_1, window_bounds = array<i64: 1, 9, 512>}, {transform_indices = @transform_2, window_bounds = array<i64: 1, 20, 256>}, {transform_indices = @transform_3, window_bounds = array<i64: 1, 43, 128>}, {pipeline_mode = #tpu.pipeline_mode<synchronous>, transform_indices = @transform_4, window_bounds = array<i64: 512, 2048>}, {pipeline_mode = #tpu.pipeline_mode<synchronous>, transform_indices = @transform_5, window_bounds = array<i64: 1024, 1024>}, {pipeline_mode = #tpu.pipeline_mode<synchronous>, transform_indices = @transform_6, window_bounds = array<i64: 512, 512>}, {pipeline_mode = #tpu.pipeline_mode<synchronous>, transform_indices = @transform_7, window_bounds = array<i64: 256, 384>}, {pipeline_mode = #tpu.pipeline_mode<synchronous>, transform_indices = @transform_8, window_bounds = array<i64: 4, 9, 3>}, {pipeline_mode = #tpu.pipeline_mode<synchronous>, transform_indices = @transform_9, window_bounds = array<i64: 4, 20, 9>}, {pipeline_mode = #tpu.pipeline_mode<synchronous>, transform_indices = @transform_10, window_bounds = array<i64: 4, 43, 20>}, {pipeline_mode = #tpu.pipeline_mode<synchronous>, transform_indices = @transform_11, window_bounds = array<i64: 3, 88, 43>}, {pipeline_mode = #tpu.pipeline_mode<synchronous>, transform_indices = @transform_12, window_bounds = array<i64: 1, 128>}, {transform_indices = @transform_13, window_bounds = array<i64: 1, 88, 128>}]} {
    %c0 = arith.constant 0 : index
    %c0_0 = arith.constant 0 : index
    %c0_1 = arith.constant 0 : index
    %0 = vector.load %arg1[%c0, %c0_0, %c0_1] : memref<1x3x512xbf16, #tpu.memory_space<vmem>>, vector<1x3x512xbf16>
    %1 = vector.shape_cast %0 : vector<1x3x512xbf16> to vector<3x512xbf16>
    %c0_2 = arith.constant 0 : index
    %c0_3 = arith.constant 0 : index
    %c0_4 = arith.constant 0 : index
    %2 = vector.load %arg2[%c0_2, %c0_3, %c0_4] : memref<1x9x512xbf16, #tpu.memory_space<vmem>>, vector<1x9x512xbf16>
    %3 = vector.shape_cast %2 : vector<1x9x512xbf16> to vector<9x512xbf16>
    %c0_5 = arith.constant 0 : index
    %c0_6 = arith.constant 0 : index
    %c0_7 = arith.constant 0 : index
    %4 = vector.load %arg3[%c0_5, %c0_6, %c0_7] : memref<1x20x256xbf16, #tpu.memory_space<vmem>>, vector<1x20x256xbf16>
    %5 = vector.shape_cast %4 : vector<1x20x256xbf16> to vector<20x256xbf16>
    %c0_8 = arith.constant 0 : index
    %c0_9 = arith.constant 0 : index
    %c0_10 = arith.constant 0 : index
    %6 = vector.load %arg4[%c0_8, %c0_9, %c0_10] : memref<1x43x128xbf16, #tpu.memory_space<vmem>>, vector<1x43x128xbf16>
    %7 = vector.shape_cast %6 : vector<1x43x128xbf16> to vector<43x128xbf16>
    %c0_11 = arith.constant 0 : index
    %c0_12 = arith.constant 0 : index
    %8 = vector.load %arg5[%c0_11, %c0_12] : memref<512x2048xbf16, #tpu.memory_space<vmem>>, vector<512x2048xbf16>
    %cst = arith.constant dense<0.000000e+00> : vector<3x2048xf32>
    %9 = tpu.matmul %1, %8, %cst {dimension_numbers = #tpu.dot_dimension_numbers<[1], [0], [0], [1], [0, 0, 1, 1], [], []>} : vector<3x512xbf16>, vector<512x2048xbf16>, vector<3x2048xf32> -> vector<3x2048xf32>
    %c0_13 = arith.constant 0 : index
    %c0_14 = arith.constant 0 : index
    %c0_15 = arith.constant 0 : index
    %10 = vector.load %arg9[%c0_13, %c0_14, %c0_15] : memref<4x9x3xf32, #tpu.memory_space<vmem>>, vector<4x9x3xf32>
    %11 = vector.extract_strided_slice %10 {offsets = [0, 0, 0], sizes = [1, 9, 3], strides = [1, 1, 1]} : vector<4x9x3xf32> to vector<1x9x3xf32>
    %12 = vector.shape_cast %11 : vector<1x9x3xf32> to vector<9x3xf32>
    %13 = vector.extract_strided_slice %9 {offsets = [0, 0], sizes = [3, 512], strides = [1, 1]} : vector<3x2048xf32> to vector<3x512xf32>
    %cst_16 = arith.constant dense<0.000000e+00> : vector<9x512xf32>
    %14 = tpu.matmul %12, %13, %cst_16 {dimension_numbers = #tpu.dot_dimension_numbers<[1], [0], [0], [1], [0, 0, 1, 1], [], []>} : vector<9x3xf32>, vector<3x512xf32>, vector<9x512xf32> -> vector<9x512xf32>
    %15 = vector.extract_strided_slice %10 {offsets = [1, 0, 0], sizes = [1, 9, 3], strides = [1, 1, 1]} : vector<4x9x3xf32> to vector<1x9x3xf32>
    %16 = vector.shape_cast %15 : vector<1x9x3xf32> to vector<9x3xf32>
    %17 = vector.extract_strided_slice %9 {offsets = [0, 512], sizes = [3, 512], strides = [1, 1]} : vector<3x2048xf32> to vector<3x512xf32>
    %cst_17 = arith.constant dense<0.000000e+00> : vector<9x512xf32>
    %18 = tpu.matmul %16, %17, %cst_17 {dimension_numbers = #tpu.dot_dimension_numbers<[1], [0], [0], [1], [0, 0, 1, 1], [], []>} : vector<9x3xf32>, vector<3x512xf32>, vector<9x512xf32> -> vector<9x512xf32>
    %19 = arith.addf %14, %18 : vector<9x512xf32>
    %20 = vector.extract_strided_slice %10 {offsets = [2, 0, 0], sizes = [1, 9, 3], strides = [1, 1, 1]} : vector<4x9x3xf32> to vector<1x9x3xf32>
    %21 = vector.shape_cast %20 : vector<1x9x3xf32> to vector<9x3xf32>
    %22 = vector.extract_strided_slice %9 {offsets = [0, 1024], sizes = [3, 512], strides = [1, 1]} : vector<3x2048xf32> to vector<3x512xf32>
    %cst_18 = arith.constant dense<0.000000e+00> : vector<9x512xf32>
    %23 = tpu.matmul %21, %22, %cst_18 {dimension_numbers = #tpu.dot_dimension_numbers<[1], [0], [0], [1], [0, 0, 1, 1], [], []>} : vector<9x3xf32>, vector<3x512xf32>, vector<9x512xf32> -> vector<9x512xf32>
    %24 = arith.addf %19, %23 : vector<9x512xf32>
    %25 = vector.extract_strided_slice %10 {offsets = [3, 0, 0], sizes = [1, 9, 3], strides = [1, 1, 1]} : vector<4x9x3xf32> to vector<1x9x3xf32>
    %26 = vector.shape_cast %25 : vector<1x9x3xf32> to vector<9x3xf32>
    %27 = vector.extract_strided_slice %9 {offsets = [0, 1536], sizes = [3, 512], strides = [1, 1]} : vector<3x2048xf32> to vector<3x512xf32>
    %cst_19 = arith.constant dense<0.000000e+00> : vector<9x512xf32>
    %28 = tpu.matmul %26, %27, %cst_19 {dimension_numbers = #tpu.dot_dimension_numbers<[1], [0], [0], [1], [0, 0, 1, 1], [], []>} : vector<9x3xf32>, vector<3x512xf32>, vector<9x512xf32> -> vector<9x512xf32>
    %29 = arith.addf %24, %28 : vector<9x512xf32>
    %cst_20 = arith.constant dense<0.000000e+00> : vector<512xf32>
    %30 = vector.multi_reduction <add>, %29, %cst_20 [0] : vector<9x512xf32> to vector<512xf32>
    %31 = vector.shape_cast %30 : vector<512xf32> to vector<1x512xf32>
    %cst_21 = arith.constant 9.000000e+00 : f32
    %32 = vector.broadcast %cst_21 : f32 to vector<1x512xf32>
    %33 = arith.divf %31, %32 : vector<1x512xf32>
    %34 = vector.broadcast %33 : vector<1x512xf32> to vector<9x512xf32>
    %35 = arith.subf %29, %34 : vector<9x512xf32>
    %36 = arith.mulf %35, %35 : vector<9x512xf32>
    %cst_22 = arith.constant dense<0.000000e+00> : vector<512xf32>
    %37 = vector.multi_reduction <add>, %36, %cst_22 [0] : vector<9x512xf32> to vector<512xf32>
    %38 = vector.shape_cast %37 : vector<512xf32> to vector<1x512xf32>
    %cst_23 = arith.constant 9.000000e+00 : f32
    %39 = vector.broadcast %cst_23 : f32 to vector<1x512xf32>
    %40 = arith.divf %38, %39 : vector<1x512xf32>
    %cst_24 = arith.constant 9.99999974E-6 : f32
    %41 = vector.broadcast %cst_24 : f32 to vector<1x512xf32>
    %42 = arith.addf %40, %41 : vector<1x512xf32>
    %43 = math.rsqrt %42 : vector<1x512xf32>
    %44 = vector.broadcast %43 : vector<1x512xf32> to vector<9x512xf32>
    %45 = arith.mulf %35, %44 : vector<9x512xf32>
    %cst_25 = arith.constant 0.000000e+00 : f32
    %46 = vector.broadcast %cst_25 : f32 to vector<9x512xf32>
    %47 = arith.maximumf %45, %46 : vector<9x512xf32>
    %48 = arith.truncf %47 : vector<9x512xf32> to vector<9x512xbf16>
    %49 = tpu.concatenate %48, %3 in 1 : vector<9x512xbf16>, vector<9x512xbf16> -> vector<9x1024xbf16>
    %c0_26 = arith.constant 0 : index
    %c0_27 = arith.constant 0 : index
    %50 = vector.load %arg6[%c0_26, %c0_27] : memref<1024x1024xbf16, #tpu.memory_space<vmem>>, vector<1024x1024xbf16>
    %cst_28 = arith.constant dense<0.000000e+00> : vector<9x1024xf32>
    %51 = tpu.matmul %49, %50, %cst_28 {dimension_numbers = #tpu.dot_dimension_numbers<[1], [0], [0], [1], [0, 0, 1, 1], [], []>} : vector<9x1024xbf16>, vector<1024x1024xbf16>, vector<9x1024xf32> -> vector<9x1024xf32>
    %c0_29 = arith.constant 0 : index
    %c0_30 = arith.constant 0 : index
    %c0_31 = arith.constant 0 : index
    %52 = vector.load %arg10[%c0_29, %c0_30, %c0_31] : memref<4x20x9xf32, #tpu.memory_space<vmem>>, vector<4x20x9xf32>
    %53 = vector.extract_strided_slice %52 {offsets = [0, 0, 0], sizes = [1, 20, 9], strides = [1, 1, 1]} : vector<4x20x9xf32> to vector<1x20x9xf32>
    %54 = vector.shape_cast %53 : vector<1x20x9xf32> to vector<20x9xf32>
    %55 = vector.extract_strided_slice %51 {offsets = [0, 0], sizes = [9, 256], strides = [1, 1]} : vector<9x1024xf32> to vector<9x256xf32>
    %cst_32 = arith.constant dense<0.000000e+00> : vector<20x256xf32>
    %56 = tpu.matmul %54, %55, %cst_32 {dimension_numbers = #tpu.dot_dimension_numbers<[1], [0], [0], [1], [0, 0, 1, 1], [], []>} : vector<20x9xf32>, vector<9x256xf32>, vector<20x256xf32> -> vector<20x256xf32>
    %57 = vector.extract_strided_slice %52 {offsets = [1, 0, 0], sizes = [1, 20, 9], strides = [1, 1, 1]} : vector<4x20x9xf32> to vector<1x20x9xf32>
    %58 = vector.shape_cast %57 : vector<1x20x9xf32> to vector<20x9xf32>
    %59 = vector.extract_strided_slice %51 {offsets = [0, 256], sizes = [9, 256], strides = [1, 1]} : vector<9x1024xf32> to vector<9x256xf32>
    %cst_33 = arith.constant dense<0.000000e+00> : vector<20x256xf32>
    %60 = tpu.matmul %58, %59, %cst_33 {dimension_numbers = #tpu.dot_dimension_numbers<[1], [0], [0], [1], [0, 0, 1, 1], [], []>} : vector<20x9xf32>, vector<9x256xf32>, vector<20x256xf32> -> vector<20x256xf32>
    %61 = arith.addf %56, %60 : vector<20x256xf32>
    %62 = vector.extract_strided_slice %52 {offsets = [2, 0, 0], sizes = [1, 20, 9], strides = [1, 1, 1]} : vector<4x20x9xf32> to vector<1x20x9xf32>
    %63 = vector.shape_cast %62 : vector<1x20x9xf32> to vector<20x9xf32>
    %64 = vector.extract_strided_slice %51 {offsets = [0, 512], sizes = [9, 256], strides = [1, 1]} : vector<9x1024xf32> to vector<9x256xf32>
    %cst_34 = arith.constant dense<0.000000e+00> : vector<20x256xf32>
    %65 = tpu.matmul %63, %64, %cst_34 {dimension_numbers = #tpu.dot_dimension_numbers<[1], [0], [0], [1], [0, 0, 1, 1], [], []>} : vector<20x9xf32>, vector<9x256xf32>, vector<20x256xf32> -> vector<20x256xf32>
    %66 = arith.addf %61, %65 : vector<20x256xf32>
    %67 = vector.extract_strided_slice %52 {offsets = [3, 0, 0], sizes = [1, 20, 9], strides = [1, 1, 1]} : vector<4x20x9xf32> to vector<1x20x9xf32>
    %68 = vector.shape_cast %67 : vector<1x20x9xf32> to vector<20x9xf32>
    %69 = vector.extract_strided_slice %51 {offsets = [0, 768], sizes = [9, 256], strides = [1, 1]} : vector<9x1024xf32> to vector<9x256xf32>
    %cst_35 = arith.constant dense<0.000000e+00> : vector<20x256xf32>
    %70 = tpu.matmul %68, %69, %cst_35 {dimension_numbers = #tpu.dot_dimension_numbers<[1], [0], [0], [1], [0, 0, 1, 1], [], []>} : vector<20x9xf32>, vector<9x256xf32>, vector<20x256xf32> -> vector<20x256xf32>
    %71 = arith.addf %66, %70 : vector<20x256xf32>
    %cst_36 = arith.constant dense<0.000000e+00> : vector<256xf32>
    %72 = vector.multi_reduction <add>, %71, %cst_36 [0] : vector<20x256xf32> to vector<256xf32>
    %73 = vector.shape_cast %72 : vector<256xf32> to vector<1x256xf32>
    %cst_37 = arith.constant 2.000000e+01 : f32
    %74 = vector.broadcast %cst_37 : f32 to vector<1x256xf32>
    %75 = arith.divf %73, %74 : vector<1x256xf32>
    %76 = vector.broadcast %75 : vector<1x256xf32> to vector<20x256xf32>
    %77 = arith.subf %71, %76 : vector<20x256xf32>
    %78 = arith.mulf %77, %77 : vector<20x256xf32>
    %cst_38 = arith.constant dense<0.000000e+00> : vector<256xf32>
    %79 = vector.multi_reduction <add>, %78, %cst_38 [0] : vector<20x256xf32> to vector<256xf32>
    %80 = vector.shape_cast %79 : vector<256xf32> to vector<1x256xf32>
    %cst_39 = arith.constant 2.000000e+01 : f32
    %81 = vector.broadcast %cst_39 : f32 to vector<1x256xf32>
    %82 = arith.divf %80, %81 : vector<1x256xf32>
    %cst_40 = arith.constant 9.99999974E-6 : f32
    %83 = vector.broadcast %cst_40 : f32 to vector<1x256xf32>
    %84 = arith.addf %82, %83 : vector<1x256xf32>
    %85 = math.rsqrt %84 : vector<1x256xf32>
    %86 = vector.broadcast %85 : vector<1x256xf32> to vector<20x256xf32>
    %87 = arith.mulf %77, %86 : vector<20x256xf32>
    %cst_41 = arith.constant 0.000000e+00 : f32
    %88 = vector.broadcast %cst_41 : f32 to vector<20x256xf32>
    %89 = arith.maximumf %87, %88 : vector<20x256xf32>
    %90 = arith.truncf %89 : vector<20x256xf32> to vector<20x256xbf16>
    %91 = tpu.concatenate %90, %5 in 1 : vector<20x256xbf16>, vector<20x256xbf16> -> vector<20x512xbf16>
    %c0_42 = arith.constant 0 : index
    %c0_43 = arith.constant 0 : index
    %92 = vector.load %arg7[%c0_42, %c0_43] : memref<512x512xbf16, #tpu.memory_space<vmem>>, vector<512x512xbf16>
    %cst_44 = arith.constant dense<0.000000e+00> : vector<20x512xf32>
    %93 = tpu.matmul %91, %92, %cst_44 {dimension_numbers = #tpu.dot_dimension_numbers<[1], [0], [0], [1], [0, 0, 1, 1], [], []>} : vector<20x512xbf16>, vector<512x512xbf16>, vector<20x512xf32> -> vector<20x512xf32>
    %c0_45 = arith.constant 0 : index
    %c0_46 = arith.constant 0 : index
    %c0_47 = arith.constant 0 : index
    %94 = vector.load %arg11[%c0_45, %c0_46, %c0_47] : memref<4x43x20xf32, #tpu.memory_space<vmem>>, vector<4x43x20xf32>
    %95 = vector.extract_strided_slice %94 {offsets = [0, 0, 0], sizes = [1, 43, 20], strides = [1, 1, 1]} : vector<4x43x20xf32> to vector<1x43x20xf32>
    %96 = vector.shape_cast %95 : vector<1x43x20xf32> to vector<43x20xf32>
    %97 = vector.extract_strided_slice %93 {offsets = [0, 0], sizes = [20, 128], strides = [1, 1]} : vector<20x512xf32> to vector<20x128xf32>
    %cst_48 = arith.constant dense<0.000000e+00> : vector<43x128xf32>
    %98 = tpu.matmul %96, %97, %cst_48 {dimension_numbers = #tpu.dot_dimension_numbers<[1], [0], [0], [1], [0, 0, 1, 1], [], []>} : vector<43x20xf32>, vector<20x128xf32>, vector<43x128xf32> -> vector<43x128xf32>
    %99 = vector.extract_strided_slice %94 {offsets = [1, 0, 0], sizes = [1, 43, 20], strides = [1, 1, 1]} : vector<4x43x20xf32> to vector<1x43x20xf32>
    %100 = vector.shape_cast %99 : vector<1x43x20xf32> to vector<43x20xf32>
    %101 = vector.extract_strided_slice %93 {offsets = [0, 128], sizes = [20, 128], strides = [1, 1]} : vector<20x512xf32> to vector<20x128xf32>
    %cst_49 = arith.constant dense<0.000000e+00> : vector<43x128xf32>
    %102 = tpu.matmul %100, %101, %cst_49 {dimension_numbers = #tpu.dot_dimension_numbers<[1], [0], [0], [1], [0, 0, 1, 1], [], []>} : vector<43x20xf32>, vector<20x128xf32>, vector<43x128xf32> -> vector<43x128xf32>
    %103 = arith.addf %98, %102 : vector<43x128xf32>
    %104 = vector.extract_strided_slice %94 {offsets = [2, 0, 0], sizes = [1, 43, 20], strides = [1, 1, 1]} : vector<4x43x20xf32> to vector<1x43x20xf32>
    %105 = vector.shape_cast %104 : vector<1x43x20xf32> to vector<43x20xf32>
    %106 = vector.extract_strided_slice %93 {offsets = [0, 256], sizes = [20, 128], strides = [1, 1]} : vector<20x512xf32> to vector<20x128xf32>
    %cst_50 = arith.constant dense<0.000000e+00> : vector<43x128xf32>
    %107 = tpu.matmul %105, %106, %cst_50 {dimension_numbers = #tpu.dot_dimension_numbers<[1], [0], [0], [1], [0, 0, 1, 1], [], []>} : vector<43x20xf32>, vector<20x128xf32>, vector<43x128xf32> -> vector<43x128xf32>
    %108 = arith.addf %103, %107 : vector<43x128xf32>
    %109 = vector.extract_strided_slice %94 {offsets = [3, 0, 0], sizes = [1, 43, 20], strides = [1, 1, 1]} : vector<4x43x20xf32> to vector<1x43x20xf32>
    %110 = vector.shape_cast %109 : vector<1x43x20xf32> to vector<43x20xf32>
    %111 = vector.extract_strided_slice %93 {offsets = [0, 384], sizes = [20, 128], strides = [1, 1]} : vector<20x512xf32> to vector<20x128xf32>
    %cst_51 = arith.constant dense<0.000000e+00> : vector<43x128xf32>
    %112 = tpu.matmul %110, %111, %cst_51 {dimension_numbers = #tpu.dot_dimension_numbers<[1], [0], [0], [1], [0, 0, 1, 1], [], []>} : vector<43x20xf32>, vector<20x128xf32>, vector<43x128xf32> -> vector<43x128xf32>
    %113 = arith.addf %108, %112 : vector<43x128xf32>
    %cst_52 = arith.constant dense<0.000000e+00> : vector<128xf32>
    %114 = vector.multi_reduction <add>, %113, %cst_52 [0] : vector<43x128xf32> to vector<128xf32>
    %115 = vector.shape_cast %114 : vector<128xf32> to vector<1x128xf32>
    %cst_53 = arith.constant 4.300000e+01 : f32
    %116 = vector.broadcast %cst_53 : f32 to vector<1x128xf32>
    %117 = arith.divf %115, %116 : vector<1x128xf32>
    %118 = vector.broadcast %117 : vector<1x128xf32> to vector<43x128xf32>
    %119 = arith.subf %113, %118 : vector<43x128xf32>
    %120 = arith.mulf %119, %119 : vector<43x128xf32>
    %cst_54 = arith.constant dense<0.000000e+00> : vector<128xf32>
    %121 = vector.multi_reduction <add>, %120, %cst_54 [0] : vector<43x128xf32> to vector<128xf32>
    %122 = vector.shape_cast %121 : vector<128xf32> to vector<1x128xf32>
    %cst_55 = arith.constant 4.300000e+01 : f32
    %123 = vector.broadcast %cst_55 : f32 to vector<1x128xf32>
    %124 = arith.divf %122, %123 : vector<1x128xf32>
    %cst_56 = arith.constant 9.99999974E-6 : f32
    %125 = vector.broadcast %cst_56 : f32 to vector<1x128xf32>
    %126 = arith.addf %124, %125 : vector<1x128xf32>
    %127 = math.rsqrt %126 : vector<1x128xf32>
    %128 = vector.broadcast %127 : vector<1x128xf32> to vector<43x128xf32>
    %129 = arith.mulf %119, %128 : vector<43x128xf32>
    %cst_57 = arith.constant 0.000000e+00 : f32
    %130 = vector.broadcast %cst_57 : f32 to vector<43x128xf32>
    %131 = arith.maximumf %129, %130 : vector<43x128xf32>
    %132 = arith.truncf %131 : vector<43x128xf32> to vector<43x128xbf16>
    %133 = tpu.concatenate %132, %7 in 1 : vector<43x128xbf16>, vector<43x128xbf16> -> vector<43x256xbf16>
    %c0_58 = arith.constant 0 : index
    %c0_59 = arith.constant 0 : index
    %134 = vector.load %arg8[%c0_58, %c0_59] : memref<256x384xbf16, #tpu.memory_space<vmem>>, vector<256x384xbf16>
    %cst_60 = arith.constant dense<0.000000e+00> : vector<43x384xf32>
    %135 = tpu.matmul %133, %134, %cst_60 {dimension_numbers = #tpu.dot_dimension_numbers<[1], [0], [0], [1], [0, 0, 1, 1], [], []>} : vector<43x256xbf16>, vector<256x384xbf16>, vector<43x384xf32> -> vector<43x384xf32>
    %c0_61 = arith.constant 0 : index
    %c0_62 = arith.constant 0 : index
    %c0_63 = arith.constant 0 : index
    %136 = vector.load %arg12[%c0_61, %c0_62, %c0_63] : memref<3x88x43xf32, #tpu.memory_space<vmem>>, vector<3x88x43xf32>
    %c0_64 = arith.constant 0 : index
    %c0_65 = arith.constant 0 : index
    %137 = vector.load %arg13[%c0_64, %c0_65] : memref<1x128xf32, #tpu.memory_space<vmem>>, vector<1x128xf32>
    %138 = vector.extract_strided_slice %136 {offsets = [0, 0, 0], sizes = [1, 88, 43], strides = [1, 1, 1]} : vector<3x88x43xf32> to vector<1x88x43xf32>
    %139 = vector.shape_cast %138 : vector<1x88x43xf32> to vector<88x43xf32>
    %140 = vector.extract_strided_slice %135 {offsets = [0, 0], sizes = [43, 128], strides = [1, 1]} : vector<43x384xf32> to vector<43x128xf32>
    %cst_66 = arith.constant dense<0.000000e+00> : vector<88x128xf32>
    %141 = tpu.matmul %139, %140, %cst_66 {dimension_numbers = #tpu.dot_dimension_numbers<[1], [0], [0], [1], [0, 0, 1, 1], [], []>} : vector<88x43xf32>, vector<43x128xf32>, vector<88x128xf32> -> vector<88x128xf32>
    %142 = vector.broadcast %137 : vector<1x128xf32> to vector<88x128xf32>
    %143 = arith.addf %142, %141 : vector<88x128xf32>
    %144 = vector.extract_strided_slice %136 {offsets = [1, 0, 0], sizes = [1, 88, 43], strides = [1, 1, 1]} : vector<3x88x43xf32> to vector<1x88x43xf32>
    %145 = vector.shape_cast %144 : vector<1x88x43xf32> to vector<88x43xf32>
    %146 = vector.extract_strided_slice %135 {offsets = [0, 128], sizes = [43, 128], strides = [1, 1]} : vector<43x384xf32> to vector<43x128xf32>
    %cst_67 = arith.constant dense<0.000000e+00> : vector<88x128xf32>
    %147 = tpu.matmul %145, %146, %cst_67 {dimension_numbers = #tpu.dot_dimension_numbers<[1], [0], [0], [1], [0, 0, 1, 1], [], []>} : vector<88x43xf32>, vector<43x128xf32>, vector<88x128xf32> -> vector<88x128xf32>
    %148 = arith.addf %143, %147 : vector<88x128xf32>
    %149 = vector.extract_strided_slice %136 {offsets = [2, 0, 0], sizes = [1, 88, 43], strides = [1, 1, 1]} : vector<3x88x43xf32> to vector<1x88x43xf32>
    %150 = vector.shape_cast %149 : vector<1x88x43xf32> to vector<88x43xf32>
    %151 = vector.extract_strided_slice %135 {offsets = [0, 256], sizes = [43, 128], strides = [1, 1]} : vector<43x384xf32> to vector<43x128xf32>
    %cst_68 = arith.constant dense<0.000000e+00> : vector<88x128xf32>
    %152 = tpu.matmul %150, %151, %cst_68 {dimension_numbers = #tpu.dot_dimension_numbers<[1], [0], [0], [1], [0, 0, 1, 1], [], []>} : vector<88x43xf32>, vector<43x128xf32>, vector<88x128xf32> -> vector<88x128xf32>
    %153 = arith.addf %148, %152 : vector<88x128xf32>
    %154 = math.tanh %153 : vector<88x128xf32>
    %155 = arith.truncf %154 : vector<88x128xf32> to vector<88x128xbf16>
    %c0_69 = arith.constant 0 : index
    %c0_70 = arith.constant 0 : index
    %c0_71 = arith.constant 0 : index
    %156 = vector.load %arg14[%c0_69, %c0_70, %c0_71] : memref<1x88x128xbf16, #tpu.memory_space<vmem>>, vector<1x88x128xbf16>
    %157 = vector.shape_cast %156 : vector<1x88x128xbf16> to vector<88x128xbf16>
    %158 = vector.shape_cast %155 : vector<88x128xbf16> to vector<1x88x128xbf16>
    tpu.vector_store %arg14[%c0_69, %c0_70, %c0_71], %158 {strides = array<i32>} : memref<1x88x128xbf16, #tpu.memory_space<vmem>>, vector<1x88x128xbf16>,
    return
  }
  func.func @transform_0(%arg0: i32) -> (i32, i32, i32) {
    %c0_i32 = arith.constant 0 : i32
    %c0_i32_0 = arith.constant 0 : i32
    %c0_i32_1 = arith.constant 0 : i32
    return %arg0, %c0_i32, %c0_i32_0 : i32, i32, i32
  }
  func.func @transform_1(%arg0: i32) -> (i32, i32, i32) {
    %c0_i32 = arith.constant 0 : i32
    %c0_i32_0 = arith.constant 0 : i32
    %c0_i32_1 = arith.constant 0 : i32
    return %arg0, %c0_i32, %c0_i32_0 : i32, i32, i32
  }
  func.func @transform_2(%arg0: i32) -> (i32, i32, i32) {
    %c0_i32 = arith.constant 0 : i32
    %c0_i32_0 = arith.constant 0 : i32
    %c0_i32_1 = arith.constant 0 : i32
    return %arg0, %c0_i32, %c0_i32_0 : i32, i32, i32
  }
  func.func @transform_3(%arg0: i32) -> (i32, i32, i32) {
    %c0_i32 = arith.constant 0 : i32
    %c0_i32_0 = arith.constant 0 : i32
    %c0_i32_1 = arith.constant 0 : i32
    return %arg0, %c0_i32, %c0_i32_0 : i32, i32, i32
  }
  func.func @transform_4(%arg0: i32) -> (i32, i32) {
    %c0_i32 = arith.constant 0 : i32
    %c0_i32_0 = arith.constant 0 : i32
    %c0_i32_1 = arith.constant 0 : i32
    return %c0_i32, %c0_i32_0 : i32, i32
  }
  func.func @transform_5(%arg0: i32) -> (i32, i32) {
    %c0_i32 = arith.constant 0 : i32
    %c0_i32_0 = arith.constant 0 : i32
    %c0_i32_1 = arith.constant 0 : i32
    return %c0_i32, %c0_i32_0 : i32, i32
  }
  func.func @transform_6(%arg0: i32) -> (i32, i32) {
    %c0_i32 = arith.constant 0 : i32
    %c0_i32_0 = arith.constant 0 : i32
    %c0_i32_1 = arith.constant 0 : i32
    return %c0_i32, %c0_i32_0 : i32, i32
  }
  func.func @transform_7(%arg0: i32) -> (i32, i32) {
    %c0_i32 = arith.constant 0 : i32
    %c0_i32_0 = arith.constant 0 : i32
    %c0_i32_1 = arith.constant 0 : i32
    return %c0_i32, %c0_i32_0 : i32, i32
  }
  func.func @transform_8(%arg0: i32) -> (i32, i32, i32) {
    %c0_i32 = arith.constant 0 : i32
    %c0_i32_0 = arith.constant 0 : i32
    %c0_i32_1 = arith.constant 0 : i32
    %c0_i32_2 = arith.constant 0 : i32
    return %c0_i32, %c0_i32_0, %c0_i32_1 : i32, i32, i32
  }
  func.func @transform_9(%arg0: i32) -> (i32, i32, i32) {
    %c0_i32 = arith.constant 0 : i32
    %c0_i32_0 = arith.constant 0 : i32
    %c0_i32_1 = arith.constant 0 : i32
    %c0_i32_2 = arith.constant 0 : i32
    return %c0_i32, %c0_i32_0, %c0_i32_1 : i32, i32, i32
  }
  func.func @transform_10(%arg0: i32) -> (i32, i32, i32) {
    %c0_i32 = arith.constant 0 : i32
    %c0_i32_0 = arith.constant 0 : i32
    %c0_i32_1 = arith.constant 0 : i32
    %c0_i32_2 = arith.constant 0 : i32
    return %c0_i32, %c0_i32_0, %c0_i32_1 : i32, i32, i32
  }
  func.func @transform_11(%arg0: i32) -> (i32, i32, i32) {
    %c0_i32 = arith.constant 0 : i32
    %c0_i32_0 = arith.constant 0 : i32
    %c0_i32_1 = arith.constant 0 : i32
    %c0_i32_2 = arith.constant 0 : i32
    return %c0_i32, %c0_i32_0, %c0_i32_1 : i32, i32, i32
  }
  func.func @transform_12(%arg0: i32) -> (i32, i32) {
    %c0_i32 = arith.constant 0 : i32
    %c0_i32_0 = arith.constant 0 : i32
    %c0_i32_1 = arith.constant 0 : i32
    return %c0_i32, %c0_i32_0 : i32, i32
  }
  func.func @transform_13(%arg0: i32) -> (i32, i32, i32) {
    %c0_i32 = arith.constant 0 : i32
    %c0_i32_0 = arith.constant 0 : i32
    %c0_i32_1 = arith.constant 0 : i32
    return %arg0, %c0_i32, %c0_i32_0 : i32, i32, i32
  }
}

</mosaic_0001>

<bundles_post_ra>
// kernel: decoder_forward.1
= control target key start
LH: loop header
LB: loop body
LE: loop exit
PB: predicated region body
PF: predicated region fallthrough
CT: control target
= control target key end

     0   :  { %s15909_s0 = inlined_call_operand.vmem [shape: bf16[2,3,512], index: 0, kind: input, shape index: {}]   ;;  %s15910_s1 = inlined_call_operand.vmem [shape: bf16[2,9,512], index: 1, kind: input, shape index: {}]   ;;  %s15911_s2 = inlined_call_operand.vmem [shape: bf16[2,20,256], index: 2, kind: input, shape index: {}]   ;;  %s15912_s3 = inlined_call_operand.vmem [shape: bf16[2,43,128], index: 3, kind: input, shape index: {}]   ;;  %s15913_s4 = inlined_call_operand.hbm [shape: bf16[512,2048], index: 4, kind: input, shape index: {}]   ;;  %s15914_s5 = inlined_call_operand.hbm [shape: bf16[1024,1024], index: 5, kind: input, shape index: {}]   ;;  %s15915_s6 = inlined_call_operand.hbm [shape: bf16[512,512], index: 6, kind: input, shape index: {}]   ;;  %s15916_s7 = inlined_call_operand.hbm [shape: bf16[256,384], index: 7, kind: input, shape index: {}]   ;;  %s15917_s8 = inlined_call_operand.hbm [shape: f32[4,9,3], index: 8, kind: input, shape index: {}]   ;;  %s15918_s9 = inlined_call_operand.hbm [shape: f32[4,20,9], index: 9, kind: input, shape index: {}]   ;;  %s15919_s10 = inlined_call_operand.hbm [shape: f32[4,43,20], index: 10, kind: input, shape index: {}]   ;;  %s15920_s11 = inlined_call_operand.hbm [shape: f32[3,88,43], index: 11, kind: input, shape index: {}]   ;;  %s15921_s12 = inlined_call_operand.hbm [shape: f32[1,128], index: 12, kind: input, shape index: {}]   ;;  %s15922_s13 = inlined_call_operand.vmem [shape: bf16[2,88,128], index: 13, kind: output, shape index: {}]  }
   0x1   :  { %15930 = sst [smem:[#allocation22_spill]] %s15912_s3 }
   0x2   :  { %15931 = sst [smem:[#allocation23_spill]] %s15914_s5 }
   0x3   :  { %15932 = sst [smem:[#allocation24_spill]] %s15922_s13 }
   0x4   :  { %18 = vsyncpa [#allocation3], 0 }
   0x5   :  { %19 = vsyncpa [#allocation5], 0 }
   0x6   :  { %20 = vsyncpa [#allocation8], 0 }
   0x7   :  { %21 = vsyncpa [#allocation11], 0 }
   0x8   :  { %22 = vsyncpa [#allocation14], 0  ;;  %s15099_s25 = smov 0  }
   0x9 LB: > { %15933 = sst [smem:[#allocation21_spill]] %s15003_s25  ;;  %s15005_s26 = smov [#allocation4]   ;;  %s15003_s25 = sphi %s15099_s25, %s28_s25  }
   0xa   : > { %s377_s27 = sshll.u32 %s15005_s26, 4  ;;  %s15105_s28 = sadd.s32 4294967295, %s15003_s25   ;;  %s15110_s27 = int_to_ptr.vmem [resolvable:$true] %s377_s27 }
   0xb   : > { %p12292_p0 = scmp.ge.s32.totalorder %s15003_s25, 1  ;;  %p352_p1 = scmp.lt.s32.totalorder %s15003_s25, 3 }
   0xc   : > { %p15924_p2 = scmp.eq.s32.totalorder %s15105_s28, 0  ;;  %s15006_s30 = smov [#allocation7]  }
   0xd   : > { %p15112_p3 = pnand %p12292_p0, %p352_p1  ;;  %s403_s14 = sshll.u32 %s15006_s30, 4  ;;  %s15118_s14 = int_to_ptr.vmem [resolvable:$true] %s403_s14 }
   0xe   : > { %s15936_s5 = sld [smem:[#allocation23_spill]] }
   0xf   : > { %s15934_s29 = scalar_select %p15112_p3, 1, 0 }
  0x10   : > { %p14336_p4 = pneg %p15112_p3 }
  0x12   : > { %p15122_p5 = pnand %p15924_p2, %p14336_p4 }
  0x14   : > { %s14725_s18 = scalar_lea.hbm %s15936_s5, 65536  ;;  %p15134_p7 = pneg %p15122_p5 }
  0x15   : > { %p14726_p6 = scmp.ne.s32.totalorder %s15936_s5, %s14725_s18  ;;  %p14732_p10 = scmp.lt.u32.totalorder %s14725_s18, %s15936_s5 }
  0x17   : > { %p14728_p8 = pnand %p15134_p7, %p14726_p6 }
  0x19   : > { %p14729_p9 = pneg %p14728_p8 }
  0x1b   : > { %p14734_p11 = pnand %p14732_p10, %p14729_p9 }
  0x1d   : > { %14737 = shalt.err (!%p14734_p11)
}
  0x1e   : > { %s14738_s24 = scalar_lea.vmem %s15110_s27, 65536  ;;  %p14746_p1 = scmp.lt.s32.totalorder %s15110_s27, %s15110_s27 }
  0x1f   : > { %p14739_p12 = scmp.ne.s32.totalorder %s15110_s27, %s14738_s24  ;;  %p14747_p4 = scmp.lt.s32.totalorder %s14738_s24, %s14738_s24 }
  0x21   : > { %p14741_p13 = pnand %p14739_p12, %p15134_p7  ;;  %p14748_p6 = por %p14747_p4, %p14746_p1 }
  0x23   : > { %p14742_p0 = pneg %p14741_p13 }
  0x25   : > { %p14749_p8 = pnand %p14748_p6, %p14742_p0 }
  0x27   : > { %14752 = shalt.err (!%p14749_p8)
}
  0x28   : > { %s15007_s26 = smov 512   ;;  %s15008_s30 = smov 32  }
  0x29   : > { %14342 = dma.hbm_to_vmem [thread:$0]  (!%p15122_p5), %s15936_s5, 65536, %s15110_s27, [#allocation5], %s15007_s26, %s15007_s26, %s15008_s30  }
  0x2a   : > { %s14753_s20 = scalar_lea.hbm %s15916_s7, 6144 }
  0x2b   : > { %p14754_p9 = scmp.ne.s32.totalorder %s15916_s7, %s14753_s20  ;;  %p14760_p12 = scmp.lt.u32.totalorder %s14753_s20, %s15916_s7 }
  0x2d   : > { %p14756_p10 = pnand %p14754_p9, %p15134_p7 }
  0x2f   : > { %p14757_p11 = pneg %p14756_p10 }
  0x31   : > { %p14762_p13 = pnand %p14760_p12, %p14757_p11 }
  0x33   : > { %14765 = shalt.err (!%p14762_p13)
}
  0x34   : > { %s14766_s27 = scalar_lea.vmem %s15118_s14, 6144  ;;  %p14774_p6 = scmp.lt.s32.totalorder %s15118_s14, %s15118_s14 }
  0x35   : > { %p14767_p0 = scmp.ne.s32.totalorder %s15118_s14, %s14766_s27  ;;  %p14775_p8 = scmp.lt.s32.totalorder %s14766_s27, %s14766_s27 }
  0x37   : > { %p14769_p1 = pnand %p14767_p0, %p15134_p7  ;;  %p14776_p9 = por %p14775_p8, %p14774_p6 }
  0x39   : > { %p14770_p4 = pneg %p14769_p1 }
  0x3b   : > { %p14777_p10 = pnand %p14776_p9, %p14770_p4 }
  0x3d   : > { %14780 = shalt.err (!%p14777_p10)
}
  0x3e   : > { %s15009_s26 = smov 192   ;;  %s15010_s25 = smov 12  }
  0x3f   : > { %14348 = dma.hbm_to_vmem [thread:$0]  (!%p15122_p5), %s15916_s7, 6144, %s15118_s14, [#allocation8], %s15009_s26, %s15009_s26, %s15010_s25  }
  0x40   : > { %s15011_s17 = smov [#allocation10]   ;;  %s15012_s19 = smov [#allocation13]  }
  0x41   : > { %s429_s18 = sshll.u32 %s15011_s17, 4  ;;  %s455_s20 = sshll.u32 %s15012_s19, 4  ;;  %s430_s18 = int_to_ptr.vmem [resolvable:$true] %s429_s18  ;;  %s456_s20 = int_to_ptr.vmem [resolvable:$true] %s455_s20 }
  0x42   : > { %s14781_s24 = scalar_lea.hbm %s15918_s9, 1536 }
  0x43   : > { %p14782_p11 = scmp.ne.s32.totalorder %s15918_s9, %s14781_s24  ;;  %p14788_p0 = scmp.lt.u32.totalorder %s14781_s24, %s15918_s9 }
  0x45   : > { %p14784_p12 = pnand %p14782_p11, %p15134_p7 }
  0x47   : > { %p14785_p13 = pneg %p14784_p12 }
  0x49   : > { %p14790_p1 = pnand %p14788_p0, %p14785_p13 }
  0x4b   : > { %14793 = shalt.err (!%p14790_p1)
}
  0x4c   : > { %s14794_s14 = scalar_lea.vmem %s430_s18, 1536  ;;  %p14802_p9 = scmp.lt.s32.totalorder %s430_s18, %s430_s18 }
  0x4d   : > { %p14795_p4 = scmp.ne.s32.totalorder %s430_s18, %s14794_s14  ;;  %p14803_p10 = scmp.lt.s32.totalorder %s14794_s14, %s14794_s14 }
  0x4f   : > { %p14797_p6 = pnand %p14795_p4, %p15134_p7  ;;  %p14804_p2 = por %p14803_p10, %p14802_p9 }
  0x51   : > { %p14798_p8 = pneg %p14797_p6 }
  0x53   : > { %p14805_p3 = pnand %p14804_p2, %p14798_p8 }
  0x55   : > { %14808 = shalt.err (!%p14805_p3)
}
  0x56   : > { %s15926_s5 = smov 128   ;;  %s15928_s26 = smov 8  }
  0x57   : > { %14354 = dma.hbm_to_vmem [thread:$0]  (!%p15122_p5), %s15918_s9, 1536, %s430_s18, [#allocation11], %s15926_s5, %s15926_s5, %s15928_s26  }
  0x58   : > { %s14809_s16 = scalar_lea.hbm %s15920_s11, 4224 }
  0x59   : > { %p14810_p2 = scmp.ne.s32.totalorder %s15920_s11, %s14809_s16  ;;  %p14816_p12 = scmp.lt.u32.totalorder %s14809_s16, %s15920_s11 }
  0x5b   : > { %p14812_p3 = pnand %p14810_p2, %p15134_p7 }
  0x5d   : > { %p14813_p11 = pneg %p14812_p3 }
  0x5f   : > { %p14818_p13 = pnand %p14816_p12, %p14813_p11 }
  0x61   : > { %14821 = shalt.err (!%p14818_p13)
}
  0x62   : > { %s14822_s24 = scalar_lea.vmem %s456_s20, 4224  ;;  %p14830_p6 = scmp.lt.s32.totalorder %s456_s20, %s456_s20 }
  0x63   : > { %p14823_p0 = scmp.ne.s32.totalorder %s456_s20, %s14822_s24  ;;  %p14831_p8 = scmp.lt.s32.totalorder %s14822_s24, %s14822_s24 }
  0x65   : > { %p14825_p1 = pnand %p14823_p0, %p15134_p7  ;;  %p14832_p9 = por %p14831_p8, %p14830_p6 }
  0x67   : > { %p14826_p4 = pneg %p14825_p1 }
  0x69   : > { %p14833_p10 = pnand %p14832_p9, %p14826_p4 }
  0x6b   : > { %14836 = shalt.err (!%p14833_p10)
}
  0x6c   : > { %14360 = dma.hbm_to_vmem [thread:$0]  (!%p15122_p5), %s15920_s11, 4224, %s456_s20, [#allocation14], %s15926_s5, %s15926_s5, %s15928_s26  }
  0x6d   : > { %s15015_s14 = smov [#allocation2]   ;;  %s14837_s30 = scalar_lea.hbm %s15913_s4, 65536 }
  0x6e   : > { %s364_s3 = sshll.u32 %s15015_s14, 4  ;;  %p14838_p2 = scmp.ne.s32.totalorder %s15913_s4, %s14837_s30  ;;  %s365_s3 = int_to_ptr.vmem [resolvable:$true] %s364_s3 }
  0x6f   : > { %p14844_p12 = scmp.lt.u32.totalorder %s14837_s30, %s15913_s4 }
  0x70   : > { %p14840_p3 = pnand %p14838_p2, %p15134_p7 }
  0x72   : > { %p14841_p11 = pneg %p14840_p3 }
  0x74   : > { %p14846_p13 = pnand %p14844_p12, %p14841_p11 }
  0x76   : > { %14849 = shalt.err (!%p14846_p13)
}
  0x77   : > { %s14850_s20 = scalar_lea.vmem %s365_s3, 65536  ;;  %p14858_p6 = scmp.lt.s32.totalorder %s365_s3, %s365_s3 }
  0x78   : > { %p14851_p0 = scmp.ne.s32.totalorder %s365_s3, %s14850_s20  ;;  %p14859_p8 = scmp.lt.s32.totalorder %s14850_s20, %s14850_s20 }
  0x7a   : > { %p14853_p1 = pnand %p14851_p0, %p15134_p7  ;;  %p14860_p9 = por %p14859_p8, %p14858_p6 }
  0x7c   : > { %p14854_p4 = pneg %p14853_p1 }
  0x7e   : > { %p14861_p10 = pnand %p14860_p9, %p14854_p4 }
  0x80   : > { %14864 = shalt.err (!%p14861_p10)
}
  0x81   : > { %s15016_s23 = smov 1024   ;;  %s15017_s24 = smov 64  }
  0x82   : > { %14339 = dma.hbm_to_vmem [thread:$0]  (!%p15122_p5), %s15913_s4, 65536, %s365_s3, [#allocation3], %s15016_s23, %s15016_s23, %s15017_s24  }
  0x83   : > { %s15018_s14 = smov [#allocation6]   ;;  %s14865_s16 = scalar_lea.hbm %s15915_s6, 16384 }
  0x84   : > { %s390_s13 = sshll.u32 %s15018_s14, 4  ;;  %p14866_p2 = scmp.ne.s32.totalorder %s15915_s6, %s14865_s16  ;;  %s391_s13 = int_to_ptr.vmem [resolvable:$true] %s390_s13 }
  0x85   : > { %p14872_p12 = scmp.lt.u32.totalorder %s14865_s16, %s15915_s6 }
  0x86   : > { %p14868_p3 = pnand %p14866_p2, %p15134_p7 }
  0x88   : > { %p14869_p11 = pneg %p14868_p3 }
  0x8a   : > { %p14874_p13 = pnand %p14872_p12, %p14869_p11 }
  0x8c   : > { %14877 = shalt.err (!%p14874_p13)
}
  0x8d   : > { %s14878_s3 = scalar_lea.vmem %s391_s13, 16384  ;;  %p14886_p6 = scmp.lt.s32.totalorder %s391_s13, %s391_s13 }
  0x8e   : > { %p14879_p0 = scmp.ne.s32.totalorder %s391_s13, %s14878_s3  ;;  %p14887_p8 = scmp.lt.s32.totalorder %s14878_s3, %s14878_s3 }
  0x90   : > { %p14881_p1 = pnand %p14879_p0, %p15134_p7  ;;  %p14888_p9 = por %p14887_p8, %p14886_p6 }
  0x92   : > { %p14882_p4 = pneg %p14881_p1 }
  0x94   : > { %p14889_p10 = pnand %p14888_p9, %p14882_p4 }
  0x96   : > { %14892 = shalt.err (!%p14889_p10)
}
  0x97   : > { %s15019_s23 = smov 256   ;;  %s15020_s24 = smov 16  }
  0x98   : > { %14345 = dma.hbm_to_vmem [thread:$0]  (!%p15122_p5), %s15915_s6, 16384, %s391_s13, [#allocation5], %s15019_s23, %s15019_s23, %s15020_s24  }
  0x99   : > { %s15021_s14 = smov [#allocation9]   ;;  %s15022_s30 = smov [#allocation12]  }
  0x9a   : > { %s416_s25 = sshll.u32 %s15021_s14, 4  ;;  %s442_s16 = sshll.u32 %s15022_s30, 4  ;;  %s417_s25 = int_to_ptr.vmem [resolvable:$true] %s416_s25  ;;  %s443_s16 = int_to_ptr.vmem [resolvable:$true] %s442_s16 }
  0x9b   : > { %s14893_s22 = scalar_lea.hbm %s15917_s8, 1024 }
  0x9c   : > { %p14894_p2 = scmp.ne.s32.totalorder %s15917_s8, %s14893_s22  ;;  %p14900_p12 = scmp.lt.u32.totalorder %s14893_s22, %s15917_s8 }
  0x9e   : > { %p14896_p3 = pnand %p14894_p2, %p15134_p7 }
  0xa0   : > { %p14897_p11 = pneg %p14896_p3 }
  0xa2   : > { %p14902_p13 = pnand %p14900_p12, %p14897_p11 }
  0xa4   : > { %14905 = shalt.err (!%p14902_p13)
}
  0xa5   : > { %s14906_s13 = scalar_lea.vmem %s417_s25, 1024  ;;  %p14914_p6 = scmp.lt.s32.totalorder %s417_s25, %s417_s25 }
  0xa6   : > { %p14907_p0 = scmp.ne.s32.totalorder %s417_s25, %s14906_s13  ;;  %p14915_p8 = scmp.lt.s32.totalorder %s14906_s13, %s14906_s13 }
  0xa8   : > { %p14909_p1 = pnand %p14907_p0, %p15134_p7  ;;  %p14916_p9 = por %p14915_p8, %p14914_p6 }
  0xaa   : > { %p14910_p4 = pneg %p14909_p1 }
  0xac   : > { %p14917_p10 = pnand %p14916_p9, %p14910_p4 }
  0xae   : > { %14920 = shalt.err (!%p14917_p10)
}
  0xaf   : > { %s15938_s23 = smov 8   ;;  %s15939_s24 = smov 128  }
  0xb0   : > { %14351 = dma.hbm_to_vmem [thread:$0]  (!%p15122_p5), %s15917_s8, 1024, %s417_s25, [#allocation8], %s15939_s24, %s15939_s24, %s15938_s23  }
  0xb1   : > { %s14921_s14 = scalar_lea.hbm %s15919_s10, 3072 }
  0xb2   : > { %p14922_p2 = scmp.ne.s32.totalorder %s15919_s10, %s14921_s14  ;;  %p14928_p12 = scmp.lt.u32.totalorder %s14921_s14, %s15919_s10 }
  0xb4   : > { %p14924_p3 = pnand %p14922_p2, %p15134_p7 }
  0xb6   : > { %p14925_p11 = pneg %p14924_p3 }
  0xb8   : > { %p14930_p13 = pnand %p14928_p12, %p14925_p11 }
  0xba   : > { %14933 = shalt.err (!%p14930_p13)
}
  0xbb   : > { %s14934_s20 = scalar_lea.vmem %s443_s16, 3072  ;;  %p14942_p6 = scmp.lt.s32.totalorder %s443_s16, %s443_s16 }
  0xbc   : > { %p14935_p0 = scmp.ne.s32.totalorder %s443_s16, %s14934_s20  ;;  %p14943_p8 = scmp.lt.s32.totalorder %s14934_s20, %s14934_s20 }
  0xbe   : > { %p14937_p1 = pnand %p14935_p0, %p15134_p7  ;;  %p14944_p9 = por %p14943_p8, %p14942_p6 }
  0xc0   : > { %p14938_p4 = pneg %p14937_p1 }
  0xc2   : > { %p14945_p10 = pnand %p14944_p9, %p14938_p4 }
  0xc4   : > { %14948 = shalt.err (!%p14945_p10)
}
  0xc5   : > { %14357 = dma.hbm_to_vmem [thread:$0]  (!%p15122_p5), %s15919_s10, 3072, %s443_s16, [#allocation11], %s15939_s24, %s15939_s24, %s15938_s23  }
  0xc6   : > { %s15023_s13 = smov [#allocation15]   ;;  %s14949_s27 = scalar_lea.hbm %s15921_s12, 16 }
  0xc7   : > { %s469_s5 = sshll.u32 %s15023_s13, 4  ;;  %p14950_p2 = scmp.ne.s32.totalorder %s15921_s12, %s14949_s27  ;;  %s470_s5 = int_to_ptr.vmem [resolvable:$true] %s469_s5 }
  0xc8   : > { %p14956_p12 = scmp.lt.u32.totalorder %s14949_s27, %s15921_s12 }
  0xc9   : > { %p14952_p3 = pnand %p14950_p2, %p15134_p7 }
  0xcb   : > { %p14953_p11 = pneg %p14952_p3 }
  0xcd   : > { %p14958_p13 = pnand %p14956_p12, %p14953_p11 }
  0xcf   : > { %14961 = shalt.err (!%p14958_p13)
}
  0xd0   : > { %s14962_s16 = scalar_lea.vmem %s470_s5, 16  ;;  %s14969_s23 = scalar_lea.vmem %s470_s5, 32 }
  0xd1   : > { %p14963_p0 = scmp.ne.s32.totalorder %s470_s5, %s14962_s16  ;;  %p14970_p6 = scmp.lt.s32.totalorder %s470_s5, %s470_s5 }
  0xd2   : > { %p14971_p8 = scmp.lt.s32.totalorder %s14969_s23, %s14962_s16 }
  0xd3   : > { %p14965_p1 = pnand %p14963_p0, %p15134_p7 }
  0xd4   : > { %p14972_p9 = por %p14971_p8, %p14970_p6 }
  0xd5   : > { %p14966_p4 = pneg %p14965_p1 }
  0xd7   : > { %p14973_p10 = pnand %p14972_p9, %p14966_p4 }
  0xd9   : > { %14976 = shalt.err (!%p14973_p10)
}
  0xda   : > { %14363 = dma.hbm_to_vmem [thread:$0]  (!%p15122_p5), %s15921_s12, 16, %s470_s5, [#allocation14]  }
  0xdb   : > { %p15940_p2 = scmp.ne.s32.totalorder %s15934_s29, 0 }
  0xdc   : > { %p15941_p3 = scmp.eq.s32.totalorder (!%p15940_p2), %s15105_s28, 0 }
  0xdd   : > { %514 = sbr.rel (%p15940_p2) target bundleno = 3474 (0xd92), region = 72 }
  0xe4   : > { %14982 = dma.done.wait (%p15941_p3), [#allocation3], 65536   ;;  %p15942_p7 = pmov %p15941_p3 }
  0xe5   : > { %p15943_p11 = pmov %p15941_p3 }
  0xe6   : > { %14984 = vsyncadd (%p15942_p7), [#allocation3], 4294901760 }
  0xe7   : > { %14986 = dma.done.wait (%p15943_p11), [#allocation5], 81920   ;;  %p15944_p12 = pmov %p15941_p3 }
  0xe8   : > { %p15945_p13 = pmov %p15941_p3 }
  0xe9   : > { %14988 = vsyncadd (%p15944_p12), [#allocation5], 4294885376 }
  0xea   : > { %14990 = dma.done.wait (%p15945_p13), [#allocation8], 7168   ;;  %p15946_p5 = pmov %p15941_p3 }
  0xeb   : > { %p15947_p0 = pmov %p15941_p3 }
  0xec   : > { %14992 = vsyncadd (%p15946_p5), [#allocation8], 4294960128 }
  0xed   : > { %14994 = dma.done.wait (%p15947_p0), [#allocation11], 4608   ;;  %p15948_p1 = pmov %p15947_p0 }
  0xee   : > { %p15949_p4 = pmov %p15947_p0 }
  0xef   : > { %14996 = vsyncadd (%p15948_p1), [#allocation11], 4294962688 }
  0xf0   : > { %14998 = dma.done.wait (%p15949_p4), [#allocation14], 4240   ;;  %p15950_p6 = pmov %p15947_p0 }
  0xf1   : > { %v645_v0 = vld [vmem:[#allocation2] sm:$0xff]  ;;  %v902_v2 = vld [vmem:[#allocation2 + $0x808] sm:$0xff]  ;;  %p605_p8 = scmp.lt.s32.totalorder %s15105_s28, 1  ;;  %v15024_v32 = vmov 1983009808   ;;  %v1162_v34 = vlaneseq  ;;  %vm4410_vm0 = vcmask 1042432  }
  0xf2   : > { %15000 = vsyncadd (%p15950_p6), [#allocation14], 4294963056  ;;  %v653_v1 = vld [vmem:[#allocation2 + $0x40] sm:$0xff]  ;;  %v910_v4 = vld [vmem:[#allocation2 + $0x848] sm:$0xff]  ;;  %v1160_v33 = vunpack.c.l.s4 %v15024_v32  ;;  %vm4403_vm1 = vcmask 23552   ;;  %vm5109_vm2 = vcmask 1040384  }
  0xf3   : > { %v12321_v3 = vcombine.high %v645_v0, %v653_v1  ;;  %v12320_v5 = vcombine.low %v645_v0, %v653_v1  ;;  %v661_v6 = vld [vmem:[#allocation2 + $0x80] sm:$0xff]  ;;  %v12579_v8 = vcombine.high %v902_v2, %v910_v4  ;;  %v12578_v9 = vcombine.low %v902_v2, %v910_v4  ;;  %v918_v11 = vld [vmem:[#allocation2 + $0x888] sm:$0xff]  ;;  %s15959_s28 = smov (!%p605_p8, %s15105_s28), 1  ;;  %s15953_s19 = sld [smem:[#allocation22_spill]] }
  0xf4   : > { %v669_v7 = vld [vmem:[#allocation2 + $0xc0] sm:$0xff]  ;;  %v926_v12 = vld [vmem:[#allocation2 + $0x8c8] sm:$0xff]  ;;  %v1161_v43 = vunpack.c.0.s8 %v1160_v33  ;;  %v1163_v44 = vshrl.u32 %v1162_v34, 7  ;;  %s13661_s29 = sshll.u32 %s15959_s28, 3  ;;  %s13662_s25 = sshll.u32 %s15959_s28, 5  ;;  %vm15026_vm3 = vmmov 1  }
  0xf5   : > { %v12337_v10 = vcombine.high %v661_v6, %v669_v7  ;;  %v677_v13 = vld [vmem:[#allocation2 + $0x100] sm:$0xff]  ;;  %3739 = vmatprep.subr.bf16.mxu0 %v12321_v3  ;;  %v12595_v14 = vcombine.high %v918_v11, %v926_v12  ;;  %v934_v16 = vld [vmem:[#allocation2 + $0x908] sm:$0xff]  ;;  %3862 = vmatprep.subr.bf16.mxu1 %v12579_v8  ;;  %v12336_v18 = vcombine.low %v661_v6, %v669_v7  ;;  %s609_s20 = scalar_lea.vmem %s15909_s0, %s13661_s29  ;;  %s15566_s5 = scalar_lea.vmem %s15910_s1, %s13662_s25  ;;  %vm15623_vm4 = vmpackc.low %vm5109_vm2, %vm15026_vm3  ;;  %vm9019_vm5 = vcmask 72704  }
  0xf6   : > { %v685_v15 = vld [vmem:[#allocation2 + $0x140] sm:$0xff]  ;;  %v942_v17 = vld [vmem:[#allocation2 + $0x948] sm:$0xff]  ;;  %3740 = vmatpush1.bf16.msra.mxu0 %v12320_v5  ;;  %3863 = vmatpush1.bf16.msra.mxu1 %v12578_v9  ;;  %v12594_v19 = vcombine.low %v918_v11, %v926_v12  ;;  %v1164_v53 = vsub.s32 %v1161_v43, %v1163_v44  ;;  %s14298_s26 = smul.u32 24, %s15959_s28  ;;  %vm9425_vm6 = vcmask 1043456   ;;  %vm10511_vm7 = vcmask 162816   ;;  %vm15774_vm9 = vmpackc.low %vm4410_vm0, %vm15026_vm3  ;;  %s15956_s29 = sld [smem:[#allocation24_spill]] }
  0xf7   : > { %3741 = vmatprep.subr.bf16.mxu0 %v12337_v10  ;;  %v12353_v20 = vcombine.high %v677_v13, %v685_v15  ;;  %3864 = vmatprep.subr.bf16.mxu1 %v12595_v14  ;;  %v12611_v21 = vcombine.high %v934_v16, %v942_v17  ;;  %v693_v22 = vld [vmem:[#allocation2 + $0x180] sm:$0xff]  ;;  %v950_v24 = vld [vmem:[#allocation2 + $0x988] sm:$0xff]  ;;  %v12352_v26 = vcombine.low %v677_v13, %v685_v15  ;;  %vm15028_vm8 = vmmov 0   ;;  %s14299_s23 = smul.u32 44, %s15959_s28 }
  0xf8   : > { %v701_v23 = vld [vmem:[#allocation2 + $0x1c0] sm:$0xff]  ;;  %v958_v25 = vld [vmem:[#allocation2 + $0x9c8] sm:$0xff]  ;;  %v12610_v27 = vcombine.low %v934_v16, %v942_v17  ;;  %s15698_s14 = scalar_lea.vmem %s15911_s2, %s14298_s26  ;;  %vm11536_vm10 = vcmask 351232  }
  0xf9   : > { %v12369_v28 = vcombine.high %v693_v22, %v701_v23  ;;  %v12627_v29 = vcombine.high %v950_v24, %v958_v25  ;;  %v709_v30 = vld [vmem:[#allocation2 + $0x200] sm:$0xff]  ;;  %v966_v35 = vld [vmem:[#allocation2 + $0xa08] sm:$0xff]  ;;  %v12368_v37 = vcombine.low %v693_v22, %v701_v23  ;;  %v12626_v38 = vcombine.low %v950_v24, %v958_v25  ;;  %s15704_s16 = scalar_lea.vmem %s15953_s19, %s14298_s26 }
  0xfa   : > { %3742 = vmatpush1.bf16.msra.mxu0 %v12336_v18  ;;  %3865 = vmatpush1.bf16.msra.mxu1 %v12594_v19  ;;  %v717_v31 = vld [vmem:[#allocation2 + $0x240] sm:$0xff]  ;;  %v974_v36 = vld [vmem:[#allocation2 + $0xa48] sm:$0xff] }
  0xfb   : > { %3743 = vmatprep.subr.bf16.mxu0 %v12353_v20  ;;  %3866 = vmatprep.subr.bf16.mxu1 %v12611_v21  ;;  %v12385_v39 = vcombine.high %v709_v30, %v717_v31  ;;  %v12643_v40 = vcombine.high %v966_v35, %v974_v36  ;;  %v725_v41 = vld [vmem:[#allocation2 + $0x280] sm:$0xff]  ;;  %v982_v45 = vld [vmem:[#allocation2 + $0xa88] sm:$0xff]  ;;  %v12384_v47 = vcombine.low %v709_v30, %v717_v31 }
  0xfc   : > { %v733_v42 = vld [vmem:[#allocation2 + $0x2c0] sm:$0xff]  ;;  %v990_v46 = vld [vmem:[#allocation2 + $0xac8] sm:$0xff]  ;;  %v12642_v48 = vcombine.low %v966_v35, %v974_v36  ;;  %s15898_s15 = scalar_lea.vmem %s15956_s29, %s14299_s23 }
  0xfd   : > { %v12401_v49 = vcombine.high %v725_v41, %v733_v42  ;;  %v12659_v50 = vcombine.high %v982_v45, %v990_v46  ;;  %v741_v51 = vld [vmem:[#allocation2 + $0x300] sm:$0xff]  ;;  %v998_v54 = vld [vmem:[#allocation2 + $0xb08] sm:$0xff]  ;;  %v12400_v56 = vcombine.low %v725_v41, %v733_v42  ;;  %v12658_v57 = vcombine.low %v982_v45, %v990_v46 }
  0xfe   : > { %3744 = vmatpush1.bf16.msra.mxu0 %v12352_v26  ;;  %3867 = vmatpush1.bf16.msra.mxu1 %v12610_v27  ;;  %v749_v52 = vld [vmem:[#allocation2 + $0x340] sm:$0xff]  ;;  %v1006_v55 = vld [vmem:[#allocation2 + $0xb48] sm:$0xff] }
  0xff   : > { %3745 = vmatprep.subr.bf16.mxu0 %v12369_v28  ;;  %3868 = vmatprep.subr.bf16.mxu1 %v12627_v29  ;;  %v12417_v58 = vcombine.high %v741_v51, %v749_v52  ;;  %v631_v59 = vld [vmem:[%s609_s20] sm:$0xff]  ;;  %v12675_v60 = vcombine.high %v998_v54, %v1006_v55  ;;  %v1014_v1 = vld [vmem:[#allocation2 + $0xb88] sm:$0xff]  ;;  %v12416_v3 = vcombine.low %v741_v51, %v749_v52 }
 0x100   : > { %v757_v61 = vld [vmem:[#allocation2 + $0x380] sm:$0xff]  ;;  %v15348_v63 = vrot.slane %v631_v59, %v1164_v53  ;;  %v1158_v0 = vcombine.high %v631_v59, %v631_v59  ;;  %v1022_v2 = vld [vmem:[#allocation2 + $0xbc8] sm:$0xff]  ;;  %v12674_v6 = vcombine.low %v998_v54, %v1006_v55 }
 0x101   : > { %v765_v62 = vld [vmem:[#allocation2 + $0x3c0] sm:$0xff]  ;;  %v12691_v8 = vcombine.high %v1014_v1, %v1022_v2  ;;  %v1030_v12 = vld [vmem:[#allocation2 + $0xc08] sm:$0xff]  ;;  %v12690_v15 = vcombine.low %v1014_v1, %v1022_v2 }
 0x102   : > { %3746 = vmatpush1.bf16.msra.mxu0 %v12368_v37  ;;  %3869 = vmatpush1.bf16.msra.mxu1 %v12626_v38  ;;  %v15352_v4 = vcombine.high %v15348_v63, %v15348_v63  ;;  %v15354_v5 = vrot.slane %v1158_v0, %v1164_v53  ;;  %v12433_v7 = vcombine.high %v757_v61, %v765_v62  ;;  %v773_v9 = vld [vmem:[#allocation2 + $0x400] sm:$0xff]  ;;  %v1038_v13 = vld [vmem:[#allocation2 + $0xc48] sm:$0xff] }
 0x103   : > { %3747 = vmatprep.subr.bf16.mxu0 %v12385_v39  ;;  %3870 = vmatprep.subr.bf16.mxu1 %v12643_v40  ;;  %v781_v10 = vld [vmem:[#allocation2 + $0x440] sm:$0xff]  ;;  %v12432_v14 = vcombine.low %v757_v61, %v765_v62  ;;  %v12707_v17 = vcombine.high %v1030_v12, %v1038_v13  ;;  %v1046_v20 = vld [vmem:[#allocation2 + $0xc88] sm:$0xff]  ;;  %v12706_v23 = vcombine.low %v1030_v12, %v1038_v13 }
 0x104   : > { %3771 = vmatprep.mubr.bf16.mxu0 %v15352_v4  ;;  %v15359_v11 = vcombine.high %v15354_v5, %v15354_v5  ;;  %v12449_v16 = vcombine.high %v773_v9, %v781_v10  ;;  %v789_v18 = vld [vmem:[#allocation2 + $0x480] sm:$0xff]  ;;  %v1054_v21 = vld [vmem:[#allocation2 + $0xcc8] sm:$0xff]  ;;  %v12448_v22 = vcombine.low %v773_v9, %v781_v10 }
 0x105   : > { %v797_v19 = vld [vmem:[#allocation2 + $0x4c0] sm:$0xff]  ;;  %v12723_v25 = vcombine.high %v1046_v20, %v1054_v21  ;;  %v1062_v28 = vld [vmem:[#allocation2 + $0xd08] sm:$0xff]  ;;  %v12722_v31 = vcombine.low %v1046_v20, %v1054_v21 }
 0x106   : > { %3748 = vmatpush1.bf16.msra.mxu0 %v12384_v47  ;;  %3871 = vmatpush1.bf16.msra.mxu1 %v12642_v48  ;;  %v12465_v24 = vcombine.high %v789_v18, %v797_v19  ;;  %v805_v26 = vld [vmem:[#allocation2 + $0x500] sm:$0xff]  ;;  %v1070_v29 = vld [vmem:[#allocation2 + $0xd48] sm:$0xff]  ;;  %v12464_v30 = vcombine.low %v789_v18, %v797_v19 }
 0x107   : > { %3749 = vmatprep.subr.bf16.mxu0 %v12401_v49  ;;  %3872 = vmatprep.subr.bf16.mxu1 %v12659_v50  ;;  %v813_v27 = vld [vmem:[#allocation2 + $0x540] sm:$0xff]  ;;  %v12739_v33 = vcombine.high %v1062_v28, %v1070_v29  ;;  %v1078_v36 = vld [vmem:[#allocation2 + $0xd88] sm:$0xff]  ;;  %v12738_v39 = vcombine.low %v1062_v28, %v1070_v29 }
 0x108   : > { %3894 = vmatprep.mubr.bf16.mxu1 %v15359_v11  ;;  %v12481_v32 = vcombine.high %v805_v26, %v813_v27  ;;  %v821_v34 = vld [vmem:[#allocation2 + $0x580] sm:$0xff]  ;;  %v1086_v37 = vld [vmem:[#allocation2 + $0xdc8] sm:$0xff]  ;;  %v12480_v38 = vcombine.low %v805_v26, %v813_v27 }
 0x109   : > { %v829_v35 = vld [vmem:[#allocation2 + $0x5c0] sm:$0xff]  ;;  %v12755_v41 = vcombine.high %v1078_v36, %v1086_v37  ;;  %v1094_v44 = vld [vmem:[#allocation2 + $0xe08] sm:$0xff]  ;;  %v12754_v47 = vcombine.low %v1078_v36, %v1086_v37 }
 0x10a   : > { %3750 = vmatpush1.bf16.msra.mxu0 %v12400_v56  ;;  %3873 = vmatpush1.bf16.msra.mxu1 %v12658_v57  ;;  %v12497_v40 = vcombine.high %v821_v34, %v829_v35  ;;  %v837_v42 = vld [vmem:[#allocation2 + $0x600] sm:$0xff]  ;;  %v1102_v45 = vld [vmem:[#allocation2 + $0xe48] sm:$0xff]  ;;  %v12496_v46 = vcombine.low %v821_v34, %v829_v35 }
 0x10b   : > { %3751 = vmatprep.subr.bf16.mxu0 %v12417_v58  ;;  %3874 = vmatprep.subr.bf16.mxu1 %v12675_v60  ;;  %v845_v43 = vld [vmem:[#allocation2 + $0x640] sm:$0xff]  ;;  %v12771_v49 = vcombine.high %v1094_v44, %v1102_v45  ;;  %v1110_v52 = vld [vmem:[#allocation2 + $0xe88] sm:$0xff]  ;;  %v12770_v55 = vcombine.low %v1094_v44, %v1102_v45 }
 0x10c   : > { %v12513_v48 = vcombine.high %v837_v42, %v845_v43  ;;  %v853_v50 = vld [vmem:[#allocation2 + $0x680] sm:$0xff]  ;;  %v1118_v53 = vld [vmem:[#allocation2 + $0xec8] sm:$0xff]  ;;  %v12512_v54 = vcombine.low %v837_v42, %v845_v43 }
 0x10d   : > { %v861_v51 = vld [vmem:[#allocation2 + $0x6c0] sm:$0xff]  ;;  %v12787_v57 = vcombine.high %v1110_v52, %v1118_v53  ;;  %v1126_v60 = vld [vmem:[#allocation2 + $0xf08] sm:$0xff]  ;;  %v12786_v0 = vcombine.low %v1110_v52, %v1118_v53 }
 0x10e   : > { %3752 = vmatpush1.bf16.msra.mxu0 %v12416_v3  ;;  %3875 = vmatpush1.bf16.msra.mxu1 %v12674_v6  ;;  %v12529_v56 = vcombine.high %v853_v50, %v861_v51  ;;  %v869_v58 = vld [vmem:[#allocation2 + $0x700] sm:$0xff]  ;;  %v1134_v61 = vld [vmem:[#allocation2 + $0xf48] sm:$0xff]  ;;  %v12528_v62 = vcombine.low %v853_v50, %v861_v51 }
 0x10f   : > { %3753 = vmatprep.subr.bf16.mxu0 %v12433_v7  ;;  %3876 = vmatprep.subr.bf16.mxu1 %v12691_v8  ;;  %v877_v59 = vld [vmem:[#allocation2 + $0x740] sm:$0xff]  ;;  %v12803_v2 = vcombine.high %v1126_v60, %v1134_v61  ;;  %v1142_v7 = vld [vmem:[#allocation2 + $0xf88] sm:$0xff]  ;;  %v12802_v10 = vcombine.low %v1126_v60, %v1134_v61 }
 0x110   : > { %v12545_v1 = vcombine.high %v869_v58, %v877_v59  ;;  %v885_v3 = vld [vmem:[#allocation2 + $0x780] sm:$0xff]  ;;  %v1150_v8 = vld [vmem:[#allocation2 + $0xfc8] sm:$0xff]  ;;  %v12544_v9 = vcombine.low %v869_v58, %v877_v59 }
 0x111   : > { %v893_v6 = vld [vmem:[#allocation2 + $0x7c0] sm:$0xff]  ;;  %v12819_v13 = vcombine.high %v1142_v7, %v1150_v8  ;;  %v12818_v19 = vcombine.low %v1142_v7, %v1150_v8 }
 0x112   : > { %3754 = vmatpush1.bf16.msra.mxu0 %v12432_v14  ;;  %3877 = vmatpush1.bf16.msra.mxu1 %v12690_v15  ;;  %v12561_v12 = vcombine.high %v885_v3, %v893_v6  ;;  %v901_v14 = vld [vmem:[#allocation2 + $0x800] sm:$0xff]  ;;  %v12560_v18 = vcombine.low %v885_v3, %v893_v6 }
 0x113   : > { %3755 = vmatprep.subr.bf16.mxu0 %v12449_v16  ;;  %3878 = vmatprep.subr.bf16.mxu1 %v12707_v17  ;;  %v909_v15 = vld [vmem:[#allocation2 + $0x840] sm:$0xff]  ;;  %v648_v16 = vld [vmem:[#allocation2 + $0x18] sm:$0xff] }
 0x114   : > { %v656_v17 = vld [vmem:[#allocation2 + $0x58] sm:$0xff]  ;;  %v12577_v20 = vcombine.high %v901_v14, %v909_v15  ;;  %v12576_v26 = vcombine.low %v901_v14, %v909_v15  ;;  %v933_v29 = vld [vmem:[#allocation2 + $0x900] sm:$0xff] }
 0x115   : > { %v12327_v21 = vcombine.high %v648_v16, %v656_v17  ;;  %v12326_v27 = vcombine.low %v648_v16, %v656_v17  ;;  %v949_v37 = vld [vmem:[#allocation2 + $0x980] sm:$0xff] }
 0x116   : > { %3756 = vmatpush1.bf16.msra.mxu0 %v12448_v22  ;;  %3879 = vmatpush1.bf16.msra.mxu1 %v12706_v23  ;;  %v917_v22 = vld [vmem:[#allocation2 + $0x880] sm:$0xff] }
 0x117   : > { %3757 = vmatprep.subr.bf16.mxu0 %v12465_v24  ;;  %3880 = vmatprep.subr.bf16.mxu1 %v12723_v25  ;;  %v925_v23 = vld [vmem:[#allocation2 + $0x8c0] sm:$0xff]  ;;  %v664_v24 = vld [vmem:[#allocation2 + $0x98] sm:$0xff] }
 0x118   : > { %v672_v25 = vld [vmem:[#allocation2 + $0xd8] sm:$0xff]  ;;  %v12593_v28 = vcombine.high %v917_v22, %v925_v23  ;;  %v12592_v34 = vcombine.low %v917_v22, %v925_v23  ;;  %v965_v45 = vld [vmem:[#allocation2 + $0xa00] sm:$0xff] }
 0x119   : > { %v12342_v35 = vcombine.low %v664_v24, %v672_v25  ;;  %v981_v53 = vld [vmem:[#allocation2 + $0xa80] sm:$0xff] }
 0x11a   : > { %3758 = vmatpush1.bf16.msra.mxu0 %v12464_v30  ;;  %3881 = vmatpush1.bf16.msra.mxu1 %v12722_v31  ;;  %v941_v30 = vld [vmem:[#allocation2 + $0x940] sm:$0xff]  ;;  %v680_v31 = vld [vmem:[#allocation2 + $0x118] sm:$0xff] }
 0x11b   : > { %3759 = vmatprep.subr.bf16.mxu0 %v12481_v32  ;;  %3882 = vmatprep.subr.bf16.mxu1 %v12739_v33  ;;  %v12343_v32 = vcombine.high %v664_v24, %v672_v25  ;;  %v688_v33 = vld [vmem:[#allocation2 + $0x158] sm:$0xff]  ;;  %v12609_v36 = vcombine.high %v933_v29, %v941_v30  ;;  %v12608_v42 = vcombine.low %v933_v29, %v941_v30  ;;  %v997_v61 = vld [vmem:[#allocation2 + $0xb00] sm:$0xff] }
 0x11c   : > { %v12358_v43 = vcombine.low %v680_v31, %v688_v33  ;;  %v1013_v8 = vld [vmem:[#allocation2 + $0xb80] sm:$0xff]  ;;  %v800_v29 = vld [vmem:[#allocation2 + $0x4d8] sm:$0xff] }
 0x11d   : > { %v1029_v17 = vld [vmem:[#allocation2 + $0xc00] sm:$0xff] }
 0x11e   : > { %3760 = vmatpush1.bf16.msra.mxu0 %v12480_v38  ;;  %3883 = vmatpush1.bf16.msra.mxu1 %v12738_v39  ;;  %v957_v38 = vld [vmem:[#allocation2 + $0x9c0] sm:$0xff]  ;;  %v696_v39 = vld [vmem:[#allocation2 + $0x198] sm:$0xff] }
 0x11f   : > { %3761 = vmatprep.subr.bf16.mxu0 %v12497_v40  ;;  %3884 = vmatprep.subr.bf16.mxu1 %v12755_v41  ;;  %v12359_v40 = vcombine.high %v680_v31, %v688_v33  ;;  %v704_v41 = vld [vmem:[#allocation2 + $0x1d8] sm:$0xff]  ;;  %v12625_v44 = vcombine.high %v949_v37, %v957_v38  ;;  %v12624_v50 = vcombine.low %v949_v37, %v957_v38  ;;  %v1045_v25 = vld [vmem:[#allocation2 + $0xc80] sm:$0xff] }
 0x120   : > { %v12374_v51 = vcombine.low %v696_v39, %v704_v41  ;;  %v1061_v33 = vld [vmem:[#allocation2 + $0xd00] sm:$0xff]  ;;  %v816_v37 = vld [vmem:[#allocation2 + $0x558] sm:$0xff] }
 0x122   : > { %3762 = vmatpush1.bf16.msra.mxu0 %v12496_v46  ;;  %3885 = vmatpush1.bf16.msra.mxu1 %v12754_v47  ;;  %v973_v46 = vld [vmem:[#allocation2 + $0xa40] sm:$0xff]  ;;  %v712_v47 = vld [vmem:[#allocation2 + $0x218] sm:$0xff] }
 0x123   : > { %3763 = vmatprep.subr.bf16.mxu0 %v12513_v48  ;;  %3886 = vmatprep.subr.bf16.mxu1 %v12771_v49  ;;  %v12375_v48 = vcombine.high %v696_v39, %v704_v41  ;;  %v720_v49 = vld [vmem:[#allocation2 + $0x258] sm:$0xff]  ;;  %v12641_v52 = vcombine.high %v965_v45, %v973_v46  ;;  %v12640_v58 = vcombine.low %v965_v45, %v973_v46  ;;  %v1077_v41 = vld [vmem:[#allocation2 + $0xd80] sm:$0xff] }
 0x124   : > { %v12390_v59 = vcombine.low %v712_v47, %v720_v49  ;;  %v832_v45 = vld [vmem:[#allocation2 + $0x5d8] sm:$0xff] }
 0x126   : > { %3764 = vmatpush1.bf16.msra.mxu0 %v12512_v54  ;;  %3887 = vmatpush1.bf16.msra.mxu1 %v12770_v55  ;;  %v989_v54 = vld [vmem:[#allocation2 + $0xac0] sm:$0xff]  ;;  %v728_v55 = vld [vmem:[#allocation2 + $0x298] sm:$0xff] }
 0x127   : > { %3765 = vmatprep.subr.bf16.mxu0 %v12529_v56  ;;  %3888 = vmatprep.subr.bf16.mxu1 %v12787_v57  ;;  %v12391_v56 = vcombine.high %v712_v47, %v720_v49  ;;  %v736_v57 = vld [vmem:[#allocation2 + $0x2d8] sm:$0xff]  ;;  %v12657_v60 = vcombine.high %v981_v53, %v989_v54  ;;  %v12656_v3 = vcombine.low %v981_v53, %v989_v54  ;;  %v1093_v49 = vld [vmem:[#allocation2 + $0xe00] sm:$0xff] }
 0x128   : > { %v12406_v6 = vcombine.low %v728_v55, %v736_v57  ;;  %v848_v53 = vld [vmem:[#allocation2 + $0x658] sm:$0xff] }
 0x12a   : > { %3766 = vmatpush1.bf16.msra.mxu0 %v12528_v62  ;;  %3889 = vmatpush1.bf16.msra.mxu1 %v12786_v0  ;;  %v1005_v62 = vld [vmem:[#allocation2 + $0xb40] sm:$0xff]  ;;  %v744_v0 = vld [vmem:[#allocation2 + $0x318] sm:$0xff] }
 0x12b   : > { %3767 = vmatprep.subr.bf16.mxu0 %v12545_v1  ;;  %3890 = vmatprep.subr.bf16.mxu1 %v12803_v2  ;;  %v12407_v1 = vcombine.high %v728_v55, %v736_v57  ;;  %v752_v2 = vld [vmem:[#allocation2 + $0x358] sm:$0xff]  ;;  %v12673_v7 = vcombine.high %v997_v61, %v1005_v62  ;;  %v12672_v14 = vcombine.low %v997_v61, %v1005_v62  ;;  %v1109_v57 = vld [vmem:[#allocation2 + $0xe80] sm:$0xff] }
 0x12c   : > { %v12422_v15 = vcombine.low %v744_v0, %v752_v2  ;;  %v864_v61 = vld [vmem:[#allocation2 + $0x6d8] sm:$0xff] }
 0x12e   : > { %3768 = vmatpush1.bf16.msra.mxu0 %v12544_v9  ;;  %3891 = vmatpush1.bf16.msra.mxu1 %v12802_v10  ;;  %v1021_v9 = vld [vmem:[#allocation2 + $0xbc0] sm:$0xff]  ;;  %v760_v10 = vld [vmem:[#allocation2 + $0x398] sm:$0xff] }
 0x12f   : > { %3769 = vmatprep.subr.bf16.mxu0 %v12561_v12  ;;  %3892 = vmatprep.subr.bf16.mxu1 %v12819_v13  ;;  %v12423_v12 = vcombine.high %v744_v0, %v752_v2  ;;  %v768_v13 = vld [vmem:[#allocation2 + $0x3d8] sm:$0xff]  ;;  %v12689_v16 = vcombine.high %v1013_v8, %v1021_v9  ;;  %v12688_v22 = vcombine.low %v1013_v8, %v1021_v9  ;;  %v1125_v2 = vld [vmem:[#allocation2 + $0xf00] sm:$0xff] }
 0x130   : > { %v12438_v23 = vcombine.low %v760_v10, %v768_v13  ;;  %v880_v8 = vld [vmem:[#allocation2 + $0x758] sm:$0xff] }
 0x132   : > { %3770 = vmatpush1.bf16.msra.mxu0 %v12560_v18  ;;  %3893 = vmatpush1.bf16.msra.mxu1 %v12818_v19  ;;  %v1037_v18 = vld [vmem:[#allocation2 + $0xc40] sm:$0xff]  ;;  %v776_v19 = vld [vmem:[#allocation2 + $0x418] sm:$0xff] }
 0x133   : > { %3780 = vmatprep.subr.bf16.mxu0 %v12577_v20  ;;  %3985 = vmatprep.subr.bf16.mxu1 %v12327_v21  ;;  %v12439_v20 = vcombine.high %v760_v10, %v768_v13  ;;  %v784_v21 = vld [vmem:[#allocation2 + $0x458] sm:$0xff]  ;;  %v12705_v24 = vcombine.high %v1029_v17, %v1037_v18  ;;  %v12704_v30 = vcombine.low %v1029_v17, %v1037_v18  ;;  %v1141_v13 = vld [vmem:[#allocation2 + $0xf80] sm:$0xff] }
 0x134   : > { %v12454_v31 = vcombine.low %v776_v19, %v784_v21  ;;  %v896_v17 = vld [vmem:[#allocation2 + $0x7d8] sm:$0xff] }
 0x135   : > { %3772 = vmatmul.mubr.bf16.vlgmr.msra.gmra.mrb[0].mxu0 %v15348_v63  ;;  %3895 = vmatmul.mubr.bf16.vlgmr.msra.gmra.mrb[0].mxu1 %v15354_v5 }
 0x136   : > { %3781 = vmatpush1.bf16.msra.mxu0 %v12576_v26  ;;  %3986 = vmatpush1.bf16.msra.mxu1 %v12326_v27  ;;  %v1053_v26 = vld [vmem:[#allocation2 + $0xcc0] sm:$0xff]  ;;  %v792_v27 = vld [vmem:[#allocation2 + $0x498] sm:$0xff] }
 0x137   : > { %3782 = vmatprep.subr.bf16.mxu0 %v12593_v28  ;;  %3987 = vmatprep.subr.bf16.mxu1 %v12343_v32  ;;  %v12455_v28 = vcombine.high %v776_v19, %v784_v21  ;;  %v12721_v32 = vcombine.high %v1045_v25, %v1053_v26  ;;  %v12720_v38 = vcombine.low %v1045_v25, %v1053_v26  ;;  %v646_v21 = vld [vmem:[#allocation2 + $0x8] sm:$0xff]  ;;  %v912_v25 = vld [vmem:[#allocation2 + $0x858] sm:$0xff] }
 0x138   : > { %3812 = vmatprep.mubr.bf16.mxu0 %v15359_v11  ;;  %4017 = vmatprep.mubr.bf16.mxu1 %v15352_v4  ;;  %v12470_v39 = vcombine.low %v792_v27, %v800_v29 }
 0x13a   : > { %3783 = vmatpush1.bf16.msra.mxu0 %v12592_v34  ;;  %3988 = vmatpush1.bf16.msra.mxu1 %v12342_v35  ;;  %v1069_v34 = vld [vmem:[#allocation2 + $0xd40] sm:$0xff]  ;;  %v808_v35 = vld [vmem:[#allocation2 + $0x518] sm:$0xff] }
 0x13b   : > { %3784 = vmatprep.subr.bf16.mxu0 %v12609_v36  ;;  %3989 = vmatprep.subr.bf16.mxu1 %v12359_v40  ;;  %v12471_v36 = vcombine.high %v792_v27, %v800_v29  ;;  %v12737_v40 = vcombine.high %v1061_v33, %v1069_v34  ;;  %v12736_v46 = vcombine.low %v1061_v33, %v1069_v34  ;;  %v662_v29 = vld [vmem:[#allocation2 + $0x88] sm:$0xff]  ;;  %v928_v33 = vld [vmem:[#allocation2 + $0x8d8] sm:$0xff] }
 0x13c   : > { %v12486_v47 = vcombine.low %v808_v35, %v816_v37 }
 0x13e   : > { %3785 = vmatpush1.bf16.msra.mxu0 %v12608_v42  ;;  %3990 = vmatpush1.bf16.msra.mxu1 %v12358_v43  ;;  %v1085_v42 = vld [vmem:[#allocation2 + $0xdc0] sm:$0xff]  ;;  %v824_v43 = vld [vmem:[#allocation2 + $0x598] sm:$0xff] }
 0x13f   : > { %3786 = vmatprep.subr.bf16.mxu0 %v12625_v44  ;;  %3991 = vmatprep.subr.bf16.mxu1 %v12375_v48  ;;  %v12487_v44 = vcombine.high %v808_v35, %v816_v37  ;;  %v12753_v48 = vcombine.high %v1077_v41, %v1085_v42  ;;  %v12752_v54 = vcombine.low %v1077_v41, %v1085_v42  ;;  %v678_v37 = vld [vmem:[#allocation2 + $0x108] sm:$0xff]  ;;  %v944_v41 = vld [vmem:[#allocation2 + $0x958] sm:$0xff] }
 0x140   : > { %v12502_v55 = vcombine.low %v824_v43, %v832_v45 }
 0x142   : > { %3787 = vmatpush1.bf16.msra.mxu0 %v12624_v50  ;;  %3992 = vmatpush1.bf16.msra.mxu1 %v12374_v51  ;;  %v1101_v50 = vld [vmem:[#allocation2 + $0xe40] sm:$0xff]  ;;  %v840_v51 = vld [vmem:[#allocation2 + $0x618] sm:$0xff] }
 0x143   : > { %3788 = vmatprep.subr.bf16.mxu0 %v12641_v52  ;;  %3993 = vmatprep.subr.bf16.mxu1 %v12391_v56  ;;  %v12503_v52 = vcombine.high %v824_v43, %v832_v45  ;;  %v12769_v56 = vcombine.high %v1093_v49, %v1101_v50  ;;  %v12768_v62 = vcombine.low %v1093_v49, %v1101_v50  ;;  %v694_v45 = vld [vmem:[#allocation2 + $0x188] sm:$0xff]  ;;  %v960_v49 = vld [vmem:[#allocation2 + $0x9d8] sm:$0xff] }
 0x144   : > { %v12518_v0 = vcombine.low %v840_v51, %v848_v53 }
 0x146   : > { %3789 = vmatpush1.bf16.msra.mxu0 %v12640_v58  ;;  %3994 = vmatpush1.bf16.msra.mxu1 %v12390_v59  ;;  %v1117_v58 = vld [vmem:[#allocation2 + $0xec0] sm:$0xff]  ;;  %v856_v59 = vld [vmem:[#allocation2 + $0x698] sm:$0xff] }
 0x147   : > { %3790 = vmatprep.subr.bf16.mxu0 %v12657_v60  ;;  %3995 = vmatprep.subr.bf16.mxu1 %v12407_v1  ;;  %v12519_v60 = vcombine.high %v840_v51, %v848_v53  ;;  %v12785_v1 = vcombine.high %v1109_v57, %v1117_v58  ;;  %v12784_v9 = vcombine.low %v1109_v57, %v1117_v58  ;;  %v710_v53 = vld [vmem:[#allocation2 + $0x208] sm:$0xff]  ;;  %v976_v57 = vld [vmem:[#allocation2 + $0xa58] sm:$0xff] }
 0x148   : > { %v12534_v10 = vcombine.low %v856_v59, %v864_v61 }
 0x14a   : > { %3791 = vmatpush1.bf16.msra.mxu0 %v12656_v3  ;;  %3996 = vmatpush1.bf16.msra.mxu1 %v12406_v6  ;;  %v1133_v3 = vld [vmem:[#allocation2 + $0xf40] sm:$0xff]  ;;  %v872_v6 = vld [vmem:[#allocation2 + $0x718] sm:$0xff] }
 0x14b   : > { %3792 = vmatprep.subr.bf16.mxu0 %v12673_v7  ;;  %3997 = vmatprep.subr.bf16.mxu1 %v12423_v12  ;;  %v12535_v7 = vcombine.high %v856_v59, %v864_v61  ;;  %v12801_v12 = vcombine.high %v1125_v2, %v1133_v3  ;;  %v12800_v18 = vcombine.low %v1125_v2, %v1133_v3  ;;  %v726_v61 = vld [vmem:[#allocation2 + $0x288] sm:$0xff]  ;;  %v992_v2 = vld [vmem:[#allocation2 + $0xad8] sm:$0xff] }
 0x14c   : > { %v12550_v19 = vcombine.low %v872_v6, %v880_v8 }
 0x14e   : > { %3793 = vmatpush1.bf16.msra.mxu0 %v12672_v14  ;;  %3998 = vmatpush1.bf16.msra.mxu1 %v12422_v15  ;;  %v1149_v14 = vld [vmem:[#allocation2 + $0xfc0] sm:$0xff]  ;;  %v888_v15 = vld [vmem:[#allocation2 + $0x798] sm:$0xff] }
 0x14f   : > { %3794 = vmatprep.subr.bf16.mxu0 %v12689_v16  ;;  %3999 = vmatprep.subr.bf16.mxu1 %v12439_v20  ;;  %v12551_v16 = vcombine.high %v872_v6, %v880_v8  ;;  %v12817_v20 = vcombine.high %v1141_v13, %v1149_v14  ;;  %v12816_v26 = vcombine.low %v1141_v13, %v1149_v14  ;;  %v742_v8 = vld [vmem:[#allocation2 + $0x308] sm:$0xff]  ;;  %v1008_v13 = vld [vmem:[#allocation2 + $0xb58] sm:$0xff] }
 0x150   : > { %v12566_v27 = vcombine.low %v888_v15, %v896_v17 }
 0x152   : > { %3795 = vmatpush1.bf16.msra.mxu0 %v12688_v22  ;;  %4000 = vmatpush1.bf16.msra.mxu1 %v12438_v23  ;;  %v654_v22 = vld [vmem:[#allocation2 + $0x48] sm:$0xff]  ;;  %v904_v23 = vld [vmem:[#allocation2 + $0x818] sm:$0xff] }
 0x153   : > { %3796 = vmatprep.subr.bf16.mxu0 %v12705_v24  ;;  %4001 = vmatprep.subr.bf16.mxu1 %v12455_v28  ;;  %v12567_v24 = vcombine.high %v888_v15, %v896_v17  ;;  %v12323_v28 = vcombine.high %v646_v21, %v654_v22  ;;  %v12322_v34 = vcombine.low %v646_v21, %v654_v22  ;;  %v758_v17 = vld [vmem:[#allocation2 + $0x388] sm:$0xff]  ;;  %v1024_v21 = vld [vmem:[#allocation2 + $0xbd8] sm:$0xff] }
 0x154   : > { %v12582_v35 = vcombine.low %v904_v23, %v912_v25 }
 0x156   : > { %3797 = vmatpush1.bf16.msra.mxu0 %v12704_v30  ;;  %4002 = vmatpush1.bf16.msra.mxu1 %v12454_v31  ;;  %v670_v30 = vld [vmem:[#allocation2 + $0xc8] sm:$0xff]  ;;  %v920_v31 = vld [vmem:[#allocation2 + $0x898] sm:$0xff] }
 0x157   : > { %3798 = vmatprep.subr.bf16.mxu0 %v12721_v32  ;;  %4003 = vmatprep.subr.bf16.mxu1 %v12471_v36  ;;  %v12583_v32 = vcombine.high %v904_v23, %v912_v25  ;;  %v12339_v36 = vcombine.high %v662_v29, %v670_v30  ;;  %v12338_v42 = vcombine.low %v662_v29, %v670_v30  ;;  %v774_v25 = vld [vmem:[#allocation2 + $0x408] sm:$0xff]  ;;  %v1040_v29 = vld [vmem:[#allocation2 + $0xc58] sm:$0xff] }
 0x158   : > { %v12598_v43 = vcombine.low %v920_v31, %v928_v33 }
 0x15a   : > { %3799 = vmatpush1.bf16.msra.mxu0 %v12720_v38  ;;  %4004 = vmatpush1.bf16.msra.mxu1 %v12470_v39  ;;  %v686_v38 = vld [vmem:[#allocation2 + $0x148] sm:$0xff]  ;;  %v936_v39 = vld [vmem:[#allocation2 + $0x918] sm:$0xff] }
 0x15b   : > { %3800 = vmatprep.subr.bf16.mxu0 %v12737_v40  ;;  %4005 = vmatprep.subr.bf16.mxu1 %v12487_v44  ;;  %v12599_v40 = vcombine.high %v920_v31, %v928_v33  ;;  %v12355_v44 = vcombine.high %v678_v37, %v686_v38  ;;  %v12354_v50 = vcombine.low %v678_v37, %v686_v38  ;;  %v790_v33 = vld [vmem:[#allocation2 + $0x488] sm:$0xff]  ;;  %v1056_v37 = vld [vmem:[#allocation2 + $0xcd8] sm:$0xff] }
 0x15c   : > { %v12614_v51 = vcombine.low %v936_v39, %v944_v41 }
 0x15e   : > { %3801 = vmatpush1.bf16.msra.mxu0 %v12736_v46  ;;  %4006 = vmatpush1.bf16.msra.mxu1 %v12486_v47  ;;  %v702_v46 = vld [vmem:[#allocation2 + $0x1c8] sm:$0xff]  ;;  %v952_v47 = vld [vmem:[#allocation2 + $0x998] sm:$0xff] }
 0x15f   : > { %3802 = vmatprep.subr.bf16.mxu0 %v12753_v48  ;;  %4007 = vmatprep.subr.bf16.mxu1 %v12503_v52  ;;  %v12615_v48 = vcombine.high %v936_v39, %v944_v41  ;;  %v12371_v52 = vcombine.high %v694_v45, %v702_v46  ;;  %v12370_v58 = vcombine.low %v694_v45, %v702_v46  ;;  %v1072_v45 = vld [vmem:[#allocation2 + $0xd58] sm:$0xff] }
 0x160   : > { %v12630_v59 = vcombine.low %v952_v47, %v960_v49 }
 0x162   : > { %3803 = vmatpush1.bf16.msra.mxu0 %v12752_v54  ;;  %4008 = vmatpush1.bf16.msra.mxu1 %v12502_v55  ;;  %v718_v54 = vld [vmem:[#allocation2 + $0x248] sm:$0xff]  ;;  %v968_v55 = vld [vmem:[#allocation2 + $0xa18] sm:$0xff] }
 0x163   : > { %3804 = vmatprep.subr.bf16.mxu0 %v12769_v56  ;;  %4009 = vmatprep.subr.bf16.mxu1 %v12519_v60  ;;  %v12631_v56 = vcombine.high %v952_v47, %v960_v49  ;;  %v12387_v60 = vcombine.high %v710_v53, %v718_v54  ;;  %v12386_v3 = vcombine.low %v710_v53, %v718_v54  ;;  %v1088_v53 = vld [vmem:[#allocation2 + $0xdd8] sm:$0xff] }
 0x164   : > { %v12646_v6 = vcombine.low %v968_v55, %v976_v57 }
 0x166   : > { %3805 = vmatpush1.bf16.msra.mxu0 %v12768_v62  ;;  %4010 = vmatpush1.bf16.msra.mxu1 %v12518_v0  ;;  %v734_v62 = vld [vmem:[#allocation2 + $0x2c8] sm:$0xff]  ;;  %v984_v0 = vld [vmem:[#allocation2 + $0xa98] sm:$0xff] }
 0x167   : > { %3806 = vmatprep.subr.bf16.mxu0 %v12785_v1  ;;  %4011 = vmatprep.subr.bf16.mxu1 %v12535_v7  ;;  %v12647_v1 = vcombine.high %v968_v55, %v976_v57  ;;  %v12403_v7 = vcombine.high %v726_v61, %v734_v62  ;;  %v12402_v14 = vcombine.low %v726_v61, %v734_v62  ;;  %v1104_v61 = vld [vmem:[#allocation2 + $0xe58] sm:$0xff] }
 0x168   : > { %v12662_v15 = vcombine.low %v984_v0, %v992_v2 }
 0x16a   : > { %3807 = vmatpush1.bf16.msra.mxu0 %v12784_v9  ;;  %4012 = vmatpush1.bf16.msra.mxu1 %v12534_v10  ;;  %v750_v9 = vld [vmem:[#allocation2 + $0x348] sm:$0xff]  ;;  %v1000_v10 = vld [vmem:[#allocation2 + $0xb18] sm:$0xff] }
 0x16b   : > { %3808 = vmatprep.subr.bf16.mxu0 %v12801_v12  ;;  %4013 = vmatprep.subr.bf16.mxu1 %v12551_v16  ;;  %v12663_v12 = vcombine.high %v984_v0, %v992_v2  ;;  %v12419_v16 = vcombine.high %v742_v8, %v750_v9  ;;  %v12418_v22 = vcombine.low %v742_v8, %v750_v9  ;;  %v1120_v8 = vld [vmem:[#allocation2 + $0xed8] sm:$0xff] }
 0x16c   : > { %v12678_v23 = vcombine.low %v1000_v10, %v1008_v13 }
 0x16e   : > { %3809 = vmatpush1.bf16.msra.mxu0 %v12800_v18  ;;  %4014 = vmatpush1.bf16.msra.mxu1 %v12550_v19  ;;  %v766_v18 = vld [vmem:[#allocation2 + $0x3c8] sm:$0xff]  ;;  %v1016_v19 = vld [vmem:[#allocation2 + $0xb98] sm:$0xff] }
 0x16f   : > { %3810 = vmatprep.subr.bf16.mxu0 %v12817_v20  ;;  %4015 = vmatprep.subr.bf16.mxu1 %v12567_v24  ;;  %v12679_v20 = vcombine.high %v1000_v10, %v1008_v13  ;;  %v12435_v24 = vcombine.high %v758_v17, %v766_v18  ;;  %v12434_v30 = vcombine.low %v758_v17, %v766_v18  ;;  %v1136_v17 = vld [vmem:[#allocation2 + $0xf58] sm:$0xff] }
 0x170   : > { %v12694_v31 = vcombine.low %v1016_v19, %v1024_v21 }
 0x172   : > { %3811 = vmatpush1.bf16.msra.mxu0 %v12816_v26  ;;  %4016 = vmatpush1.bf16.msra.mxu1 %v12566_v27  ;;  %v782_v26 = vld [vmem:[#allocation2 + $0x448] sm:$0xff]  ;;  %v1032_v27 = vld [vmem:[#allocation2 + $0xc18] sm:$0xff] }
 0x173   : > { %3821 = vmatprep.subr.bf16.mxu0 %v12323_v28  ;;  %4026 = vmatprep.subr.bf16.mxu1 %v12583_v32  ;;  %v12695_v28 = vcombine.high %v1016_v19, %v1024_v21  ;;  %v12451_v32 = vcombine.high %v774_v25, %v782_v26  ;;  %v12450_v38 = vcombine.low %v774_v25, %v782_v26  ;;  %v1152_v25 = vld [vmem:[#allocation2 + $0xfd8] sm:$0xff] }
 0x174   : > { %v12710_v39 = vcombine.low %v1032_v27, %v1040_v29 }
 0x175   : > { %3813 = vmatmul.mubr.bf16.vlgmr.msra.gmra.mrb[0].mxu0 %v15354_v5  ;;  %4018 = vmatmul.mubr.bf16.vlgmr.msra.gmra.mrb[4].mxu1 %v15348_v63 }
 0x176   : > { %3822 = vmatpush1.bf16.msra.mxu0 %v12322_v34  ;;  %4027 = vmatpush1.bf16.msra.mxu1 %v12582_v35  ;;  %v798_v34 = vld [vmem:[#allocation2 + $0x4c8] sm:$0xff]  ;;  %v1048_v35 = vld [vmem:[#allocation2 + $0xc98] sm:$0xff] }
 0x177   : > { %3823 = vmatprep.subr.bf16.mxu0 %v12339_v36  ;;  %4028 = vmatprep.subr.bf16.mxu1 %v12599_v40  ;;  %v12711_v36 = vcombine.high %v1032_v27, %v1040_v29  ;;  %v12467_v40 = vcombine.high %v790_v33, %v798_v34  ;;  %v12727_v41 = vcombine.high %v1048_v35, %v1056_v37 }
 0x178   : > { %3853 = vmatprep.mubr.bf16.mxu0 %v15352_v4  ;;  %4058 = vmatprep.mubr.bf16.mxu1 %v15359_v11  ;;  %v12466_v46 = vcombine.low %v790_v33, %v798_v34  ;;  %v12726_v47 = vcombine.low %v1048_v35, %v1056_v37  ;;  %v658_v33 = vld [vmem:[#allocation2 + $0x68] sm:$0xff] }
 0x17a   : > { %3824 = vmatpush1.bf16.msra.mxu0 %v12338_v42  ;;  %4029 = vmatpush1.bf16.msra.mxu1 %v12598_v43  ;;  %v806_v42 = vld [vmem:[#allocation2 + $0x508] sm:$0xff] }
 0x17b   : > { %3825 = vmatprep.subr.bf16.mxu0 %v12355_v44  ;;  %4030 = vmatprep.subr.bf16.mxu1 %v12615_v48  ;;  %v814_v43 = vld [vmem:[#allocation2 + $0x548] sm:$0xff]  ;;  %v1064_v44 = vld [vmem:[#allocation2 + $0xd18] sm:$0xff] }
 0x17c   : > { %v12483_v48 = vcombine.high %v806_v42, %v814_v43  ;;  %v12743_v49 = vcombine.high %v1064_v44, %v1072_v45  ;;  %v12482_v54 = vcombine.low %v806_v42, %v814_v43  ;;  %v12742_v55 = vcombine.low %v1064_v44, %v1072_v45 }
 0x17e   : > { %3826 = vmatpush1.bf16.msra.mxu0 %v12354_v50  ;;  %4031 = vmatpush1.bf16.msra.mxu1 %v12614_v51  ;;  %v822_v50 = vld [vmem:[#allocation2 + $0x588] sm:$0xff] }
 0x17f   : > { %3827 = vmatprep.subr.bf16.mxu0 %v12371_v52  ;;  %4032 = vmatprep.subr.bf16.mxu1 %v12631_v56  ;;  %v830_v51 = vld [vmem:[#allocation2 + $0x5c8] sm:$0xff]  ;;  %v1080_v52 = vld [vmem:[#allocation2 + $0xd98] sm:$0xff] }
 0x180   : > { %v12499_v56 = vcombine.high %v822_v50, %v830_v51  ;;  %v12759_v57 = vcombine.high %v1080_v52, %v1088_v53  ;;  %v12498_v62 = vcombine.low %v822_v50, %v830_v51  ;;  %v12758_v0 = vcombine.low %v1080_v52, %v1088_v53 }
 0x182   : > { %3828 = vmatpush1.bf16.msra.mxu0 %v12370_v58  ;;  %4033 = vmatpush1.bf16.msra.mxu1 %v12630_v59  ;;  %v838_v58 = vld [vmem:[#allocation2 + $0x608] sm:$0xff] }
 0x183   : > { %3829 = vmatprep.subr.bf16.mxu0 %v12387_v60  ;;  %4034 = vmatprep.subr.bf16.mxu1 %v12647_v1  ;;  %v846_v59 = vld [vmem:[#allocation2 + $0x648] sm:$0xff]  ;;  %v1096_v60 = vld [vmem:[#allocation2 + $0xe18] sm:$0xff] }
 0x184   : > { %v12515_v1 = vcombine.high %v838_v58, %v846_v59  ;;  %v12775_v2 = vcombine.high %v1096_v60, %v1104_v61  ;;  %v12514_v9 = vcombine.low %v838_v58, %v846_v59  ;;  %v12774_v10 = vcombine.low %v1096_v60, %v1104_v61 }
 0x186   : > { %3830 = vmatpush1.bf16.msra.mxu0 %v12386_v3  ;;  %4035 = vmatpush1.bf16.msra.mxu1 %v12646_v6  ;;  %v854_v3 = vld [vmem:[#allocation2 + $0x688] sm:$0xff] }
 0x187   : > { %3831 = vmatprep.subr.bf16.mxu0 %v12403_v7  ;;  %4036 = vmatprep.subr.bf16.mxu1 %v12663_v12  ;;  %v862_v6 = vld [vmem:[#allocation2 + $0x6c8] sm:$0xff]  ;;  %v1112_v7 = vld [vmem:[#allocation2 + $0xe98] sm:$0xff] }
 0x188   : > { %v12531_v12 = vcombine.high %v854_v3, %v862_v6  ;;  %v12791_v13 = vcombine.high %v1112_v7, %v1120_v8  ;;  %v12530_v18 = vcombine.low %v854_v3, %v862_v6  ;;  %v12790_v19 = vcombine.low %v1112_v7, %v1120_v8 }
 0x18a   : > { %3832 = vmatpush1.bf16.msra.mxu0 %v12402_v14  ;;  %4037 = vmatpush1.bf16.msra.mxu1 %v12662_v15  ;;  %v870_v14 = vld [vmem:[#allocation2 + $0x708] sm:$0xff] }
 0x18b   : > { %3833 = vmatprep.subr.bf16.mxu0 %v12419_v16  ;;  %4038 = vmatprep.subr.bf16.mxu1 %v12679_v20  ;;  %v878_v15 = vld [vmem:[#allocation2 + $0x748] sm:$0xff]  ;;  %v1128_v16 = vld [vmem:[#allocation2 + $0xf18] sm:$0xff] }
 0x18c   : > { %v12547_v20 = vcombine.high %v870_v14, %v878_v15  ;;  %v12807_v21 = vcombine.high %v1128_v16, %v1136_v17  ;;  %v12546_v26 = vcombine.low %v870_v14, %v878_v15  ;;  %v12806_v27 = vcombine.low %v1128_v16, %v1136_v17 }
 0x18e   : > { %3834 = vmatpush1.bf16.msra.mxu0 %v12418_v22  ;;  %4039 = vmatpush1.bf16.msra.mxu1 %v12678_v23  ;;  %v886_v22 = vld [vmem:[#allocation2 + $0x788] sm:$0xff] }
 0x18f   : > { %3835 = vmatprep.subr.bf16.mxu0 %v12435_v24  ;;  %4040 = vmatprep.subr.bf16.mxu1 %v12695_v28  ;;  %v894_v23 = vld [vmem:[#allocation2 + $0x7c8] sm:$0xff]  ;;  %v1144_v24 = vld [vmem:[#allocation2 + $0xf98] sm:$0xff] }
 0x190   : > { %v12563_v28 = vcombine.high %v886_v22, %v894_v23  ;;  %v12823_v29 = vcombine.high %v1144_v24, %v1152_v25  ;;  %v12562_v34 = vcombine.low %v886_v22, %v894_v23  ;;  %v12822_v35 = vcombine.low %v1144_v24, %v1152_v25 }
 0x192   : > { %3836 = vmatpush1.bf16.msra.mxu0 %v12434_v30  ;;  %4041 = vmatpush1.bf16.msra.mxu1 %v12694_v31  ;;  %v647_v30 = vld [vmem:[#allocation2 + $0x10] sm:$0xff] }
 0x193   : > { %3837 = vmatprep.subr.bf16.mxu0 %v12451_v32  ;;  %4042 = vmatprep.subr.bf16.mxu1 %v12711_v36  ;;  %v655_v31 = vld [vmem:[#allocation2 + $0x50] sm:$0xff]  ;;  %v650_v32 = vld [vmem:[#allocation2 + $0x28] sm:$0xff] }
 0x194   : > { %v12325_v36 = vcombine.high %v647_v30, %v655_v31  ;;  %v12331_v37 = vcombine.high %v650_v32, %v658_v33  ;;  %v12324_v42 = vcombine.low %v647_v30, %v655_v31  ;;  %v12330_v43 = vcombine.low %v650_v32, %v658_v33 }
 0x196   : > { %3838 = vmatpush1.bf16.msra.mxu0 %v12450_v38  ;;  %4043 = vmatpush1.bf16.msra.mxu1 %v12710_v39  ;;  %v663_v38 = vld [vmem:[#allocation2 + $0x90] sm:$0xff] }
 0x197   : > { %3839 = vmatprep.subr.bf16.mxu0 %v12467_v40  ;;  %4044 = vmatprep.subr.bf16.mxu1 %v12727_v41  ;;  %v671_v39 = vld [vmem:[#allocation2 + $0xd0] sm:$0xff]  ;;  %v666_v40 = vld [vmem:[#allocation2 + $0xa8] sm:$0xff] }
 0x198   : > { %v674_v41 = vld [vmem:[#allocation2 + $0xe8] sm:$0xff]  ;;  %v12341_v44 = vcombine.high %v663_v38, %v671_v39  ;;  %v12340_v50 = vcombine.low %v663_v38, %v671_v39 }
 0x199   : > { %v12347_v45 = vcombine.high %v666_v40, %v674_v41  ;;  %v12346_v51 = vcombine.low %v666_v40, %v674_v41 }
 0x19a   : > { %3840 = vmatpush1.bf16.msra.mxu0 %v12466_v46  ;;  %4045 = vmatpush1.bf16.msra.mxu1 %v12726_v47  ;;  %v679_v46 = vld [vmem:[#allocation2 + $0x110] sm:$0xff] }
 0x19b   : > { %3841 = vmatprep.subr.bf16.mxu0 %v12483_v48  ;;  %4046 = vmatprep.subr.bf16.mxu1 %v12743_v49  ;;  %v687_v47 = vld [vmem:[#allocation2 + $0x150] sm:$0xff]  ;;  %v682_v48 = vld [vmem:[#allocation2 + $0x128] sm:$0xff] }
 0x19c   : > { %v690_v49 = vld [vmem:[#allocation2 + $0x168] sm:$0xff]  ;;  %v12357_v52 = vcombine.high %v679_v46, %v687_v47  ;;  %v12356_v58 = vcombine.low %v679_v46, %v687_v47 }
 0x19d   : > { %v12363_v53 = vcombine.high %v682_v48, %v690_v49  ;;  %v12362_v59 = vcombine.low %v682_v48, %v690_v49 }
 0x19e   : > { %3842 = vmatpush1.bf16.msra.mxu0 %v12482_v54  ;;  %4047 = vmatpush1.bf16.msra.mxu1 %v12742_v55  ;;  %v695_v54 = vld [vmem:[#allocation2 + $0x190] sm:$0xff] }
 0x19f   : > { %3843 = vmatprep.subr.bf16.mxu0 %v12499_v56  ;;  %4048 = vmatprep.subr.bf16.mxu1 %v12759_v57  ;;  %v703_v55 = vld [vmem:[#allocation2 + $0x1d0] sm:$0xff]  ;;  %v698_v56 = vld [vmem:[#allocation2 + $0x1a8] sm:$0xff] }
 0x1a0   : > { %v706_v57 = vld [vmem:[#allocation2 + $0x1e8] sm:$0xff]  ;;  %v12373_v60 = vcombine.high %v695_v54, %v703_v55  ;;  %v12372_v3 = vcombine.low %v695_v54, %v703_v55 }
 0x1a1   : > { %v12379_v61 = vcombine.high %v698_v56, %v706_v57  ;;  %v12378_v6 = vcombine.low %v698_v56, %v706_v57 }
 0x1a2   : > { %3844 = vmatpush1.bf16.msra.mxu0 %v12498_v62  ;;  %4049 = vmatpush1.bf16.msra.mxu1 %v12758_v0  ;;  %v711_v62 = vld [vmem:[#allocation2 + $0x210] sm:$0xff] }
 0x1a3   : > { %3845 = vmatprep.subr.bf16.mxu0 %v12515_v1  ;;  %4050 = vmatprep.subr.bf16.mxu1 %v12775_v2  ;;  %v719_v0 = vld [vmem:[#allocation2 + $0x250] sm:$0xff]  ;;  %v714_v1 = vld [vmem:[#allocation2 + $0x228] sm:$0xff] }
 0x1a4   : > { %v722_v2 = vld [vmem:[#allocation2 + $0x268] sm:$0xff]  ;;  %v12389_v7 = vcombine.high %v711_v62, %v719_v0  ;;  %v12388_v14 = vcombine.low %v711_v62, %v719_v0 }
 0x1a5   : > { %v12395_v8 = vcombine.high %v714_v1, %v722_v2  ;;  %v12394_v15 = vcombine.low %v714_v1, %v722_v2 }
 0x1a6   : > { %3846 = vmatpush1.bf16.msra.mxu0 %v12514_v9  ;;  %4051 = vmatpush1.bf16.msra.mxu1 %v12774_v10  ;;  %v727_v9 = vld [vmem:[#allocation2 + $0x290] sm:$0xff] }
 0x1a7   : > { %3847 = vmatprep.subr.bf16.mxu0 %v12531_v12  ;;  %4052 = vmatprep.subr.bf16.mxu1 %v12791_v13  ;;  %v735_v10 = vld [vmem:[#allocation2 + $0x2d0] sm:$0xff]  ;;  %v730_v12 = vld [vmem:[#allocation2 + $0x2a8] sm:$0xff] }
 0x1a8   : > { %v738_v13 = vld [vmem:[#allocation2 + $0x2e8] sm:$0xff]  ;;  %v12405_v16 = vcombine.high %v727_v9, %v735_v10  ;;  %v12404_v22 = vcombine.low %v727_v9, %v735_v10 }
 0x1a9   : > { %v12411_v17 = vcombine.high %v730_v12, %v738_v13  ;;  %v12410_v23 = vcombine.low %v730_v12, %v738_v13 }
 0x1aa   : > { %3848 = vmatpush1.bf16.msra.mxu0 %v12530_v18  ;;  %4053 = vmatpush1.bf16.msra.mxu1 %v12790_v19  ;;  %v743_v18 = vld [vmem:[#allocation2 + $0x310] sm:$0xff] }
 0x1ab   : > { %3849 = vmatprep.subr.bf16.mxu0 %v12547_v20  ;;  %4054 = vmatprep.subr.bf16.mxu1 %v12807_v21  ;;  %v751_v19 = vld [vmem:[#allocation2 + $0x350] sm:$0xff]  ;;  %v746_v20 = vld [vmem:[#allocation2 + $0x328] sm:$0xff] }
 0x1ac   : > { %v754_v21 = vld [vmem:[#allocation2 + $0x368] sm:$0xff]  ;;  %v12421_v24 = vcombine.high %v743_v18, %v751_v19  ;;  %v12420_v30 = vcombine.low %v743_v18, %v751_v19 }
 0x1ad   : > { %v12427_v25 = vcombine.high %v746_v20, %v754_v21  ;;  %v12426_v31 = vcombine.low %v746_v20, %v754_v21 }
 0x1ae   : > { %3850 = vmatpush1.bf16.msra.mxu0 %v12546_v26  ;;  %4055 = vmatpush1.bf16.msra.mxu1 %v12806_v27  ;;  %v759_v26 = vld [vmem:[#allocation2 + $0x390] sm:$0xff] }
 0x1af   : > { %3851 = vmatprep.subr.bf16.mxu0 %v12563_v28  ;;  %4056 = vmatprep.subr.bf16.mxu1 %v12823_v29  ;;  %v767_v27 = vld [vmem:[#allocation2 + $0x3d0] sm:$0xff]  ;;  %v762_v28 = vld [vmem:[#allocation2 + $0x3a8] sm:$0xff] }
 0x1b0   : > { %v770_v29 = vld [vmem:[#allocation2 + $0x3e8] sm:$0xff]  ;;  %v12437_v32 = vcombine.high %v759_v26, %v767_v27  ;;  %v12436_v38 = vcombine.low %v759_v26, %v767_v27 }
 0x1b1   : > { %v12443_v33 = vcombine.high %v762_v28, %v770_v29  ;;  %v12442_v39 = vcombine.low %v762_v28, %v770_v29 }
 0x1b2   : > { %3852 = vmatpush1.bf16.msra.mxu0 %v12562_v34  ;;  %4057 = vmatpush1.bf16.msra.mxu1 %v12822_v35  ;;  %v775_v34 = vld [vmem:[#allocation2 + $0x410] sm:$0xff] }
 0x1b3   : > { %3903 = vmatprep.subr.bf16.mxu0 %v12325_v36  ;;  %4149 = vmatprep.subr.bf16.mxu1 %v12331_v37  ;;  %v783_v35 = vld [vmem:[#allocation2 + $0x450] sm:$0xff]  ;;  %v778_v36 = vld [vmem:[#allocation2 + $0x428] sm:$0xff] }
 0x1b4   : > { %v786_v37 = vld [vmem:[#allocation2 + $0x468] sm:$0xff]  ;;  %v12453_v40 = vcombine.high %v775_v34, %v783_v35  ;;  %v12452_v46 = vcombine.low %v775_v34, %v783_v35 }
 0x1b5   : > { %3854 = vmatmul.mubr.bf16.vlgmr.msra.gmra.mrb[4].mxu0 %v15348_v63  ;;  %4059 = vmatmul.mubr.bf16.vlgmr.msra.gmra.mrb[4].mxu1 %v15354_v5  ;;  %v12459_v41 = vcombine.high %v778_v36, %v786_v37  ;;  %v12458_v47 = vcombine.low %v778_v36, %v786_v37 }
 0x1b6   : > { %3904 = vmatpush1.bf16.msra.mxu0 %v12324_v42  ;;  %4150 = vmatpush1.bf16.msra.mxu1 %v12330_v43  ;;  %v791_v42 = vld [vmem:[#allocation2 + $0x490] sm:$0xff] }
 0x1b7   : > { %3905 = vmatprep.subr.bf16.mxu0 %v12341_v44  ;;  %4151 = vmatprep.subr.bf16.mxu1 %v12347_v45  ;;  %v799_v43 = vld [vmem:[#allocation2 + $0x4d0] sm:$0xff]  ;;  %v794_v44 = vld [vmem:[#allocation2 + $0x4a8] sm:$0xff] }
 0x1b8   : > { %3935 = vmatprep.mubr.bf16.mxu0 %v15352_v4  ;;  %4181 = vmatprep.mubr.bf16.mxu1 %v15352_v4  ;;  %v802_v45 = vld [vmem:[#allocation2 + $0x4e8] sm:$0xff]  ;;  %v12469_v48 = vcombine.high %v791_v42, %v799_v43  ;;  %v12468_v54 = vcombine.low %v791_v42, %v799_v43 }
 0x1b9   : > { %v12475_v49 = vcombine.high %v794_v44, %v802_v45  ;;  %v12474_v55 = vcombine.low %v794_v44, %v802_v45 }
 0x1ba   : > { %3906 = vmatpush1.bf16.msra.mxu0 %v12340_v50  ;;  %4152 = vmatpush1.bf16.msra.mxu1 %v12346_v51  ;;  %v807_v50 = vld [vmem:[#allocation2 + $0x510] sm:$0xff] }
 0x1bb   : > { %3907 = vmatprep.subr.bf16.mxu0 %v12357_v52  ;;  %4153 = vmatprep.subr.bf16.mxu1 %v12363_v53  ;;  %v815_v51 = vld [vmem:[#allocation2 + $0x550] sm:$0xff]  ;;  %v810_v52 = vld [vmem:[#allocation2 + $0x528] sm:$0xff] }
 0x1bc   : > { %v818_v53 = vld [vmem:[#allocation2 + $0x568] sm:$0xff]  ;;  %v12485_v56 = vcombine.high %v807_v50, %v815_v51  ;;  %v12484_v62 = vcombine.low %v807_v50, %v815_v51 }
 0x1bd   : > { %v12491_v57 = vcombine.high %v810_v52, %v818_v53  ;;  %v12490_v0 = vcombine.low %v810_v52, %v818_v53 }
 0x1be   : > { %3908 = vmatpush1.bf16.msra.mxu0 %v12356_v58  ;;  %4154 = vmatpush1.bf16.msra.mxu1 %v12362_v59  ;;  %v823_v58 = vld [vmem:[#allocation2 + $0x590] sm:$0xff] }
 0x1bf   : > { %3909 = vmatprep.subr.bf16.mxu0 %v12373_v60  ;;  %4155 = vmatprep.subr.bf16.mxu1 %v12379_v61  ;;  %v831_v59 = vld [vmem:[#allocation2 + $0x5d0] sm:$0xff]  ;;  %v826_v60 = vld [vmem:[#allocation2 + $0x5a8] sm:$0xff] }
 0x1c0   : > { %v834_v61 = vld [vmem:[#allocation2 + $0x5e8] sm:$0xff]  ;;  %v12501_v1 = vcombine.high %v823_v58, %v831_v59  ;;  %v12500_v9 = vcombine.low %v823_v58, %v831_v59 }
 0x1c1   : > { %v12507_v2 = vcombine.high %v826_v60, %v834_v61  ;;  %v12506_v10 = vcombine.low %v826_v60, %v834_v61 }
 0x1c2   : > { %3910 = vmatpush1.bf16.msra.mxu0 %v12372_v3  ;;  %4156 = vmatpush1.bf16.msra.mxu1 %v12378_v6  ;;  %v839_v3 = vld [vmem:[#allocation2 + $0x610] sm:$0xff] }
 0x1c3   : > { %3911 = vmatprep.subr.bf16.mxu0 %v12389_v7  ;;  %4157 = vmatprep.subr.bf16.mxu1 %v12395_v8  ;;  %v847_v6 = vld [vmem:[#allocation2 + $0x650] sm:$0xff]  ;;  %v842_v7 = vld [vmem:[#allocation2 + $0x628] sm:$0xff] }
 0x1c4   : > { %v850_v8 = vld [vmem:[#allocation2 + $0x668] sm:$0xff]  ;;  %v12517_v12 = vcombine.high %v839_v3, %v847_v6  ;;  %v12516_v18 = vcombine.low %v839_v3, %v847_v6 }
 0x1c5   : > { %v12523_v13 = vcombine.high %v842_v7, %v850_v8  ;;  %v12522_v19 = vcombine.low %v842_v7, %v850_v8 }
 0x1c6   : > { %3912 = vmatpush1.bf16.msra.mxu0 %v12388_v14  ;;  %4158 = vmatpush1.bf16.msra.mxu1 %v12394_v15  ;;  %v855_v14 = vld [vmem:[#allocation2 + $0x690] sm:$0xff] }
 0x1c7   : > { %3913 = vmatprep.subr.bf16.mxu0 %v12405_v16  ;;  %4159 = vmatprep.subr.bf16.mxu1 %v12411_v17  ;;  %v863_v15 = vld [vmem:[#allocation2 + $0x6d0] sm:$0xff]  ;;  %v858_v16 = vld [vmem:[#allocation2 + $0x6a8] sm:$0xff] }
 0x1c8   : > { %v866_v17 = vld [vmem:[#allocation2 + $0x6e8] sm:$0xff]  ;;  %v12533_v20 = vcombine.high %v855_v14, %v863_v15  ;;  %v12532_v26 = vcombine.low %v855_v14, %v863_v15 }
 0x1c9   : > { %v12539_v21 = vcombine.high %v858_v16, %v866_v17  ;;  %v12538_v27 = vcombine.low %v858_v16, %v866_v17 }
 0x1ca   : > { %3914 = vmatpush1.bf16.msra.mxu0 %v12404_v22  ;;  %4160 = vmatpush1.bf16.msra.mxu1 %v12410_v23  ;;  %v871_v22 = vld [vmem:[#allocation2 + $0x710] sm:$0xff] }
 0x1cb   : > { %3915 = vmatprep.subr.bf16.mxu0 %v12421_v24  ;;  %4161 = vmatprep.subr.bf16.mxu1 %v12427_v25  ;;  %v879_v23 = vld [vmem:[#allocation2 + $0x750] sm:$0xff]  ;;  %v874_v24 = vld [vmem:[#allocation2 + $0x728] sm:$0xff] }
 0x1cc   : > { %v882_v25 = vld [vmem:[#allocation2 + $0x768] sm:$0xff]  ;;  %v12549_v28 = vcombine.high %v871_v22, %v879_v23  ;;  %v12548_v34 = vcombine.low %v871_v22, %v879_v23 }
 0x1cd   : > { %v12555_v29 = vcombine.high %v874_v24, %v882_v25  ;;  %v12554_v35 = vcombine.low %v874_v24, %v882_v25 }
 0x1ce   : > { %3916 = vmatpush1.bf16.msra.mxu0 %v12420_v30  ;;  %4162 = vmatpush1.bf16.msra.mxu1 %v12426_v31  ;;  %v887_v30 = vld [vmem:[#allocation2 + $0x790] sm:$0xff] }
 0x1cf   : > { %3917 = vmatprep.subr.bf16.mxu0 %v12437_v32  ;;  %4163 = vmatprep.subr.bf16.mxu1 %v12443_v33  ;;  %v895_v31 = vld [vmem:[#allocation2 + $0x7d0] sm:$0xff]  ;;  %v890_v32 = vld [vmem:[#allocation2 + $0x7a8] sm:$0xff] }
 0x1d0   : > { %v898_v33 = vld [vmem:[#allocation2 + $0x7e8] sm:$0xff]  ;;  %v12565_v36 = vcombine.high %v887_v30, %v895_v31  ;;  %v12564_v42 = vcombine.low %v887_v30, %v895_v31 }
 0x1d1   : > { %v12571_v37 = vcombine.high %v890_v32, %v898_v33  ;;  %v12570_v43 = vcombine.low %v890_v32, %v898_v33 }
 0x1d2   : > { %3918 = vmatpush1.bf16.msra.mxu0 %v12436_v38  ;;  %4164 = vmatpush1.bf16.msra.mxu1 %v12442_v39  ;;  %v903_v38 = vld [vmem:[#allocation2 + $0x810] sm:$0xff] }
 0x1d3   : > { %3919 = vmatprep.subr.bf16.mxu0 %v12453_v40  ;;  %4165 = vmatprep.subr.bf16.mxu1 %v12459_v41  ;;  %v911_v39 = vld [vmem:[#allocation2 + $0x850] sm:$0xff]  ;;  %v906_v40 = vld [vmem:[#allocation2 + $0x828] sm:$0xff] }
 0x1d4   : > { %v914_v41 = vld [vmem:[#allocation2 + $0x868] sm:$0xff]  ;;  %v12581_v44 = vcombine.high %v903_v38, %v911_v39  ;;  %v12580_v50 = vcombine.low %v903_v38, %v911_v39 }
 0x1d5   : > { %v12587_v45 = vcombine.high %v906_v40, %v914_v41  ;;  %v12586_v51 = vcombine.low %v906_v40, %v914_v41 }
 0x1d6   : > { %3920 = vmatpush1.bf16.msra.mxu0 %v12452_v46  ;;  %4166 = vmatpush1.bf16.msra.mxu1 %v12458_v47  ;;  %v919_v46 = vld [vmem:[#allocation2 + $0x890] sm:$0xff] }
 0x1d7   : > { %3921 = vmatprep.subr.bf16.mxu0 %v12469_v48  ;;  %4167 = vmatprep.subr.bf16.mxu1 %v12475_v49  ;;  %v927_v47 = vld [vmem:[#allocation2 + $0x8d0] sm:$0xff]  ;;  %v922_v48 = vld [vmem:[#allocation2 + $0x8a8] sm:$0xff] }
 0x1d8   : > { %v930_v49 = vld [vmem:[#allocation2 + $0x8e8] sm:$0xff]  ;;  %v12597_v52 = vcombine.high %v919_v46, %v927_v47  ;;  %v12596_v58 = vcombine.low %v919_v46, %v927_v47  ;;  %v1039_v46 = vld [vmem:[#allocation2 + $0xc50] sm:$0xff] }
 0x1d9   : > { %v12603_v53 = vcombine.high %v922_v48, %v930_v49  ;;  %v12602_v59 = vcombine.low %v922_v48, %v930_v49  ;;  %v1034_v48 = vld [vmem:[#allocation2 + $0xc28] sm:$0xff] }
 0x1da   : > { %3922 = vmatpush1.bf16.msra.mxu0 %v12468_v54  ;;  %4168 = vmatpush1.bf16.msra.mxu1 %v12474_v55  ;;  %v935_v54 = vld [vmem:[#allocation2 + $0x910] sm:$0xff]  ;;  %v1042_v49 = vld [vmem:[#allocation2 + $0xc68] sm:$0xff] }
 0x1db   : > { %3923 = vmatprep.subr.bf16.mxu0 %v12485_v56  ;;  %4169 = vmatprep.subr.bf16.mxu1 %v12491_v57  ;;  %v943_v55 = vld [vmem:[#allocation2 + $0x950] sm:$0xff]  ;;  %v938_v56 = vld [vmem:[#allocation2 + $0x928] sm:$0xff] }
 0x1dc   : > { %v946_v57 = vld [vmem:[#allocation2 + $0x968] sm:$0xff]  ;;  %v12613_v60 = vcombine.high %v935_v54, %v943_v55  ;;  %v12612_v3 = vcombine.low %v935_v54, %v943_v55  ;;  %v1047_v54 = vld [vmem:[#allocation2 + $0xc90] sm:$0xff] }
 0x1dd   : > { %v12619_v61 = vcombine.high %v938_v56, %v946_v57  ;;  %v12618_v6 = vcombine.low %v938_v56, %v946_v57  ;;  %v1055_v55 = vld [vmem:[#allocation2 + $0xcd0] sm:$0xff]  ;;  %v1050_v56 = vld [vmem:[#allocation2 + $0xca8] sm:$0xff] }
 0x1de   : > { %3924 = vmatpush1.bf16.msra.mxu0 %v12484_v62  ;;  %4170 = vmatpush1.bf16.msra.mxu1 %v12490_v0  ;;  %v951_v62 = vld [vmem:[#allocation2 + $0x990] sm:$0xff]  ;;  %v1058_v57 = vld [vmem:[#allocation2 + $0xce8] sm:$0xff] }
 0x1df   : > { %3925 = vmatprep.subr.bf16.mxu0 %v12501_v1  ;;  %4171 = vmatprep.subr.bf16.mxu1 %v12507_v2  ;;  %v959_v0 = vld [vmem:[#allocation2 + $0x9d0] sm:$0xff]  ;;  %v954_v1 = vld [vmem:[#allocation2 + $0x9a8] sm:$0xff] }
 0x1e0   : > { %v962_v2 = vld [vmem:[#allocation2 + $0x9e8] sm:$0xff]  ;;  %v12629_v7 = vcombine.high %v951_v62, %v959_v0  ;;  %v12628_v14 = vcombine.low %v951_v62, %v959_v0  ;;  %v1063_v62 = vld [vmem:[#allocation2 + $0xd10] sm:$0xff] }
 0x1e1   : > { %v12635_v8 = vcombine.high %v954_v1, %v962_v2  ;;  %v12634_v15 = vcombine.low %v954_v1, %v962_v2  ;;  %v1071_v0 = vld [vmem:[#allocation2 + $0xd50] sm:$0xff]  ;;  %v1066_v1 = vld [vmem:[#allocation2 + $0xd28] sm:$0xff] }
 0x1e2   : > { %3926 = vmatpush1.bf16.msra.mxu0 %v12500_v9  ;;  %4172 = vmatpush1.bf16.msra.mxu1 %v12506_v10  ;;  %v967_v9 = vld [vmem:[#allocation2 + $0xa10] sm:$0xff]  ;;  %v1074_v2 = vld [vmem:[#allocation2 + $0xd68] sm:$0xff] }
 0x1e3   : > { %3927 = vmatprep.subr.bf16.mxu0 %v12517_v12  ;;  %4173 = vmatprep.subr.bf16.mxu1 %v12523_v13  ;;  %v975_v10 = vld [vmem:[#allocation2 + $0xa50] sm:$0xff]  ;;  %v970_v12 = vld [vmem:[#allocation2 + $0xa28] sm:$0xff] }
 0x1e4   : > { %v978_v13 = vld [vmem:[#allocation2 + $0xa68] sm:$0xff]  ;;  %v12645_v16 = vcombine.high %v967_v9, %v975_v10  ;;  %v12644_v22 = vcombine.low %v967_v9, %v975_v10  ;;  %v1079_v9 = vld [vmem:[#allocation2 + $0xd90] sm:$0xff] }
 0x1e5   : > { %v12651_v17 = vcombine.high %v970_v12, %v978_v13  ;;  %v12650_v23 = vcombine.low %v970_v12, %v978_v13  ;;  %v1087_v10 = vld [vmem:[#allocation2 + $0xdd0] sm:$0xff]  ;;  %v1082_v12 = vld [vmem:[#allocation2 + $0xda8] sm:$0xff] }
 0x1e6   : > { %3928 = vmatpush1.bf16.msra.mxu0 %v12516_v18  ;;  %4174 = vmatpush1.bf16.msra.mxu1 %v12522_v19  ;;  %v983_v18 = vld [vmem:[#allocation2 + $0xa90] sm:$0xff]  ;;  %v1090_v13 = vld [vmem:[#allocation2 + $0xde8] sm:$0xff] }
 0x1e7   : > { %3929 = vmatprep.subr.bf16.mxu0 %v12533_v20  ;;  %4175 = vmatprep.subr.bf16.mxu1 %v12539_v21  ;;  %v991_v19 = vld [vmem:[#allocation2 + $0xad0] sm:$0xff]  ;;  %v986_v20 = vld [vmem:[#allocation2 + $0xaa8] sm:$0xff] }
 0x1e8   : > { %v994_v21 = vld [vmem:[#allocation2 + $0xae8] sm:$0xff]  ;;  %v12661_v24 = vcombine.high %v983_v18, %v991_v19  ;;  %v12660_v30 = vcombine.low %v983_v18, %v991_v19  ;;  %v1095_v18 = vld [vmem:[#allocation2 + $0xe10] sm:$0xff] }
 0x1e9   : > { %v12667_v25 = vcombine.high %v986_v20, %v994_v21  ;;  %v12666_v31 = vcombine.low %v986_v20, %v994_v21  ;;  %v1103_v19 = vld [vmem:[#allocation2 + $0xe50] sm:$0xff]  ;;  %v1098_v20 = vld [vmem:[#allocation2 + $0xe28] sm:$0xff] }
 0x1ea   : > { %3930 = vmatpush1.bf16.msra.mxu0 %v12532_v26  ;;  %4176 = vmatpush1.bf16.msra.mxu1 %v12538_v27  ;;  %v999_v26 = vld [vmem:[#allocation2 + $0xb10] sm:$0xff]  ;;  %v1106_v21 = vld [vmem:[#allocation2 + $0xe68] sm:$0xff] }
 0x1eb   : > { %3931 = vmatprep.subr.bf16.mxu0 %v12549_v28  ;;  %4177 = vmatprep.subr.bf16.mxu1 %v12555_v29  ;;  %v1007_v27 = vld [vmem:[#allocation2 + $0xb50] sm:$0xff]  ;;  %v1002_v28 = vld [vmem:[#allocation2 + $0xb28] sm:$0xff] }
 0x1ec   : > { %v1010_v29 = vld [vmem:[#allocation2 + $0xb68] sm:$0xff]  ;;  %v12677_v32 = vcombine.high %v999_v26, %v1007_v27  ;;  %v12676_v39 = vcombine.low %v999_v26, %v1007_v27  ;;  %v1111_v26 = vld [vmem:[#allocation2 + $0xe90] sm:$0xff] }
 0x1ed   : > { %v12683_v33 = vcombine.high %v1002_v28, %v1010_v29  ;;  %v12682_v41 = vcombine.low %v1002_v28, %v1010_v29  ;;  %v1119_v27 = vld [vmem:[#allocation2 + $0xed0] sm:$0xff]  ;;  %v1114_v28 = vld [vmem:[#allocation2 + $0xea8] sm:$0xff] }
 0x1ee   : > { %3932 = vmatpush1.bf16.msra.mxu0 %v12548_v34  ;;  %4178 = vmatpush1.bf16.msra.mxu1 %v12554_v35  ;;  %v1015_v34 = vld [vmem:[#allocation2 + $0xb90] sm:$0xff]  ;;  %v1122_v29 = vld [vmem:[#allocation2 + $0xee8] sm:$0xff] }
 0x1ef   : > { %3933 = vmatprep.subr.bf16.mxu0 %v12565_v36  ;;  %4179 = vmatprep.subr.bf16.mxu1 %v12571_v37  ;;  %v1023_v35 = vld [vmem:[#allocation2 + $0xbd0] sm:$0xff]  ;;  %v1018_v36 = vld [vmem:[#allocation2 + $0xba8] sm:$0xff] }
 0x1f0   : > { %v1026_v37 = vld [vmem:[#allocation2 + $0xbe8] sm:$0xff] }
 0x1f2   : > { %3934 = vmatpush1.bf16.msra.mxu0 %v12564_v42  ;;  %4180 = vmatpush1.bf16.msra.mxu1 %v12570_v43  ;;  %v12693_v42 = vcombine.high %v1015_v34, %v1023_v35 }
 0x1f3   : > { %3944 = vmatprep.subr.bf16.mxu0 %v12581_v44  ;;  %4190 = vmatprep.subr.bf16.mxu1 %v12587_v45  ;;  %v12699_v44 = vcombine.high %v1018_v36, %v1026_v37  ;;  %v1031_v45 = vld [vmem:[#allocation2 + $0xc10] sm:$0xff] }
 0x1f5   : > { %3936 = vmatmul.mubr.bf16.vlgmr.msra.gmra.mrb[8].mxu0 %v15348_v63  ;;  %4182 = vmatmul.mubr.bf16.vlgmr.msra.gmra.mrb[8].mxu1 %v15348_v63 }
 0x1f6   : > { %3945 = vmatpush1.bf16.msra.mxu0 %v12580_v50  ;;  %4191 = vmatpush1.bf16.msra.mxu1 %v12586_v51  ;;  %v12692_v50 = vcombine.low %v1015_v34, %v1023_v35  ;;  %v12698_v51 = vcombine.low %v1018_v36, %v1026_v37  ;;  %v1127_v34 = vld [vmem:[#allocation2 + $0xf10] sm:$0xff]  ;;  %v1130_v36 = vld [vmem:[#allocation2 + $0xf28] sm:$0xff] }
 0x1f7   : > { %3946 = vmatprep.subr.bf16.mxu0 %v12597_v52  ;;  %4192 = vmatprep.subr.bf16.mxu1 %v12603_v53  ;;  %v12709_v52 = vcombine.high %v1031_v45, %v1039_v46  ;;  %v12715_v53 = vcombine.high %v1034_v48, %v1042_v49  ;;  %v1135_v35 = vld [vmem:[#allocation2 + $0xf50] sm:$0xff]  ;;  %v1138_v37 = vld [vmem:[#allocation2 + $0xf68] sm:$0xff] }
 0x1f8   : > { %3976 = vmatprep.mubr.bf16.mxu0 %v15359_v11  ;;  %4222 = vmatprep.mubr.bf16.mxu1 %v15359_v11 }
 0x1fa   : > { %3947 = vmatpush1.bf16.msra.mxu0 %v12596_v58  ;;  %4193 = vmatpush1.bf16.msra.mxu1 %v12602_v59  ;;  %v12708_v58 = vcombine.low %v1031_v45, %v1039_v46  ;;  %v12714_v59 = vcombine.low %v1034_v48, %v1042_v49  ;;  %v1151_v45 = vld [vmem:[#allocation2 + $0xfd0] sm:$0xff]  ;;  %v1146_v46 = vld [vmem:[#allocation2 + $0xfa8] sm:$0xff]  ;;  %v12804_v48 = vcombine.low %v1127_v34, %v1135_v35 }
 0x1fb   : > { %3948 = vmatprep.subr.bf16.mxu0 %v12613_v60  ;;  %4194 = vmatprep.subr.bf16.mxu1 %v12619_v61  ;;  %v12725_v60 = vcombine.high %v1047_v54, %v1055_v55  ;;  %v12731_v61 = vcombine.high %v1050_v56, %v1058_v57  ;;  %v12810_v49 = vcombine.low %v1130_v36, %v1138_v37 }
 0x1fe   : > { %3949 = vmatpush1.bf16.msra.mxu0 %v12612_v3  ;;  %4195 = vmatpush1.bf16.msra.mxu1 %v12618_v6  ;;  %v12724_v3 = vcombine.low %v1047_v54, %v1055_v55  ;;  %v12730_v6 = vcombine.low %v1050_v56, %v1058_v57  ;;  %v652_v54 = vld [vmem:[#allocation2 + $0x38] sm:$0xff] }
 0x1ff   : > { %3950 = vmatprep.subr.bf16.mxu0 %v12629_v7  ;;  %4196 = vmatprep.subr.bf16.mxu1 %v12635_v8  ;;  %v12741_v7 = vcombine.high %v1063_v62, %v1071_v0  ;;  %v12747_v8 = vcombine.high %v1066_v1, %v1074_v2  ;;  %v660_v55 = vld [vmem:[#allocation2 + $0x78] sm:$0xff] }
 0x202   : > { %3951 = vmatpush1.bf16.msra.mxu0 %v12628_v14  ;;  %4197 = vmatpush1.bf16.msra.mxu1 %v12634_v15  ;;  %v12740_v14 = vcombine.low %v1063_v62, %v1071_v0  ;;  %v12746_v15 = vcombine.low %v1066_v1, %v1074_v2  ;;  %v668_v62 = vld [vmem:[#allocation2 + $0xb8] sm:$0xff]  ;;  %v12334_v2 = vcombine.low %v652_v54, %v660_v55 }
 0x203   : > { %3952 = vmatprep.subr.bf16.mxu0 %v12645_v16  ;;  %4198 = vmatprep.subr.bf16.mxu1 %v12651_v17  ;;  %v12757_v16 = vcombine.high %v1079_v9, %v1087_v10  ;;  %v12763_v17 = vcombine.high %v1082_v12, %v1090_v13  ;;  %v676_v0 = vld [vmem:[#allocation2 + $0xf8] sm:$0xff] }
 0x206   : > { %3953 = vmatpush1.bf16.msra.mxu0 %v12644_v22  ;;  %4199 = vmatpush1.bf16.msra.mxu1 %v12650_v23  ;;  %v12756_v22 = vcombine.low %v1079_v9, %v1087_v10  ;;  %v12762_v23 = vcombine.low %v1082_v12, %v1090_v13  ;;  %v684_v9 = vld [vmem:[#allocation2 + $0x138] sm:$0xff]  ;;  %v12350_v13 = vcombine.low %v668_v62, %v676_v0 }
 0x207   : > { %3954 = vmatprep.subr.bf16.mxu0 %v12661_v24  ;;  %4200 = vmatprep.subr.bf16.mxu1 %v12667_v25  ;;  %v12773_v24 = vcombine.high %v1095_v18, %v1103_v19  ;;  %v12779_v25 = vcombine.high %v1098_v20, %v1106_v21  ;;  %v692_v10 = vld [vmem:[#allocation2 + $0x178] sm:$0xff] }
 0x208   : > { %v15378_v38 = vpop.f32.mrb[0].mxu1 }
 0x209   : > { %v15380_v40 = vpop.f32.mrb[1].mxu1 }
 0x20a   : > { %3955 = vmatpush1.bf16.msra.mxu0 %v12660_v30  ;;  %4201 = vmatpush1.bf16.msra.mxu1 %v12666_v31  ;;  %v3900_v43 = vpop.f32.mrb[2].mxu1  ;;  %v12772_v30 = vcombine.low %v1095_v18, %v1103_v19  ;;  %v12778_v31 = vcombine.low %v1098_v20, %v1106_v21  ;;  %v700_v18 = vld [vmem:[#allocation2 + $0x1b8] sm:$0xff]  ;;  %v12366_v21 = vcombine.low %v684_v9, %v692_v10 }
 0x20b   : > { %3956 = vmatprep.subr.bf16.mxu0 %v12677_v32  ;;  %4202 = vmatprep.subr.bf16.mxu1 %v12683_v33  ;;  %v3901_v47 = vpop.f32.mrb[3].mxu1  ;;  %v12789_v32 = vcombine.high %v1111_v26, %v1119_v27  ;;  %v12795_v33 = vcombine.high %v1114_v28, %v1122_v29  ;;  %v12811_v43 = vcombine.high %v1130_v36, %v1138_v37  ;;  %v708_v19 = vld [vmem:[#allocation2 + $0x1f8] sm:$0xff] }
 0x20c   : > { %v1154_v47 = vld [vmem:[#allocation2 + $0xfe8] sm:$0xff] }
 0x20d   : > { %v12826_v57 = vcombine.low %v1146_v46, %v1154_v47 }
 0x20e   : > { %3957 = vmatpush1.bf16.msra.mxu0 %v12676_v39  ;;  %4203 = vmatpush1.bf16.msra.mxu1 %v12682_v41  ;;  %v12788_v39 = vcombine.low %v1111_v26, %v1119_v27  ;;  %v12794_v41 = vcombine.low %v1114_v28, %v1122_v29  ;;  %v716_v26 = vld [vmem:[#allocation2 + $0x238] sm:$0xff]  ;;  %v12382_v29 = vcombine.low %v700_v18, %v708_v19 }
 0x20f   : > { %3958 = vmatprep.subr.bf16.mxu0 %v12693_v42  ;;  %4204 = vmatprep.subr.bf16.mxu1 %v12699_v44  ;;  %v12805_v42 = vcombine.high %v1127_v34, %v1135_v35  ;;  %v1143_v44 = vld [vmem:[#allocation2 + $0xf90] sm:$0xff]  ;;  %v724_v27 = vld [vmem:[#allocation2 + $0x278] sm:$0xff] }
 0x210   : > { %v12820_v56 = vcombine.low %v1143_v44, %v1151_v45  ;;  %v732_v34 = vld [vmem:[#allocation2 + $0x2b8] sm:$0xff]  ;;  %v12398_v37 = vcombine.low %v716_v26, %v724_v27 }
 0x211   : > { %v740_v35 = vld [vmem:[#allocation2 + $0x2f8] sm:$0xff] }
 0x212   : > { %3959 = vmatpush1.bf16.msra.mxu0 %v12692_v50  ;;  %4205 = vmatpush1.bf16.msra.mxu1 %v12698_v51  ;;  %v12821_v50 = vcombine.high %v1143_v44, %v1151_v45  ;;  %v12827_v51 = vcombine.high %v1146_v46, %v1154_v47  ;;  %v748_v44 = vld [vmem:[#allocation2 + $0x338] sm:$0xff]  ;;  %v12414_v47 = vcombine.low %v732_v34, %v740_v35 }
 0x213   : > { %3960 = vmatprep.subr.bf16.mxu0 %v12709_v52  ;;  %4206 = vmatprep.subr.bf16.mxu1 %v12715_v53  ;;  %v649_v52 = vld [vmem:[#allocation2 + $0x20] sm:$0xff]  ;;  %v756_v45 = vld [vmem:[#allocation2 + $0x378] sm:$0xff] }
 0x214   : > { %v657_v53 = vld [vmem:[#allocation2 + $0x60] sm:$0xff] }
 0x215   : > { %v12328_v1 = vcombine.low %v649_v52, %v657_v53 }
 0x216   : > { %3961 = vmatpush1.bf16.msra.mxu0 %v12708_v58  ;;  %4207 = vmatpush1.bf16.msra.mxu1 %v12714_v59  ;;  %v12329_v58 = vcombine.high %v649_v52, %v657_v53  ;;  %v12335_v59 = vcombine.high %v652_v54, %v660_v55  ;;  %v769_v52 = vld [vmem:[#allocation2 + $0x3e0] sm:$0xff]  ;;  %v764_v54 = vld [vmem:[#allocation2 + $0x3b8] sm:$0xff] }
 0x217   : > { %3962 = vmatprep.subr.bf16.mxu0 %v12725_v60  ;;  %4208 = vmatprep.subr.bf16.mxu1 %v12731_v61  ;;  %v665_v60 = vld [vmem:[#allocation2 + $0xa0] sm:$0xff]  ;;  %v772_v55 = vld [vmem:[#allocation2 + $0x3f8] sm:$0xff] }
 0x218   : > { %v673_v61 = vld [vmem:[#allocation2 + $0xe0] sm:$0xff] }
 0x219   : > { %v12344_v12 = vcombine.low %v665_v60, %v673_v61 }
 0x21a   : > { %3963 = vmatpush1.bf16.msra.mxu0 %v12724_v3  ;;  %4209 = vmatpush1.bf16.msra.mxu1 %v12730_v6  ;;  %v12345_v3 = vcombine.high %v665_v60, %v673_v61  ;;  %v12351_v6 = vcombine.high %v668_v62, %v676_v0  ;;  %v12447_v61 = vcombine.high %v764_v54, %v772_v55  ;;  %v777_v62 = vld [vmem:[#allocation2 + $0x420] sm:$0xff] }
 0x21b   : > { %3964 = vmatprep.subr.bf16.mxu0 %v12741_v7  ;;  %4210 = vmatprep.subr.bf16.mxu1 %v12747_v8  ;;  %v681_v7 = vld [vmem:[#allocation2 + $0x120] sm:$0xff] }
 0x21c   : > { %v689_v8 = vld [vmem:[#allocation2 + $0x160] sm:$0xff] }
 0x21d   : > { %v12360_v20 = vcombine.low %v681_v7, %v689_v8  ;;  %v785_v0 = vld [vmem:[#allocation2 + $0x460] sm:$0xff] }
 0x21e   : > { %3965 = vmatpush1.bf16.msra.mxu0 %v12740_v14  ;;  %4211 = vmatpush1.bf16.msra.mxu1 %v12746_v15  ;;  %v12361_v14 = vcombine.high %v681_v7, %v689_v8  ;;  %v12367_v15 = vcombine.high %v684_v9, %v692_v10  ;;  %v12457_v7 = vcombine.high %v777_v62, %v785_v0  ;;  %v793_v9 = vld [vmem:[#allocation2 + $0x4a0] sm:$0xff] }
 0x21f   : > { %3966 = vmatprep.subr.bf16.mxu0 %v12757_v16  ;;  %4212 = vmatprep.subr.bf16.mxu1 %v12763_v17  ;;  %v697_v16 = vld [vmem:[#allocation2 + $0x1a0] sm:$0xff] }
 0x220   : > { %v705_v17 = vld [vmem:[#allocation2 + $0x1e0] sm:$0xff] }
 0x221   : > { %v12376_v28 = vcombine.low %v697_v16, %v705_v17  ;;  %v801_v10 = vld [vmem:[#allocation2 + $0x4e0] sm:$0xff] }
 0x222   : > { %3967 = vmatpush1.bf16.msra.mxu0 %v12756_v22  ;;  %4213 = vmatpush1.bf16.msra.mxu1 %v12762_v23  ;;  %v12377_v22 = vcombine.high %v697_v16, %v705_v17  ;;  %v12383_v23 = vcombine.high %v700_v18, %v708_v19  ;;  %v12473_v16 = vcombine.high %v793_v9, %v801_v10  ;;  %v809_v18 = vld [vmem:[#allocation2 + $0x520] sm:$0xff] }
 0x223   : > { %3968 = vmatprep.subr.bf16.mxu0 %v12773_v24  ;;  %4214 = vmatprep.subr.bf16.mxu1 %v12779_v25  ;;  %v713_v24 = vld [vmem:[#allocation2 + $0x220] sm:$0xff] }
 0x224   : > { %v721_v25 = vld [vmem:[#allocation2 + $0x260] sm:$0xff] }
 0x225   : > { %v12392_v36 = vcombine.low %v713_v24, %v721_v25  ;;  %v817_v19 = vld [vmem:[#allocation2 + $0x560] sm:$0xff] }
 0x226   : > { %3969 = vmatpush1.bf16.msra.mxu0 %v12772_v30  ;;  %4215 = vmatpush1.bf16.msra.mxu1 %v12778_v31  ;;  %v12393_v30 = vcombine.high %v713_v24, %v721_v25  ;;  %v12399_v31 = vcombine.high %v716_v26, %v724_v27  ;;  %v12489_v24 = vcombine.high %v809_v18, %v817_v19  ;;  %v825_v26 = vld [vmem:[#allocation2 + $0x5a0] sm:$0xff] }
 0x227   : > { %3970 = vmatprep.subr.bf16.mxu0 %v12789_v32  ;;  %4216 = vmatprep.subr.bf16.mxu1 %v12795_v33  ;;  %v729_v32 = vld [vmem:[#allocation2 + $0x2a0] sm:$0xff] }
 0x228   : > { %v737_v33 = vld [vmem:[#allocation2 + $0x2e0] sm:$0xff] }
 0x229   : > { %v12408_v46 = vcombine.low %v729_v32, %v737_v33  ;;  %v833_v27 = vld [vmem:[#allocation2 + $0x5e0] sm:$0xff] }
 0x22a   : > { %3971 = vmatpush1.bf16.msra.mxu0 %v12788_v39  ;;  %4217 = vmatpush1.bf16.msra.mxu1 %v12794_v41  ;;  %v12409_v39 = vcombine.high %v729_v32, %v737_v33  ;;  %v12415_v41 = vcombine.high %v732_v34, %v740_v35  ;;  %v12505_v32 = vcombine.high %v825_v26, %v833_v27  ;;  %v841_v34 = vld [vmem:[#allocation2 + $0x620] sm:$0xff] }
 0x22b   : > { %3972 = vmatprep.subr.bf16.mxu0 %v12805_v42  ;;  %4218 = vmatprep.subr.bf16.mxu1 %v12811_v43  ;;  %v745_v42 = vld [vmem:[#allocation2 + $0x320] sm:$0xff] }
 0x22c   : > { %v753_v43 = vld [vmem:[#allocation2 + $0x360] sm:$0xff] }
 0x22d   : > { %v849_v35 = vld [vmem:[#allocation2 + $0x660] sm:$0xff] }
 0x22e   : > { %3973 = vmatpush1.bf16.msra.mxu0 %v12804_v48  ;;  %4219 = vmatpush1.bf16.msra.mxu1 %v12810_v49  ;;  %v12425_v48 = vcombine.high %v745_v42, %v753_v43 }
 0x22f   : > { %3974 = vmatprep.subr.bf16.mxu0 %v12821_v50  ;;  %4220 = vmatprep.subr.bf16.mxu1 %v12827_v51  ;;  %v12431_v50 = vcombine.high %v748_v44, %v756_v45  ;;  %v761_v51 = vld [vmem:[#allocation2 + $0x3a0] sm:$0xff] }
 0x230   : > { %v12441_v60 = vcombine.high %v761_v51, %v769_v52 }
 0x232   : > { %3975 = vmatpush1.bf16.msra.mxu0 %v12820_v56  ;;  %4221 = vmatpush1.bf16.msra.mxu1 %v12826_v57  ;;  %v12424_v57 = vcombine.low %v745_v42, %v753_v43  ;;  %v12521_v42 = vcombine.high %v841_v34, %v849_v35 }
 0x233   : > { %4067 = vmatprep.subr.bf16.mxu0 %v12329_v58  ;;  %4313 = vmatprep.subr.bf16.mxu1 %v12335_v59  ;;  %v12430_v59 = vcombine.low %v748_v44, %v756_v45  ;;  %v857_v44 = vld [vmem:[#allocation2 + $0x6a0] sm:$0xff] }
 0x234   : > { %v865_v45 = vld [vmem:[#allocation2 + $0x6e0] sm:$0xff] }
 0x235   : > { %3977 = vmatmul.mubr.bf16.vlgmr.msra.gmra.mrb[8].mxu0 %v15354_v5  ;;  %4223 = vmatmul.mubr.bf16.vlgmr.msra.gmra.mrb[8].mxu1 %v15354_v5 }
 0x236   : > { %4068 = vmatpush1.bf16.msra.mxu0 %v12328_v1  ;;  %4314 = vmatpush1.bf16.msra.mxu1 %v12334_v2  ;;  %v780_v1 = vld [vmem:[#allocation2 + $0x438] sm:$0xff] }
 0x237   : > { %4069 = vmatprep.subr.bf16.mxu0 %v12345_v3  ;;  %4315 = vmatprep.subr.bf16.mxu1 %v12351_v6  ;;  %v788_v2 = vld [vmem:[#allocation2 + $0x478] sm:$0xff]  ;;  %v12440_v3 = vcombine.low %v761_v51, %v769_v52  ;;  %v12446_v6 = vcombine.low %v764_v54, %v772_v55  ;;  %v12537_v51 = vcombine.high %v857_v44, %v865_v45  ;;  %v873_v54 = vld [vmem:[#allocation2 + $0x720] sm:$0xff] }
 0x238   : > { %4099 = vmatprep.mubr.bf16.mxu0 %v15352_v4  ;;  %4345 = vmatprep.mubr.bf16.mxu1 %v15352_v4  ;;  %v12463_v8 = vcombine.high %v780_v1, %v788_v2  ;;  %v881_v55 = vld [vmem:[#allocation2 + $0x760] sm:$0xff] }
 0x23a   : > { %4070 = vmatpush1.bf16.msra.mxu0 %v12344_v12  ;;  %4316 = vmatpush1.bf16.msra.mxu1 %v12350_v13  ;;  %v796_v12 = vld [vmem:[#allocation2 + $0x4b8] sm:$0xff] }
 0x23b   : > { %4071 = vmatprep.subr.bf16.mxu0 %v12361_v14  ;;  %4317 = vmatprep.subr.bf16.mxu1 %v12367_v15  ;;  %v804_v13 = vld [vmem:[#allocation2 + $0x4f8] sm:$0xff]  ;;  %v12456_v14 = vcombine.low %v777_v62, %v785_v0  ;;  %v12462_v15 = vcombine.low %v780_v1, %v788_v2  ;;  %v889_v62 = vld [vmem:[#allocation2 + $0x7a0] sm:$0xff] }
 0x23c   : > { %v12479_v17 = vcombine.high %v796_v12, %v804_v13  ;;  %v897_v0 = vld [vmem:[#allocation2 + $0x7e0] sm:$0xff]  ;;  %v892_v1 = vld [vmem:[#allocation2 + $0x7b8] sm:$0xff] }
 0x23d   : > { %v900_v2 = vld [vmem:[#allocation2 + $0x7f8] sm:$0xff] }
 0x23e   : > { %4072 = vmatpush1.bf16.msra.mxu0 %v12360_v20  ;;  %4318 = vmatpush1.bf16.msra.mxu1 %v12366_v21  ;;  %v812_v20 = vld [vmem:[#allocation2 + $0x538] sm:$0xff] }
 0x23f   : > { %4073 = vmatprep.subr.bf16.mxu0 %v12377_v22  ;;  %4319 = vmatprep.subr.bf16.mxu1 %v12383_v23  ;;  %v820_v21 = vld [vmem:[#allocation2 + $0x578] sm:$0xff]  ;;  %v12472_v22 = vcombine.low %v793_v9, %v801_v10  ;;  %v12478_v23 = vcombine.low %v796_v12, %v804_v13  ;;  %v905_v9 = vld [vmem:[#allocation2 + $0x820] sm:$0xff] }
 0x240   : > { %v12495_v25 = vcombine.high %v812_v20, %v820_v21  ;;  %v913_v10 = vld [vmem:[#allocation2 + $0x860] sm:$0xff]  ;;  %v908_v12 = vld [vmem:[#allocation2 + $0x838] sm:$0xff] }
 0x241   : > { %v916_v13 = vld [vmem:[#allocation2 + $0x878] sm:$0xff] }
 0x242   : > { %4074 = vmatpush1.bf16.msra.mxu0 %v12376_v28  ;;  %4320 = vmatpush1.bf16.msra.mxu1 %v12382_v29  ;;  %v828_v28 = vld [vmem:[#allocation2 + $0x5b8] sm:$0xff] }
 0x243   : > { %4075 = vmatprep.subr.bf16.mxu0 %v12393_v30  ;;  %4321 = vmatprep.subr.bf16.mxu1 %v12399_v31  ;;  %v836_v29 = vld [vmem:[#allocation2 + $0x5f8] sm:$0xff]  ;;  %v12488_v30 = vcombine.low %v809_v18, %v817_v19  ;;  %v12494_v31 = vcombine.low %v812_v20, %v820_v21  ;;  %v921_v18 = vld [vmem:[#allocation2 + $0x8a0] sm:$0xff] }
 0x244   : > { %v12511_v33 = vcombine.high %v828_v28, %v836_v29  ;;  %v929_v19 = vld [vmem:[#allocation2 + $0x8e0] sm:$0xff]  ;;  %v924_v20 = vld [vmem:[#allocation2 + $0x8b8] sm:$0xff] }
 0x245   : > { %v932_v21 = vld [vmem:[#allocation2 + $0x8f8] sm:$0xff] }
 0x246   : > { %4076 = vmatpush1.bf16.msra.mxu0 %v12392_v36  ;;  %4322 = vmatpush1.bf16.msra.mxu1 %v12398_v37  ;;  %v844_v36 = vld [vmem:[#allocation2 + $0x638] sm:$0xff] }
 0x247   : > { %4077 = vmatprep.subr.bf16.mxu0 %v12409_v39  ;;  %4323 = vmatprep.subr.bf16.mxu1 %v12415_v41  ;;  %v852_v37 = vld [vmem:[#allocation2 + $0x678] sm:$0xff]  ;;  %v12504_v39 = vcombine.low %v825_v26, %v833_v27  ;;  %v12510_v41 = vcombine.low %v828_v28, %v836_v29  ;;  %v937_v26 = vld [vmem:[#allocation2 + $0x920] sm:$0xff] }
 0x248   : > { %v15386_v49 = vpop.f32.mrb[0].mxu0  ;;  %v12527_v43 = vcombine.high %v844_v36, %v852_v37  ;;  %v945_v27 = vld [vmem:[#allocation2 + $0x960] sm:$0xff]  ;;  %v940_v28 = vld [vmem:[#allocation2 + $0x938] sm:$0xff] }
 0x249   : > { %v15388_v53 = vpop.f32.mrb[1].mxu0  ;;  %v948_v29 = vld [vmem:[#allocation2 + $0x978] sm:$0xff] }
 0x24a   : > { %v3818_v56 = vpop.f32.mrb[2].mxu0  ;;  %4078 = vmatpush1.bf16.msra.mxu0 %v12408_v46  ;;  %4324 = vmatpush1.bf16.msra.mxu1 %v12414_v47  ;;  %v860_v46 = vld [vmem:[#allocation2 + $0x6b8] sm:$0xff] }
 0x24b   : > { %v3819_v58 = vpop.f32.mrb[3].mxu0  ;;  %4079 = vmatprep.subr.bf16.mxu0 %v12425_v48  ;;  %4325 = vmatprep.subr.bf16.mxu1 %v12431_v50  ;;  %v868_v47 = vld [vmem:[#allocation2 + $0x6f8] sm:$0xff]  ;;  %v12520_v48 = vcombine.low %v841_v34, %v849_v35  ;;  %v12526_v50 = vcombine.low %v844_v36, %v852_v37  ;;  %v953_v34 = vld [vmem:[#allocation2 + $0x9a0] sm:$0xff] }
 0x24c   : > { %v12543_v52 = vcombine.high %v860_v46, %v868_v47  ;;  %v876_v56 = vld [vmem:[#allocation2 + $0x738] sm:$0xff]  ;;  %v12536_v58 = vcombine.low %v857_v44, %v865_v45  ;;  %v961_v35 = vld [vmem:[#allocation2 + $0x9e0] sm:$0xff] }
 0x24d   : > { %v956_v36 = vld [vmem:[#allocation2 + $0x9b8] sm:$0xff]  ;;  %v969_v44 = vld [vmem:[#allocation2 + $0xa20] sm:$0xff] }
 0x24e   : > { %4080 = vmatpush1.bf16.msra.mxu0 %v12424_v57  ;;  %4326 = vmatpush1.bf16.msra.mxu1 %v12430_v59  ;;  %v884_v57 = vld [vmem:[#allocation2 + $0x778] sm:$0xff]  ;;  %v12542_v59 = vcombine.low %v860_v46, %v868_v47  ;;  %v977_v45 = vld [vmem:[#allocation2 + $0xa60] sm:$0xff] }
 0x24f   : > { %4081 = vmatprep.subr.bf16.mxu0 %v12441_v60  ;;  %4327 = vmatprep.subr.bf16.mxu1 %v12447_v61  ;;  %v12553_v60 = vcombine.high %v873_v54, %v881_v55  ;;  %v12559_v61 = vcombine.high %v876_v56, %v884_v57  ;;  %v964_v37 = vld [vmem:[#allocation2 + $0x9f8] sm:$0xff] }
 0x250   : > { %v972_v46 = vld [vmem:[#allocation2 + $0xa38] sm:$0xff] }
 0x251   : > { %v980_v47 = vld [vmem:[#allocation2 + $0xa78] sm:$0xff] }
 0x252   : > { %4082 = vmatpush1.bf16.msra.mxu0 %v12440_v3  ;;  %4328 = vmatpush1.bf16.msra.mxu1 %v12446_v6  ;;  %v12552_v3 = vcombine.low %v873_v54, %v881_v55  ;;  %v12558_v6 = vcombine.low %v876_v56, %v884_v57  ;;  %v985_v54 = vld [vmem:[#allocation2 + $0xaa0] sm:$0xff]  ;;  %v988_v56 = vld [vmem:[#allocation2 + $0xab8] sm:$0xff] }
 0x253   : > { %4083 = vmatprep.subr.bf16.mxu0 %v12457_v7  ;;  %4329 = vmatprep.subr.bf16.mxu1 %v12463_v8  ;;  %v12569_v7 = vcombine.high %v889_v62, %v897_v0  ;;  %v12575_v8 = vcombine.high %v892_v1, %v900_v2  ;;  %v993_v55 = vld [vmem:[#allocation2 + $0xae0] sm:$0xff]  ;;  %v996_v57 = vld [vmem:[#allocation2 + $0xaf8] sm:$0xff] }
 0x256   : > { %4084 = vmatpush1.bf16.msra.mxu0 %v12456_v14  ;;  %4330 = vmatpush1.bf16.msra.mxu1 %v12462_v15  ;;  %v12568_v14 = vcombine.low %v889_v62, %v897_v0  ;;  %v12574_v15 = vcombine.low %v892_v1, %v900_v2  ;;  %v1001_v62 = vld [vmem:[#allocation2 + $0xb20] sm:$0xff]  ;;  %v1004_v1 = vld [vmem:[#allocation2 + $0xb38] sm:$0xff] }
 0x257   : > { %4085 = vmatprep.subr.bf16.mxu0 %v12473_v16  ;;  %4331 = vmatprep.subr.bf16.mxu1 %v12479_v17  ;;  %v12585_v16 = vcombine.high %v905_v9, %v913_v10  ;;  %v12591_v17 = vcombine.high %v908_v12, %v916_v13  ;;  %v1009_v0 = vld [vmem:[#allocation2 + $0xb60] sm:$0xff]  ;;  %v1012_v2 = vld [vmem:[#allocation2 + $0xb78] sm:$0xff] }
 0x25a   : > { %4086 = vmatpush1.bf16.msra.mxu0 %v12472_v22  ;;  %4332 = vmatpush1.bf16.msra.mxu1 %v12478_v23  ;;  %v12584_v22 = vcombine.low %v905_v9, %v913_v10  ;;  %v12590_v23 = vcombine.low %v908_v12, %v916_v13  ;;  %v12687_v9 = vcombine.high %v1004_v1, %v1012_v2  ;;  %v1017_v10 = vld [vmem:[#allocation2 + $0xba0] sm:$0xff] }
 0x25b   : > { %4087 = vmatprep.subr.bf16.mxu0 %v12489_v24  ;;  %4333 = vmatprep.subr.bf16.mxu1 %v12495_v25  ;;  %v12601_v24 = vcombine.high %v921_v18, %v929_v19  ;;  %v12607_v25 = vcombine.high %v924_v20, %v932_v21  ;;  %v1025_v12 = vld [vmem:[#allocation2 + $0xbe0] sm:$0xff] }
 0x25e   : > { %4088 = vmatpush1.bf16.msra.mxu0 %v12488_v30  ;;  %4334 = vmatpush1.bf16.msra.mxu1 %v12494_v31  ;;  %v12600_v30 = vcombine.low %v921_v18, %v929_v19  ;;  %v12606_v31 = vcombine.low %v924_v20, %v932_v21  ;;  %v12680_v20 = vcombine.low %v1001_v62, %v1009_v0 }
 0x25f   : > { %4089 = vmatprep.subr.bf16.mxu0 %v12505_v32  ;;  %4335 = vmatprep.subr.bf16.mxu1 %v12511_v33  ;;  %v12617_v32 = vcombine.high %v937_v26, %v945_v27  ;;  %v12623_v33 = vcombine.high %v940_v28, %v948_v29 }
 0x262   : > { %4090 = vmatpush1.bf16.msra.mxu0 %v12504_v39  ;;  %4336 = vmatpush1.bf16.msra.mxu1 %v12510_v41  ;;  %v12616_v39 = vcombine.low %v937_v26, %v945_v27  ;;  %v12622_v41 = vcombine.low %v940_v28, %v948_v29  ;;  %v1033_v26 = vld [vmem:[#allocation2 + $0xc20] sm:$0xff]  ;;  %v1036_v29 = vld [vmem:[#allocation2 + $0xc38] sm:$0xff] }
 0x263   : > { %4091 = vmatprep.subr.bf16.mxu0 %v12521_v42  ;;  %4337 = vmatprep.subr.bf16.mxu1 %v12527_v43  ;;  %v12633_v42 = vcombine.high %v953_v34, %v961_v35  ;;  %v12639_v43 = vcombine.high %v956_v36, %v964_v37  ;;  %v1041_v27 = vld [vmem:[#allocation2 + $0xc60] sm:$0xff] }
 0x266   : > { %4092 = vmatpush1.bf16.msra.mxu0 %v12520_v48  ;;  %4338 = vmatpush1.bf16.msra.mxu1 %v12526_v50  ;;  %v12632_v48 = vcombine.low %v953_v34, %v961_v35  ;;  %v12638_v50 = vcombine.low %v956_v36, %v964_v37  ;;  %v1049_v34 = vld [vmem:[#allocation2 + $0xca0] sm:$0xff]  ;;  %v1052_v36 = vld [vmem:[#allocation2 + $0xcb8] sm:$0xff] }
 0x267   : > { %4093 = vmatprep.subr.bf16.mxu0 %v12537_v51  ;;  %4339 = vmatprep.subr.bf16.mxu1 %v12543_v52  ;;  %v12649_v51 = vcombine.high %v969_v44, %v977_v45  ;;  %v12655_v52 = vcombine.high %v972_v46, %v980_v47  ;;  %v1057_v35 = vld [vmem:[#allocation2 + $0xce0] sm:$0xff]  ;;  %v1060_v37 = vld [vmem:[#allocation2 + $0xcf8] sm:$0xff] }
 0x26a   : > { %4094 = vmatpush1.bf16.msra.mxu0 %v12536_v58  ;;  %4340 = vmatpush1.bf16.msra.mxu1 %v12542_v59  ;;  %v12648_v58 = vcombine.low %v969_v44, %v977_v45  ;;  %v12654_v59 = vcombine.low %v972_v46, %v980_v47  ;;  %v1065_v44 = vld [vmem:[#allocation2 + $0xd20] sm:$0xff]  ;;  %v1068_v46 = vld [vmem:[#allocation2 + $0xd38] sm:$0xff] }
 0x26b   : > { %4095 = vmatprep.subr.bf16.mxu0 %v12553_v60  ;;  %4341 = vmatprep.subr.bf16.mxu1 %v12559_v61  ;;  %v12665_v60 = vcombine.high %v985_v54, %v993_v55  ;;  %v12671_v61 = vcombine.high %v988_v56, %v996_v57  ;;  %v1073_v45 = vld [vmem:[#allocation2 + $0xd60] sm:$0xff]  ;;  %v1076_v47 = vld [vmem:[#allocation2 + $0xd78] sm:$0xff] }
 0x26e   : > { %4096 = vmatpush1.bf16.msra.mxu0 %v12552_v3  ;;  %4342 = vmatpush1.bf16.msra.mxu1 %v12558_v6  ;;  %v12664_v3 = vcombine.low %v985_v54, %v993_v55  ;;  %v12670_v6 = vcombine.low %v988_v56, %v996_v57  ;;  %v1081_v54 = vld [vmem:[#allocation2 + $0xda0] sm:$0xff]  ;;  %v1084_v56 = vld [vmem:[#allocation2 + $0xdb8] sm:$0xff] }
 0x26f   : > { %4097 = vmatprep.subr.bf16.mxu0 %v12569_v7  ;;  %4343 = vmatprep.subr.bf16.mxu1 %v12575_v8  ;;  %v12681_v7 = vcombine.high %v1001_v62, %v1009_v0  ;;  %v1089_v55 = vld [vmem:[#allocation2 + $0xde0] sm:$0xff]  ;;  %v1092_v57 = vld [vmem:[#allocation2 + $0xdf8] sm:$0xff] }
 0x270   : > { %v1097_v62 = vld [vmem:[#allocation2 + $0xe20] sm:$0xff] }
 0x271   : > { %v1105_v0 = vld [vmem:[#allocation2 + $0xe60] sm:$0xff] }
 0x272   : > { %4098 = vmatpush1.bf16.msra.mxu0 %v12568_v14  ;;  %4344 = vmatpush1.bf16.msra.mxu1 %v12574_v15  ;;  %v1020_v15 = vld [vmem:[#allocation2 + $0xbb8] sm:$0xff] }
 0x273   : > { %4108 = vmatprep.subr.bf16.mxu0 %v12585_v16  ;;  %4354 = vmatprep.subr.bf16.mxu1 %v12591_v17  ;;  %v1028_v16 = vld [vmem:[#allocation2 + $0xbf8] sm:$0xff] }
 0x275   : > { %4100 = vmatmul.mubr.bf16.vlgmr.msra.gmra.mrb[12].mxu0 %v15348_v63  ;;  %4346 = vmatmul.mubr.bf16.vlgmr.msra.gmra.mrb[12].mxu1 %v15348_v63 }
 0x276   : > { %4109 = vmatpush1.bf16.msra.mxu0 %v12584_v22  ;;  %4355 = vmatpush1.bf16.msra.mxu1 %v12590_v23  ;;  %v12686_v23 = vcombine.low %v1004_v1, %v1012_v2  ;;  %v1100_v1 = vld [vmem:[#allocation2 + $0xe38] sm:$0xff] }
 0x277   : > { %4110 = vmatprep.subr.bf16.mxu0 %v12601_v24  ;;  %4356 = vmatprep.subr.bf16.mxu1 %v12607_v25  ;;  %v12697_v24 = vcombine.high %v1017_v10, %v1025_v12  ;;  %v12703_v25 = vcombine.high %v1020_v15, %v1028_v16  ;;  %v1108_v2 = vld [vmem:[#allocation2 + $0xe78] sm:$0xff] }
 0x278   : > { %4140 = vmatprep.mubr.bf16.mxu0 %v15359_v11  ;;  %4386 = vmatprep.mubr.bf16.mxu1 %v15359_v11 }
 0x27a   : > { %4111 = vmatpush1.bf16.msra.mxu0 %v12600_v30  ;;  %4357 = vmatpush1.bf16.msra.mxu1 %v12606_v31  ;;  %v1044_v30 = vld [vmem:[#allocation2 + $0xc78] sm:$0xff]  ;;  %v12702_v31 = vcombine.low %v1020_v15, %v1028_v16  ;;  %v12776_v15 = vcombine.low %v1097_v62, %v1105_v0  ;;  %v12782_v16 = vcombine.low %v1100_v1, %v1108_v2 }
 0x27b   : > { %4112 = vmatprep.subr.bf16.mxu0 %v12617_v32  ;;  %4358 = vmatprep.subr.bf16.mxu1 %v12623_v33  ;;  %v12713_v32 = vcombine.high %v1033_v26, %v1041_v27  ;;  %v12719_v33 = vcombine.high %v1036_v29, %v1044_v30 }
 0x27e   : > { %4113 = vmatpush1.bf16.msra.mxu0 %v12616_v39  ;;  %4359 = vmatpush1.bf16.msra.mxu1 %v12622_v41  ;;  %v12712_v39 = vcombine.low %v1033_v26, %v1041_v27  ;;  %v12718_v41 = vcombine.low %v1036_v29, %v1044_v30  ;;  %v1145_v29 = vld [vmem:[#allocation2 + $0xfa0] sm:$0xff] }
 0x27f   : > { %4114 = vmatprep.subr.bf16.mxu0 %v12633_v42  ;;  %4360 = vmatprep.subr.bf16.mxu1 %v12639_v43  ;;  %v12729_v42 = vcombine.high %v1049_v34, %v1057_v35  ;;  %v12735_v43 = vcombine.high %v1052_v36, %v1060_v37  ;;  %v1153_v30 = vld [vmem:[#allocation2 + $0xfe0] sm:$0xff] }
 0x282   : > { %4115 = vmatpush1.bf16.msra.mxu0 %v12632_v48  ;;  %4361 = vmatpush1.bf16.msra.mxu1 %v12638_v50  ;;  %v12728_v48 = vcombine.low %v1049_v34, %v1057_v35  ;;  %v12734_v50 = vcombine.low %v1052_v36, %v1060_v37  ;;  %v12825_v34 = vcombine.high %v1145_v29, %v1153_v30  ;;  %v651_v36 = vld [vmem:[#allocation2 + $0x30] sm:$0xff] }
 0x283   : > { %4116 = vmatprep.subr.bf16.mxu0 %v12649_v51  ;;  %4362 = vmatprep.subr.bf16.mxu1 %v12655_v52  ;;  %v12745_v51 = vcombine.high %v1065_v44, %v1073_v45  ;;  %v12751_v52 = vcombine.high %v1068_v46, %v1076_v47  ;;  %v659_v37 = vld [vmem:[#allocation2 + $0x70] sm:$0xff] }
 0x286   : > { %4117 = vmatpush1.bf16.msra.mxu0 %v12648_v58  ;;  %4363 = vmatpush1.bf16.msra.mxu1 %v12654_v59  ;;  %v12744_v58 = vcombine.low %v1065_v44, %v1073_v45  ;;  %v12750_v59 = vcombine.low %v1068_v46, %v1076_v47  ;;  %v675_v44 = vld [vmem:[#allocation2 + $0xf0] sm:$0xff]  ;;  %v12332_v45 = vcombine.low %v651_v36, %v659_v37 }
 0x287   : > { %4118 = vmatprep.subr.bf16.mxu0 %v12665_v60  ;;  %4364 = vmatprep.subr.bf16.mxu1 %v12671_v61  ;;  %v12761_v60 = vcombine.high %v1081_v54, %v1089_v55  ;;  %v12767_v61 = vcombine.high %v1084_v56, %v1092_v57  ;;  %v683_v47 = vld [vmem:[#allocation2 + $0x130] sm:$0xff] }
 0x288   : > { %v3855_v8 = vpop.f32.mrb[4].mxu0  ;;  %v15397_v17 = vpop.f32.mrb[4].mxu1 }
 0x289   : > { %v15395_v13 = vadd.f32 %v15378_v38, %v3855_v8  ;;  %v3857_v14 = vpop.f32.mrb[5].mxu0  ;;  %v15402_v21 = vpop.f32.mrb[5].mxu1  ;;  %v12783_v8 = vcombine.high %v1100_v1, %v1108_v2  ;;  %v747_v1 = vld [vmem:[#allocation2 + $0x330] sm:$0xff] }
 0x28a   : > { %v15400_v18 = vadd.f32 %v15380_v40, %v3857_v14  ;;  %v3859_v19 = vpop.f32.mrb[6].mxu0  ;;  %4119 = vmatpush1.bf16.msra.mxu0 %v12664_v3  ;;  %4365 = vmatpush1.bf16.msra.mxu1 %v12670_v6  ;;  %v4064_v38 = vpop.f32.mrb[6].mxu1  ;;  %v12696_v40 = vcombine.low %v1017_v10, %v1025_v12  ;;  %v12760_v3 = vcombine.low %v1081_v54, %v1089_v55  ;;  %v1121_v10 = vld [vmem:[#allocation2 + $0xee0] sm:$0xff]  ;;  %v1116_v12 = vld [vmem:[#allocation2 + $0xeb8] sm:$0xff]  ;;  %v707_v54 = vld [vmem:[#allocation2 + $0x1f0] sm:$0xff] }
 0x28b   : > { %v3860_v22 = vpop.f32.mrb[7].mxu0  ;;  %4120 = vmatprep.subr.bf16.mxu0 %v12681_v7  ;;  %4366 = vmatprep.subr.bf16.mxu1 %v12687_v9  ;;  %v4065_v28 = vpop.f32.mrb[7].mxu1  ;;  %v12766_v6 = vcombine.low %v1084_v56, %v1092_v57  ;;  %v12777_v7 = vcombine.high %v1097_v62, %v1105_v0  ;;  %v1113_v9 = vld [vmem:[#allocation2 + $0xea0] sm:$0xff]  ;;  %v1124_v14 = vld [vmem:[#allocation2 + $0xef8] sm:$0xff]  ;;  %v15414_v56 = vld [vmem:[#allocation9 + $0x10] sm:$0xff] }
 0x28c   : > { %v12793_v19 = vcombine.high %v1113_v9, %v1121_v10  ;;  %v1129_v22 = vld [vmem:[#allocation2 + $0xf20] sm:$0xff]  ;;  %v1140_v38 = vld [vmem:[#allocation2 + $0xf78] sm:$0xff]  ;;  %v12798_v26 = vcombine.low %v1116_v12, %v1124_v14  ;;  %v755_v2 = vld [vmem:[#allocation2 + $0x370] sm:$0xff] }
 0x28e   : > { %4121 = vmatpush1.bf16.msra.mxu0 %v12680_v20  ;;  %4367 = vmatpush1.bf16.msra.mxu1 %v12686_v23  ;;  %v12799_v20 = vcombine.high %v1116_v12, %v1124_v14  ;;  %v1137_v23 = vld [vmem:[#allocation2 + $0xf60] sm:$0xff]  ;;  %v787_v12 = vld [vmem:[#allocation2 + $0x470] sm:$0xff] }
 0x28f   : > { %4122 = vmatprep.subr.bf16.mxu0 %v12697_v24  ;;  %4368 = vmatprep.subr.bf16.mxu1 %v12703_v25  ;;  %v1132_v24 = vld [vmem:[#allocation2 + $0xf38] sm:$0xff]  ;;  %v12792_v25 = vcombine.low %v1113_v9, %v1121_v10  ;;  %v12809_v27 = vcombine.high %v1129_v22, %v1137_v23  ;;  %v779_v10 = vld [vmem:[#allocation2 + $0x430] sm:$0xff] }
 0x290   : > { %v12815_v28 = vcombine.high %v1132_v24, %v1140_v38 }
 0x292   : > { %4123 = vmatpush1.bf16.msra.mxu0 %v12696_v40  ;;  %4369 = vmatpush1.bf16.msra.mxu1 %v12702_v31  ;;  %v1148_v40 = vld [vmem:[#allocation2 + $0xfb8] sm:$0xff] }
 0x293   : > { %4124 = vmatprep.subr.bf16.mxu0 %v12713_v32  ;;  %4370 = vmatprep.subr.bf16.mxu1 %v12719_v33  ;;  %v1156_v31 = vld [vmem:[#allocation2 + $0xff8] sm:$0xff]  ;;  %v12808_v32 = vcombine.low %v1129_v22, %v1137_v23  ;;  %v12814_v33 = vcombine.low %v1132_v24, %v1140_v38  ;;  %v811_v23 = vld [vmem:[#allocation2 + $0x530] sm:$0xff] }
 0x294   : > { %v12831_v35 = vcombine.high %v1148_v40, %v1156_v31  ;;  %v819_v24 = vld [vmem:[#allocation2 + $0x570] sm:$0xff] }
 0x296   : > { %4125 = vmatpush1.bf16.msra.mxu0 %v12712_v39  ;;  %4371 = vmatpush1.bf16.msra.mxu1 %v12718_v41  ;;  %v12824_v39 = vcombine.low %v1145_v29, %v1153_v30  ;;  %v12830_v41 = vcombine.low %v1148_v40, %v1156_v31  ;;  %v843_v30 = vld [vmem:[#allocation2 + $0x630] sm:$0xff] }
 0x297   : > { %4126 = vmatprep.subr.bf16.mxu0 %v12729_v42  ;;  %4372 = vmatprep.subr.bf16.mxu1 %v12735_v43  ;;  %v12333_v42 = vcombine.high %v651_v36, %v659_v37  ;;  %v667_v43 = vld [vmem:[#allocation2 + $0xb0] sm:$0xff] }
 0x298   : > { %v12349_v46 = vcombine.high %v667_v43, %v675_v44  ;;  %v851_v40 = vld [vmem:[#allocation2 + $0x670] sm:$0xff] }
 0x299   : > { %v875_v37 = vld [vmem:[#allocation2 + $0x730] sm:$0xff] }
 0x29a   : > { %4127 = vmatpush1.bf16.msra.mxu0 %v12728_v48  ;;  %4373 = vmatpush1.bf16.msra.mxu1 %v12734_v50  ;;  %v691_v48 = vld [vmem:[#allocation2 + $0x170] sm:$0xff]  ;;  %v12348_v50 = vcombine.low %v667_v43, %v675_v44 }
 0x29b   : > { %4128 = vmatprep.subr.bf16.mxu0 %v12745_v51  ;;  %4374 = vmatprep.subr.bf16.mxu1 %v12751_v52  ;;  %v12365_v51 = vcombine.high %v683_v47, %v691_v48  ;;  %v15025_v52 = vmov 0.0   ;;  %v12364_v55 = vcombine.low %v683_v47, %v691_v48  ;;  %v891_v43 = vld [vmem:[#allocation2 + $0x7b0] sm:$0xff] }
 0x29c   : > { %v899_v44 = vld [vmem:[#allocation2 + $0x7f0] sm:$0xff] }
 0x29d   : > { %v907_v47 = vld [vmem:[#allocation2 + $0x830] sm:$0xff] }
 0x29e   : > { %4129 = vmatpush1.bf16.msra.mxu0 %v12744_v58  ;;  %4375 = vmatpush1.bf16.msra.mxu1 %v12750_v59  ;;  %v723_v58 = vld [vmem:[#allocation2 + $0x270] sm:$0xff] }
 0x29f   : > { %4130 = vmatprep.subr.bf16.mxu0 %v12761_v60  ;;  %4376 = vmatprep.subr.bf16.mxu1 %v12767_v61  ;;  %v731_v60 = vld [vmem:[#allocation2 + $0x2b0] sm:$0xff] }
 0x2a0   : > { %v739_v61 = vld [vmem:[#allocation2 + $0x2f0] sm:$0xff] }
 0x2a1   : > { %v12413_v0 = vcombine.high %v731_v60, %v739_v61  ;;  %v915_v48 = vld [vmem:[#allocation2 + $0x870] sm:$0xff] }
 0x2a2   : > { %4131 = vmatpush1.bf16.msra.mxu0 %v12760_v3  ;;  %4377 = vmatpush1.bf16.msra.mxu1 %v12766_v6  ;;  %v12429_v3 = vcombine.high %v747_v1, %v755_v2  ;;  %v763_v6 = vld [vmem:[#allocation2 + $0x3b0] sm:$0xff] }
 0x2a3   : > { %4132 = vmatprep.subr.bf16.mxu0 %v12777_v7  ;;  %4378 = vmatprep.subr.bf16.mxu1 %v12783_v8  ;;  %v771_v7 = vld [vmem:[#allocation2 + $0x3f0] sm:$0xff]  ;;  %v12428_v8 = vcombine.low %v747_v1, %v755_v2 }
 0x2a4   : > { %v12445_v9 = vcombine.high %v763_v6, %v771_v7  ;;  %v12444_v14 = vcombine.low %v763_v6, %v771_v7  ;;  %v971_v1 = vld [vmem:[#allocation2 + $0xa30] sm:$0xff] }
 0x2a5   : > { %v979_v2 = vld [vmem:[#allocation2 + $0xa70] sm:$0xff] }
 0x2a6   : > { %4133 = vmatpush1.bf16.msra.mxu0 %v12776_v15  ;;  %4379 = vmatpush1.bf16.msra.mxu1 %v12782_v16  ;;  %v12461_v15 = vcombine.high %v779_v10, %v787_v12  ;;  %v795_v16 = vld [vmem:[#allocation2 + $0x4b0] sm:$0xff]  ;;  %v12652_v7 = vcombine.low %v971_v1, %v979_v2 }
 0x2a7   : > { %4134 = vmatprep.subr.bf16.mxu0 %v12793_v19  ;;  %4380 = vmatprep.subr.bf16.mxu1 %v12799_v20  ;;  %v803_v19 = vld [vmem:[#allocation2 + $0x4f0] sm:$0xff]  ;;  %v12460_v20 = vcombine.low %v779_v10, %v787_v12 }
 0x2a8   : > { %v12477_v22 = vcombine.high %v795_v16, %v803_v19  ;;  %v12476_v38 = vcombine.low %v795_v16, %v803_v19  ;;  %v987_v6 = vld [vmem:[#allocation2 + $0xab0] sm:$0xff] }
 0x2a9   : > { %v1027_v16 = vld [vmem:[#allocation2 + $0xbf0] sm:$0xff] }
 0x2aa   : > { %4135 = vmatpush1.bf16.msra.mxu0 %v12792_v25  ;;  %4381 = vmatpush1.bf16.msra.mxu1 %v12798_v26  ;;  %v12493_v25 = vcombine.high %v811_v23, %v819_v24  ;;  %v827_v26 = vld [vmem:[#allocation2 + $0x5b0] sm:$0xff] }
 0x2ab   : > { %4136 = vmatprep.subr.bf16.mxu0 %v12809_v27  ;;  %4382 = vmatprep.subr.bf16.mxu1 %v12815_v28  ;;  %v835_v27 = vld [vmem:[#allocation2 + $0x5f0] sm:$0xff]  ;;  %v12492_v28 = vcombine.low %v811_v23, %v819_v24 }
 0x2ac   : > { %v12509_v29 = vcombine.high %v827_v26, %v835_v27  ;;  %v12508_v31 = vcombine.low %v827_v26, %v835_v27 }
 0x2ae   : > { %4137 = vmatpush1.bf16.msra.mxu0 %v12808_v32  ;;  %4383 = vmatpush1.bf16.msra.mxu1 %v12814_v33  ;;  %v12525_v32 = vcombine.high %v843_v30, %v851_v40  ;;  %v859_v33 = vld [vmem:[#allocation2 + $0x6b0] sm:$0xff] }
 0x2af   : > { %4138 = vmatprep.subr.bf16.mxu0 %v12825_v34  ;;  %4384 = vmatprep.subr.bf16.mxu1 %v12831_v35  ;;  %v867_v34 = vld [vmem:[#allocation2 + $0x6f0] sm:$0xff]  ;;  %v12524_v35 = vcombine.low %v843_v30, %v851_v40  ;;  %v15439_v40 = vld [vmem:[#allocation9 + $0x8] sm:$0x1] }
 0x2b0   : > { %v12541_v36 = vcombine.high %v859_v33, %v867_v34 }
 0x2b2   : > { %4139 = vmatpush1.bf16.msra.mxu0 %v12824_v39  ;;  %4385 = vmatpush1.bf16.msra.mxu1 %v12830_v41  ;;  %v883_v39 = vld [vmem:[#allocation2 + $0x770] sm:$0xff]  ;;  %v12540_v41 = vcombine.low %v859_v33, %v867_v34 }
 0x2b3   : > { %4231 = vmatprep.subr.bf16.mxu0 %v12333_v42  ;;  %12836 = vmatprep.subr.msk.mxu1 %vm4410_vm0, %v15402_v21  ;;  %v699_v21 = vld [vmem:[#allocation2 + $0x1b0] sm:$0xff]  ;;  %v12557_v42 = vcombine.high %v875_v37, %v883_v39 }
 0x2b4   : > { %v12381_v57 = vcombine.high %v699_v21, %v707_v54  ;;  %v1051_v33 = vld [vmem:[#allocation2 + $0xcb0] sm:$0xff] }
 0x2b5   : > { %4141 = vmatmul.mubr.bf16.vlgmr.msra.gmra.mrb[12].mxu0 %v15354_v5  ;;  %4387 = vmatmul.mubr.bf16.vlgmr.msra.gmra.mrb[12].mxu1 %v15354_v5  ;;  %v1059_v34 = vld [vmem:[#allocation2 + $0xcf0] sm:$0xff] }
 0x2b6   : > { %4232 = vmatpush1.bf16.msra.mxu0 %v12332_v45  ;;  %12837 = vmatpush1.msk.msra.mxu1 %vm4410_vm0, %v15397_v17  ;;  %v715_v17 = vld [vmem:[#allocation2 + $0x230] sm:$0xff]  ;;  %v12556_v45 = vcombine.low %v875_v37, %v883_v39  ;;  %v12733_v37 = vcombine.high %v1051_v33, %v1059_v34 }
 0x2b7   : > { %4233 = vmatprep.subr.bf16.mxu0 %v12349_v46  ;;  %12844 = vmatprep.subr.msk.mxu1 %vm4410_vm0, %v15400_v18  ;;  %v12380_v18 = vcombine.low %v699_v21, %v707_v54  ;;  %v12397_v59 = vcombine.high %v715_v17, %v723_v58  ;;  %v12396_v62 = vcombine.low %v715_v17, %v723_v58  ;;  %v923_v21 = vld [vmem:[#allocation2 + $0x8b0] sm:$0xff] }
 0x2b8   : > { %4564 = vmatprep.mubr.f32.mxu1 %v15025_v52  ;;  %4263 = vmatprep.mubr.bf16.mxu0 %v15352_v4  ;;  %v15420_v4 = vld [vmem:[#allocation9 + $0x18] sm:$0x1]  ;;  %v12573_v46 = vcombine.high %v891_v43, %v899_v44  ;;  %v931_v54 = vld [vmem:[#allocation2 + $0x8f0] sm:$0xff] }
 0x2b9   : > { %v939_v17 = vld [vmem:[#allocation2 + $0x930] sm:$0xff] }
 0x2ba   : > { %4234 = vmatpush1.bf16.msra.mxu0 %v12348_v50  ;;  %v12572_v50 = vcombine.low %v891_v43, %v899_v44  ;;  %v947_v58 = vld [vmem:[#allocation2 + $0x970] sm:$0xff]  ;;  %v12732_v43 = vcombine.low %v1051_v33, %v1059_v34 }
 0x2bb   : > { %4235 = vmatprep.subr.bf16.mxu0 %v12365_v51  ;;  %v12589_v51 = vcombine.high %v907_v47, %v915_v48  ;;  %v1067_v39 = vld [vmem:[#allocation2 + $0xd30] sm:$0xff] }
 0x2bd   : > { %12838 = vmatmul.mubr.msk.f32.vlgmr.msra.gmra.mrb[16].mxu1 %vm4403_vm1, %v15414_v56 }
 0x2be   : > { %4236 = vmatpush1.bf16.msra.mxu0 %v12364_v55  ;;  %12845 = vmatpush1.msk.msra.mxu1 %vm4410_vm0, %v15395_v13  ;;  %v12412_v13 = vcombine.low %v731_v60, %v739_v61  ;;  %v12588_v55 = vcombine.low %v907_v47, %v915_v48  ;;  %v955_v60 = vld [vmem:[#allocation2 + $0x9b0] sm:$0xff] }
 0x2bf   : > { %4237 = vmatprep.subr.bf16.mxu0 %v12381_v57  ;;  %4570 = vmatprep.mubr.f32.mxu1 %v15025_v52  ;;  %v12605_v57 = vcombine.high %v923_v21, %v931_v54  ;;  %v963_v61 = vld [vmem:[#allocation2 + $0x9f0] sm:$0xff] }
 0x2c1   : > { %12839 = vmatmul.mubr.msk.f32.gmra.mrb[18].mxu1 %vm4403_vm1, %v15420_v4 }
 0x2c2   : > { %4238 = vmatpush1.bf16.msra.mxu0 %v12380_v18  ;;  %4736 = vmatprep.mubr.f32.mxu1 %v15025_v52  ;;  %v12604_v18 = vcombine.low %v923_v21, %v931_v54 }
 0x2c3   : > { %4239 = vmatprep.subr.bf16.mxu0 %v12397_v59  ;;  %v12621_v59 = vcombine.high %v939_v17, %v947_v58 }
 0x2c6   : > { %4240 = vmatpush1.bf16.msra.mxu0 %v12396_v62  ;;  %v12620_v62 = vcombine.low %v939_v17, %v947_v58 }
 0x2c7   : > { %4241 = vmatprep.subr.bf16.mxu0 %v12413_v0  ;;  %v12637_v0 = vcombine.high %v955_v60, %v963_v61 }
 0x2ca   : > { %4242 = vmatpush1.bf16.msra.mxu0 %v12412_v13  ;;  %v12636_v13 = vcombine.low %v955_v60, %v963_v61 }
 0x2cb   : > { %4243 = vmatprep.subr.bf16.mxu0 %v12429_v3  ;;  %v12653_v3 = vcombine.high %v971_v1, %v979_v2 }
 0x2ce   : > { %4244 = vmatpush1.bf16.msra.mxu0 %v12428_v8  ;;  %v1003_v8 = vld [vmem:[#allocation2 + $0xb30] sm:$0xff] }
 0x2cf   : > { %4245 = vmatprep.subr.bf16.mxu0 %v12445_v9  ;;  %v1011_v9 = vld [vmem:[#allocation2 + $0xb70] sm:$0xff] }
 0x2d0   : > { %v12685_v12 = vcombine.high %v1003_v8, %v1011_v9  ;;  %v12684_v23 = vcombine.low %v1003_v8, %v1011_v9 }
 0x2d2   : > { %4246 = vmatpush1.bf16.msra.mxu0 %v12444_v14 }
 0x2d3   : > { %4247 = vmatprep.subr.bf16.mxu0 %v12461_v15  ;;  %v1019_v15 = vld [vmem:[#allocation2 + $0xbb0] sm:$0xff] }
 0x2d4   : > { %v12701_v26 = vcombine.high %v1019_v15, %v1027_v16 }
 0x2d6   : > { %4248 = vmatpush1.bf16.msra.mxu0 %v12460_v20 }
 0x2d7   : > { %4249 = vmatprep.subr.bf16.mxu0 %v12477_v22 }
 0x2da   : > { %4250 = vmatpush1.bf16.msra.mxu0 %v12476_v38  ;;  %v15432_v38 = vld [vmem:[#allocation9] sm:$0xff] }
 0x2db   : > { %4251 = vmatprep.subr.bf16.mxu0 %v12493_v25  ;;  %12846 = vmatmul.mubr.msk.f32.vlgmr.msra.gmra.mrb[16].mxu1 %vm4403_vm1, %v15432_v38 }
 0x2dc   : > { %4742 = vmatprep.mubr.f32.mxu1 %v15025_v52 }
 0x2de   : > { %4252 = vmatpush1.bf16.msra.mxu0 %v12492_v28  ;;  %v1035_v28 = vld [vmem:[#allocation2 + $0xc30] sm:$0xff] }
 0x2df   : > { %4253 = vmatprep.subr.bf16.mxu0 %v12509_v29  ;;  %v1043_v29 = vld [vmem:[#allocation2 + $0xc70] sm:$0xff]  ;;  %12847 = vmatmul.mubr.msk.f32.gmra.mrb[18].mxu1 %vm4403_vm1, %v15439_v40 }
 0x2e0   : > { %4908 = vmatprep.mubr.f32.mxu1 %v15025_v52 }
 0x2e2   : > { %4254 = vmatpush1.bf16.msra.mxu0 %v12508_v31  ;;  %v12700_v31 = vcombine.low %v1019_v15, %v1027_v16  ;;  %v5251_v15 = vld [vmem:[#allocation4 + $0x20] sm:$0xff]  ;;  %v5248_v16 = vld [vmem:[#allocation4 + $0x8] sm:$0xff] }
 0x2e3   : > { %4255 = vmatprep.subr.bf16.mxu0 %v12525_v32  ;;  %v12717_v32 = vcombine.high %v1035_v28, %v1043_v29 }
 0x2e6   : > { %4256 = vmatpush1.bf16.msra.mxu0 %v12524_v35  ;;  %v15444_v35 = vld [vmem:[#allocation9 + $0x20] sm:$0xff] }
 0x2e7   : > { %4257 = vmatprep.subr.bf16.mxu0 %v12541_v36  ;;  %v12716_v36 = vcombine.low %v1035_v28, %v1043_v29 }
 0x2ea   : > { %4258 = vmatpush1.bf16.msra.mxu0 %v12540_v41  ;;  %v1075_v41 = vld [vmem:[#allocation2 + $0xd70] sm:$0xff] }
 0x2eb   : > { %4259 = vmatprep.subr.bf16.mxu0 %v12557_v42  ;;  %v15449_v42 = vld [vmem:[#allocation9 + $0x28] sm:$0x1]  ;;  %v12749_v44 = vcombine.high %v1067_v39, %v1075_v41  ;;  %v12748_v47 = vcombine.low %v1067_v39, %v1075_v41 }
 0x2ec   : > { %v5264_v39 = vld [vmem:[#allocation4 + $0x88] sm:$0xff] }
 0x2ee   : > { %4260 = vmatpush1.bf16.msra.mxu0 %v12556_v45  ;;  %v1083_v45 = vld [vmem:[#allocation2 + $0xdb0] sm:$0xff] }
 0x2ef   : > { %4261 = vmatprep.subr.bf16.mxu0 %v12573_v46  ;;  %v1091_v46 = vld [vmem:[#allocation2 + $0xdf0] sm:$0xff] }
 0x2f0   : > { %v12765_v48 = vcombine.high %v1083_v45, %v1091_v46  ;;  %v12764_v21 = vcombine.low %v1083_v45, %v1091_v46 }
 0x2f2   : > { %4262 = vmatpush1.bf16.msra.mxu0 %v12572_v50  ;;  %v1099_v50 = vld [vmem:[#allocation2 + $0xe30] sm:$0xff] }
 0x2f3   : > { %4272 = vmatprep.subr.bf16.mxu0 %v12589_v51  ;;  %v1107_v51 = vld [vmem:[#allocation2 + $0xe70] sm:$0xff] }
 0x2f4   : > { %v12781_v54 = vcombine.high %v1099_v50, %v1107_v51  ;;  %v12780_v17 = vcombine.low %v1099_v50, %v1107_v51 }
 0x2f5   : > { %4264 = vmatmul.mubr.bf16.vlgmr.msra.gmra.mrb[16].mxu0 %v15348_v63  ;;  %v995_v63 = vld [vmem:[#allocation2 + $0xaf0] sm:$0xff] }
 0x2f6   : > { %4273 = vmatpush1.bf16.msra.mxu0 %v12588_v55  ;;  %4304 = vmatprep.mubr.bf16.mxu0 %v15359_v11  ;;  %v12669_v11 = vcombine.high %v987_v6, %v995_v63  ;;  %v12668_v10 = vcombine.low %v987_v6, %v995_v63  ;;  %v1115_v55 = vld [vmem:[#allocation2 + $0xeb0] sm:$0xff] }
 0x2f7   : > { %4274 = vmatprep.subr.bf16.mxu0 %v12605_v57  ;;  %v1123_v57 = vld [vmem:[#allocation2 + $0xef0] sm:$0xff] }
 0x2f8   : > { %v12797_v58 = vcombine.high %v1115_v55, %v1123_v57  ;;  %v12796_v60 = vcombine.low %v1115_v55, %v1123_v57  ;;  %v5272_v55 = vld [vmem:[#allocation4 + $0xc8] sm:$0xff] }
 0x2fa   : > { %4275 = vmatpush1.bf16.msra.mxu0 %v12604_v18  ;;  %v1131_v18 = vld [vmem:[#allocation2 + $0xf30] sm:$0xff] }
 0x2fb   : > { %4276 = vmatprep.subr.bf16.mxu0 %v12621_v59  ;;  %v1139_v59 = vld [vmem:[#allocation2 + $0xf70] sm:$0xff] }
 0x2fc   : > { %v12813_v61 = vcombine.high %v1131_v18, %v1139_v59  ;;  %v12812_v1 = vcombine.low %v1131_v18, %v1139_v59 }
 0x2fe   : > { %4277 = vmatpush1.bf16.msra.mxu0 %v12620_v62  ;;  %v1147_v62 = vld [vmem:[#allocation2 + $0xfb0] sm:$0xff] }
 0x2ff   : > { %4278 = vmatprep.subr.bf16.mxu0 %v12637_v0  ;;  %v1155_v0 = vld [vmem:[#allocation2 + $0xff0] sm:$0xff] }
 0x300   : > { %v12829_v2 = vcombine.high %v1147_v62, %v1155_v0 }
 0x302   : > { %4279 = vmatpush1.bf16.msra.mxu0 %v12636_v13  ;;  %v12828_v13 = vcombine.low %v1147_v62, %v1155_v0 }
 0x303   : > { %4280 = vmatprep.subr.bf16.mxu0 %v12653_v3 }
 0x306   : > { %4281 = vmatpush1.bf16.msra.mxu0 %v12652_v7 }
 0x307   : > { %4282 = vmatprep.subr.bf16.mxu0 %v12669_v11  ;;  %v4402_v11 = vld [vmem:[#allocation9 + $0x38] sm:$0x1] }
 0x308   : > { %v15428_v14 = vpop.f32.mrb[8].mxu0  ;;  %v4224_v20 = vpop.f32.mrb[8].mxu1 }
 0x309   : > { %v15430_v19 = vpop.f32.mrb[9].mxu0  ;;  %v4226_v24 = vpop.f32.mrb[9].mxu1 }
 0x30a   : > { %v3982_v22 = vpop.f32.mrb[10].mxu0  ;;  %4283 = vmatpush1.bf16.msra.mxu0 %v12668_v10  ;;  %v4228_v27 = vpop.f32.mrb[10].mxu1  ;;  %12852 = vmatprep.subr.msk.mxu1 %vm4410_vm0, %v4226_v24 }
 0x30b   : > { %v3983_v25 = vpop.f32.mrb[11].mxu0  ;;  %4284 = vmatprep.subr.bf16.mxu0 %v12685_v12  ;;  %v4229_v30 = vpop.f32.mrb[11].mxu1  ;;  %12853 = vmatpush1.msk.msra.mxu1 %vm4410_vm0, %v4224_v20  ;;  %v5252_v22 = vld [vmem:[#allocation4 + $0x28] sm:$0xff] }
 0x30c   : > { %12854 = vmatmul.mubr.msk.f32.vlgmr.msra.gmra.mrb[16].mxu1 %vm4403_vm1, %v15444_v35  ;;  %v12871_v24 = vcombine.high %v5248_v16, %v5252_v22  ;;  %v5255_v25 = vld [vmem:[#allocation4 + $0x40] sm:$0xff]  ;;  %v5256_v27 = vld [vmem:[#allocation4 + $0x48] sm:$0xff] }
 0x30d   : > { %4914 = vmatprep.mubr.f32.mxu1 %v15025_v52 }
 0x30e   : > { %4285 = vmatpush1.bf16.msra.mxu0 %v12684_v23  ;;  %v12870_v23 = vcombine.low %v5248_v16, %v5252_v22 }
 0x30f   : > { %4286 = vmatprep.subr.bf16.mxu0 %v12701_v26  ;;  %v5259_v26 = vld [vmem:[#allocation4 + $0x60] sm:$0xff] }
 0x310   : > { %12855 = vmatmul.mubr.msk.f32.gmra.mrb[18].mxu1 %vm4403_vm1, %v15449_v42  ;;  %v12876_v29 = vcombine.low %v5255_v25, %v5259_v26  ;;  %v12877_v30 = vcombine.high %v5255_v25, %v5259_v26  ;;  %v5299_v25 = vld [vmem:[#allocation4 + $0x1a0] sm:$0xff]  ;;  %v5296_v26 = vld [vmem:[#allocation4 + $0x188] sm:$0xff] }
 0x311   : > { %5088 = vmatprep.mubr.f32.mxu1 %v15025_v52 }
 0x312   : > { %4287 = vmatpush1.bf16.msra.mxu0 %v12700_v31 }
 0x313   : > { %4288 = vmatprep.subr.bf16.mxu0 %v12717_v32 }
 0x316   : > { %4289 = vmatpush1.bf16.msra.mxu0 %v12716_v36  ;;  %v5263_v36 = vld [vmem:[#allocation4 + $0x80] sm:$0xff] }
 0x317   : > { %4290 = vmatprep.subr.bf16.mxu0 %v12733_v37  ;;  %v5267_v37 = vld [vmem:[#allocation4 + $0xa0] sm:$0xff] }
 0x318   : > { %v12884_v46 = vcombine.low %v5263_v36, %v5267_v37 }
 0x31a   : > { %4291 = vmatpush1.bf16.msra.mxu0 %v12732_v43  ;;  %v12885_v43 = vcombine.high %v5263_v36, %v5267_v37 }
 0x31b   : > { %4292 = vmatprep.subr.bf16.mxu0 %v12749_v44  ;;  %v5268_v44 = vld [vmem:[#allocation4 + $0xa8] sm:$0xff] }
 0x31e   : > { %4293 = vmatpush1.bf16.msra.mxu0 %v12748_v47  ;;  %v12886_v47 = vcombine.low %v5264_v39, %v5268_v44 }
 0x31f   : > { %4294 = vmatprep.subr.bf16.mxu0 %v12765_v48  ;;  %v12887_v48 = vcombine.high %v5264_v39, %v5268_v44 }
 0x322   : > { %4295 = vmatpush1.bf16.msra.mxu0 %v12764_v21  ;;  %v5271_v21 = vld [vmem:[#allocation4 + $0xc0] sm:$0xff] }
 0x323   : > { %4296 = vmatprep.subr.bf16.mxu0 %v12781_v54  ;;  %v5275_v54 = vld [vmem:[#allocation4 + $0xe0] sm:$0xff] }
 0x324   : > { %v12892_v59 = vcombine.low %v5271_v21, %v5275_v54 }
 0x326   : > { %4297 = vmatpush1.bf16.msra.mxu0 %v12780_v17  ;;  %v12893_v17 = vcombine.high %v5271_v21, %v5275_v54 }
 0x327   : > { %4298 = vmatprep.subr.bf16.mxu0 %v12797_v58  ;;  %v5276_v58 = vld [vmem:[#allocation4 + $0xe8] sm:$0xff] }
 0x32a   : > { %4299 = vmatpush1.bf16.msra.mxu0 %v12796_v60  ;;  %v12894_v60 = vcombine.low %v5272_v55, %v5276_v58 }
 0x32b   : > { %4300 = vmatprep.subr.bf16.mxu0 %v12813_v61  ;;  %v12895_v61 = vcombine.high %v5272_v55, %v5276_v58  ;;  %v5311_v55 = vld [vmem:[#allocation4 + $0x200] sm:$0xff] }
 0x32e   : > { %4301 = vmatpush1.bf16.msra.mxu0 %v12812_v1  ;;  %v5279_v1 = vld [vmem:[#allocation4 + $0x100] sm:$0xff] }
 0x32f   : > { %4302 = vmatprep.subr.bf16.mxu0 %v12829_v2  ;;  %v5283_v2 = vld [vmem:[#allocation4 + $0x120] sm:$0xff] }
 0x332   : > { %4303 = vmatpush1.bf16.msra.mxu0 %v12828_v13  ;;  %v5280_v13 = vld [vmem:[#allocation4 + $0x108] sm:$0xff] }
 0x333   : > { %12832 = vmatprep.subr.msk.mxu0 %vm4410_vm0, %v15430_v19 }
 0x335   : > { %4305 = vmatmul.mubr.bf16.vlgmr.msra.gmra.mrb[16].mxu0 %v15354_v5 }
 0x336   : > { %12833 = vmatpush1.msk.msra.mxu0 %vm4410_vm0, %v15428_v14  ;;  %4487 = vmatprep.mubr.f32.mxu0 %v15025_v52  ;;  %v5247_v14 = vld [vmem:[#allocation4] sm:$0xff] }
 0x337   : > { %12840 = vmatprep.subr.msk.mxu0 %vm4410_vm0, %v15388_v53  ;;  %v12868_v19 = vcombine.low %v5247_v14, %v5251_v15  ;;  %v12869_v20 = vcombine.high %v5247_v14, %v5251_v15  ;;  %v5292_v14 = vld [vmem:[#allocation4 + $0x168] sm:$0xff] }
 0x33d   : > { %12834 = vmatmul.mubr.msk.f32.vlgmr.msra.gmra.mrb[20].mxu0 %vm4403_vm1, %v15414_v56 }
 0x33e   : > { %12841 = vmatpush1.msk.msra.mxu0 %vm4410_vm0, %v15386_v49  ;;  %4493 = vmatprep.mubr.f32.mxu0 %v15025_v52 }
 0x341   : > { %12835 = vmatmul.mubr.msk.f32.gmra.mrb[22].mxu0 %vm4403_vm1, %v15420_v4  ;;  %v4401_v4 = vld [vmem:[#allocation9 + $0x30] sm:$0xff] }
 0x342   : > { %4659 = vmatprep.mubr.f32.mxu0 %v15025_v52 }
 0x345   : > { %12842 = vmatmul.mubr.msk.f32.vlgmr.msra.gmra.mrb[20].mxu0 %vm4403_vm1, %v15432_v38 }
 0x346   : > { %4665 = vmatprep.mubr.f32.mxu0 %v15025_v52 }
 0x349   : > { %12843 = vmatmul.mubr.msk.f32.gmra.mrb[22].mxu0 %vm4403_vm1, %v15439_v40  ;;  %v5260_v40 = vld [vmem:[#allocation4 + $0x68] sm:$0xff] }
 0x34a   : > { %4831 = vmatprep.mubr.f32.mxu0 %v15025_v52  ;;  %v12878_v31 = vcombine.low %v5256_v27, %v5260_v40  ;;  %v12879_v32 = vcombine.high %v5256_v27, %v5260_v40  ;;  %v5300_v40 = vld [vmem:[#allocation4 + $0x1a8] sm:$0xff] }
 0x34b   : > { %v12918_v36 = vcombine.low %v5296_v26, %v5300_v40 }
 0x388   : > { %v4142_v5 = vpop.f32.mrb[12].mxu0  ;;  %v4388_v49 = vpop.f32.mrb[12].mxu1 }
 0x389   : > { %v4144_v53 = vpop.f32.mrb[13].mxu0  ;;  %v4390_v3 = vpop.f32.mrb[13].mxu1 }
 0x38a   : > { %v4146_v56 = vpop.f32.mrb[14].mxu0  ;;  %12848 = vmatprep.subr.msk.mxu0 %vm4410_vm0, %v4144_v53  ;;  %12860 = vmatprep.subr.msk.mxu1 %vm4410_vm0, %v4390_v3  ;;  %v4392_v63 = vpop.f32.mrb[14].mxu1  ;;  %v12901_v53 = vcombine.high %v5279_v1, %v5283_v2  ;;  %v12900_v3 = vcombine.low %v5279_v1, %v5283_v2 }
 0x38b   : > { %v4147_v6 = vpop.f32.mrb[15].mxu0  ;;  %12849 = vmatpush1.msk.msra.mxu0 %vm4410_vm0, %v4142_v5  ;;  %12861 = vmatpush1.msk.msra.mxu1 %vm4410_vm0, %v4388_v49  ;;  %v4393_v7 = vpop.f32.mrb[15].mxu1  ;;  %v5284_v49 = vld [vmem:[#allocation4 + $0x128] sm:$0xff] }
 0x38c   : > { %12850 = vmatmul.mubr.msk.f32.vlgmr.msra.gmra.mrb[20].mxu0 %vm4403_vm1, %v15444_v35  ;;  %12862 = vmatmul.mubr.msk.f32.vlgmr.msra.gmra.mrb[16].mxu1 %vm4403_vm1, %v4401_v4  ;;  %v12903_v6 = vcombine.high %v5280_v13, %v5284_v49 }
 0x38d   : > { %4837 = vmatprep.mubr.f32.mxu0 %v15025_v52  ;;  %5094 = vmatprep.mubr.f32.mxu1 %v15025_v52 }
 0x38e   : > { %8491 = vmatprep.subr.bf16.mxu1 %v12871_v24  ;;  %v5295_v24 = vld [vmem:[#allocation4 + $0x180] sm:$0xff] }
 0x38f   : > { %8492 = vmatpush1.bf16.msra.mxu1 %v12870_v23 }
 0x390   : > { %12851 = vmatmul.mubr.msk.f32.gmra.mrb[22].mxu0 %vm4403_vm1, %v15449_v42  ;;  %12863 = vmatmul.mubr.msk.f32.gmra.mrb[18].mxu1 %vm4403_vm1, %v4402_v11 }
 0x391   : > { %5011 = vmatprep.mubr.f32.mxu0 %v15025_v52  ;;  %8493 = vmatprep.subr.bf16.mxu1 %v12879_v32 }
 0x393   : > { %8494 = vmatpush1.bf16.msra.mxu1 %v12878_v31 }
 0x394   : > { %8495 = vmatprep.subr.bf16.mxu1 %v12887_v48 }
 0x397   : > { %8496 = vmatpush1.bf16.msra.mxu1 %v12886_v47 }
 0x398   : > { %8497 = vmatprep.subr.bf16.mxu1 %v12895_v61 }
 0x39b   : > { %8498 = vmatpush1.bf16.msra.mxu1 %v12894_v60 }
 0x39c   : > { %8499 = vmatprep.subr.bf16.mxu1 %v12903_v6 }
 0x408   : > { %v4306_v8 = vpop.f32.mrb[16].mxu0 }
 0x409   : > { %v4308_v9 = vpop.f32.mrb[17].mxu0 }
 0x40a   : > { %v4310_v10 = vpop.f32.mrb[18].mxu0  ;;  %12856 = vmatprep.subr.msk.mxu0 %vm4410_vm0, %v4308_v9  ;;  %v5288_v9 = vld [vmem:[#allocation4 + $0x148] sm:$0xff] }
 0x40b   : > { %v4311_v12 = vpop.f32.mrb[19].mxu0  ;;  %12857 = vmatpush1.msk.msra.mxu0 %vm4410_vm0, %v4306_v8  ;;  %v5291_v8 = vld [vmem:[#allocation4 + $0x160] sm:$0xff] }
 0x40c   : > { %12858 = vmatmul.mubr.msk.f32.vlgmr.msra.gmra.mrb[20].mxu0 %vm4403_vm1, %v4401_v4  ;;  %8319 = vmatprep.subr.bf16.mxu0 %v12869_v20  ;;  %v12902_v4 = vcombine.low %v5280_v13, %v5284_v49  ;;  %v12911_v20 = vcombine.high %v5288_v9, %v5292_v14  ;;  %v5319_v13 = vld [vmem:[#allocation4 + $0x240] sm:$0xff] }
 0x40d   : > { %5017 = vmatprep.mubr.f32.mxu0 %v15025_v52  ;;  %8320 = vmatpush1.bf16.msra.mxu0 %v12868_v19  ;;  %v12910_v19 = vcombine.low %v5288_v9, %v5292_v14  ;;  %v5327_v9 = vld [vmem:[#allocation4 + $0x280] sm:$0xff] }
 0x40e   : > { %8321 = vmatprep.subr.bf16.mxu0 %v12877_v30  ;;  %8500 = vmatpush1.bf16.msra.mxu1 %v12902_v4  ;;  %v12917_v30 = vcombine.high %v5295_v24, %v5299_v25 }
 0x40f   : > { %8501 = vmatprep.subr.bf16.mxu1 %v12911_v20 }
 0x410   : > { %12859 = vmatmul.mubr.msk.f32.gmra.mrb[22].mxu0 %vm4403_vm1, %v4402_v11  ;;  %v5287_v11 = vld [vmem:[#allocation4 + $0x140] sm:$0xff] }
 0x411   : > { %8322 = vmatpush1.bf16.msra.mxu0 %v12876_v29  ;;  %v12909_v12 = vcombine.high %v5287_v11, %v5291_v8  ;;  %v12908_v16 = vcombine.low %v5287_v11, %v5291_v8 }
 0x412   : > { %8323 = vmatprep.subr.bf16.mxu0 %v12885_v43  ;;  %8502 = vmatpush1.bf16.msra.mxu1 %v12910_v19 }
 0x415   : > { %8324 = vmatpush1.bf16.msra.mxu0 %v12884_v46 }
 0x416   : > { %8325 = vmatprep.subr.bf16.mxu0 %v12893_v17  ;;  %v5312_v17 = vld [vmem:[#allocation4 + $0x208] sm:$0xff] }
 0x419   : > { %8326 = vmatpush1.bf16.msra.mxu0 %v12892_v59  ;;  %v5316_v59 = vld [vmem:[#allocation4 + $0x228] sm:$0xff] }
 0x41a   : > { %8327 = vmatprep.subr.bf16.mxu0 %v12901_v53  ;;  %v5320_v53 = vld [vmem:[#allocation4 + $0x248] sm:$0xff] }
 0x41d   : > { %8328 = vmatpush1.bf16.msra.mxu0 %v12900_v3  ;;  %v5324_v3 = vld [vmem:[#allocation4 + $0x268] sm:$0xff] }
 0x41e   : > { %8329 = vmatprep.subr.bf16.mxu0 %v12909_v12  ;;  %v5328_v12 = vld [vmem:[#allocation4 + $0x288] sm:$0xff] }
 0x421   : > { %8330 = vmatpush1.bf16.msra.mxu0 %v12908_v16  ;;  %v5332_v16 = vld [vmem:[#allocation4 + $0x2a8] sm:$0xff] }
 0x422   : > { %8331 = vmatprep.subr.bf16.mxu0 %v12917_v30  ;;  %v5339_v30 = vld [vmem:[#allocation4 + $0x2e0] sm:$0xff] }
 0x45f   : > { %v15494_v38 = vpop.f32.mrb[16].mxu1 }
 0x460   : > { %v15496_v28 = vpop.f32.mrb[17].mxu1 }
 0x463   : > { %v15498_v33 = vpop.f32.mrb[18].mxu1 }
 0x464   : > { %v5126_v34 = vsel %vm5109_vm2, %v15498_v33, 0.0  ;;  %v15502_v35 = vpop.f32.mrb[19].mxu1 }
 0x465   : > { %v5127_v41 = vadd.f32 %v5126_v34, %v15494_v38  ;;  %v5134_v42 = vsel %vm5109_vm2, %v15502_v35, 0.0  ;;  %v12916_v34 = vcombine.low %v5295_v24, %v5299_v25 }
 0x466   : > { %v5135_v45 = vadd.f32 %v5134_v42, %v15496_v28  ;;  %v5304_v42 = vld [vmem:[#allocation4 + $0x1c8] sm:$0xff] }
 0x467   : > { %v5128_v50 = vrot.slane %v5127_v41, 4  ;;  %8332 = vmatpush1.bf16.msra.mxu0 %v12916_v34 }
 0x468   : > { %v5136_v51 = vrot.slane %v5135_v45, 4 }
 0x469   : > { %v5129_v57 = vadd.f32 %v5128_v50, %v5127_v41  ;;  %v5303_v41 = vld [vmem:[#allocation4 + $0x1c0] sm:$0xff] }
 0x46a   : > { %v5137_v18 = vadd.f32 %v5136_v51, %v5135_v45  ;;  %v5308_v45 = vld [vmem:[#allocation4 + $0x1e8] sm:$0xff] }
 0x46b   : > { %v5130_v62 = vrot.slane %v5129_v57, 2  ;;  %v12926_v50 = vcombine.low %v5304_v42, %v5308_v45  ;;  %v12927_v21 = vcombine.high %v5304_v42, %v5308_v45  ;;  %v5347_v42 = vld [vmem:[#allocation4 + $0x320] sm:$0xff]  ;;  %v5348_v45 = vld [vmem:[#allocation4 + $0x328] sm:$0xff] }
 0x46c   : > { %v5138_v0 = vrot.slane %v5137_v18, 2 }
 0x46d   : > { %v5131_v5 = vadd.f32 %v5130_v62, %v5129_v57  ;;  %v5315_v57 = vld [vmem:[#allocation4 + $0x220] sm:$0xff]  ;;  %v12934_v62 = vcombine.low %v5312_v17, %v5316_v59 }
 0x46e   : > { %v5139_v56 = vadd.f32 %v5138_v0, %v5137_v18  ;;  %v12933_v18 = vcombine.high %v5311_v55, %v5315_v57  ;;  %v12932_v61 = vcombine.low %v5311_v55, %v5315_v57  ;;  %v12935_v0 = vcombine.high %v5312_v17, %v5316_v59  ;;  %v5356_v55 = vld [vmem:[#allocation4 + $0x368] sm:$0xff]  ;;  %v5363_v59 = vld [vmem:[#allocation4 + $0x3a0] sm:$0xff] }
 0x46f   : > { %v5132_v63 = vrot.slane %v5131_v5, 1 }
 0x470   : > { %v5140_v7 = vrot.slane %v5139_v56, 1 }
 0x471   : > { %v5133_v10 = vadd.f32 %v5132_v63, %v5131_v5  ;;  %v5323_v5 = vld [vmem:[#allocation4 + $0x260] sm:$0xff]  ;;  %v12942_v63 = vcombine.low %v5320_v53, %v5324_v3 }
 0x472   : > { %v5141_v15 = vadd.f32 %v5140_v7, %v5139_v56  ;;  %v12941_v56 = vcombine.high %v5319_v13, %v5323_v5  ;;  %v12940_v6 = vcombine.low %v5319_v13, %v5323_v5  ;;  %v12943_v7 = vcombine.high %v5320_v53, %v5324_v3 }
 0x473   : > { %v5145_v22 = vmul.f32 0.11111111, %v5133_v10  ;;  %v5331_v10 = vld [vmem:[#allocation4 + $0x2a0] sm:$0xff] }
 0x474   : > { %v5146_v23 = vmul.f32 0.11111111, %v5141_v15  ;;  %v12949_v15 = vcombine.high %v5327_v9, %v5331_v10  ;;  %v12948_v20 = vcombine.low %v5327_v9, %v5331_v10  ;;  %v5372_v9 = vld [vmem:[#allocation4 + $0x3e8] sm:$0xff] }
 0x475   : > { %v15509_v27 = vsub.f32 %v15494_v38, %v5145_v22  ;;  %v15512_v29 = vsub.f32 %v15498_v33, %v5145_v22  ;;  %v12919_v33 = vcombine.high %v5296_v26, %v5300_v40  ;;  %v12950_v22 = vcombine.low %v5328_v12, %v5332_v16  ;;  %v5335_v26 = vld [vmem:[#allocation4 + $0x2c0] sm:$0xff]  ;;  %v5336_v40 = vld [vmem:[#allocation4 + $0x2c8] sm:$0xff] }
 0x476   : > { %v15515_v31 = vsub.f32 %v15496_v28, %v5146_v23  ;;  %v15518_v32 = vsub.f32 %v15502_v35, %v5146_v23  ;;  %v5307_v35 = vld [vmem:[#allocation4 + $0x1e0] sm:$0xff]  ;;  %v12951_v23 = vcombine.high %v5328_v12, %v5332_v16 }
 0x477   : > { %v5157_v37 = vmul.f32 %v15509_v27, %v15509_v27  ;;  %v5161_v38 = vmul.f32 %v15512_v29, %v15512_v29  ;;  %8503 = vmatprep.subr.bf16.mxu1 %v12919_v33  ;;  %v12925_v44 = vcombine.high %v5303_v41, %v5307_v35  ;;  %v12924_v48 = vcombine.low %v5303_v41, %v5307_v35  ;;  %v5343_v35 = vld [vmem:[#allocation4 + $0x300] sm:$0xff] }
 0x478   : > { %v5158_v39 = vmul.f32 %v15515_v31, %v15515_v31  ;;  %v5162_v28 = vmul.f32 %v15518_v32, %v15518_v32  ;;  %8504 = vmatpush1.bf16.msra.mxu1 %v12918_v36  ;;  %v12957_v36 = vcombine.high %v5335_v26, %v5339_v30  ;;  %v12956_v33 = vcombine.low %v5335_v26, %v5339_v30  ;;  %v15540_v16 = vld [vmem:[#allocation4 + $0x420] sm:$0xff] }
 0x479   : > { %v5179_v43 = vsel %vm5109_vm2, %v5161_v38, 0.0  ;;  %8333 = vmatprep.subr.bf16.mxu0 %v12925_v44  ;;  %8505 = vmatprep.subr.bf16.mxu1 %v12927_v21  ;;  %v12965_v44 = vcombine.high %v5343_v35, %v5347_v42  ;;  %v5352_v21 = vld [vmem:[#allocation4 + $0x348] sm:$0xff] }
 0x47a   : > { %v5180_v46 = vadd.f32 %v5179_v43, %v5157_v37  ;;  %v5187_v47 = vsel %vm5109_vm2, %v5162_v28, 0.0  ;;  %8334 = vmatpush1.bf16.msra.mxu0 %v12924_v48  ;;  %v5340_v37 = vld [vmem:[#allocation4 + $0x2e8] sm:$0xff]  ;;  %v12974_v17 = vcombine.low %v5352_v21, %v5356_v55 }
 0x47b   : > { %v5188_v51 = vadd.f32 %v5187_v47, %v5158_v39  ;;  %8335 = vmatprep.subr.bf16.mxu0 %v12933_v18  ;;  %v12958_v39 = vcombine.low %v5336_v40, %v5340_v37  ;;  %v12959_v28 = vcombine.high %v5336_v40, %v5340_v37  ;;  %v5344_v43 = vld [vmem:[#allocation4 + $0x308] sm:$0xff]  ;;  %v5359_v18 = vld [vmem:[#allocation4 + $0x380] sm:$0xff] }
 0x47c   : > { %v5181_v54 = vrot.slane %v5180_v46, 4  ;;  %8506 = vmatpush1.bf16.msra.mxu1 %v12926_v50  ;;  %v12966_v47 = vcombine.low %v5344_v43, %v5348_v45  ;;  %v12967_v48 = vcombine.high %v5344_v43, %v5348_v45  ;;  %v5351_v50 = vld [vmem:[#allocation4 + $0x340] sm:$0xff] }
 0x47d   : > { %v5189_v58 = vrot.slane %v5188_v51, 4  ;;  %8507 = vmatprep.subr.bf16.mxu1 %v12935_v0 }
 0x47e   : > { %v5182_v60 = vadd.f32 %v5181_v54, %v5180_v46  ;;  %8336 = vmatpush1.bf16.msra.mxu0 %v12932_v61  ;;  %v12964_v46 = vcombine.low %v5343_v35, %v5347_v42  ;;  %v12981_v61 = vcombine.high %v5359_v18, %v5363_v59 }
 0x47f   : > { %v5190_v1 = vadd.f32 %v5189_v58, %v5188_v51  ;;  %8337 = vmatprep.subr.bf16.mxu0 %v12941_v56  ;;  %v5355_v51 = vld [vmem:[#allocation4 + $0x360] sm:$0xff]  ;;  %v12975_v58 = vcombine.high %v5352_v21, %v5356_v55 }
 0x480   : > { %v5183_v2 = vrot.slane %v5182_v60, 2  ;;  %8508 = vmatpush1.bf16.msra.mxu1 %v12934_v62  ;;  %v12973_v54 = vcombine.high %v5351_v50, %v5355_v51  ;;  %v12972_v57 = vcombine.low %v5351_v50, %v5355_v51  ;;  %v5364_v62 = vld [vmem:[#allocation4 + $0x3a8] sm:$0xff] }
 0x481   : > { %v5191_v49 = vrot.slane %v5190_v1, 2  ;;  %8509 = vmatprep.subr.bf16.mxu1 %v12943_v7 }
 0x482   : > { %v5184_v4 = vadd.f32 %v5183_v2, %v5182_v60  ;;  %8338 = vmatpush1.bf16.msra.mxu0 %v12940_v6  ;;  %v5360_v60 = vld [vmem:[#allocation4 + $0x388] sm:$0xff]  ;;  %v5371_v6 = vld [vmem:[#allocation4 + $0x3e0] sm:$0xff] }
 0x483   : > { %v5192_v11 = vadd.f32 %v5191_v49, %v5190_v1  ;;  %8339 = vmatprep.subr.bf16.mxu0 %v12949_v15  ;;  %v12980_v1 = vcombine.low %v5359_v18, %v5363_v59  ;;  %v12982_v2 = vcombine.low %v5360_v60, %v5364_v62  ;;  %v12983_v13 = vcombine.high %v5360_v60, %v5364_v62 }
 0x484   : > { %v5185_v8 = vrot.slane %v5184_v4, 1  ;;  %8510 = vmatpush1.bf16.msra.mxu1 %v12942_v63  ;;  %v5368_v63 = vld [vmem:[#allocation4 + $0x3c8] sm:$0xff] }
 0x485   : > { %v5193_v14 = vrot.slane %v5192_v11, 1  ;;  %8511 = vmatprep.subr.bf16.mxu1 %v12951_v23  ;;  %v15548_v23 = vld [vmem:[#allocation4 + $0x428] sm:$0xff] }
 0x486   : > { %v5186_v19 = vadd.f32 %v5185_v8, %v5184_v4  ;;  %8340 = vmatpush1.bf16.msra.mxu0 %v12948_v20  ;;  %v5367_v4 = vld [vmem:[#allocation4 + $0x3c0] sm:$0xff] }
 0x487   : > { %v5194_v24 = vadd.f32 %v5193_v14, %v5192_v11  ;;  %8341 = vmatprep.subr.bf16.mxu0 %v12957_v36  ;;  %v12989_v8 = vcombine.high %v5367_v4, %v5371_v6  ;;  %v12990_v14 = vcombine.low %v5368_v63, %v5372_v9 }
 0x488   : > { %v5197_v25 = vmul.f32 0.11111111, %v5186_v19  ;;  %8512 = vmatpush1.bf16.msra.mxu1 %v12950_v22  ;;  %v15542_v19 = vld [vmem:[#allocation4 + $0x408] sm:$0xff] }
 0x489   : > { %v5198_v34 = vmul.f32 0.11111111, %v5194_v24  ;;  %8513 = vmatprep.subr.bf16.mxu1 %v12959_v28  ;;  %v12998_v24 = vcombine.low %v15542_v19, %v15548_v23 }
 0x48a   : > { %v5201_v38 = vadd.f32 1e-05, %v5197_v25  ;;  %8342 = vmatpush1.bf16.msra.mxu0 %v12956_v33  ;;  %v12999_v25 = vcombine.high %v15542_v19, %v15548_v23  ;;  %v5407_v23 = vld [vmem:[#allocation4 + $0x500] sm:$0xff] }
 0x48b   : > { %v5202_v41 = vadd.f32 1e-05, %v5198_v34  ;;  %8343 = vmatprep.subr.bf16.mxu0 %v12965_v44 }
 0x48c   : > { %14685 = vrsqrt.f32 %v5201_v38  ;;  %8514 = vmatpush1.bf16.msra.mxu1 %v12958_v39 }
 0x48d   : > { %14687 = vrsqrt.f32 %v5202_v41  ;;  %8515 = vmatprep.subr.bf16.mxu1 %v12967_v48 }
 0x48e   : > { %8344 = vmatpush1.bf16.msra.mxu0 %v12964_v46 }
 0x48f   : > { %8345 = vmatprep.subr.bf16.mxu0 %v12973_v54 }
 0x490   : > { %8516 = vmatpush1.bf16.msra.mxu1 %v12966_v47 }
 0x491   : > { %8517 = vmatprep.subr.bf16.mxu1 %v12975_v58 }
 0x492   : > { %8346 = vmatpush1.bf16.msra.mxu0 %v12972_v57 }
 0x493   : > { %8347 = vmatprep.subr.bf16.mxu0 %v12981_v61 }
 0x494   : > { %8518 = vmatpush1.bf16.msra.mxu1 %v12974_v17 }
 0x495   : > { %8519 = vmatprep.subr.bf16.mxu1 %v12983_v13 }
 0x496   : > { %v14686_v0 = vpop.eup %14685  ;;  %8348 = vmatpush1.bf16.msra.mxu0 %v12980_v1 }
 0x497   : > { %v14688_v5 = vpop.eup %14687  ;;  %v5209_v53 = vmul.f32 %v14686_v0, %v15509_v27  ;;  %v5213_v49 = vmul.f32 %v14686_v0, %v15512_v29  ;;  %v12988_v27 = vcombine.low %v5367_v4, %v5371_v6  ;;  %8349 = vmatprep.subr.bf16.mxu0 %v12989_v8 }
 0x498   : > { %v5210_v56 = vmul.f32 %v14688_v5, %v15515_v31  ;;  %v5214_v3 = vmul.f32 %v14688_v5, %v15518_v32  ;;  %8520 = vmatpush1.bf16.msra.mxu1 %v12982_v2  ;;  %v12991_v31 = vcombine.high %v5368_v63, %v5372_v9  ;;  %v15538_v32 = vld [vmem:[#allocation4 + $0x400] sm:$0xff] }
 0x499   : > { %v5217_v7 = vmax.f32 %v5209_v53, 0.0  ;;  %v5221_v11 = vmax.f32 %v5213_v49, 0.0  ;;  %v12996_v20 = vcombine.low %v15538_v32, %v15540_v16  ;;  %v12997_v22 = vcombine.high %v15538_v32, %v15540_v16 }
 0x49a   : > { %v5218_v10 = vmax.f32 %v5210_v56, 0.0  ;;  %v5222_v12 = vmax.f32 %v5214_v3, 0.0  ;;  %8350 = vmatpush1.bf16.msra.mxu0 %v12988_v27  ;;  %8521 = vmatprep.subr.bf16.mxu1 %v12991_v31 }
 0x49b   : > { %v15534_v29 = vpack.c.bf16 %v5221_v11, %v5217_v7  ;;  %8362 = vmatprep.subr.bf16.mxu0 %v12997_v22 }
 0x49c   : > { %v15536_v15 = vpack.c.bf16 %v5222_v12, %v5218_v10  ;;  %8522 = vmatpush1.bf16.msra.mxu1 %v12990_v14 }
 0x49d   : > { %8534 = vmatprep.subr.bf16.mxu1 %v12999_v25 }
 0x4df   : > { %v5013_v26 = vpop.f32.mrb[20].mxu0 }
 0x4e0   : > { %v5015_v30 = vpop.f32.mrb[21].mxu0 }
 0x4e3   : > { %v5019_v40 = vpop.f32.mrb[22].mxu0 }
 0x4e4   : > { %v5110_v34 = vsel %vm5109_vm2, %v5019_v40, 0.0  ;;  %v5021_v36 = vpop.f32.mrb[23].mxu0 }
 0x4e5   : > { %v5111_v37 = vadd.f32 %v5110_v34, %v5013_v26  ;;  %v5118_v38 = vsel %vm5109_vm2, %v5021_v36, 0.0 }
 0x4e6   : > { %v5119_v33 = vadd.f32 %v5118_v38, %v5015_v30 }
 0x4e7   : > { %v5112_v39 = vrot.slane %v5111_v37, 4 }
 0x4e8   : > { %v5120_v28 = vrot.slane %v5119_v33, 4 }
 0x4e9   : > { %v5113_v41 = vadd.f32 %v5112_v39, %v5111_v37  ;;  %v5383_v37 = vld [vmem:[#allocation4 + $0x440] sm:$0xff]  ;;  %v5384_v39 = vld [vmem:[#allocation4 + $0x448] sm:$0xff] }
 0x4ea   : > { %v5121_v35 = vadd.f32 %v5120_v28, %v5119_v33  ;;  %v5387_v33 = vld [vmem:[#allocation4 + $0x460] sm:$0xff]  ;;  %v5388_v28 = vld [vmem:[#allocation4 + $0x468] sm:$0xff] }
 0x4eb   : > { %v5114_v42 = vrot.slane %v5113_v41, 2 }
 0x4ec   : > { %v5122_v43 = vrot.slane %v5121_v35, 2 }
 0x4ed   : > { %v5115_v44 = vadd.f32 %v5114_v42, %v5113_v41  ;;  %v5395_v42 = vld [vmem:[#allocation4 + $0x4a0] sm:$0xff] }
 0x4ee   : > { %v5123_v45 = vadd.f32 %v5122_v43, %v5121_v35  ;;  %v5391_v35 = vld [vmem:[#allocation4 + $0x480] sm:$0xff]  ;;  %v5392_v43 = vld [vmem:[#allocation4 + $0x488] sm:$0xff] }
 0x4ef   : > { %v5116_v46 = vrot.slane %v5115_v44, 1  ;;  %v13012_v32 = vcombine.low %v5391_v35, %v5395_v42 }
 0x4f0   : > { %v5124_v47 = vrot.slane %v5123_v45, 1 }
 0x4f1   : > { %v5117_v48 = vadd.f32 %v5116_v46, %v5115_v44  ;;  %v13005_v44 = vcombine.high %v5383_v37, %v5387_v33  ;;  %v5396_v46 = vld [vmem:[#allocation4 + $0x4a8] sm:$0xff] }
 0x4f2   : > { %v5125_v50 = vadd.f32 %v5124_v47, %v5123_v45  ;;  %v13007_v45 = vcombine.high %v5384_v39, %v5388_v28  ;;  %v13004_v47 = vcombine.low %v5383_v37, %v5387_v33  ;;  %v13014_v16 = vcombine.low %v5392_v43, %v5396_v46 }
 0x4f3   : > { %v5143_v51 = vmul.f32 0.11111111, %v5117_v48  ;;  %v13006_v48 = vcombine.low %v5384_v39, %v5388_v28  ;;  %v5447_v28 = vld [vmem:[#allocation4 + $0x640] sm:$0xff] }
 0x4f4   : > { %v5144_v21 = vmul.f32 0.11111111, %v5125_v50  ;;  %v13013_v50 = vcombine.high %v5391_v35, %v5395_v42  ;;  %v5451_v35 = vld [vmem:[#allocation4 + $0x660] sm:$0xff]  ;;  %v5448_v42 = vld [vmem:[#allocation4 + $0x648] sm:$0xff] }
 0x4f5   : > { %v5147_v54 = vsub.f32 %v5013_v26, %v5143_v51  ;;  %v5151_v55 = vsub.f32 %v5019_v40, %v5143_v51  ;;  %v13015_v51 = vcombine.high %v5392_v43, %v5396_v46  ;;  %v5452_v43 = vld [vmem:[#allocation4 + $0x668] sm:$0xff]  ;;  %v13069_v46 = vcombine.high %v5447_v28, %v5451_v35 }
 0x4f6   : > { %v5148_v57 = vsub.f32 %v5015_v30, %v5144_v21  ;;  %v5152_v17 = vsub.f32 %v5021_v36, %v5144_v21  ;;  %v5399_v21 = vld [vmem:[#allocation4 + $0x4c0] sm:$0xff] }
 0x4f7   : > { %v5155_v58 = vmul.f32 %v5147_v54, %v5147_v54  ;;  %v5159_v18 = vmul.f32 %v5151_v55, %v5151_v55 }
 0x4f8   : > { %v5156_v59 = vmul.f32 %v5148_v57, %v5148_v57  ;;  %v5160_v60 = vmul.f32 %v5152_v17, %v5152_v17 }
 0x4f9   : > { %v5163_v61 = vsel %vm5109_vm2, %v5159_v18, 0.0 }
 0x4fa   : > { %v5164_v62 = vadd.f32 %v5163_v61, %v5155_v58  ;;  %v5171_v0 = vsel %vm5109_vm2, %v5160_v60, 0.0  ;;  %v5412_v58 = vld [vmem:[#allocation4 + $0x528] sm:$0xff] }
 0x4fb   : > { %v5172_v1 = vadd.f32 %v5171_v0, %v5156_v59  ;;  %v5419_v0 = vld [vmem:[#allocation4 + $0x560] sm:$0xff] }
 0x4fc   : > { %v5165_v2 = vrot.slane %v5164_v62, 4 }
 0x4fd   : > { %v5173_v13 = vrot.slane %v5172_v1, 4 }
 0x4fe   : > { %v5166_v5 = vadd.f32 %v5165_v2, %v5164_v62  ;;  %v5415_v62 = vld [vmem:[#allocation4 + $0x540] sm:$0xff]  ;;  %v5420_v2 = vld [vmem:[#allocation4 + $0x568] sm:$0xff] }
 0x4ff   : > { %v5174_v53 = vadd.f32 %v5173_v13, %v5172_v1  ;;  %v5416_v1 = vld [vmem:[#allocation4 + $0x548] sm:$0xff] }
 0x500   : > { %v5167_v49 = vrot.slane %v5166_v5, 2 }
 0x501   : > { %v5175_v56 = vrot.slane %v5174_v53, 2 }
 0x502   : > { %v5168_v3 = vadd.f32 %v5167_v49, %v5166_v5  ;;  %v13039_v49 = vcombine.high %v5416_v1, %v5420_v2 }
 0x503   : > { %v5176_v4 = vadd.f32 %v5175_v56, %v5174_v53  ;;  %v13037_v53 = vcombine.high %v5415_v62, %v5419_v0  ;;  %v5423_v56 = vld [vmem:[#allocation4 + $0x580] sm:$0xff] }
 0x504   : > { %v5169_v6 = vrot.slane %v5168_v3, 1 }
 0x505   : > { %v5177_v63 = vrot.slane %v5176_v4, 1 }
 0x506   : > { %v5170_v7 = vadd.f32 %v5169_v6, %v5168_v3  ;;  %v5427_v3 = vld [vmem:[#allocation4 + $0x5a0] sm:$0xff]  ;;  %v5428_v6 = vld [vmem:[#allocation4 + $0x5a8] sm:$0xff] }
 0x507   : > { %v5178_v11 = vadd.f32 %v5177_v63, %v5176_v4  ;;  %v5424_v4 = vld [vmem:[#allocation4 + $0x588] sm:$0xff]  ;;  %v13036_v63 = vcombine.low %v5415_v62, %v5419_v0 }
 0x508   : > { %v5195_v8 = vmul.f32 0.11111111, %v5170_v7  ;;  %v13038_v7 = vcombine.low %v5416_v1, %v5420_v2  ;;  %v5476_v62 = vld [vmem:[#allocation4 + $0x728] sm:$0xff] }
 0x509   : > { %v5196_v9 = vmul.f32 0.11111111, %v5178_v11  ;;  %v13045_v11 = vcombine.high %v5423_v56, %v5427_v3 }
 0x50a   : > { %v5199_v10 = vadd.f32 1e-05, %v5195_v8  ;;  %v13047_v8 = vcombine.high %v5424_v4, %v5428_v6 }
 0x50b   : > { %v5200_v12 = vadd.f32 1e-05, %v5196_v9  ;;  %v5431_v9 = vld [vmem:[#allocation4 + $0x5c0] sm:$0xff] }
 0x50c   : > { %14689 = vrsqrt.f32 %v5199_v10  ;;  %v5435_v10 = vld [vmem:[#allocation4 + $0x5e0] sm:$0xff] }
 0x50d   : > { %14691 = vrsqrt.f32 %v5200_v12  ;;  %v5432_v12 = vld [vmem:[#allocation4 + $0x5c8] sm:$0xff] }
 0x516   : > { %v14690_v27 = vpop.eup %14689 }
 0x517   : > { %v14692_v14 = vpop.eup %14691  ;;  %v5207_v31 = vmul.f32 %v14690_v27, %v5147_v54  ;;  %v5211_v22 = vmul.f32 %v14690_v27, %v5151_v55  ;;  %v5403_v54 = vld [vmem:[#allocation4 + $0x4e0] sm:$0xff]  ;;  %v5400_v55 = vld [vmem:[#allocation4 + $0x4c8] sm:$0xff] }
 0x518   : > { %v5208_v25 = vmul.f32 %v14692_v14, %v5148_v57  ;;  %v5212_v26 = vmul.f32 %v14692_v14, %v5152_v17  ;;  %v5404_v57 = vld [vmem:[#allocation4 + $0x4e8] sm:$0xff]  ;;  %v13021_v19 = vcombine.high %v5399_v21, %v5403_v54  ;;  %v13020_v18 = vcombine.low %v5399_v21, %v5403_v54 }
 0x519   : > { %v5215_v30 = vmax.f32 %v5207_v31, 0.0  ;;  %v5219_v40 = vmax.f32 %v5211_v22, 0.0  ;;  %v5408_v17 = vld [vmem:[#allocation4 + $0x508] sm:$0xff]  ;;  %v13022_v59 = vcombine.low %v5400_v55, %v5404_v57  ;;  %v13044_v14 = vcombine.low %v5423_v56, %v5427_v3 }
 0x51a   : > { %v5216_v34 = vmax.f32 %v5208_v25, 0.0  ;;  %v5220_v36 = vmax.f32 %v5212_v26, 0.0  ;;  %v13031_v61 = vcombine.high %v5408_v17, %v5412_v58  ;;  %v13030_v5 = vcombine.low %v5408_v17, %v5412_v58  ;;  %v5436_v27 = vld [vmem:[#allocation4 + $0x5e8] sm:$0xff]  ;;  %v5439_v26 = vld [vmem:[#allocation4 + $0x600] sm:$0xff] }
 0x51b   : > { %v15558_v38 = vpack.c.bf16 %v5219_v40, %v5215_v30  ;;  %v13046_v31 = vcombine.low %v5424_v4, %v5428_v6  ;;  %v13053_v22 = vcombine.high %v5431_v9, %v5435_v10  ;;  %v13055_v25 = vcombine.high %v5432_v12, %v5436_v27  ;;  %v5443_v30 = vld [vmem:[#allocation4 + $0x620] sm:$0xff]  ;;  %v5440_v40 = vld [vmem:[#allocation4 + $0x608] sm:$0xff] }
 0x51c   : > { %v15560_v41 = vpack.c.bf16 %v5220_v36, %v5216_v34  ;;  %v5444_v34 = vld [vmem:[#allocation4 + $0x628] sm:$0xff]  ;;  %v13052_v36 = vcombine.low %v5431_v9, %v5435_v10  ;;  %v13054_v37 = vcombine.low %v5432_v12, %v5436_v27  ;;  %v13061_v33 = vcombine.high %v5439_v26, %v5443_v30 }
 0x51d   : > { %v13063_v39 = vcombine.high %v5440_v40, %v5444_v34  ;;  %v5460_v21 = vld [vmem:[#allocation4 + $0x6a8] sm:$0xff]  ;;  %v13068_v54 = vcombine.low %v5447_v28, %v5451_v35 }
 0x51e   : > { %8351 = vmatprep.mubr.bf16.mxu0 %v15560_v41  ;;  %8523 = vmatprep.mubr.bf16.mxu1 %v15560_v41  ;;  %v5484_v56 = vld [vmem:[#allocation4 + $0x768] sm:$0xff] }
 0x51f   : > { %8352 = vmatmul.mubr.bf16.vlgmr.msra.gmra.mrb[24].mxu0 %v15558_v38  ;;  %8524 = vmatmul.mubr.bf16.vlgmr.msra.gmra.mrb[20].mxu1 %v15558_v38  ;;  %v5492_v9 = vld [vmem:[#allocation4 + $0x7a8] sm:$0xff] }
 0x520   : > { %8363 = vmatpush1.bf16.msra.mxu0 %v12996_v20  ;;  %8535 = vmatpush1.bf16.msra.mxu1 %v12998_v24  ;;  %v13023_v20 = vcombine.high %v5400_v55, %v5404_v57  ;;  %v5411_v24 = vld [vmem:[#allocation4 + $0x520] sm:$0xff]  ;;  %v13070_v55 = vcombine.low %v5448_v42, %v5452_v43  ;;  %v5508_v28 = vld [vmem:[#allocation4 + $0x828] sm:$0xff] }
 0x521   : > { %8394 = vmatprep.mubr.bf16.mxu0 %v15536_v15  ;;  %8566 = vmatprep.mubr.bf16.mxu1 %v15536_v15  ;;  %v13029_v60 = vcombine.high %v5407_v23, %v5411_v24  ;;  %v13028_v13 = vcombine.low %v5407_v23, %v5411_v24  ;;  %v5468_v23 = vld [vmem:[#allocation4 + $0x6e8] sm:$0xff] }
 0x522   : > { %8364 = vmatprep.subr.bf16.mxu0 %v13005_v44  ;;  %8536 = vmatprep.subr.bf16.mxu1 %v13007_v45  ;;  %v13060_v44 = vcombine.low %v5439_v26, %v5443_v30  ;;  %v13062_v45 = vcombine.low %v5440_v40, %v5444_v34  ;;  %v5500_v26 = vld [vmem:[#allocation4 + $0x7e8] sm:$0xff] }
 0x524   : > { %8365 = vmatpush1.bf16.msra.mxu0 %v13004_v47  ;;  %8537 = vmatpush1.bf16.msra.mxu1 %v13006_v48  ;;  %v13071_v47 = vcombine.high %v5448_v42, %v5452_v43  ;;  %v5455_v48 = vld [vmem:[#allocation4 + $0x680] sm:$0xff] }
 0x525   : > { %8366 = vmatprep.subr.bf16.mxu0 %v13013_v50  ;;  %8538 = vmatprep.subr.bf16.mxu1 %v13015_v51  ;;  %v5459_v50 = vld [vmem:[#allocation4 + $0x6a0] sm:$0xff]  ;;  %v5456_v51 = vld [vmem:[#allocation4 + $0x688] sm:$0xff] }
 0x526   : > { %v13077_v57 = vcombine.high %v5455_v48, %v5459_v50  ;;  %v13076_v24 = vcombine.low %v5455_v48, %v5459_v50  ;;  %v13078_v17 = vcombine.low %v5456_v51, %v5460_v21  ;;  %v5516_v48 = vld [vmem:[#allocation4 + $0x868] sm:$0xff] }
 0x528   : > { %8367 = vmatpush1.bf16.msra.mxu0 %v13012_v32  ;;  %8539 = vmatpush1.bf16.msra.mxu1 %v13014_v16  ;;  %v13079_v32 = vcombine.high %v5456_v51, %v5460_v21  ;;  %v5463_v16 = vld [vmem:[#allocation4 + $0x6c0] sm:$0xff] }
 0x529   : > { %8368 = vmatprep.subr.bf16.mxu0 %v13021_v19  ;;  %8540 = vmatprep.subr.bf16.mxu1 %v13023_v20  ;;  %v5467_v19 = vld [vmem:[#allocation4 + $0x6e0] sm:$0xff]  ;;  %v5464_v20 = vld [vmem:[#allocation4 + $0x6c8] sm:$0xff] }
 0x52a   : > { %v13085_v58 = vcombine.high %v5463_v16, %v5467_v19  ;;  %v13084_v0 = vcombine.low %v5463_v16, %v5467_v19  ;;  %v13086_v1 = vcombine.low %v5464_v20, %v5468_v23  ;;  %v5524_v16 = vld [vmem:[#allocation4 + $0x8a8] sm:$0xff]  ;;  %v14415_v19 = vld [vmem:[%s15566_s5 + $0x4] ss:$16 sps:$4 sm:$0x1f]  }
 0x52c   : > { %8369 = vmatpush1.bf16.msra.mxu0 %v13020_v18  ;;  %8541 = vmatpush1.bf16.msra.mxu1 %v13022_v59  ;;  %v13087_v18 = vcombine.high %v5464_v20, %v5468_v23  ;;  %v5471_v59 = vld [vmem:[#allocation4 + $0x700] sm:$0xff] }
 0x52d   : > { %8370 = vmatprep.subr.bf16.mxu0 %v13029_v60  ;;  %8542 = vmatprep.subr.bf16.mxu1 %v13031_v61  ;;  %v5475_v60 = vld [vmem:[#allocation4 + $0x720] sm:$0xff]  ;;  %v5472_v61 = vld [vmem:[#allocation4 + $0x708] sm:$0xff] }
 0x52e   : > { %v13093_v2 = vcombine.high %v5471_v59, %v5475_v60  ;;  %v13092_v3 = vcombine.low %v5471_v59, %v5475_v60  ;;  %v13094_v4 = vcombine.low %v5472_v61, %v5476_v62  ;;  %v5528_v59 = vld [vmem:[#allocation4 + $0x8c8] sm:$0xff] }
 0x52f   : > { %v5532_v60 = vld [vmem:[#allocation4 + $0x8e8] sm:$0xff] }
 0x530   : > { %8371 = vmatpush1.bf16.msra.mxu0 %v13028_v13  ;;  %8543 = vmatpush1.bf16.msra.mxu1 %v13030_v5  ;;  %v13095_v13 = vcombine.high %v5472_v61, %v5476_v62  ;;  %v5479_v5 = vld [vmem:[#allocation4 + $0x740] sm:$0xff] }
 0x531   : > { %8372 = vmatprep.subr.bf16.mxu0 %v13037_v53  ;;  %8544 = vmatprep.subr.bf16.mxu1 %v13039_v49  ;;  %v5483_v53 = vld [vmem:[#allocation4 + $0x760] sm:$0xff]  ;;  %v5480_v49 = vld [vmem:[#allocation4 + $0x748] sm:$0xff] }
 0x532   : > { %v13101_v6 = vcombine.high %v5479_v5, %v5483_v53  ;;  %v13100_v10 = vcombine.low %v5479_v5, %v5483_v53  ;;  %v13102_v12 = vcombine.low %v5480_v49, %v5484_v56  ;;  %v5536_v5 = vld [vmem:[#allocation4 + $0x908] sm:$0xff] }
 0x533   : > { %v5540_v53 = vld [vmem:[#allocation4 + $0x928] sm:$0xff] }
 0x534   : > { %8373 = vmatpush1.bf16.msra.mxu0 %v13036_v63  ;;  %8545 = vmatpush1.bf16.msra.mxu1 %v13038_v7  ;;  %v13103_v63 = vcombine.high %v5480_v49, %v5484_v56  ;;  %v5487_v7 = vld [vmem:[#allocation4 + $0x780] sm:$0xff]  ;;  %v13150_v56 = vcombine.low %v5528_v59, %v5532_v60 }
 0x535   : > { %8374 = vmatprep.subr.bf16.mxu0 %v13045_v11  ;;  %8546 = vmatprep.subr.bf16.mxu1 %v13047_v8  ;;  %v5491_v11 = vld [vmem:[#allocation4 + $0x7a0] sm:$0xff]  ;;  %v5488_v8 = vld [vmem:[#allocation4 + $0x788] sm:$0xff] }
 0x536   : > { %v13109_v27 = vcombine.high %v5487_v7, %v5491_v11  ;;  %v13108_v30 = vcombine.low %v5487_v7, %v5491_v11  ;;  %v13110_v40 = vcombine.low %v5488_v8, %v5492_v9  ;;  %v5544_v7 = vld [vmem:[#allocation4 + $0x948] sm:$0xff] }
 0x537   : > { %v5548_v11 = vld [vmem:[#allocation4 + $0x968] sm:$0xff] }
 0x538   : > { %8375 = vmatpush1.bf16.msra.mxu0 %v13044_v14  ;;  %8547 = vmatpush1.bf16.msra.mxu1 %v13046_v31  ;;  %v13111_v14 = vcombine.high %v5488_v8, %v5492_v9  ;;  %v5495_v31 = vld [vmem:[#allocation4 + $0x7c0] sm:$0xff]  ;;  %v13158_v9 = vcombine.low %v5536_v5, %v5540_v53 }
 0x539   : > { %8376 = vmatprep.subr.bf16.mxu0 %v13053_v22  ;;  %8548 = vmatprep.subr.bf16.mxu1 %v13055_v25  ;;  %v5499_v22 = vld [vmem:[#allocation4 + $0x7e0] sm:$0xff]  ;;  %v5496_v25 = vld [vmem:[#allocation4 + $0x7c8] sm:$0xff] }
 0x53a   : > { %v13117_v34 = vcombine.high %v5495_v31, %v5499_v22  ;;  %v13116_v35 = vcombine.low %v5495_v31, %v5499_v22  ;;  %v13118_v42 = vcombine.low %v5496_v25, %v5500_v26  ;;  %v5552_v31 = vld [vmem:[#allocation4 + $0x988] sm:$0xff] }
 0x53b   : > { %v5556_v22 = vld [vmem:[#allocation4 + $0x9a8] sm:$0xff] }
 0x53c   : > { %8377 = vmatpush1.bf16.msra.mxu0 %v13052_v36  ;;  %8549 = vmatpush1.bf16.msra.mxu1 %v13054_v37  ;;  %v13119_v36 = vcombine.high %v5496_v25, %v5500_v26  ;;  %v5503_v37 = vld [vmem:[#allocation4 + $0x800] sm:$0xff]  ;;  %v13166_v26 = vcombine.low %v5544_v7, %v5548_v11 }
 0x53d   : > { %8378 = vmatprep.subr.bf16.mxu0 %v13061_v33  ;;  %8550 = vmatprep.subr.bf16.mxu1 %v13063_v39  ;;  %v5507_v33 = vld [vmem:[#allocation4 + $0x820] sm:$0xff]  ;;  %v5504_v39 = vld [vmem:[#allocation4 + $0x808] sm:$0xff] }
 0x53e   : > { %v13125_v43 = vcombine.high %v5503_v37, %v5507_v33  ;;  %v13124_v50 = vcombine.low %v5503_v37, %v5507_v33  ;;  %v13126_v51 = vcombine.low %v5504_v39, %v5508_v28  ;;  %v5560_v37 = vld [vmem:[#allocation4 + $0x9c8] sm:$0xff] }
 0x53f   : > { %v5564_v33 = vld [vmem:[#allocation4 + $0x9e8] sm:$0xff] }
 0x540   : > { %8379 = vmatpush1.bf16.msra.mxu0 %v13060_v44  ;;  %8551 = vmatpush1.bf16.msra.mxu1 %v13062_v45  ;;  %v13127_v44 = vcombine.high %v5504_v39, %v5508_v28  ;;  %v5511_v45 = vld [vmem:[#allocation4 + $0x840] sm:$0xff]  ;;  %v13174_v28 = vcombine.low %v5552_v31, %v5556_v22 }
 0x541   : > { %8380 = vmatprep.subr.bf16.mxu0 %v13069_v46  ;;  %8552 = vmatprep.subr.bf16.mxu1 %v13071_v47  ;;  %v5515_v46 = vld [vmem:[#allocation4 + $0x860] sm:$0xff]  ;;  %v5512_v47 = vld [vmem:[#allocation4 + $0x848] sm:$0xff] }
 0x542   : > { %v13133_v21 = vcombine.high %v5511_v45, %v5515_v46  ;;  %v13132_v20 = vcombine.low %v5511_v45, %v5515_v46  ;;  %v13134_v23 = vcombine.low %v5512_v47, %v5516_v48  ;;  %v5568_v45 = vld [vmem:[#allocation4 + $0xa08] sm:$0xff] }
 0x543   : > { %v5572_v46 = vld [vmem:[#allocation4 + $0xa28] sm:$0xff] }
 0x544   : > { %8381 = vmatpush1.bf16.msra.mxu0 %v13068_v54  ;;  %8553 = vmatpush1.bf16.msra.mxu1 %v13070_v55  ;;  %v13135_v54 = vcombine.high %v5512_v47, %v5516_v48  ;;  %v5519_v55 = vld [vmem:[#allocation4 + $0x880] sm:$0xff]  ;;  %v13182_v48 = vcombine.low %v5560_v37, %v5564_v33 }
 0x545   : > { %8382 = vmatprep.subr.bf16.mxu0 %v13077_v57  ;;  %8554 = vmatprep.subr.bf16.mxu1 %v13079_v32  ;;  %v5523_v57 = vld [vmem:[#allocation4 + $0x8a0] sm:$0xff]  ;;  %v5520_v32 = vld [vmem:[#allocation4 + $0x888] sm:$0xff] }
 0x546   : > { %v13140_v61 = vcombine.low %v5519_v55, %v5523_v57  ;;  %v13142_v62 = vcombine.low %v5520_v32, %v5524_v16 }
 0x548   : > { %8383 = vmatpush1.bf16.msra.mxu0 %v13076_v24  ;;  %8555 = vmatpush1.bf16.msra.mxu1 %v13078_v17  ;;  %v13141_v24 = vcombine.high %v5519_v55, %v5523_v57  ;;  %v13143_v17 = vcombine.high %v5520_v32, %v5524_v16  ;;  %v5576_v55 = vld [vmem:[#allocation4 + $0xa48] sm:$0xff]  ;;  %v13190_v16 = vcombine.low %v5568_v45, %v5572_v46 }
 0x549   : > { %8384 = vmatprep.subr.bf16.mxu0 %v13085_v58  ;;  %8556 = vmatprep.subr.bf16.mxu1 %v13087_v18  ;;  %v5527_v58 = vld [vmem:[#allocation4 + $0x8c0] sm:$0xff]  ;;  %v5580_v57 = vld [vmem:[#allocation4 + $0xa68] sm:$0xff] }
 0x54a   : > { %v5531_v18 = vld [vmem:[#allocation4 + $0x8e0] sm:$0xff] }
 0x54b   : > { %v13148_v49 = vcombine.low %v5527_v58, %v5531_v18 }
 0x54c   : > { %8385 = vmatpush1.bf16.msra.mxu0 %v13084_v0  ;;  %8557 = vmatpush1.bf16.msra.mxu1 %v13086_v1  ;;  %v13149_v0 = vcombine.high %v5527_v58, %v5531_v18  ;;  %v13151_v1 = vcombine.high %v5528_v59, %v5532_v60  ;;  %v5588_v58 = vld [vmem:[#allocation4 + $0xaa8] sm:$0xff]  ;;  %v13198_v59 = vcombine.low %v5576_v55, %v5580_v57 }
 0x54d   : > { %8386 = vmatprep.subr.bf16.mxu0 %v13093_v2  ;;  %8558 = vmatprep.subr.bf16.mxu1 %v13095_v13  ;;  %v5535_v2 = vld [vmem:[#allocation4 + $0x900] sm:$0xff] }
 0x54e   : > { %v5539_v13 = vld [vmem:[#allocation4 + $0x920] sm:$0xff] }
 0x54f   : > { %v13156_v8 = vcombine.low %v5535_v2, %v5539_v13 }
 0x550   : > { %8387 = vmatpush1.bf16.msra.mxu0 %v13092_v3  ;;  %8559 = vmatpush1.bf16.msra.mxu1 %v13094_v4  ;;  %v13157_v3 = vcombine.high %v5535_v2, %v5539_v13  ;;  %v13159_v4 = vcombine.high %v5536_v5, %v5540_v53  ;;  %v5596_v2 = vld [vmem:[#allocation4 + $0xae8] sm:$0xff] }
 0x551   : > { %8388 = vmatprep.subr.bf16.mxu0 %v13101_v6  ;;  %8560 = vmatprep.subr.bf16.mxu1 %v13103_v63  ;;  %v5543_v6 = vld [vmem:[#allocation4 + $0x940] sm:$0xff] }
 0x552   : > { %v5547_v63 = vld [vmem:[#allocation4 + $0x960] sm:$0xff] }
 0x553   : > { %v13164_v25 = vcombine.low %v5543_v6, %v5547_v63 }
 0x554   : > { %8389 = vmatpush1.bf16.msra.mxu0 %v13100_v10  ;;  %8561 = vmatpush1.bf16.msra.mxu1 %v13102_v12  ;;  %v13165_v10 = vcombine.high %v5543_v6, %v5547_v63  ;;  %v13167_v12 = vcombine.high %v5544_v7, %v5548_v11  ;;  %v5604_v6 = vld [vmem:[#allocation4 + $0xb28] sm:$0xff] }
 0x555   : > { %8390 = vmatprep.subr.bf16.mxu0 %v13109_v27  ;;  %8562 = vmatprep.subr.bf16.mxu1 %v13111_v14  ;;  %v5551_v27 = vld [vmem:[#allocation4 + $0x980] sm:$0xff] }
 0x556   : > { %v5555_v14 = vld [vmem:[#allocation4 + $0x9a0] sm:$0xff] }
 0x557   : > { %v13172_v39 = vcombine.low %v5551_v27, %v5555_v14 }
 0x558   : > { %8391 = vmatpush1.bf16.msra.mxu0 %v13108_v30  ;;  %8563 = vmatpush1.bf16.msra.mxu1 %v13110_v40  ;;  %v13173_v30 = vcombine.high %v5551_v27, %v5555_v14  ;;  %v13175_v40 = vcombine.high %v5552_v31, %v5556_v22  ;;  %v5612_v27 = vld [vmem:[#allocation4 + $0xb68] sm:$0xff] }
 0x559   : > { %8392 = vmatprep.subr.bf16.mxu0 %v13117_v34  ;;  %8564 = vmatprep.subr.bf16.mxu1 %v13119_v36  ;;  %v5559_v34 = vld [vmem:[#allocation4 + $0x9c0] sm:$0xff] }
 0x55a   : > { %v5563_v36 = vld [vmem:[#allocation4 + $0x9e0] sm:$0xff] }
 0x55b   : > { %v13180_v47 = vcombine.low %v5559_v34, %v5563_v36 }
 0x55c   : > { %8393 = vmatpush1.bf16.msra.mxu0 %v13116_v35  ;;  %8565 = vmatpush1.bf16.msra.mxu1 %v13118_v42  ;;  %v13181_v35 = vcombine.high %v5559_v34, %v5563_v36  ;;  %v13183_v42 = vcombine.high %v5560_v37, %v5564_v33  ;;  %v5620_v34 = vld [vmem:[#allocation4 + $0xba8] sm:$0xff] }
 0x55d   : > { %8405 = vmatprep.subr.bf16.mxu0 %v13125_v43  ;;  %8577 = vmatprep.subr.bf16.mxu1 %v13127_v44  ;;  %v5567_v43 = vld [vmem:[#allocation4 + $0xa00] sm:$0xff] }
 0x55e   : > { %v5571_v44 = vld [vmem:[#allocation4 + $0xa20] sm:$0xff] }
 0x55f   : > { %8395 = vmatmul.mubr.bf16.vlgmr.msra.gmra.mrb[24].mxu0 %v15534_v29  ;;  %8567 = vmatmul.mubr.bf16.vlgmr.msra.gmra.mrb[20].mxu1 %v15534_v29  ;;  %v13188_v32 = vcombine.low %v5567_v43, %v5571_v44 }
 0x560   : > { %8406 = vmatpush1.bf16.msra.mxu0 %v13124_v50  ;;  %8578 = vmatpush1.bf16.msra.mxu1 %v13126_v51  ;;  %v13189_v50 = vcombine.high %v5567_v43, %v5571_v44  ;;  %v13191_v51 = vcombine.high %v5568_v45, %v5572_v46  ;;  %v5628_v43 = vld [vmem:[#allocation4 + $0xbe8] sm:$0xff] }
 0x561   : > { %8407 = vmatprep.subr.bf16.mxu0 %v13133_v21  ;;  %8579 = vmatprep.subr.bf16.mxu1 %v13135_v54  ;;  %v5575_v21 = vld [vmem:[#allocation4 + $0xa40] sm:$0xff] }
 0x562   : > { %8437 = vmatprep.mubr.bf16.mxu0 %v14415_v19  ;;  %8609 = vmatprep.mubr.bf16.mxu1 %v14415_v19  ;;  %v5579_v54 = vld [vmem:[#allocation4 + $0xa60] sm:$0xff] }
 0x563   : > { %v13197_v19 = vcombine.high %v5575_v21, %v5579_v54  ;;  %v13196_v18 = vcombine.low %v5575_v21, %v5579_v54  ;;  %v5636_v21 = vld [vmem:[#allocation4 + $0xc28] sm:$0xff] }
 0x564   : > { %8408 = vmatpush1.bf16.msra.mxu0 %v13132_v20  ;;  %8580 = vmatpush1.bf16.msra.mxu1 %v13134_v23  ;;  %v13199_v20 = vcombine.high %v5576_v55, %v5580_v57  ;;  %v5583_v23 = vld [vmem:[#allocation4 + $0xa80] sm:$0xff] }
 0x565   : > { %8409 = vmatprep.subr.bf16.mxu0 %v13141_v24  ;;  %8581 = vmatprep.subr.bf16.mxu1 %v13143_v17  ;;  %v5587_v24 = vld [vmem:[#allocation4 + $0xaa0] sm:$0xff]  ;;  %v5584_v17 = vld [vmem:[#allocation4 + $0xa88] sm:$0xff] }
 0x566   : > { %v13205_v60 = vcombine.high %v5583_v23, %v5587_v24  ;;  %v13204_v13 = vcombine.low %v5583_v23, %v5587_v24  ;;  %v13206_v5 = vcombine.low %v5584_v17, %v5588_v58  ;;  %v5644_v23 = vld [vmem:[#allocation4 + $0xc68] sm:$0xff]  ;;  %v14417_v24 = vld [vmem:[%s15566_s5] ss:$16 sps:$4 sm:$0x1f]  }
 0x568   : > { %8410 = vmatpush1.bf16.msra.mxu0 %v13140_v61  ;;  %8582 = vmatpush1.bf16.msra.mxu1 %v13142_v62  ;;  %v13207_v61 = vcombine.high %v5584_v17, %v5588_v58  ;;  %v5591_v62 = vld [vmem:[#allocation4 + $0xac0] sm:$0xff] }
 0x569   : > { %8411 = vmatprep.subr.bf16.mxu0 %v13149_v0  ;;  %8583 = vmatprep.subr.bf16.mxu1 %v13151_v1  ;;  %v5595_v0 = vld [vmem:[#allocation4 + $0xae0] sm:$0xff]  ;;  %v5592_v1 = vld [vmem:[#allocation4 + $0xac8] sm:$0xff] }
 0x56a   : > { %v13213_v53 = vcombine.high %v5591_v62, %v5595_v0  ;;  %v13212_v63 = vcombine.low %v5591_v62, %v5595_v0  ;;  %v13214_v7 = vcombine.low %v5592_v1, %v5596_v2  ;;  %v5648_v62 = vld [vmem:[#allocation4 + $0xc88] sm:$0xff] }
 0x56b   : > { %v5652_v0 = vld [vmem:[#allocation4 + $0xca8] sm:$0xff] }
 0x56c   : > { %8412 = vmatpush1.bf16.msra.mxu0 %v13148_v49  ;;  %8584 = vmatpush1.bf16.msra.mxu1 %v13150_v56  ;;  %v13215_v49 = vcombine.high %v5592_v1, %v5596_v2  ;;  %v5599_v56 = vld [vmem:[#allocation4 + $0xb00] sm:$0xff]  ;;  %v14418_v1 = vld [vmem:[%s15566_s5 + $0xc] ss:$16 sps:$4 sm:$0x1f]  }
 0x56d   : > { %8413 = vmatprep.subr.bf16.mxu0 %v13157_v3  ;;  %8585 = vmatprep.subr.bf16.mxu1 %v13159_v4  ;;  %v5603_v3 = vld [vmem:[#allocation4 + $0xb20] sm:$0xff]  ;;  %v5600_v4 = vld [vmem:[#allocation4 + $0xb08] sm:$0xff] }
 0x56e   : > { %v13221_v11 = vcombine.high %v5599_v56, %v5603_v3  ;;  %v13220_v14 = vcombine.low %v5599_v56, %v5603_v3  ;;  %v13222_v31 = vcombine.low %v5600_v4, %v5604_v6  ;;  %v5659_v56 = vld [vmem:[#allocation4 + $0xce0] sm:$0xff]  ;;  %v5656_v3 = vld [vmem:[#allocation4 + $0xcc8] sm:$0xff] }
 0x570   : > { %8414 = vmatpush1.bf16.msra.mxu0 %v13156_v8  ;;  %8586 = vmatpush1.bf16.msra.mxu1 %v13158_v9  ;;  %v13223_v8 = vcombine.high %v5600_v4, %v5604_v6  ;;  %v5607_v9 = vld [vmem:[#allocation4 + $0xb40] sm:$0xff]  ;;  %v5660_v4 = vld [vmem:[#allocation4 + $0xce8] sm:$0xff] }
 0x571   : > { %8415 = vmatprep.subr.bf16.mxu0 %v13165_v10  ;;  %8587 = vmatprep.subr.bf16.mxu1 %v13167_v12  ;;  %v5611_v10 = vld [vmem:[#allocation4 + $0xb60] sm:$0xff]  ;;  %v5608_v12 = vld [vmem:[#allocation4 + $0xb48] sm:$0xff] }
 0x572   : > { %v13229_v22 = vcombine.high %v5607_v9, %v5611_v10  ;;  %v13228_v36 = vcombine.low %v5607_v9, %v5611_v10  ;;  %v13230_v37 = vcombine.low %v5608_v12, %v5612_v27  ;;  %v5667_v9 = vld [vmem:[#allocation4 + $0xd20] sm:$0xff]  ;;  %v5664_v10 = vld [vmem:[#allocation4 + $0xd08] sm:$0xff] }
 0x574   : > { %8416 = vmatpush1.bf16.msra.mxu0 %v13164_v25  ;;  %8588 = vmatpush1.bf16.msra.mxu1 %v13166_v26  ;;  %v13231_v25 = vcombine.high %v5608_v12, %v5612_v27  ;;  %v5615_v26 = vld [vmem:[#allocation4 + $0xb80] sm:$0xff]  ;;  %v5668_v12 = vld [vmem:[#allocation4 + $0xd28] sm:$0xff] }
 0x575   : > { %8417 = vmatprep.subr.bf16.mxu0 %v13173_v30  ;;  %8589 = vmatprep.subr.bf16.mxu1 %v13175_v40  ;;  %v5619_v30 = vld [vmem:[#allocation4 + $0xba0] sm:$0xff]  ;;  %v5616_v40 = vld [vmem:[#allocation4 + $0xb88] sm:$0xff] }
 0x576   : > { %v13237_v33 = vcombine.high %v5615_v26, %v5619_v30  ;;  %v13236_v44 = vcombine.low %v5615_v26, %v5619_v30  ;;  %v13238_v45 = vcombine.low %v5616_v40, %v5620_v34  ;;  %v5675_v26 = vld [vmem:[#allocation4 + $0xd60] sm:$0xff]  ;;  %v5672_v30 = vld [vmem:[#allocation4 + $0xd48] sm:$0xff] }
 0x578   : > { %8418 = vmatpush1.bf16.msra.mxu0 %v13172_v39  ;;  %8590 = vmatpush1.bf16.msra.mxu1 %v13174_v28  ;;  %v13239_v39 = vcombine.high %v5616_v40, %v5620_v34  ;;  %v5623_v28 = vld [vmem:[#allocation4 + $0xbc0] sm:$0xff]  ;;  %v5676_v40 = vld [vmem:[#allocation4 + $0xd68] sm:$0xff] }
 0x579   : > { %8419 = vmatprep.subr.bf16.mxu0 %v13181_v35  ;;  %8591 = vmatprep.subr.bf16.mxu1 %v13183_v42  ;;  %v5627_v35 = vld [vmem:[#allocation4 + $0xbe0] sm:$0xff]  ;;  %v5624_v42 = vld [vmem:[#allocation4 + $0xbc8] sm:$0xff] }
 0x57a   : > { %v13245_v46 = vcombine.high %v5623_v28, %v5627_v35  ;;  %v13244_v54 = vcombine.low %v5623_v28, %v5627_v35  ;;  %v13246_v55 = vcombine.low %v5624_v42, %v5628_v43  ;;  %v5683_v28 = vld [vmem:[#allocation4 + $0xda0] sm:$0xff]  ;;  %v5680_v35 = vld [vmem:[#allocation4 + $0xd88] sm:$0xff] }
 0x57c   : > { %8420 = vmatpush1.bf16.msra.mxu0 %v13180_v47  ;;  %8592 = vmatpush1.bf16.msra.mxu1 %v13182_v48  ;;  %v13247_v47 = vcombine.high %v5624_v42, %v5628_v43  ;;  %v5631_v48 = vld [vmem:[#allocation4 + $0xc00] sm:$0xff]  ;;  %v5684_v42 = vld [vmem:[#allocation4 + $0xda8] sm:$0xff] }
 0x57d   : > { %8421 = vmatprep.subr.bf16.mxu0 %v13189_v50  ;;  %8593 = vmatprep.subr.bf16.mxu1 %v13191_v51  ;;  %v5635_v50 = vld [vmem:[#allocation4 + $0xc20] sm:$0xff]  ;;  %v5632_v51 = vld [vmem:[#allocation4 + $0xc08] sm:$0xff] }
 0x57e   : > { %v13253_v57 = vcombine.high %v5631_v48, %v5635_v50  ;;  %v13252_v17 = vcombine.low %v5631_v48, %v5635_v50  ;;  %v13254_v58 = vcombine.low %v5632_v51, %v5636_v21  ;;  %v5691_v48 = vld [vmem:[#allocation4 + $0xde0] sm:$0xff]  ;;  %v5688_v50 = vld [vmem:[#allocation4 + $0xdc8] sm:$0xff] }
 0x580   : > { %8422 = vmatpush1.bf16.msra.mxu0 %v13188_v32  ;;  %8594 = vmatpush1.bf16.msra.mxu1 %v13190_v16  ;;  %v13255_v32 = vcombine.high %v5632_v51, %v5636_v21  ;;  %v5639_v16 = vld [vmem:[#allocation4 + $0xc40] sm:$0xff]  ;;  %v5692_v51 = vld [vmem:[#allocation4 + $0xde8] sm:$0xff] }
 0x581   : > { %8423 = vmatprep.subr.bf16.mxu0 %v13197_v19  ;;  %8595 = vmatprep.subr.bf16.mxu1 %v13199_v20  ;;  %v5643_v19 = vld [vmem:[#allocation4 + $0xc60] sm:$0xff]  ;;  %v5640_v20 = vld [vmem:[#allocation4 + $0xc48] sm:$0xff] }
 0x582   : > { %v13260_v2 = vcombine.low %v5639_v16, %v5643_v19 }
 0x584   : > { %8424 = vmatpush1.bf16.msra.mxu0 %v13196_v18  ;;  %8596 = vmatpush1.bf16.msra.mxu1 %v13198_v59  ;;  %v13261_v18 = vcombine.high %v5639_v16, %v5643_v19  ;;  %v13263_v59 = vcombine.high %v5640_v20, %v5644_v23  ;;  %v5699_v16 = vld [vmem:[#allocation4 + $0xe20] sm:$0xff]  ;;  %v5696_v19 = vld [vmem:[#allocation4 + $0xe08] sm:$0xff] }
 0x585   : > { %8425 = vmatprep.subr.bf16.mxu0 %v13205_v60  ;;  %8597 = vmatprep.subr.bf16.mxu1 %v13207_v61  ;;  %v5647_v60 = vld [vmem:[#allocation4 + $0xc80] sm:$0xff] }
 0x586   : > { %v5651_v61 = vld [vmem:[#allocation4 + $0xca0] sm:$0xff] }
 0x587   : > { %v13268_v6 = vcombine.low %v5647_v60, %v5651_v61 }
 0x588   : > { %8426 = vmatpush1.bf16.msra.mxu0 %v13204_v13  ;;  %8598 = vmatpush1.bf16.msra.mxu1 %v13206_v5  ;;  %v13262_v13 = vcombine.low %v5640_v20, %v5644_v23  ;;  %v13269_v5 = vcombine.high %v5647_v60, %v5651_v61  ;;  %v5700_v20 = vld [vmem:[#allocation4 + $0xe28] sm:$0xff] }
 0x589   : > { %8427 = vmatprep.subr.bf16.mxu0 %v13213_v53  ;;  %8599 = vmatprep.subr.bf16.mxu1 %v13215_v49  ;;  %v13271_v53 = vcombine.high %v5648_v62, %v5652_v0  ;;  %v5655_v49 = vld [vmem:[#allocation4 + $0xcc0] sm:$0xff]  ;;  %v5704_v60 = vld [vmem:[#allocation4 + $0xe48] sm:$0xff] }
 0x58a   : > { %v13276_v27 = vcombine.low %v5655_v49, %v5659_v56  ;;  %v5708_v61 = vld [vmem:[#allocation4 + $0xe68] sm:$0xff] }
 0x58c   : > { %8428 = vmatpush1.bf16.msra.mxu0 %v13212_v63  ;;  %8600 = vmatpush1.bf16.msra.mxu1 %v13214_v7  ;;  %v13270_v63 = vcombine.low %v5648_v62, %v5652_v0  ;;  %v13277_v7 = vcombine.high %v5655_v49, %v5659_v56  ;;  %v13318_v0 = vcombine.low %v5696_v19, %v5700_v20  ;;  %v5716_v49 = vld [vmem:[#allocation4 + $0xea8] sm:$0xff] }
 0x58d   : > { %8429 = vmatprep.subr.bf16.mxu0 %v13221_v11  ;;  %8601 = vmatprep.subr.bf16.mxu1 %v13223_v8  ;;  %v13279_v11 = vcombine.high %v5656_v3, %v5660_v4  ;;  %v5663_v8 = vld [vmem:[#allocation4 + $0xd00] sm:$0xff] }
 0x58e   : > { %v13284_v34 = vcombine.low %v5663_v8, %v5667_v9 }
 0x590   : > { %8430 = vmatpush1.bf16.msra.mxu0 %v13220_v14  ;;  %8602 = vmatpush1.bf16.msra.mxu1 %v13222_v31  ;;  %v13278_v14 = vcombine.low %v5656_v3, %v5660_v4  ;;  %v13285_v31 = vcombine.high %v5663_v8, %v5667_v9  ;;  %v13326_v3 = vcombine.low %v5704_v60, %v5708_v61  ;;  %v5724_v8 = vld [vmem:[#allocation4 + $0xee8] sm:$0xff] }
 0x591   : > { %8431 = vmatprep.subr.bf16.mxu0 %v13229_v22  ;;  %8603 = vmatprep.subr.bf16.mxu1 %v13231_v25  ;;  %v13287_v22 = vcombine.high %v5664_v10, %v5668_v12  ;;  %v5671_v25 = vld [vmem:[#allocation4 + $0xd40] sm:$0xff] }
 0x592   : > { %v13292_v43 = vcombine.low %v5671_v25, %v5675_v26 }
 0x594   : > { %8432 = vmatpush1.bf16.msra.mxu0 %v13228_v36  ;;  %8604 = vmatpush1.bf16.msra.mxu1 %v13230_v37  ;;  %v13286_v36 = vcombine.low %v5664_v10, %v5668_v12  ;;  %v13293_v37 = vcombine.high %v5671_v25, %v5675_v26  ;;  %v5732_v25 = vld [vmem:[#allocation4 + $0xf28] sm:$0xff] }
 0x595   : > { %8433 = vmatprep.subr.bf16.mxu0 %v13237_v33  ;;  %8605 = vmatprep.subr.bf16.mxu1 %v13239_v39  ;;  %v13295_v33 = vcombine.high %v5672_v30, %v5676_v40  ;;  %v5679_v39 = vld [vmem:[#allocation4 + $0xd80] sm:$0xff] }
 0x596   : > { %v13300_v21 = vcombine.low %v5679_v39, %v5683_v28 }
 0x598   : > { %8434 = vmatpush1.bf16.msra.mxu0 %v13236_v44  ;;  %8606 = vmatpush1.bf16.msra.mxu1 %v13238_v45  ;;  %v13294_v44 = vcombine.low %v5672_v30, %v5676_v40  ;;  %v13301_v45 = vcombine.high %v5679_v39, %v5683_v28  ;;  %v5740_v39 = vld [vmem:[#allocation4 + $0xf68] sm:$0xff] }
 0x599   : > { %8435 = vmatprep.subr.bf16.mxu0 %v13245_v46  ;;  %8607 = vmatprep.subr.bf16.mxu1 %v13247_v47  ;;  %v13303_v46 = vcombine.high %v5680_v35, %v5684_v42  ;;  %v5687_v47 = vld [vmem:[#allocation4 + $0xdc0] sm:$0xff] }
 0x59a   : > { %v13308_v23 = vcombine.low %v5687_v47, %v5691_v48 }
 0x59c   : > { %8436 = vmatpush1.bf16.msra.mxu0 %v13244_v54  ;;  %8608 = vmatpush1.bf16.msra.mxu1 %v13246_v55  ;;  %v13302_v54 = vcombine.low %v5680_v35, %v5684_v42  ;;  %v13309_v55 = vcombine.high %v5687_v47, %v5691_v48  ;;  %v5748_v47 = vld [vmem:[#allocation4 + $0xfa8] sm:$0xff] }
 0x59d   : > { %8448 = vmatprep.subr.bf16.mxu0 %v13253_v57  ;;  %8620 = vmatprep.subr.bf16.mxu1 %v13255_v32  ;;  %v13311_v57 = vcombine.high %v5688_v50, %v5692_v51  ;;  %v5695_v32 = vld [vmem:[#allocation4 + $0xe00] sm:$0xff] }
 0x59e   : > { %v13316_v62 = vcombine.low %v5695_v32, %v5699_v16 }
 0x59f   : > { %8438 = vmatmul.mubr.bf16.vlgmr.msra.gmra.mrb[24].mxu0 %v14417_v24  ;;  %8610 = vmatmul.mubr.bf16.vlgmr.msra.gmra.mrb[20].mxu1 %v14417_v24  ;;  %v13310_v24 = vcombine.low %v5688_v50, %v5692_v51 }
 0x5a0   : > { %8449 = vmatpush1.bf16.msra.mxu0 %v13252_v17  ;;  %8621 = vmatpush1.bf16.msra.mxu1 %v13254_v58  ;;  %v13317_v17 = vcombine.high %v5695_v32, %v5699_v16  ;;  %v13319_v58 = vcombine.high %v5696_v19, %v5700_v20  ;;  %v5756_v32 = vld [vmem:[#allocation4 + $0xfe8] sm:$0xff] }
 0x5a1   : > { %8450 = vmatprep.subr.bf16.mxu0 %v13261_v18  ;;  %8622 = vmatprep.subr.bf16.mxu1 %v13263_v59  ;;  %v5703_v18 = vld [vmem:[#allocation4 + $0xe40] sm:$0xff] }
 0x5a2   : > { %8480 = vmatprep.mubr.bf16.mxu0 %v14418_v1  ;;  %8652 = vmatprep.mubr.bf16.mxu1 %v14418_v1  ;;  %v5707_v59 = vld [vmem:[#allocation4 + $0xe60] sm:$0xff] }
 0x5a3   : > { %v13325_v1 = vcombine.high %v5703_v18, %v5707_v59  ;;  %v13324_v56 = vcombine.low %v5703_v18, %v5707_v59  ;;  %v5254_v18 = vld [vmem:[#allocation4 + $0x38] sm:$0xff] }
 0x5a4   : > { %8451 = vmatpush1.bf16.msra.mxu0 %v13260_v2  ;;  %8623 = vmatpush1.bf16.msra.mxu1 %v13262_v13  ;;  %v13327_v2 = vcombine.high %v5704_v60, %v5708_v61  ;;  %v5711_v13 = vld [vmem:[#allocation4 + $0xe80] sm:$0xff] }
 0x5a5   : > { %8452 = vmatprep.subr.bf16.mxu0 %v13269_v5  ;;  %8624 = vmatprep.subr.bf16.mxu1 %v13271_v53  ;;  %v5715_v5 = vld [vmem:[#allocation4 + $0xea0] sm:$0xff]  ;;  %v5712_v53 = vld [vmem:[#allocation4 + $0xe88] sm:$0xff] }
 0x5a6   : > { %v13333_v4 = vcombine.high %v5711_v13, %v5715_v5  ;;  %v13332_v9 = vcombine.low %v5711_v13, %v5715_v5  ;;  %v13334_v10 = vcombine.low %v5712_v53, %v5716_v49  ;;  %v5258_v13 = vld [vmem:[#allocation4 + $0x58] sm:$0xff] }
 0x5a7   : > { %v5262_v5 = vld [vmem:[#allocation4 + $0x78] sm:$0xff] }
 0x5a8   : > { %8453 = vmatpush1.bf16.msra.mxu0 %v13268_v6  ;;  %8625 = vmatpush1.bf16.msra.mxu1 %v13270_v63  ;;  %v13335_v6 = vcombine.high %v5712_v53, %v5716_v49  ;;  %v5719_v63 = vld [vmem:[#allocation4 + $0xec0] sm:$0xff] }
 0x5a9   : > { %8454 = vmatprep.subr.bf16.mxu0 %v13277_v7  ;;  %8626 = vmatprep.subr.bf16.mxu1 %v13279_v11  ;;  %v5723_v7 = vld [vmem:[#allocation4 + $0xee0] sm:$0xff]  ;;  %v5720_v11 = vld [vmem:[#allocation4 + $0xec8] sm:$0xff] }
 0x5aa   : > { %v13341_v12 = vcombine.high %v5719_v63, %v5723_v7  ;;  %v13340_v26 = vcombine.low %v5719_v63, %v5723_v7  ;;  %v13342_v30 = vcombine.low %v5720_v11, %v5724_v8  ;;  %v5266_v63 = vld [vmem:[#allocation4 + $0x98] sm:$0xff] }
 0x5ab   : > { %v5270_v7 = vld [vmem:[#allocation4 + $0xb8] sm:$0xff] }
 0x5ac   : > { %8455 = vmatpush1.bf16.msra.mxu0 %v13276_v27  ;;  %8627 = vmatpush1.bf16.msra.mxu1 %v13278_v14  ;;  %v13343_v27 = vcombine.high %v5720_v11, %v5724_v8  ;;  %v5727_v14 = vld [vmem:[#allocation4 + $0xf00] sm:$0xff]  ;;  %v12882_v8 = vcombine.low %v5258_v13, %v5262_v5 }
 0x5ad   : > { %8456 = vmatprep.subr.bf16.mxu0 %v13285_v31  ;;  %8628 = vmatprep.subr.bf16.mxu1 %v13287_v22  ;;  %v5731_v31 = vld [vmem:[#allocation4 + $0xf20] sm:$0xff]  ;;  %v5728_v22 = vld [vmem:[#allocation4 + $0xf08] sm:$0xff] }
 0x5ae   : > { %v13349_v40 = vcombine.high %v5727_v14, %v5731_v31  ;;  %v13348_v28 = vcombine.low %v5727_v14, %v5731_v31  ;;  %v13350_v35 = vcombine.low %v5728_v22, %v5732_v25  ;;  %v5274_v14 = vld [vmem:[#allocation4 + $0xd8] sm:$0xff] }
 0x5af   : > { %v5278_v31 = vld [vmem:[#allocation4 + $0xf8] sm:$0xff] }
 0x5b0   : > { %8457 = vmatpush1.bf16.msra.mxu0 %v13284_v34  ;;  %8629 = vmatpush1.bf16.msra.mxu1 %v13286_v36  ;;  %v13351_v34 = vcombine.high %v5728_v22, %v5732_v25  ;;  %v5735_v36 = vld [vmem:[#allocation4 + $0xf40] sm:$0xff]  ;;  %v12890_v25 = vcombine.low %v5266_v63, %v5270_v7 }
 0x5b1   : > { %8458 = vmatprep.subr.bf16.mxu0 %v13293_v37  ;;  %8630 = vmatprep.subr.bf16.mxu1 %v13295_v33  ;;  %v5739_v37 = vld [vmem:[#allocation4 + $0xf60] sm:$0xff]  ;;  %v5736_v33 = vld [vmem:[#allocation4 + $0xf48] sm:$0xff] }
 0x5b2   : > { %v13357_v42 = vcombine.high %v5735_v36, %v5739_v37  ;;  %v13356_v48 = vcombine.low %v5735_v36, %v5739_v37  ;;  %v13358_v50 = vcombine.low %v5736_v33, %v5740_v39  ;;  %v5286_v36 = vld [vmem:[#allocation4 + $0x138] sm:$0xff] }
 0x5b4   : > { %8459 = vmatpush1.bf16.msra.mxu0 %v13292_v43  ;;  %8631 = vmatpush1.bf16.msra.mxu1 %v13294_v44  ;;  %v13359_v43 = vcombine.high %v5736_v33, %v5740_v39  ;;  %v5743_v44 = vld [vmem:[#allocation4 + $0xf80] sm:$0xff]  ;;  %v12898_v33 = vcombine.low %v5274_v14, %v5278_v31 }
 0x5b5   : > { %8460 = vmatprep.subr.bf16.mxu0 %v13301_v45  ;;  %8632 = vmatprep.subr.bf16.mxu1 %v13303_v46  ;;  %v5747_v45 = vld [vmem:[#allocation4 + $0xfa0] sm:$0xff]  ;;  %v5744_v46 = vld [vmem:[#allocation4 + $0xf88] sm:$0xff] }
 0x5b6   : > { %v13365_v51 = vcombine.high %v5743_v44, %v5747_v45  ;;  %v13364_v16 = vcombine.low %v5743_v44, %v5747_v45  ;;  %v13366_v19 = vcombine.low %v5744_v46, %v5748_v47  ;;  %v5294_v44 = vld [vmem:[#allocation4 + $0x178] sm:$0xff] }
 0x5b8   : > { %8461 = vmatpush1.bf16.msra.mxu0 %v13300_v21  ;;  %8633 = vmatpush1.bf16.msra.mxu1 %v13302_v54  ;;  %v13367_v21 = vcombine.high %v5744_v46, %v5748_v47  ;;  %v5751_v54 = vld [vmem:[#allocation4 + $0xfc0] sm:$0xff] }
 0x5b9   : > { %8462 = vmatprep.subr.bf16.mxu0 %v13309_v55  ;;  %8634 = vmatprep.subr.bf16.mxu1 %v13311_v57  ;;  %v5755_v55 = vld [vmem:[#allocation4 + $0xfe0] sm:$0xff]  ;;  %v5752_v57 = vld [vmem:[#allocation4 + $0xfc8] sm:$0xff] }
 0x5ba   : > { %v13373_v20 = vcombine.high %v5751_v54, %v5755_v55  ;;  %v13372_v59 = vcombine.low %v5751_v54, %v5755_v55  ;;  %v13374_v60 = vcombine.low %v5752_v57, %v5756_v32  ;;  %v5302_v54 = vld [vmem:[#allocation4 + $0x1b8] sm:$0xff] }
 0x5bc   : > { %8463 = vmatpush1.bf16.msra.mxu0 %v13308_v23  ;;  %8635 = vmatpush1.bf16.msra.mxu1 %v13310_v24  ;;  %v13375_v23 = vcombine.high %v5752_v57, %v5756_v32  ;;  %v5249_v24 = vld [vmem:[#allocation4 + $0x10] sm:$0xff] }
 0x5bd   : > { %8464 = vmatprep.subr.bf16.mxu0 %v13317_v17  ;;  %8636 = vmatprep.subr.bf16.mxu1 %v13319_v58  ;;  %v5253_v17 = vld [vmem:[#allocation4 + $0x30] sm:$0xff]  ;;  %v5250_v58 = vld [vmem:[#allocation4 + $0x18] sm:$0xff] }
 0x5be   : > { %v12873_v61 = vcombine.high %v5249_v24, %v5253_v17  ;;  %v12872_v53 = vcombine.low %v5249_v24, %v5253_v17  ;;  %v12874_v49 = vcombine.low %v5250_v58, %v5254_v18  ;;  %v5310_v24 = vld [vmem:[#allocation4 + $0x1f8] sm:$0xff] }
 0x5c0   : > { %8465 = vmatpush1.bf16.msra.mxu0 %v13316_v62  ;;  %8637 = vmatpush1.bf16.msra.mxu1 %v13318_v0  ;;  %v12875_v62 = vcombine.high %v5250_v58, %v5254_v18  ;;  %v14420_v0 = vld [vmem:[%s15566_s5 + $0x8] ss:$16 sps:$4 sm:$0x1f]  }
 0x5c1   : > { %8466 = vmatprep.subr.bf16.mxu0 %v13325_v1  ;;  %8638 = vmatprep.subr.bf16.mxu1 %v13327_v2  ;;  %v5257_v1 = vld [vmem:[#allocation4 + $0x50] sm:$0xff] }
 0x5c2   : > { %v5261_v2 = vld [vmem:[#allocation4 + $0x70] sm:$0xff] }
 0x5c3   : > { %v12880_v11 = vcombine.low %v5257_v1, %v5261_v2 }
 0x5c4   : > { %8467 = vmatpush1.bf16.msra.mxu0 %v13324_v56  ;;  %8639 = vmatpush1.bf16.msra.mxu1 %v13326_v3  ;;  %v12881_v56 = vcombine.high %v5257_v1, %v5261_v2  ;;  %v12883_v3 = vcombine.high %v5258_v13, %v5262_v5 }
 0x5c5   : > { %8468 = vmatprep.subr.bf16.mxu0 %v13333_v4  ;;  %8640 = vmatprep.subr.bf16.mxu1 %v13335_v6  ;;  %v5265_v4 = vld [vmem:[#allocation4 + $0x90] sm:$0xff] }
 0x5c6   : > { %v5269_v6 = vld [vmem:[#allocation4 + $0xb0] sm:$0xff] }
 0x5c7   : > { %v12888_v22 = vcombine.low %v5265_v4, %v5269_v6 }
 0x5c8   : > { %8469 = vmatpush1.bf16.msra.mxu0 %v13332_v9  ;;  %8641 = vmatpush1.bf16.msra.mxu1 %v13334_v10  ;;  %v12889_v9 = vcombine.high %v5265_v4, %v5269_v6  ;;  %v12891_v10 = vcombine.high %v5266_v63, %v5270_v7 }
 0x5c9   : > { %8470 = vmatprep.subr.bf16.mxu0 %v13341_v12  ;;  %8642 = vmatprep.subr.bf16.mxu1 %v13343_v27  ;;  %v5273_v12 = vld [vmem:[#allocation4 + $0xd0] sm:$0xff] }
 0x5ca   : > { %v5277_v27 = vld [vmem:[#allocation4 + $0xf0] sm:$0xff] }
 0x5cb   : > { %v12896_v37 = vcombine.low %v5273_v12, %v5277_v27 }
 0x5cc   : > { %8471 = vmatpush1.bf16.msra.mxu0 %v13340_v26  ;;  %8643 = vmatpush1.bf16.msra.mxu1 %v13342_v30  ;;  %v12897_v26 = vcombine.high %v5273_v12, %v5277_v27  ;;  %v12899_v30 = vcombine.high %v5274_v14, %v5278_v31 }
 0x5cd   : > { %8472 = vmatprep.subr.bf16.mxu0 %v13349_v40  ;;  %8644 = vmatprep.subr.bf16.mxu1 %v13351_v34  ;;  %v5281_v40 = vld [vmem:[#allocation4 + $0x110] sm:$0xff] }
 0x5ce   : > { %v5285_v34 = vld [vmem:[#allocation4 + $0x130] sm:$0xff] }
 0x5cf   : > { %v12905_v39 = vcombine.high %v5281_v40, %v5285_v34  ;;  %v12904_v45 = vcombine.low %v5281_v40, %v5285_v34 }
 0x5d0   : > { %8473 = vmatpush1.bf16.msra.mxu0 %v13348_v28  ;;  %8645 = vmatpush1.bf16.msra.mxu1 %v13350_v35  ;;  %v5289_v35 = vld [vmem:[#allocation4 + $0x150] sm:$0xff] }
 0x5d1   : > { %8474 = vmatprep.subr.bf16.mxu0 %v13357_v42  ;;  %8646 = vmatprep.subr.bf16.mxu1 %v13359_v43  ;;  %v5293_v42 = vld [vmem:[#allocation4 + $0x170] sm:$0xff]  ;;  %v5290_v43 = vld [vmem:[#allocation4 + $0x158] sm:$0xff] }
 0x5d2   : > { %v12913_v47 = vcombine.high %v5289_v35, %v5293_v42  ;;  %v12912_v55 = vcombine.low %v5289_v35, %v5293_v42  ;;  %v12914_v57 = vcombine.low %v5290_v43, %v5294_v44 }
 0x5d4   : > { %8475 = vmatpush1.bf16.msra.mxu0 %v13356_v48  ;;  %8647 = vmatpush1.bf16.msra.mxu1 %v13358_v50  ;;  %v12915_v48 = vcombine.high %v5290_v43, %v5294_v44  ;;  %v5297_v50 = vld [vmem:[#allocation4 + $0x190] sm:$0xff] }
 0x5d5   : > { %8476 = vmatprep.subr.bf16.mxu0 %v13365_v51  ;;  %8648 = vmatprep.subr.bf16.mxu1 %v13367_v21  ;;  %v5301_v51 = vld [vmem:[#allocation4 + $0x1b0] sm:$0xff]  ;;  %v5298_v21 = vld [vmem:[#allocation4 + $0x198] sm:$0xff] }
 0x5d6   : > { %v12921_v32 = vcombine.high %v5297_v50, %v5301_v51  ;;  %v12920_v17 = vcombine.low %v5297_v50, %v5301_v51  ;;  %v12922_v58 = vcombine.low %v5298_v21, %v5302_v54 }
 0x5d8   : > { %8477 = vmatpush1.bf16.msra.mxu0 %v13364_v16  ;;  %8649 = vmatpush1.bf16.msra.mxu1 %v13366_v19  ;;  %v12923_v16 = vcombine.high %v5298_v21, %v5302_v54  ;;  %v5305_v19 = vld [vmem:[#allocation4 + $0x1d0] sm:$0xff] }
 0x5d9   : > { %8478 = vmatprep.subr.bf16.mxu0 %v13373_v20  ;;  %8650 = vmatprep.subr.bf16.mxu1 %v13375_v23  ;;  %v5309_v20 = vld [vmem:[#allocation4 + $0x1f0] sm:$0xff]  ;;  %v5306_v23 = vld [vmem:[#allocation4 + $0x1d8] sm:$0xff] }
 0x5da   : > { %v12929_v18 = vcombine.high %v5305_v19, %v5309_v20  ;;  %v12928_v1 = vcombine.low %v5305_v19, %v5309_v20  ;;  %v12930_v2 = vcombine.low %v5306_v23, %v5310_v24 }
 0x5dc   : > { %8479 = vmatpush1.bf16.msra.mxu0 %v13372_v59  ;;  %8651 = vmatpush1.bf16.msra.mxu1 %v13374_v60  ;;  %v12931_v59 = vcombine.high %v5306_v23, %v5310_v24  ;;  %v5313_v60 = vld [vmem:[#allocation4 + $0x210] sm:$0xff] }
 0x5dd   : > { %8663 = vmatprep.subr.bf16.mxu0 %v12873_v61  ;;  %8835 = vmatprep.subr.bf16.mxu1 %v12875_v62  ;;  %v5317_v61 = vld [vmem:[#allocation4 + $0x230] sm:$0xff]  ;;  %v5314_v62 = vld [vmem:[#allocation4 + $0x218] sm:$0xff] }
 0x5de   : > { %v12937_v13 = vcombine.high %v5313_v60, %v5317_v61  ;;  %v12936_v4 = vcombine.low %v5313_v60, %v5317_v61 }
 0x5df   : > { %8481 = vmatmul.mubr.bf16.vlgmr.msra.gmra.mrb[24].mxu0 %v14420_v0  ;;  %8653 = vmatmul.mubr.bf16.vlgmr.msra.gmra.mrb[20].mxu1 %v14420_v0  ;;  %v5318_v0 = vld [vmem:[#allocation4 + $0x238] sm:$0xff] }
 0x5e0   : > { %8664 = vmatpush1.bf16.msra.mxu0 %v12872_v53  ;;  %8695 = vmatprep.mubr.bf16.mxu0 %v15560_v41  ;;  %v12939_v5 = vcombine.high %v5314_v62, %v5318_v0  ;;  %v5321_v53 = vld [vmem:[#allocation4 + $0x250] sm:$0xff]  ;;  %v12938_v6 = vcombine.low %v5314_v62, %v5318_v0 }
 0x5e1   : > { %8836 = vmatpush1.bf16.msra.mxu1 %v12874_v49  ;;  %8867 = vmatprep.mubr.bf16.mxu1 %v15560_v41  ;;  %v5282_v41 = vld [vmem:[#allocation4 + $0x118] sm:$0xff]  ;;  %v5325_v49 = vld [vmem:[#allocation4 + $0x270] sm:$0xff] }
 0x5e2   : > { %8665 = vmatprep.subr.bf16.mxu0 %v12881_v56  ;;  %8837 = vmatprep.subr.bf16.mxu1 %v12883_v3  ;;  %v12907_v28 = vcombine.high %v5282_v41, %v5286_v36  ;;  %v12906_v46 = vcombine.low %v5282_v41, %v5286_v36  ;;  %v5322_v56 = vld [vmem:[#allocation4 + $0x258] sm:$0xff]  ;;  %v12945_v63 = vcombine.high %v5321_v53, %v5325_v49 }
 0x5e3   : > { %v5326_v3 = vld [vmem:[#allocation4 + $0x278] sm:$0xff]  ;;  %v12944_v12 = vcombine.low %v5321_v53, %v5325_v49 }
 0x5e4   : > { %8666 = vmatpush1.bf16.msra.mxu0 %v12880_v11  ;;  %v12947_v7 = vcombine.high %v5322_v56, %v5326_v3  ;;  %v5329_v11 = vld [vmem:[#allocation4 + $0x290] sm:$0xff]  ;;  %v12946_v27 = vcombine.low %v5322_v56, %v5326_v3 }
 0x5e5   : > { %8838 = vmatpush1.bf16.msra.mxu1 %v12882_v8  ;;  %8667 = vmatprep.subr.bf16.mxu0 %v12889_v9  ;;  %v5333_v8 = vld [vmem:[#allocation4 + $0x2b0] sm:$0xff]  ;;  %v5330_v9 = vld [vmem:[#allocation4 + $0x298] sm:$0xff] }
 0x5e6   : > { %8839 = vmatprep.subr.bf16.mxu1 %v12891_v10  ;;  %v5334_v10 = vld [vmem:[#allocation4 + $0x2b8] sm:$0xff]  ;;  %v12953_v14 = vcombine.high %v5329_v11, %v5333_v8  ;;  %v12952_v40 = vcombine.low %v5329_v11, %v5333_v8 }
 0x5e7   : > { %v12955_v31 = vcombine.high %v5330_v9, %v5334_v10  ;;  %v12954_v34 = vcombine.low %v5330_v9, %v5334_v10  ;;  %v5390_v11 = vld [vmem:[#allocation4 + $0x478] sm:$0xff]  ;;  %v5393_v10 = vld [vmem:[#allocation4 + $0x490] sm:$0xff] }
 0x5e8   : > { %8668 = vmatpush1.bf16.msra.mxu0 %v12888_v22  ;;  %v5337_v22 = vld [vmem:[#allocation4 + $0x2d0] sm:$0xff] }
 0x5e9   : > { %8840 = vmatpush1.bf16.msra.mxu1 %v12890_v25  ;;  %8669 = vmatprep.subr.bf16.mxu0 %v12897_v26  ;;  %v5341_v25 = vld [vmem:[#allocation4 + $0x2f0] sm:$0xff]  ;;  %v5338_v26 = vld [vmem:[#allocation4 + $0x2d8] sm:$0xff] }
 0x5ea   : > { %8841 = vmatprep.subr.bf16.mxu1 %v12899_v30  ;;  %v5342_v30 = vld [vmem:[#allocation4 + $0x2f8] sm:$0xff]  ;;  %v12961_v41 = vcombine.high %v5337_v22, %v5341_v25  ;;  %v12960_v35 = vcombine.low %v5337_v22, %v5341_v25 }
 0x5eb   : > { %v12963_v36 = vcombine.high %v5338_v26, %v5342_v30  ;;  %v12962_v42 = vcombine.low %v5338_v26, %v5342_v30 }
 0x5ec   : > { %8670 = vmatpush1.bf16.msra.mxu0 %v12896_v37  ;;  %v5345_v37 = vld [vmem:[#allocation4 + $0x310] sm:$0xff] }
 0x5ed   : > { %8842 = vmatpush1.bf16.msra.mxu1 %v12898_v33  ;;  %8671 = vmatprep.subr.bf16.mxu0 %v12905_v39  ;;  %v5349_v33 = vld [vmem:[#allocation4 + $0x330] sm:$0xff]  ;;  %v5346_v39 = vld [vmem:[#allocation4 + $0x318] sm:$0xff] }
 0x5ee   : > { %8843 = vmatprep.subr.bf16.mxu1 %v12907_v28  ;;  %v5350_v28 = vld [vmem:[#allocation4 + $0x338] sm:$0xff]  ;;  %v12969_v43 = vcombine.high %v5345_v37, %v5349_v33  ;;  %v12968_v50 = vcombine.low %v5345_v37, %v5349_v33 }
 0x5ef   : > { %v12971_v44 = vcombine.high %v5346_v39, %v5350_v28  ;;  %v12970_v51 = vcombine.low %v5346_v39, %v5350_v28  ;;  %v5409_v28 = vld [vmem:[#allocation4 + $0x510] sm:$0xff] }
 0x5f0   : > { %8672 = vmatpush1.bf16.msra.mxu0 %v12904_v45  ;;  %v5353_v45 = vld [vmem:[#allocation4 + $0x350] sm:$0xff] }
 0x5f1   : > { %8844 = vmatpush1.bf16.msra.mxu1 %v12906_v46  ;;  %8673 = vmatprep.subr.bf16.mxu0 %v12913_v47  ;;  %v5357_v46 = vld [vmem:[#allocation4 + $0x370] sm:$0xff]  ;;  %v5354_v47 = vld [vmem:[#allocation4 + $0x358] sm:$0xff] }
 0x5f2   : > { %8845 = vmatprep.subr.bf16.mxu1 %v12915_v48  ;;  %v5358_v48 = vld [vmem:[#allocation4 + $0x378] sm:$0xff]  ;;  %v12977_v21 = vcombine.high %v5353_v45, %v5357_v46  ;;  %v12976_v19 = vcombine.low %v5353_v45, %v5357_v46 }
 0x5f3   : > { %v12979_v54 = vcombine.high %v5354_v47, %v5358_v48  ;;  %v12978_v20 = vcombine.low %v5354_v47, %v5358_v48  ;;  %v5417_v47 = vld [vmem:[#allocation4 + $0x550] sm:$0xff] }
 0x5f4   : > { %8674 = vmatpush1.bf16.msra.mxu0 %v12912_v55  ;;  %v5361_v55 = vld [vmem:[#allocation4 + $0x390] sm:$0xff] }
 0x5f5   : > { %8846 = vmatpush1.bf16.msra.mxu1 %v12914_v57  ;;  %8675 = vmatprep.subr.bf16.mxu0 %v12921_v32  ;;  %v5365_v57 = vld [vmem:[#allocation4 + $0x3b0] sm:$0xff]  ;;  %v5362_v32 = vld [vmem:[#allocation4 + $0x398] sm:$0xff] }
 0x5f6   : > { %8847 = vmatprep.subr.bf16.mxu1 %v12923_v16  ;;  %v5366_v16 = vld [vmem:[#allocation4 + $0x3b8] sm:$0xff]  ;;  %v12985_v23 = vcombine.high %v5361_v55, %v5365_v57  ;;  %v12984_v60 = vcombine.low %v5361_v55, %v5365_v57  ;;  %v5421_v48 = vld [vmem:[#allocation4 + $0x570] sm:$0xff] }
 0x5f7   : > { %v12987_v24 = vcombine.high %v5362_v32, %v5366_v16  ;;  %v12986_v61 = vcombine.low %v5362_v32, %v5366_v16  ;;  %v13041_v55 = vcombine.high %v5417_v47, %v5421_v48  ;;  %v5425_v32 = vld [vmem:[#allocation4 + $0x590] sm:$0xff] }
 0x5f8   : > { %8676 = vmatpush1.bf16.msra.mxu0 %v12920_v17  ;;  %v5369_v17 = vld [vmem:[#allocation4 + $0x3d0] sm:$0xff] }
 0x5f9   : > { %8848 = vmatpush1.bf16.msra.mxu1 %v12922_v58  ;;  %8677 = vmatprep.subr.bf16.mxu0 %v12929_v18  ;;  %v5373_v58 = vld [vmem:[#allocation4 + $0x3f0] sm:$0xff]  ;;  %v5370_v18 = vld [vmem:[#allocation4 + $0x3d8] sm:$0xff] }
 0x5fa   : > { %8849 = vmatprep.subr.bf16.mxu1 %v12931_v59  ;;  %v5374_v59 = vld [vmem:[#allocation4 + $0x3f8] sm:$0xff]  ;;  %v12993_v62 = vcombine.high %v5369_v17, %v5373_v58  ;;  %v12992_v53 = vcombine.low %v5369_v17, %v5373_v58  ;;  %v5429_v16 = vld [vmem:[#allocation4 + $0x5b0] sm:$0xff] }
 0x5fb   : > { %v12995_v0 = vcombine.high %v5370_v18, %v5374_v59  ;;  %v12994_v49 = vcombine.low %v5370_v18, %v5374_v59  ;;  %v13049_v17 = vcombine.high %v5425_v32, %v5429_v16  ;;  %v5433_v18 = vld [vmem:[#allocation4 + $0x5d0] sm:$0xff] }
 0x5fc   : > { %8678 = vmatpush1.bf16.msra.mxu0 %v12928_v1  ;;  %v5377_v1 = vld [vmem:[#allocation4 + $0x410] sm:$0xff] }
 0x5fd   : > { %8850 = vmatpush1.bf16.msra.mxu1 %v12930_v2  ;;  %8679 = vmatprep.subr.bf16.mxu0 %v12937_v13  ;;  %v5381_v2 = vld [vmem:[#allocation4 + $0x430] sm:$0xff]  ;;  %v5378_v13 = vld [vmem:[#allocation4 + $0x418] sm:$0xff] }
 0x5fe   : > { %8851 = vmatprep.subr.bf16.mxu1 %v12939_v5  ;;  %v5382_v5 = vld [vmem:[#allocation4 + $0x438] sm:$0xff]  ;;  %v13001_v56 = vcombine.high %v5377_v1, %v5381_v2  ;;  %v5437_v59 = vld [vmem:[#allocation4 + $0x5f0] sm:$0xff] }
 0x5ff   : > { %v13003_v3 = vcombine.high %v5378_v13, %v5382_v5  ;;  %v13002_v8 = vcombine.low %v5378_v13, %v5382_v5  ;;  %v5441_v13 = vld [vmem:[#allocation4 + $0x610] sm:$0xff] }
 0x600   : > { %8680 = vmatpush1.bf16.msra.mxu0 %v12936_v4  ;;  %v5385_v4 = vld [vmem:[#allocation4 + $0x450] sm:$0xff] }
 0x601   : > { %8852 = vmatpush1.bf16.msra.mxu1 %v12938_v6  ;;  %8681 = vmatprep.subr.bf16.mxu0 %v12945_v63  ;;  %v5389_v6 = vld [vmem:[#allocation4 + $0x470] sm:$0xff]  ;;  %v13000_v63 = vcombine.low %v5377_v1, %v5381_v2  ;;  %v13057_v1 = vcombine.high %v5433_v18, %v5437_v59 }
 0x602   : > { %8853 = vmatprep.subr.bf16.mxu1 %v12947_v7  ;;  %v5386_v7 = vld [vmem:[#allocation4 + $0x458] sm:$0xff]  ;;  %v13009_v9 = vcombine.high %v5385_v4, %v5389_v6  ;;  %v13008_v22 = vcombine.low %v5385_v4, %v5389_v6  ;;  %v5445_v5 = vld [vmem:[#allocation4 + $0x630] sm:$0xff] }
 0x603   : > { %v13010_v25 = vcombine.low %v5386_v7, %v5390_v11  ;;  %v13065_v4 = vcombine.high %v5441_v13, %v5445_v5 }
 0x604   : > { %8682 = vmatpush1.bf16.msra.mxu0 %v12944_v12  ;;  %v5397_v12 = vld [vmem:[#allocation4 + $0x4b0] sm:$0xff] }
 0x605   : > { %8854 = vmatpush1.bf16.msra.mxu1 %v12946_v27  ;;  %8683 = vmatprep.subr.bf16.mxu0 %v12953_v14  ;;  %v13011_v27 = vcombine.high %v5386_v7, %v5390_v11  ;;  %v5394_v14 = vld [vmem:[#allocation4 + $0x498] sm:$0xff]  ;;  %v13017_v26 = vcombine.high %v5393_v10, %v5397_v12  ;;  %v13016_v37 = vcombine.low %v5393_v10, %v5397_v12  ;;  %v5453_v7 = vld [vmem:[#allocation4 + $0x670] sm:$0xff] }
 0x606   : > { %8855 = vmatprep.subr.bf16.mxu1 %v12955_v31  ;;  %v5398_v31 = vld [vmem:[#allocation4 + $0x4b8] sm:$0xff] }
 0x607   : > { %v13019_v30 = vcombine.high %v5394_v14, %v5398_v31  ;;  %v5450_v11 = vld [vmem:[#allocation4 + $0x658] sm:$0xff] }
 0x608   : > { %8684 = vmatpush1.bf16.msra.mxu0 %v12952_v40  ;;  %v5401_v40 = vld [vmem:[#allocation4 + $0x4d0] sm:$0xff] }
 0x609   : > { %8856 = vmatpush1.bf16.msra.mxu1 %v12954_v34  ;;  %8685 = vmatprep.subr.bf16.mxu0 %v12961_v41  ;;  %v5405_v34 = vld [vmem:[#allocation4 + $0x4f0] sm:$0xff]  ;;  %v5402_v41 = vld [vmem:[#allocation4 + $0x4d8] sm:$0xff] }
 0x60a   : > { %8857 = vmatprep.subr.bf16.mxu1 %v12963_v36  ;;  %v5406_v36 = vld [vmem:[#allocation4 + $0x4f8] sm:$0xff]  ;;  %v13025_v33 = vcombine.high %v5401_v40, %v5405_v34 }
 0x60b   : > { %v13027_v39 = vcombine.high %v5402_v41, %v5406_v36 }
 0x60c   : > { %8686 = vmatpush1.bf16.msra.mxu0 %v12960_v35  ;;  %v5413_v35 = vld [vmem:[#allocation4 + $0x530] sm:$0xff] }
 0x60d   : > { %8858 = vmatpush1.bf16.msra.mxu1 %v12962_v42  ;;  %8687 = vmatprep.subr.bf16.mxu0 %v12969_v43  ;;  %v5410_v42 = vld [vmem:[#allocation4 + $0x518] sm:$0xff]  ;;  %v13033_v45 = vcombine.high %v5409_v28, %v5413_v35 }
 0x60e   : > { %8859 = vmatprep.subr.bf16.mxu1 %v12971_v44  ;;  %v5414_v43 = vld [vmem:[#allocation4 + $0x538] sm:$0xff]  ;;  %v13026_v44 = vcombine.low %v5402_v41, %v5406_v36  ;;  %v5465_v41 = vld [vmem:[#allocation4 + $0x6d0] sm:$0xff] }
 0x60f   : > { %v13035_v46 = vcombine.high %v5410_v42, %v5414_v43  ;;  %v5469_v36 = vld [vmem:[#allocation4 + $0x6f0] sm:$0xff] }
 0x610   : > { %8688 = vmatpush1.bf16.msra.mxu0 %v12968_v50  ;;  %v5418_v50 = vld [vmem:[#allocation4 + $0x558] sm:$0xff] }
 0x611   : > { %8860 = vmatpush1.bf16.msra.mxu1 %v12970_v51  ;;  %8689 = vmatprep.subr.bf16.mxu0 %v12977_v21  ;;  %v5422_v51 = vld [vmem:[#allocation4 + $0x578] sm:$0xff]  ;;  %v13032_v21 = vcombine.low %v5409_v28, %v5413_v35  ;;  %v13089_v28 = vcombine.high %v5465_v41, %v5469_v36 }
 0x612   : > { %8861 = vmatprep.subr.bf16.mxu1 %v12979_v54  ;;  %v13034_v54 = vcombine.low %v5410_v42, %v5414_v43  ;;  %v13043_v57 = vcombine.high %v5418_v50, %v5422_v51  ;;  %v5473_v42 = vld [vmem:[#allocation4 + $0x710] sm:$0xff] }
 0x613   : > { %v5477_v43 = vld [vmem:[#allocation4 + $0x730] sm:$0xff] }
 0x614   : > { %8690 = vmatpush1.bf16.msra.mxu0 %v12976_v19  ;;  %v5426_v19 = vld [vmem:[#allocation4 + $0x598] sm:$0xff] }
 0x615   : > { %8862 = vmatpush1.bf16.msra.mxu1 %v12978_v20  ;;  %8691 = vmatprep.subr.bf16.mxu0 %v12985_v23  ;;  %v5430_v20 = vld [vmem:[#allocation4 + $0x5b8] sm:$0xff]  ;;  %v13040_v23 = vcombine.low %v5417_v47, %v5421_v48  ;;  %v13097_v47 = vcombine.high %v5473_v42, %v5477_v43 }
 0x616   : > { %8863 = vmatprep.subr.bf16.mxu1 %v12987_v24  ;;  %v13042_v24 = vcombine.low %v5418_v50, %v5422_v51  ;;  %v13051_v58 = vcombine.high %v5426_v19, %v5430_v20  ;;  %v5481_v50 = vld [vmem:[#allocation4 + $0x750] sm:$0xff] }
 0x617   : > { %v5485_v51 = vld [vmem:[#allocation4 + $0x770] sm:$0xff] }
 0x618   : > { %8692 = vmatpush1.bf16.msra.mxu0 %v12984_v60  ;;  %v5434_v60 = vld [vmem:[#allocation4 + $0x5d8] sm:$0xff] }
 0x619   : > { %8864 = vmatpush1.bf16.msra.mxu1 %v12986_v61  ;;  %8693 = vmatprep.subr.bf16.mxu0 %v12993_v62  ;;  %v5438_v61 = vld [vmem:[#allocation4 + $0x5f8] sm:$0xff]  ;;  %v13048_v62 = vcombine.low %v5425_v32, %v5429_v16  ;;  %v13105_v32 = vcombine.high %v5481_v50, %v5485_v51 }
 0x61a   : > { %8865 = vmatprep.subr.bf16.mxu1 %v12995_v0  ;;  %v13050_v0 = vcombine.low %v5426_v19, %v5430_v20  ;;  %v13059_v2 = vcombine.high %v5434_v60, %v5438_v61  ;;  %v5489_v19 = vld [vmem:[#allocation4 + $0x790] sm:$0xff] }
 0x61b   : > { %v5493_v20 = vld [vmem:[#allocation4 + $0x7b0] sm:$0xff] }
 0x61c   : > { %8694 = vmatpush1.bf16.msra.mxu0 %v12992_v53  ;;  %v5442_v53 = vld [vmem:[#allocation4 + $0x618] sm:$0xff] }
 0x61d   : > { %8866 = vmatpush1.bf16.msra.mxu1 %v12994_v49  ;;  %8706 = vmatprep.subr.bf16.mxu0 %v13001_v56  ;;  %v5446_v49 = vld [vmem:[#allocation4 + $0x638] sm:$0xff]  ;;  %v13056_v56 = vcombine.low %v5433_v18, %v5437_v59  ;;  %v13113_v18 = vcombine.high %v5489_v19, %v5493_v20 }
 0x61e   : > { %8878 = vmatprep.subr.bf16.mxu1 %v13003_v3  ;;  %v13058_v3 = vcombine.low %v5434_v60, %v5438_v61  ;;  %v13067_v6 = vcombine.high %v5442_v53, %v5446_v49  ;;  %v13066_v10 = vcombine.low %v5442_v53, %v5446_v49  ;;  %v5497_v60 = vld [vmem:[#allocation4 + $0x7d0] sm:$0xff] }
 0x61f   : > { %8696 = vmatmul.mubr.bf16.vlgmr.msra.gmra.mrb[28].mxu0 %v15558_v38  ;;  %v5501_v61 = vld [vmem:[#allocation4 + $0x7f0] sm:$0xff] }
 0x620   : > { %8868 = vmatmul.mubr.bf16.vlgmr.msra.gmra.mrb[24].mxu1 %v15558_v38  ;;  %8707 = vmatpush1.bf16.msra.mxu0 %v13000_v63  ;;  %v13018_v38 = vcombine.low %v5394_v14, %v5398_v31  ;;  %v5449_v63 = vld [vmem:[#allocation4 + $0x650] sm:$0xff] }
 0x621   : > { %8738 = vmatprep.mubr.bf16.mxu0 %v15536_v15  ;;  %8879 = vmatpush1.bf16.msra.mxu1 %v13002_v8  ;;  %v5454_v8 = vld [vmem:[#allocation4 + $0x678] sm:$0xff]  ;;  %v13073_v12 = vcombine.high %v5449_v63, %v5453_v7  ;;  %v5457_v14 = vld [vmem:[#allocation4 + $0x690] sm:$0xff] }
 0x622   : > { %8910 = vmatprep.mubr.bf16.mxu1 %v15536_v15  ;;  %8708 = vmatprep.subr.bf16.mxu0 %v13009_v9  ;;  %v13024_v15 = vcombine.low %v5401_v40, %v5405_v34  ;;  %v13064_v9 = vcombine.low %v5441_v13, %v5445_v5  ;;  %v5461_v31 = vld [vmem:[#allocation4 + $0x6b0] sm:$0xff]  ;;  %v13121_v13 = vcombine.high %v5497_v60, %v5501_v61 }
 0x623   : > { %8880 = vmatprep.subr.bf16.mxu1 %v13011_v27  ;;  %v13075_v27 = vcombine.high %v5450_v11, %v5454_v8  ;;  %v13081_v40 = vcombine.high %v5457_v14, %v5461_v31  ;;  %v5505_v53 = vld [vmem:[#allocation4 + $0x810] sm:$0xff] }
 0x624   : > { %8709 = vmatpush1.bf16.msra.mxu0 %v13008_v22  ;;  %v5458_v22 = vld [vmem:[#allocation4 + $0x698] sm:$0xff]  ;;  %v5509_v49 = vld [vmem:[#allocation4 + $0x830] sm:$0xff] }
 0x625   : > { %8881 = vmatpush1.bf16.msra.mxu1 %v13010_v25  ;;  %8710 = vmatprep.subr.bf16.mxu0 %v13017_v26  ;;  %v5462_v25 = vld [vmem:[#allocation4 + $0x6b8] sm:$0xff]  ;;  %v13072_v26 = vcombine.low %v5449_v63, %v5453_v7  ;;  %v13129_v63 = vcombine.high %v5505_v53, %v5509_v49 }
 0x626   : > { %8882 = vmatprep.subr.bf16.mxu1 %v13019_v30  ;;  %v13074_v30 = vcombine.low %v5450_v11, %v5454_v8  ;;  %v13083_v34 = vcombine.high %v5458_v22, %v5462_v25  ;;  %v5513_v11 = vld [vmem:[#allocation4 + $0x850] sm:$0xff] }
 0x627   : > { %v5517_v8 = vld [vmem:[#allocation4 + $0x870] sm:$0xff] }
 0x628   : > { %8711 = vmatpush1.bf16.msra.mxu0 %v13016_v37  ;;  %v5466_v37 = vld [vmem:[#allocation4 + $0x6d8] sm:$0xff] }
 0x629   : > { %8883 = vmatpush1.bf16.msra.mxu1 %v13018_v38  ;;  %8712 = vmatprep.subr.bf16.mxu0 %v13025_v33  ;;  %v5470_v38 = vld [vmem:[#allocation4 + $0x6f8] sm:$0xff]  ;;  %v13080_v33 = vcombine.low %v5457_v14, %v5461_v31  ;;  %v13137_v14 = vcombine.high %v5513_v11, %v5517_v8 }
 0x62a   : > { %8884 = vmatprep.subr.bf16.mxu1 %v13027_v39  ;;  %v13082_v39 = vcombine.low %v5458_v22, %v5462_v25  ;;  %v13091_v35 = vcombine.high %v5466_v37, %v5470_v38  ;;  %v5521_v22 = vld [vmem:[#allocation4 + $0x890] sm:$0xff] }
 0x62b   : > { %v5525_v25 = vld [vmem:[#allocation4 + $0x8b0] sm:$0xff] }
 0x62c   : > { %8713 = vmatpush1.bf16.msra.mxu0 %v13024_v15  ;;  %v5474_v15 = vld [vmem:[#allocation4 + $0x718] sm:$0xff] }
 0x62d   : > { %8885 = vmatpush1.bf16.msra.mxu1 %v13026_v44  ;;  %8714 = vmatprep.subr.bf16.mxu0 %v13033_v45  ;;  %v5478_v44 = vld [vmem:[#allocation4 + $0x738] sm:$0xff]  ;;  %v13088_v45 = vcombine.low %v5465_v41, %v5469_v36  ;;  %v13145_v41 = vcombine.high %v5521_v22, %v5525_v25 }
 0x62e   : > { %8886 = vmatprep.subr.bf16.mxu1 %v13035_v46  ;;  %v13090_v46 = vcombine.low %v5466_v37, %v5470_v38  ;;  %v13099_v48 = vcombine.high %v5474_v15, %v5478_v44  ;;  %v5529_v37 = vld [vmem:[#allocation4 + $0x8d0] sm:$0xff] }
 0x62f   : > { %v5533_v38 = vld [vmem:[#allocation4 + $0x8f0] sm:$0xff] }
 0x630   : > { %8715 = vmatpush1.bf16.msra.mxu0 %v13032_v21  ;;  %v5482_v21 = vld [vmem:[#allocation4 + $0x758] sm:$0xff] }
 0x631   : > { %8887 = vmatpush1.bf16.msra.mxu1 %v13034_v54  ;;  %8716 = vmatprep.subr.bf16.mxu0 %v13041_v55  ;;  %v5486_v54 = vld [vmem:[#allocation4 + $0x778] sm:$0xff]  ;;  %v13096_v55 = vcombine.low %v5473_v42, %v5477_v43  ;;  %v13153_v42 = vcombine.high %v5529_v37, %v5533_v38 }
 0x632   : > { %8888 = vmatprep.subr.bf16.mxu1 %v13043_v57  ;;  %v13098_v57 = vcombine.low %v5474_v15, %v5478_v44  ;;  %v13107_v16 = vcombine.high %v5482_v21, %v5486_v54  ;;  %v5537_v15 = vld [vmem:[#allocation4 + $0x910] sm:$0xff] }
 0x633   : > { %v5541_v44 = vld [vmem:[#allocation4 + $0x930] sm:$0xff] }
 0x634   : > { %8717 = vmatpush1.bf16.msra.mxu0 %v13040_v23  ;;  %v5490_v23 = vld [vmem:[#allocation4 + $0x798] sm:$0xff] }
 0x635   : > { %8889 = vmatpush1.bf16.msra.mxu1 %v13042_v24  ;;  %8718 = vmatprep.subr.bf16.mxu0 %v13049_v17  ;;  %v5494_v24 = vld [vmem:[#allocation4 + $0x7b8] sm:$0xff]  ;;  %v13104_v17 = vcombine.low %v5481_v50, %v5485_v51  ;;  %v13161_v50 = vcombine.high %v5537_v15, %v5541_v44 }
 0x636   : > { %8890 = vmatprep.subr.bf16.mxu1 %v13051_v58  ;;  %v13106_v58 = vcombine.low %v5482_v21, %v5486_v54  ;;  %v13115_v59 = vcombine.high %v5490_v23, %v5494_v24  ;;  %v5545_v21 = vld [vmem:[#allocation4 + $0x950] sm:$0xff] }
 0x637   : > { %v5549_v54 = vld [vmem:[#allocation4 + $0x970] sm:$0xff] }
 0x638   : > { %8719 = vmatpush1.bf16.msra.mxu0 %v13048_v62  ;;  %v5498_v62 = vld [vmem:[#allocation4 + $0x7d8] sm:$0xff] }
 0x639   : > { %8891 = vmatpush1.bf16.msra.mxu1 %v13050_v0  ;;  %8720 = vmatprep.subr.bf16.mxu0 %v13057_v1  ;;  %v5502_v0 = vld [vmem:[#allocation4 + $0x7f8] sm:$0xff]  ;;  %v13112_v1 = vcombine.low %v5489_v19, %v5493_v20  ;;  %v13169_v19 = vcombine.high %v5545_v21, %v5549_v54 }
 0x63a   : > { %8892 = vmatprep.subr.bf16.mxu1 %v13059_v2  ;;  %v13114_v2 = vcombine.low %v5490_v23, %v5494_v24  ;;  %v13123_v5 = vcombine.high %v5498_v62, %v5502_v0  ;;  %v5553_v23 = vld [vmem:[#allocation4 + $0x990] sm:$0xff] }
 0x63b   : > { %v5557_v24 = vld [vmem:[#allocation4 + $0x9b0] sm:$0xff] }
 0x63c   : > { %8721 = vmatpush1.bf16.msra.mxu0 %v13056_v56  ;;  %v5506_v56 = vld [vmem:[#allocation4 + $0x818] sm:$0xff] }
 0x63d   : > { %8893 = vmatpush1.bf16.msra.mxu1 %v13058_v3  ;;  %8722 = vmatprep.subr.bf16.mxu0 %v13065_v4  ;;  %v5510_v3 = vld [vmem:[#allocation4 + $0x838] sm:$0xff]  ;;  %v13120_v4 = vcombine.low %v5497_v60, %v5501_v61  ;;  %v13177_v60 = vcombine.high %v5553_v23, %v5557_v24 }
 0x63e   : > { %8894 = vmatprep.subr.bf16.mxu1 %v13067_v6  ;;  %v13122_v6 = vcombine.low %v5498_v62, %v5502_v0  ;;  %v13131_v7 = vcombine.high %v5506_v56, %v5510_v3  ;;  %v5561_v62 = vld [vmem:[#allocation4 + $0x9d0] sm:$0xff] }
 0x63f   : > { %v5565_v0 = vld [vmem:[#allocation4 + $0x9f0] sm:$0xff] }
 0x640   : > { %8723 = vmatpush1.bf16.msra.mxu0 %v13064_v9  ;;  %v5514_v9 = vld [vmem:[#allocation4 + $0x858] sm:$0xff] }
 0x641   : > { %8895 = vmatpush1.bf16.msra.mxu1 %v13066_v10  ;;  %8724 = vmatprep.subr.bf16.mxu0 %v13073_v12  ;;  %v5518_v10 = vld [vmem:[#allocation4 + $0x878] sm:$0xff]  ;;  %v13128_v12 = vcombine.low %v5505_v53, %v5509_v49  ;;  %v13185_v53 = vcombine.high %v5561_v62, %v5565_v0 }
 0x642   : > { %8896 = vmatprep.subr.bf16.mxu1 %v13075_v27  ;;  %v13130_v27 = vcombine.low %v5506_v56, %v5510_v3  ;;  %v13139_v31 = vcombine.high %v5514_v9, %v5518_v10  ;;  %v5569_v56 = vld [vmem:[#allocation4 + $0xa10] sm:$0xff] }
 0x643   : > { %v5573_v3 = vld [vmem:[#allocation4 + $0xa30] sm:$0xff] }
 0x644   : > { %8725 = vmatpush1.bf16.msra.mxu0 %v13072_v26  ;;  %v5522_v26 = vld [vmem:[#allocation4 + $0x898] sm:$0xff] }
 0x645   : > { %8897 = vmatpush1.bf16.msra.mxu1 %v13074_v30  ;;  %8726 = vmatprep.subr.bf16.mxu0 %v13081_v40  ;;  %v5526_v30 = vld [vmem:[#allocation4 + $0x8b8] sm:$0xff]  ;;  %v13136_v40 = vcombine.low %v5513_v11, %v5517_v8  ;;  %v13193_v11 = vcombine.high %v5569_v56, %v5573_v3 }
 0x646   : > { %8898 = vmatprep.subr.bf16.mxu1 %v13083_v34  ;;  %v13138_v34 = vcombine.low %v5514_v9, %v5518_v10  ;;  %v13147_v36 = vcombine.high %v5522_v26, %v5526_v30  ;;  %v5577_v9 = vld [vmem:[#allocation4 + $0xa50] sm:$0xff] }
 0x647   : > { %v5581_v10 = vld [vmem:[#allocation4 + $0xa70] sm:$0xff] }
 0x648   : > { %8727 = vmatpush1.bf16.msra.mxu0 %v13080_v33  ;;  %v14721_v33 = vld [vmem:[%s15566_s5 + $0x4] ss:$16 sps:$4 sm:$0x1f]  }
 0x649   : > { %8899 = vmatpush1.bf16.msra.mxu1 %v13082_v39  ;;  %8728 = vmatprep.subr.bf16.mxu0 %v13089_v28  ;;  %v5530_v39 = vld [vmem:[#allocation4 + $0x8d8] sm:$0xff] }
 0x64a   : > { %8900 = vmatprep.subr.bf16.mxu1 %v13091_v35  ;;  %v5534_v28 = vld [vmem:[#allocation4 + $0x8f8] sm:$0xff]  ;;  %v13144_v35 = vcombine.low %v5521_v22, %v5525_v25  ;;  %v13201_v22 = vcombine.high %v5577_v9, %v5581_v10 }
 0x64b   : > { %v13155_v43 = vcombine.high %v5530_v39, %v5534_v28 }
 0x64c   : > { %8729 = vmatpush1.bf16.msra.mxu0 %v13088_v45  ;;  %v5538_v45 = vld [vmem:[#allocation4 + $0x918] sm:$0xff] }
 0x64d   : > { %8901 = vmatpush1.bf16.msra.mxu1 %v13090_v46  ;;  %8730 = vmatprep.subr.bf16.mxu0 %v13097_v47  ;;  %v5542_v46 = vld [vmem:[#allocation4 + $0x938] sm:$0xff]  ;;  %v13152_v47 = vcombine.low %v5529_v37, %v5533_v38 }
 0x64e   : > { %8902 = vmatprep.subr.bf16.mxu1 %v13099_v48  ;;  %v13154_v48 = vcombine.low %v5530_v39, %v5534_v28  ;;  %v13163_v51 = vcombine.high %v5538_v45, %v5542_v46  ;;  %v5597_v39 = vld [vmem:[#allocation4 + $0xaf0] sm:$0xff]  ;;  %v5594_v28 = vld [vmem:[#allocation4 + $0xad8] sm:$0xff] }
 0x650   : > { %8731 = vmatpush1.bf16.msra.mxu0 %v13096_v55  ;;  %v5546_v55 = vld [vmem:[#allocation4 + $0x958] sm:$0xff] }
 0x651   : > { %8903 = vmatpush1.bf16.msra.mxu1 %v13098_v57  ;;  %8732 = vmatprep.subr.bf16.mxu0 %v13105_v32  ;;  %v5550_v57 = vld [vmem:[#allocation4 + $0x978] sm:$0xff]  ;;  %v13160_v32 = vcombine.low %v5537_v15, %v5541_v44  ;;  %v5601_v44 = vld [vmem:[#allocation4 + $0xb10] sm:$0xff] }
 0x652   : > { %8904 = vmatprep.subr.bf16.mxu1 %v13107_v16  ;;  %v13162_v16 = vcombine.low %v5538_v45, %v5542_v46  ;;  %v13171_v20 = vcombine.high %v5546_v55, %v5550_v57  ;;  %v5605_v45 = vld [vmem:[#allocation4 + $0xb30] sm:$0xff]  ;;  %v5602_v46 = vld [vmem:[#allocation4 + $0xb18] sm:$0xff] }
 0x654   : > { %8733 = vmatpush1.bf16.msra.mxu0 %v13104_v17  ;;  %v5554_v17 = vld [vmem:[#allocation4 + $0x998] sm:$0xff] }
 0x655   : > { %8905 = vmatpush1.bf16.msra.mxu1 %v13106_v58  ;;  %8734 = vmatprep.subr.bf16.mxu0 %v13113_v18  ;;  %v5558_v58 = vld [vmem:[#allocation4 + $0x9b8] sm:$0xff]  ;;  %v13168_v18 = vcombine.low %v5545_v21, %v5549_v54  ;;  %v5609_v54 = vld [vmem:[#allocation4 + $0xb50] sm:$0xff] }
 0x656   : > { %8906 = vmatprep.subr.bf16.mxu1 %v13115_v59  ;;  %v13170_v59 = vcombine.low %v5546_v55, %v5550_v57  ;;  %v13179_v61 = vcombine.high %v5554_v17, %v5558_v58  ;;  %v5613_v55 = vld [vmem:[#allocation4 + $0xb70] sm:$0xff]  ;;  %v5610_v57 = vld [vmem:[#allocation4 + $0xb58] sm:$0xff] }
 0x658   : > { %8735 = vmatpush1.bf16.msra.mxu0 %v13112_v1  ;;  %v5562_v1 = vld [vmem:[#allocation4 + $0x9d8] sm:$0xff] }
 0x659   : > { %8907 = vmatpush1.bf16.msra.mxu1 %v13114_v2  ;;  %8736 = vmatprep.subr.bf16.mxu0 %v13121_v13  ;;  %v5566_v2 = vld [vmem:[#allocation4 + $0x9f8] sm:$0xff]  ;;  %v13176_v13 = vcombine.low %v5553_v23, %v5557_v24  ;;  %v5617_v24 = vld [vmem:[#allocation4 + $0xb90] sm:$0xff] }
 0x65a   : > { %8908 = vmatprep.subr.bf16.mxu1 %v13123_v5  ;;  %v13178_v5 = vcombine.low %v5554_v17, %v5558_v58  ;;  %v13187_v49 = vcombine.high %v5562_v1, %v5566_v2  ;;  %v5621_v17 = vld [vmem:[#allocation4 + $0xbb0] sm:$0xff]  ;;  %v5618_v58 = vld [vmem:[#allocation4 + $0xb98] sm:$0xff] }
 0x65c   : > { %8737 = vmatpush1.bf16.msra.mxu0 %v13120_v4  ;;  %v5570_v4 = vld [vmem:[#allocation4 + $0xa18] sm:$0xff] }
 0x65d   : > { %8909 = vmatpush1.bf16.msra.mxu1 %v13122_v6  ;;  %8749 = vmatprep.subr.bf16.mxu0 %v13129_v63  ;;  %v5574_v6 = vld [vmem:[#allocation4 + $0xa38] sm:$0xff]  ;;  %v13184_v63 = vcombine.low %v5561_v62, %v5565_v0  ;;  %v5625_v0 = vld [vmem:[#allocation4 + $0xbd0] sm:$0xff] }
 0x65e   : > { %8921 = vmatprep.subr.bf16.mxu1 %v13131_v7  ;;  %v13186_v7 = vcombine.low %v5562_v1, %v5566_v2  ;;  %v13195_v8 = vcombine.high %v5570_v4, %v5574_v6  ;;  %v5629_v1 = vld [vmem:[#allocation4 + $0xbf0] sm:$0xff]  ;;  %v5626_v2 = vld [vmem:[#allocation4 + $0xbd8] sm:$0xff] }
 0x65f   : > { %8739 = vmatmul.mubr.bf16.vlgmr.msra.gmra.mrb[28].mxu0 %v15534_v29 }
 0x660   : > { %8911 = vmatmul.mubr.bf16.vlgmr.msra.gmra.mrb[24].mxu1 %v15534_v29  ;;  %8750 = vmatpush1.bf16.msra.mxu0 %v13128_v12  ;;  %v13146_v29 = vcombine.low %v5522_v26, %v5526_v30  ;;  %v5578_v12 = vld [vmem:[#allocation4 + $0xa58] sm:$0xff]  ;;  %v5585_v26 = vld [vmem:[#allocation4 + $0xa90] sm:$0xff] }
 0x661   : > { %8922 = vmatpush1.bf16.msra.mxu1 %v13130_v27  ;;  %8751 = vmatprep.subr.bf16.mxu0 %v13137_v14  ;;  %v5582_v27 = vld [vmem:[#allocation4 + $0xa78] sm:$0xff]  ;;  %v13192_v14 = vcombine.low %v5569_v56, %v5573_v3  ;;  %v5589_v30 = vld [vmem:[#allocation4 + $0xab0] sm:$0xff] }
 0x662   : > { %8923 = vmatprep.subr.bf16.mxu1 %v13139_v31  ;;  %8781 = vmatprep.mubr.bf16.mxu0 %v14721_v33  ;;  %v13194_v31 = vcombine.low %v5570_v4, %v5574_v6  ;;  %v13203_v25 = vcombine.high %v5578_v12, %v5582_v27  ;;  %v13209_v37 = vcombine.high %v5585_v26, %v5589_v30  ;;  %v5633_v3 = vld [vmem:[#allocation4 + $0xc10] sm:$0xff]  ;;  %v5634_v6 = vld [vmem:[#allocation4 + $0xc18] sm:$0xff] }
 0x663   : > { %8953 = vmatprep.mubr.bf16.mxu1 %v14721_v33  ;;  %v5593_v33 = vld [vmem:[#allocation4 + $0xad0] sm:$0xff] }
 0x664   : > { %8752 = vmatpush1.bf16.msra.mxu0 %v13136_v40  ;;  %v5586_v40 = vld [vmem:[#allocation4 + $0xa98] sm:$0xff]  ;;  %v5637_v4 = vld [vmem:[#allocation4 + $0xc30] sm:$0xff] }
 0x665   : > { %8924 = vmatpush1.bf16.msra.mxu1 %v13138_v34  ;;  %8753 = vmatprep.subr.bf16.mxu0 %v13145_v41  ;;  %v5590_v34 = vld [vmem:[#allocation4 + $0xab8] sm:$0xff]  ;;  %v13200_v41 = vcombine.low %v5577_v9, %v5581_v10  ;;  %v5641_v10 = vld [vmem:[#allocation4 + $0xc50] sm:$0xff] }
 0x666   : > { %8925 = vmatprep.subr.bf16.mxu1 %v13147_v36  ;;  %v13202_v36 = vcombine.low %v5578_v12, %v5582_v27  ;;  %v13211_v38 = vcombine.high %v5586_v40, %v5590_v34  ;;  %v5645_v12 = vld [vmem:[#allocation4 + $0xc70] sm:$0xff]  ;;  %v5642_v27 = vld [vmem:[#allocation4 + $0xc58] sm:$0xff] }
 0x668   : > { %8754 = vmatpush1.bf16.msra.mxu0 %v13144_v35  ;;  %v5598_v35 = vld [vmem:[#allocation4 + $0xaf8] sm:$0xff] }
 0x669   : > { %8926 = vmatpush1.bf16.msra.mxu1 %v13146_v29  ;;  %8755 = vmatprep.subr.bf16.mxu0 %v13153_v42  ;;  %v13208_v29 = vcombine.low %v5585_v26, %v5589_v30  ;;  %v13210_v42 = vcombine.low %v5586_v40, %v5590_v34  ;;  %v13219_v15 = vcombine.high %v5594_v28, %v5598_v35  ;;  %v5649_v30 = vld [vmem:[#allocation4 + $0xc90] sm:$0xff] }
 0x66a   : > { %8927 = vmatprep.subr.bf16.mxu1 %v13155_v43  ;;  %v13217_v43 = vcombine.high %v5593_v33, %v5597_v39  ;;  %v5653_v40 = vld [vmem:[#allocation4 + $0xcb0] sm:$0xff] }
 0x66b   : > { %v14722_v34 = vld [vmem:[%s15566_s5] ss:$16 sps:$4 sm:$0x1f]  }
 0x66c   : > { %8756 = vmatpush1.bf16.msra.mxu0 %v13152_v47  ;;  %v5606_v47 = vld [vmem:[#allocation4 + $0xb38] sm:$0xff] }
 0x66d   : > { %8928 = vmatpush1.bf16.msra.mxu1 %v13154_v48  ;;  %8757 = vmatprep.subr.bf16.mxu0 %v13161_v50  ;;  %v13216_v48 = vcombine.low %v5593_v33, %v5597_v39  ;;  %v13218_v50 = vcombine.low %v5594_v28, %v5598_v35  ;;  %v13227_v21 = vcombine.high %v5602_v46, %v5606_v47  ;;  %v5657_v28 = vld [vmem:[#allocation4 + $0xcd0] sm:$0xff] }
 0x66e   : > { %8929 = vmatprep.subr.bf16.mxu1 %v13163_v51  ;;  %v13225_v51 = vcombine.high %v5601_v44, %v5605_v45  ;;  %v13273_v33 = vcombine.high %v5649_v30, %v5653_v40  ;;  %v5661_v35 = vld [vmem:[#allocation4 + $0xcf0] sm:$0xff] }
 0x670   : > { %8758 = vmatpush1.bf16.msra.mxu0 %v13160_v32  ;;  %v5614_v32 = vld [vmem:[#allocation4 + $0xb78] sm:$0xff] }
 0x671   : > { %8930 = vmatpush1.bf16.msra.mxu1 %v13162_v16  ;;  %8759 = vmatprep.subr.bf16.mxu0 %v13169_v19  ;;  %v13224_v16 = vcombine.low %v5601_v44, %v5605_v45  ;;  %v13226_v19 = vcombine.low %v5602_v46, %v5606_v47  ;;  %v13235_v23 = vcombine.high %v5610_v57, %v5614_v32  ;;  %v5665_v47 = vld [vmem:[#allocation4 + $0xd10] sm:$0xff] }
 0x672   : > { %8931 = vmatprep.subr.bf16.mxu1 %v13171_v20  ;;  %v13233_v20 = vcombine.high %v5609_v54, %v5613_v55  ;;  %v13281_v45 = vcombine.high %v5657_v28, %v5661_v35 }
 0x674   : > { %8760 = vmatpush1.bf16.msra.mxu0 %v13168_v18  ;;  %v5622_v18 = vld [vmem:[#allocation4 + $0xbb8] sm:$0xff] }
 0x675   : > { %8932 = vmatpush1.bf16.msra.mxu1 %v13170_v59  ;;  %8761 = vmatprep.subr.bf16.mxu0 %v13177_v60  ;;  %v13232_v59 = vcombine.low %v5609_v54, %v5613_v55  ;;  %v13234_v60 = vcombine.low %v5610_v57, %v5614_v32  ;;  %v13243_v62 = vcombine.high %v5618_v58, %v5622_v18  ;;  %v5673_v32 = vld [vmem:[#allocation4 + $0xd50] sm:$0xff] }
 0x676   : > { %8933 = vmatprep.subr.bf16.mxu1 %v13179_v61  ;;  %v13241_v61 = vcombine.high %v5617_v24, %v5621_v17 }
 0x678   : > { %8762 = vmatpush1.bf16.msra.mxu0 %v13176_v13  ;;  %v5630_v13 = vld [vmem:[#allocation4 + $0xbf8] sm:$0xff] }
 0x679   : > { %8934 = vmatpush1.bf16.msra.mxu1 %v13178_v5  ;;  %8763 = vmatprep.subr.bf16.mxu0 %v13185_v53  ;;  %v13240_v5 = vcombine.low %v5617_v24, %v5621_v17  ;;  %v13242_v53 = vcombine.low %v5618_v58, %v5622_v18  ;;  %v13251_v56 = vcombine.high %v5626_v2, %v5630_v13  ;;  %v5681_v18 = vld [vmem:[#allocation4 + $0xd90] sm:$0xff] }
 0x67a   : > { %8935 = vmatprep.subr.bf16.mxu1 %v13187_v49  ;;  %v13249_v49 = vcombine.high %v5625_v0, %v5629_v1 }
 0x67c   : > { %8764 = vmatpush1.bf16.msra.mxu0 %v13184_v63  ;;  %v5638_v63 = vld [vmem:[#allocation4 + $0xc38] sm:$0xff] }
 0x67d   : > { %8936 = vmatpush1.bf16.msra.mxu1 %v13186_v7  ;;  %8765 = vmatprep.subr.bf16.mxu0 %v13193_v11  ;;  %v13248_v7 = vcombine.low %v5625_v0, %v5629_v1  ;;  %v13250_v11 = vcombine.low %v5626_v2, %v5630_v13  ;;  %v13259_v9 = vcombine.high %v5634_v6, %v5638_v63 }
 0x67e   : > { %8937 = vmatprep.subr.bf16.mxu1 %v13195_v8  ;;  %v13257_v8 = vcombine.high %v5633_v3, %v5637_v4 }
 0x680   : > { %8766 = vmatpush1.bf16.msra.mxu0 %v13192_v14  ;;  %v5646_v14 = vld [vmem:[#allocation4 + $0xc78] sm:$0xff] }
 0x681   : > { %8938 = vmatpush1.bf16.msra.mxu1 %v13194_v31  ;;  %8767 = vmatprep.subr.bf16.mxu0 %v13201_v22  ;;  %v13256_v31 = vcombine.low %v5633_v3, %v5637_v4  ;;  %v13258_v22 = vcombine.low %v5634_v6, %v5638_v63  ;;  %v13267_v26 = vcombine.high %v5642_v27, %v5646_v14  ;;  %v5690_v4 = vld [vmem:[#allocation4 + $0xdd8] sm:$0xff] }
 0x682   : > { %8939 = vmatprep.subr.bf16.mxu1 %v13203_v25  ;;  %v13265_v25 = vcombine.high %v5641_v10, %v5645_v12  ;;  %v5694_v6 = vld [vmem:[#allocation4 + $0xdf8] sm:$0xff] }
 0x684   : > { %8768 = vmatpush1.bf16.msra.mxu0 %v13200_v41  ;;  %v5650_v41 = vld [vmem:[#allocation4 + $0xc98] sm:$0xff] }
 0x685   : > { %8940 = vmatpush1.bf16.msra.mxu1 %v13202_v36  ;;  %8769 = vmatprep.subr.bf16.mxu0 %v13209_v37  ;;  %v5654_v36 = vld [vmem:[#allocation4 + $0xcb8] sm:$0xff]  ;;  %v13264_v37 = vcombine.low %v5641_v10, %v5645_v12 }
 0x686   : > { %8941 = vmatprep.subr.bf16.mxu1 %v13211_v38  ;;  %v13266_v38 = vcombine.low %v5642_v27, %v5646_v14  ;;  %v13275_v39 = vcombine.high %v5650_v41, %v5654_v36  ;;  %v13274_v44 = vcombine.low %v5650_v41, %v5654_v36  ;;  %v13314_v36 = vcombine.low %v5690_v4, %v5694_v6 }
 0x688   : > { %8770 = vmatpush1.bf16.msra.mxu0 %v13208_v29  ;;  %v14723_v29 = vld [vmem:[%s15566_s5 + $0xc] ss:$16 sps:$4 sm:$0x1f]  }
 0x689   : > { %8942 = vmatpush1.bf16.msra.mxu1 %v13210_v42  ;;  %8771 = vmatprep.subr.bf16.mxu0 %v13217_v43  ;;  %v5658_v42 = vld [vmem:[#allocation4 + $0xcd8] sm:$0xff] }
 0x68a   : > { %8943 = vmatprep.subr.bf16.mxu1 %v13219_v15  ;;  %v5662_v43 = vld [vmem:[#allocation4 + $0xcf8] sm:$0xff]  ;;  %v13272_v15 = vcombine.low %v5649_v30, %v5653_v40  ;;  %v5701_v30 = vld [vmem:[#allocation4 + $0xe30] sm:$0xff] }
 0x68b   : > { %v13283_v46 = vcombine.high %v5658_v42, %v5662_v43  ;;  %v13282_v54 = vcombine.low %v5658_v42, %v5662_v43  ;;  %v5698_v40 = vld [vmem:[#allocation4 + $0xe18] sm:$0xff] }
 0x68c   : > { %8772 = vmatpush1.bf16.msra.mxu0 %v13216_v48  ;;  %v5669_v48 = vld [vmem:[#allocation4 + $0xd30] sm:$0xff] }
 0x68d   : > { %8944 = vmatpush1.bf16.msra.mxu1 %v13218_v50  ;;  %8773 = vmatprep.subr.bf16.mxu0 %v13225_v51  ;;  %v5666_v50 = vld [vmem:[#allocation4 + $0xd18] sm:$0xff]  ;;  %v13289_v55 = vcombine.high %v5665_v47, %v5669_v48 }
 0x68e   : > { %8945 = vmatprep.subr.bf16.mxu1 %v13227_v21  ;;  %v5670_v51 = vld [vmem:[#allocation4 + $0xd38] sm:$0xff]  ;;  %v13280_v21 = vcombine.low %v5657_v28, %v5661_v35 }
 0x68f   : > { %v13291_v57 = vcombine.high %v5666_v50, %v5670_v51  ;;  %v13290_v24 = vcombine.low %v5666_v50, %v5670_v51  ;;  %v5706_v28 = vld [vmem:[#allocation4 + $0xe58] sm:$0xff] }
 0x690   : > { %8774 = vmatpush1.bf16.msra.mxu0 %v13224_v16  ;;  %v5677_v16 = vld [vmem:[#allocation4 + $0xd70] sm:$0xff]  ;;  %v5710_v35 = vld [vmem:[#allocation4 + $0xe78] sm:$0xff] }
 0x691   : > { %8946 = vmatpush1.bf16.msra.mxu1 %v13226_v19  ;;  %8775 = vmatprep.subr.bf16.mxu0 %v13233_v20  ;;  %v5674_v19 = vld [vmem:[#allocation4 + $0xd58] sm:$0xff]  ;;  %v13297_v17 = vcombine.high %v5673_v32, %v5677_v16  ;;  %v13330_v50 = vcombine.low %v5706_v28, %v5710_v35 }
 0x692   : > { %8947 = vmatprep.subr.bf16.mxu1 %v13235_v23  ;;  %v5678_v20 = vld [vmem:[#allocation4 + $0xd78] sm:$0xff]  ;;  %v13288_v23 = vcombine.low %v5665_v47, %v5669_v48 }
 0x693   : > { %v13299_v58 = vcombine.high %v5674_v19, %v5678_v20  ;;  %v13298_v0 = vcombine.low %v5674_v19, %v5678_v20  ;;  %v5718_v47 = vld [vmem:[#allocation4 + $0xeb8] sm:$0xff] }
 0x694   : > { %8776 = vmatpush1.bf16.msra.mxu0 %v13232_v59  ;;  %v5685_v59 = vld [vmem:[#allocation4 + $0xdb0] sm:$0xff] }
 0x695   : > { %8948 = vmatpush1.bf16.msra.mxu1 %v13234_v60  ;;  %8777 = vmatprep.subr.bf16.mxu0 %v13241_v61  ;;  %v5682_v60 = vld [vmem:[#allocation4 + $0xd98] sm:$0xff]  ;;  %v13305_v1 = vcombine.high %v5681_v18, %v5685_v59 }
 0x696   : > { %8949 = vmatprep.subr.bf16.mxu1 %v13243_v62  ;;  %v5686_v61 = vld [vmem:[#allocation4 + $0xdb8] sm:$0xff]  ;;  %v13296_v62 = vcombine.low %v5673_v32, %v5677_v16 }
 0x697   : > { %v5726_v32 = vld [vmem:[#allocation4 + $0xef8] sm:$0xff] }
 0x698   : > { %8778 = vmatpush1.bf16.msra.mxu0 %v13240_v5  ;;  %v13307_v5 = vcombine.high %v5682_v60, %v5686_v61 }
 0x699   : > { %8950 = vmatpush1.bf16.msra.mxu1 %v13242_v53  ;;  %8779 = vmatprep.subr.bf16.mxu0 %v13249_v49  ;;  %v5689_v53 = vld [vmem:[#allocation4 + $0xdd0] sm:$0xff] }
 0x69a   : > { %8951 = vmatprep.subr.bf16.mxu1 %v13251_v56  ;;  %v5693_v49 = vld [vmem:[#allocation4 + $0xdf0] sm:$0xff] }
 0x69b   : > { %v13313_v14 = vcombine.high %v5689_v53, %v5693_v49  ;;  %v13312_v41 = vcombine.low %v5689_v53, %v5693_v49  ;;  %v5742_v53 = vld [vmem:[#allocation4 + $0xf78] sm:$0xff] }
 0x69c   : > { %8780 = vmatpush1.bf16.msra.mxu0 %v13248_v7 }
 0x69d   : > { %8952 = vmatpush1.bf16.msra.mxu1 %v13250_v11  ;;  %8792 = vmatprep.subr.bf16.mxu0 %v13257_v8  ;;  %v13304_v11 = vcombine.low %v5681_v18, %v5685_v59  ;;  %v13306_v8 = vcombine.low %v5682_v60, %v5686_v61  ;;  %v5734_v18 = vld [vmem:[#allocation4 + $0xf38] sm:$0xff] }
 0x69e   : > { %8964 = vmatprep.subr.bf16.mxu1 %v13259_v9 }
 0x69f   : > { %8782 = vmatmul.mubr.bf16.vlgmr.msra.gmra.mrb[28].mxu0 %v14722_v34 }
 0x6a0   : > { %8793 = vmatpush1.bf16.msra.mxu0 %v13256_v31  ;;  %8954 = vmatmul.mubr.bf16.vlgmr.msra.gmra.mrb[24].mxu1 %v14722_v34  ;;  %v5702_v34 = vld [vmem:[#allocation4 + $0xe38] sm:$0xff] }
 0x6a1   : > { %8965 = vmatpush1.bf16.msra.mxu1 %v13258_v22  ;;  %8794 = vmatprep.subr.bf16.mxu0 %v13265_v25  ;;  %v13315_v25 = vcombine.high %v5690_v4, %v5694_v6  ;;  %v13322_v42 = vcombine.low %v5698_v40, %v5702_v34 }
 0x6a2   : > { %8966 = vmatprep.subr.bf16.mxu1 %v13267_v26  ;;  %8824 = vmatprep.mubr.bf16.mxu0 %v14723_v29  ;;  %v5697_v26 = vld [vmem:[#allocation4 + $0xe10] sm:$0xff] }
 0x6a3   : > { %8996 = vmatprep.mubr.bf16.mxu1 %v14723_v29  ;;  %v13320_v29 = vcombine.low %v5697_v26, %v5701_v30 }
 0x6a4   : > { %8795 = vmatpush1.bf16.msra.mxu0 %v13264_v37  ;;  %v13321_v37 = vcombine.high %v5697_v26, %v5701_v30  ;;  %v5750_v26 = vld [vmem:[#allocation4 + $0xfb8] sm:$0xff] }
 0x6a5   : > { %8967 = vmatpush1.bf16.msra.mxu1 %v13266_v38  ;;  %8796 = vmatprep.subr.bf16.mxu0 %v13273_v33  ;;  %v13323_v38 = vcombine.high %v5698_v40, %v5702_v34  ;;  %v5705_v33 = vld [vmem:[#allocation4 + $0xe50] sm:$0xff] }
 0x6a6   : > { %8968 = vmatprep.subr.bf16.mxu1 %v13275_v39  ;;  %v5709_v39 = vld [vmem:[#allocation4 + $0xe70] sm:$0xff] }
 0x6a7   : > { %v13329_v43 = vcombine.high %v5705_v33, %v5709_v39  ;;  %v13328_v48 = vcombine.low %v5705_v33, %v5709_v39  ;;  %v5758_v33 = vld [vmem:[#allocation4 + $0xff8] sm:$0xff] }
 0x6a8   : > { %8797 = vmatpush1.bf16.msra.mxu0 %v13272_v15  ;;  %v13331_v15 = vcombine.high %v5706_v28, %v5710_v35 }
 0x6a9   : > { %8969 = vmatpush1.bf16.msra.mxu1 %v13274_v44  ;;  %8798 = vmatprep.subr.bf16.mxu0 %v13281_v45  ;;  %v5713_v44 = vld [vmem:[#allocation4 + $0xe90] sm:$0xff] }
 0x6aa   : > { %8970 = vmatprep.subr.bf16.mxu1 %v13283_v46  ;;  %v5717_v45 = vld [vmem:[#allocation4 + $0xeb0] sm:$0xff]  ;;  %v5714_v46 = vld [vmem:[#allocation4 + $0xe98] sm:$0xff] }
 0x6ab   : > { %v13337_v51 = vcombine.high %v5713_v44, %v5717_v45  ;;  %v13336_v16 = vcombine.low %v5713_v44, %v5717_v45  ;;  %v13338_v19 = vcombine.low %v5714_v46, %v5718_v47  ;;  %v14724_v44 = vld [vmem:[%s15566_s5 + $0x8] ss:$16 sps:$4 sm:$0x1f]  }
 0x6ac   : > { %8799 = vmatpush1.bf16.msra.mxu0 %v13280_v21  ;;  %v13339_v21 = vcombine.high %v5714_v46, %v5718_v47 }
 0x6ad   : > { %8971 = vmatpush1.bf16.msra.mxu1 %v13282_v54  ;;  %8800 = vmatprep.subr.bf16.mxu0 %v13289_v55  ;;  %v5721_v54 = vld [vmem:[#allocation4 + $0xed0] sm:$0xff] }
 0x6ae   : > { %8972 = vmatprep.subr.bf16.mxu1 %v13291_v57  ;;  %v5725_v55 = vld [vmem:[#allocation4 + $0xef0] sm:$0xff]  ;;  %v5722_v57 = vld [vmem:[#allocation4 + $0xed8] sm:$0xff] }
 0x6af   : > { %v13345_v20 = vcombine.high %v5721_v54, %v5725_v55  ;;  %v13344_v59 = vcombine.low %v5721_v54, %v5725_v55  ;;  %v13346_v60 = vcombine.low %v5722_v57, %v5726_v32  ;;  %v9014_v54 = vld [vmem:[#allocation10 + $0x38] sm:$0xff]  ;;  %v9015_v55 = vld [vmem:[#allocation10 + $0x40] sm:$0xf] }
 0x6b0   : > { %8801 = vmatpush1.bf16.msra.mxu0 %v13288_v23  ;;  %v13347_v23 = vcombine.high %v5722_v57, %v5726_v32  ;;  %v9016_v57 = vld [vmem:[#allocation10 + $0x48] sm:$0xff]  ;;  %v9017_v32 = vld [vmem:[#allocation10 + $0x50] sm:$0xff] }
 0x6b1   : > { %8973 = vmatpush1.bf16.msra.mxu1 %v13290_v24  ;;  %8802 = vmatprep.subr.bf16.mxu0 %v13297_v17  ;;  %v5729_v24 = vld [vmem:[#allocation4 + $0xf10] sm:$0xff] }
 0x6b2   : > { %v15597_v2 = vpop.f32.mrb[24].mxu0  ;;  %v15599_v13 = vpop.f32.mrb[20].mxu1  ;;  %8974 = vmatprep.subr.bf16.mxu1 %v13299_v58  ;;  %v5733_v17 = vld [vmem:[#allocation4 + $0xf30] sm:$0xff]  ;;  %v5730_v58 = vld [vmem:[#allocation4 + $0xf18] sm:$0xff] }
 0x6b3   : > { %v15601_v56 = vpop.f32.mrb[25].mxu0  ;;  %v15603_v3 = vpop.f32.mrb[21].mxu1  ;;  %v13353_v61 = vcombine.high %v5729_v24, %v5733_v17  ;;  %v13352_v49 = vcombine.low %v5729_v24, %v5733_v17  ;;  %v13354_v4 = vcombine.low %v5730_v58, %v5734_v18  ;;  %v14423_v17 = vld [vmem:[#allocation6 + $0x4] ss:$16 sps:$4 sm:$0xff]  }
 0x6b4   : > { %v15605_v63 = vpop.f32.mrb[26].mxu0  ;;  %v15607_v7 = vpop.f32.mrb[22].mxu1  ;;  %8803 = vmatpush1.bf16.msra.mxu0 %v13296_v62  ;;  %v13355_v62 = vcombine.high %v5730_v58, %v5734_v18  ;;  %v14426_v58 = vld [vmem:[#allocation6 + $0xc] ss:$16 sps:$4 sm:$0xff]   ;;  %v14421_v18 = vld [vmem:[#allocation6] ss:$16 sps:$4 sm:$0xff]  }
 0x6b5   : > { %v14028_v9 = vpack.c.bf16 %v15605_v63, %v15597_v2  ;;  %v14022_v10 = vpack.c.bf16 %v15607_v7, %v15599_v13  ;;  %8975 = vmatpush1.bf16.msra.mxu1 %v13298_v0  ;;  %v15613_v12 = vpop.f32.mrb[27].mxu0  ;;  %v15615_v27 = vpop.f32.mrb[23].mxu1  ;;  %8804 = vmatprep.subr.bf16.mxu0 %v13305_v1  ;;  %v5737_v0 = vld [vmem:[#allocation4 + $0xf50] sm:$0xff]  ;;  %v9008_v2 = vld [vmem:[#allocation10 + $0x8] sm:$0xff]  ;;  %v9010_v13 = vld [vmem:[#allocation10 + $0x18] sm:$0xff] }
 0x6b6   : > { %v14025_v31 = vpack.c.bf16 %v15613_v12, %v15601_v56  ;;  %v14019_v22 = vpack.c.bf16 %v15615_v27, %v15603_v3  ;;  %8976 = vmatprep.subr.bf16.mxu1 %v13307_v5  ;;  %v5741_v1 = vld [vmem:[#allocation4 + $0xf70] sm:$0xff]  ;;  %v5738_v5 = vld [vmem:[#allocation4 + $0xf58] sm:$0xff]  ;;  %v9007_v56 = vld [vmem:[#allocation10] sm:$0xff] }
 0x6b7   : > { %v13361_v6 = vcombine.high %v5737_v0, %v5741_v1  ;;  %v13360_v30 = vcombine.low %v5737_v0, %v5741_v1  ;;  %v13362_v40 = vcombine.low %v5738_v5, %v5742_v53  ;;  %v9009_v3 = vld [vmem:[#allocation10 + $0x10] sm:$0xf]  ;;  %v9011_v63 = vld [vmem:[#allocation10 + $0x20] sm:$0xff]  ;;  %v9012_v7 = vld [vmem:[#allocation10 + $0x28] sm:$0xf] }
 0x6b8   : > { %8805 = vmatpush1.bf16.msra.mxu0 %v13304_v11  ;;  %v13363_v11 = vcombine.high %v5738_v5, %v5742_v53  ;;  %v14432_v0 = vld [vmem:[#allocation6 + $0x2c] ss:$16 sps:$4 sm:$0xff]   ;;  %v14427_v1 = vld [vmem:[#allocation6 + $0x20] ss:$16 sps:$4 sm:$0xff]   ;;  %v14430_v5 = vld [vmem:[#allocation6 + $0x28] ss:$16 sps:$4 sm:$0xff]  }
 0x6b9   : > { %8977 = vmatpush1.bf16.msra.mxu1 %v13306_v8  ;;  %8806 = vmatprep.subr.bf16.mxu0 %v13313_v14  ;;  %v5745_v8 = vld [vmem:[#allocation4 + $0xf90] sm:$0xff] }
 0x6ba   : > { %8978 = vmatprep.subr.bf16.mxu1 %v13315_v25  ;;  %v5749_v14 = vld [vmem:[#allocation4 + $0xfb0] sm:$0xff]  ;;  %v5746_v25 = vld [vmem:[#allocation4 + $0xf98] sm:$0xff] }
 0x6bb   : > { %v13369_v34 = vcombine.high %v5745_v8, %v5749_v14  ;;  %v13368_v39 = vcombine.low %v5745_v8, %v5749_v14  ;;  %v13370_v28 = vcombine.low %v5746_v25, %v5750_v26  ;;  %v14435_v53 = vld [vmem:[#allocation6 + $0x44] ss:$16 sps:$4 sm:$0xff]   ;;  %v14444_v8 = vld [vmem:[#allocation6 + $0x6c] ss:$16 sps:$4 sm:$0xff]   ;;  %v14439_v14 = vld [vmem:[#allocation6 + $0x60] ss:$16 sps:$4 sm:$0xff]  }
 0x6bc   : > { %8807 = vmatpush1.bf16.msra.mxu0 %v13312_v41  ;;  %v13371_v41 = vcombine.high %v5746_v25, %v5750_v26  ;;  %v14442_v25 = vld [vmem:[#allocation6 + $0x68] ss:$16 sps:$4 sm:$0xff]   ;;  %v14447_v26 = vld [vmem:[#allocation6 + $0x84] ss:$16 sps:$4 sm:$0xff]  }
 0x6bd   : > { %8979 = vmatpush1.bf16.msra.mxu1 %v13314_v36  ;;  %8808 = vmatprep.subr.bf16.mxu0 %v13321_v37  ;;  %v5753_v36 = vld [vmem:[#allocation4 + $0xfd0] sm:$0xff] }
 0x6be   : > { %8980 = vmatprep.subr.bf16.mxu1 %v13323_v38  ;;  %v5757_v37 = vld [vmem:[#allocation4 + $0xff0] sm:$0xff]  ;;  %v5754_v38 = vld [vmem:[#allocation4 + $0xfd8] sm:$0xff] }
 0x6bf   : > { %v13377_v35 = vcombine.high %v5753_v36, %v5757_v37 }
 0x6c0   : > { %8809 = vmatpush1.bf16.msra.mxu0 %v13320_v29  ;;  %v13379_v29 = vcombine.high %v5754_v38, %v5758_v33 }
 0x6c1   : > { %8981 = vmatpush1.bf16.msra.mxu1 %v13322_v42  ;;  %8810 = vmatprep.subr.bf16.mxu0 %v13329_v43  ;;  %v13376_v42 = vcombine.low %v5753_v36, %v5757_v37  ;;  %v13378_v43 = vcombine.low %v5754_v38, %v5758_v33  ;;  %v14456_v36 = vld [vmem:[#allocation6 + $0xac] ss:$16 sps:$4 sm:$0xff]   ;;  %v14451_v37 = vld [vmem:[#allocation6 + $0xa0] ss:$16 sps:$4 sm:$0xff]   ;;  %v14454_v38 = vld [vmem:[#allocation6 + $0xa8] ss:$16 sps:$4 sm:$0xff]  }
 0x6c2   : > { %8982 = vmatprep.subr.bf16.mxu1 %v13331_v15  ;;  %v14459_v33 = vld [vmem:[#allocation6 + $0xc4] ss:$16 sps:$4 sm:$0xff]   ;;  %v14466_v15 = vld [vmem:[#allocation6 + $0xe8] ss:$16 sps:$4 sm:$0xff]  }
 0x6c4   : > { %8811 = vmatpush1.bf16.msra.mxu0 %v13328_v48 }
 0x6c5   : > { %8983 = vmatpush1.bf16.msra.mxu1 %v13330_v50  ;;  %8812 = vmatprep.subr.bf16.mxu0 %v13337_v51 }
 0x6c6   : > { %8984 = vmatprep.subr.bf16.mxu1 %v13339_v21  ;;  %v9013_v21 = vld [vmem:[#allocation10 + $0x30] sm:$0xff] }
 0x6c8   : > { %8813 = vmatpush1.bf16.msra.mxu0 %v13336_v16  ;;  %v9018_v16 = vld [vmem:[#allocation10 + $0x58] sm:$0xf] }
 0x6c9   : > { %8985 = vmatpush1.bf16.msra.mxu1 %v13338_v19  ;;  %8814 = vmatprep.subr.bf16.mxu0 %v13345_v20 }
 0x6ca   : > { %8986 = vmatprep.subr.bf16.mxu1 %v13347_v23 }
 0x6cc   : > { %8815 = vmatpush1.bf16.msra.mxu0 %v13344_v59  ;;  %v14424_v59 = vld [vmem:[#allocation6 + $0x8] ss:$16 sps:$4 sm:$0xff]  }
 0x6cd   : > { %8987 = vmatpush1.bf16.msra.mxu1 %v13346_v60  ;;  %8816 = vmatprep.subr.bf16.mxu0 %v13353_v61 }
 0x6ce   : > { %8988 = vmatprep.subr.bf16.mxu1 %v13355_v62  ;;  %v14429_v62 = vld [vmem:[#allocation6 + $0x24] ss:$16 sps:$4 sm:$0xff]  }
 0x6d0   : > { %8817 = vmatpush1.bf16.msra.mxu0 %v13352_v49  ;;  %v14438_v49 = vld [vmem:[#allocation6 + $0x4c] ss:$16 sps:$4 sm:$0xff]  }
 0x6d1   : > { %8989 = vmatpush1.bf16.msra.mxu1 %v13354_v4  ;;  %8818 = vmatprep.subr.bf16.mxu0 %v13361_v6  ;;  %v14433_v4 = vld [vmem:[#allocation6 + $0x40] ss:$16 sps:$4 sm:$0xff]   ;;  %v14436_v6 = vld [vmem:[#allocation6 + $0x48] ss:$16 sps:$4 sm:$0xff]  }
 0x6d2   : > { %8990 = vmatprep.subr.bf16.mxu1 %v13363_v11  ;;  %v14441_v11 = vld [vmem:[#allocation6 + $0x64] ss:$16 sps:$4 sm:$0xff]  }
 0x6d4   : > { %8819 = vmatpush1.bf16.msra.mxu0 %v13360_v30  ;;  %v14450_v30 = vld [vmem:[#allocation6 + $0x8c] ss:$16 sps:$4 sm:$0xff]  }
 0x6d5   : > { %8991 = vmatpush1.bf16.msra.mxu1 %v13362_v40  ;;  %8820 = vmatprep.subr.bf16.mxu0 %v13369_v34  ;;  %v14445_v40 = vld [vmem:[#allocation6 + $0x80] ss:$16 sps:$4 sm:$0xff]   ;;  %v14448_v34 = vld [vmem:[#allocation6 + $0x88] ss:$16 sps:$4 sm:$0xff]  }
 0x6d6   : > { %8992 = vmatprep.subr.bf16.mxu1 %v13371_v41  ;;  %v14453_v41 = vld [vmem:[#allocation6 + $0xa4] ss:$16 sps:$4 sm:$0xff]  }
 0x6d8   : > { %8821 = vmatpush1.bf16.msra.mxu0 %v13368_v39  ;;  %v14462_v39 = vld [vmem:[#allocation6 + $0xcc] ss:$16 sps:$4 sm:$0xff]  }
 0x6d9   : > { %8993 = vmatpush1.bf16.msra.mxu1 %v13370_v28  ;;  %8822 = vmatprep.subr.bf16.mxu0 %v13377_v35  ;;  %v14457_v28 = vld [vmem:[#allocation6 + $0xc0] ss:$16 sps:$4 sm:$0xff]   ;;  %v14460_v35 = vld [vmem:[#allocation6 + $0xc8] ss:$16 sps:$4 sm:$0xff]  }
 0x6da   : > { %8994 = vmatprep.subr.bf16.mxu1 %v13379_v29  ;;  %v14465_v29 = vld [vmem:[#allocation6 + $0xe4] ss:$16 sps:$4 sm:$0xff]  }
 0x6dc   : > { %8823 = vmatpush1.bf16.msra.mxu0 %v13376_v42  ;;  %v14468_v42 = vld [vmem:[#allocation6 + $0xec] ss:$16 sps:$4 sm:$0xff]  }
 0x6dd   : > { %8995 = vmatpush1.bf16.msra.mxu1 %v13378_v43  ;;  %14027 = vmatprep.subr.msk.bf16.mxu0 %vm15623_vm4, %v14025_v31  ;;  %v14463_v43 = vld [vmem:[#allocation6 + $0xe0] ss:$16 sps:$4 sm:$0xff]  }
 0x6de   : > { %14021 = vmatprep.subr.msk.bf16.mxu1 %vm15623_vm4, %v14019_v22 }
 0x6df   : > { %8825 = vmatmul.mubr.bf16.vlgmr.msra.gmra.mrb[28].mxu0 %v14724_v44 }
 0x6e0   : > { %8997 = vmatmul.mubr.bf16.vlgmr.msra.gmra.mrb[24].mxu1 %v14724_v44  ;;  %14030 = vmatpush1.bf16.msk.msra.mxu0 %vm15623_vm4, %v14028_v9  ;;  %v14471_v44 = vld [vmem:[#allocation6 + $0x104] ss:$16 sps:$4 sm:$0xff]  }
 0x6e1   : > { %14024 = vmatpush1.bf16.msk.msra.mxu1 %vm15623_vm4, %v14022_v10  ;;  %9197 = vmatprep.mubr.f32.mxu0 %v15025_v52 }
 0x6e2   : > { %9099 = vmatprep.mubr.f32.mxu1 %v15025_v52  ;;  %10283 = vmatprep.subr.bf16.mxu1 %v14423_v17  ;;  %v14510_v17 = vld [vmem:[#allocation6 + $0x1cc] ss:$16 sps:$4 sm:$0xff]  }
 0x6e7   : > { %13387 = vmatmul.mubr.msk.f32.vlgmr.msra.gmra.mrb[32].mxu0 %vm9019_vm5, %v9007_v56  ;;  %v14474_v56 = vld [vmem:[#allocation6 + $0x10c] ss:$16 sps:$4 sm:$0xff]  }
 0x6e8   : > { %9203 = vmatprep.mubr.f32.mxu0 %v15025_v52  ;;  %13382 = vmatmul.mubr.msk.f32.vlgmr.msra.gmra.mrb[28].mxu1 %vm9019_vm5, %v9010_v13  ;;  %v14477_v13 = vld [vmem:[#allocation6 + $0x124] ss:$16 sps:$4 sm:$0xff]  }
 0x6e9   : > { %9105 = vmatprep.mubr.f32.mxu1 %v15025_v52  ;;  %10284 = vmatpush1.bf16.msra.mxu1 %v14421_v18  ;;  %v14508_v18 = vld [vmem:[#allocation6 + $0x1c8] ss:$16 sps:$4 sm:$0xff]  }
 0x6ea   : > { %10285 = vmatprep.subr.bf16.mxu1 %v14429_v62  ;;  %v14511_v62 = vld [vmem:[#allocation6 + $0x1e0] ss:$16 sps:$4 sm:$0xff]  }
 0x6eb   : > { %13388 = vmatmul.mubr.msk.f32.gmra.mrb[34].mxu0 %vm9019_vm5, %v9008_v2  ;;  %v14469_v2 = vld [vmem:[#allocation6 + $0x100] ss:$16 sps:$4 sm:$0xff]  }
 0x6ec   : > { %9209 = vmatprep.mubr.f32.mxu0 %v15025_v52  ;;  %13383 = vmatmul.mubr.msk.f32.gmra.mrb[30].mxu1 %vm9019_vm5, %v9011_v63  ;;  %v14480_v63 = vld [vmem:[#allocation6 + $0x12c] ss:$16 sps:$4 sm:$0xff]  }
 0x6ed   : > { %9111 = vmatprep.mubr.f32.mxu1 %v15025_v52  ;;  %10286 = vmatpush1.bf16.msra.mxu1 %v14427_v1  ;;  %v14516_v1 = vld [vmem:[#allocation6 + $0x1ec] ss:$16 sps:$4 sm:$0xff]  }
 0x6ee   : > { %10287 = vmatprep.subr.bf16.mxu1 %v14435_v53  ;;  %v14522_v53 = vld [vmem:[#allocation6 + $0x20c] ss:$16 sps:$4 sm:$0xff]  }
 0x6ef   : > { %13389 = vmatmul.mubr.msk.f32.gmra.mrb[36].mxu0 %vm9019_vm5, %v9009_v3  ;;  %v14472_v3 = vld [vmem:[#allocation6 + $0x108] ss:$16 sps:$4 sm:$0xff]  }
 0x6f0   : > { %9295 = vmatprep.mubr.f32.mxu0 %v15025_v52  ;;  %13384 = vmatmul.mubr.msk.f32.gmra.mrb[32].mxu1 %vm9019_vm5, %v9012_v7  ;;  %v14475_v7 = vld [vmem:[#allocation6 + $0x120] ss:$16 sps:$4 sm:$0xff]  }
 0x6f1   : > { %10288 = vmatpush1.bf16.msra.mxu1 %v14433_v4 }
 0x6f2   : > { %10289 = vmatprep.subr.bf16.mxu1 %v14441_v11 }
 0x6f5   : > { %10290 = vmatpush1.bf16.msra.mxu1 %v14439_v14 }
 0x6f6   : > { %10291 = vmatprep.subr.bf16.mxu1 %v14447_v26 }
 0x6f9   : > { %10292 = vmatpush1.bf16.msra.mxu1 %v14445_v40 }
 0x6fa   : > { %10293 = vmatprep.subr.bf16.mxu1 %v14453_v41 }
 0x6fd   : > { %10294 = vmatpush1.bf16.msra.mxu1 %v14451_v37 }
 0x6fe   : > { %10295 = vmatprep.subr.bf16.mxu1 %v14459_v33 }
 0x701   : > { %10296 = vmatpush1.bf16.msra.mxu1 %v14457_v28 }
 0x702   : > { %10297 = vmatprep.subr.bf16.mxu1 %v14465_v29 }
 0x705   : > { %10298 = vmatpush1.bf16.msra.mxu1 %v14463_v43 }
 0x706   : > { %10299 = vmatprep.subr.bf16.mxu1 %v14471_v44 }
 0x709   : > { %10300 = vmatpush1.bf16.msra.mxu1 %v14469_v2 }
 0x70a   : > { %10301 = vmatprep.subr.bf16.mxu1 %v14477_v13 }
 0x70d   : > { %10302 = vmatpush1.bf16.msra.mxu1 %v14475_v7 }
 0x7b2   : > { %v8826_v9 = vpop.f32.mrb[28].mxu0 }
 0x7b3   : > { %v8998_v10 = vpop.f32.mrb[24].mxu1  ;;  %v8828_v12 = vpop.f32.mrb[29].mxu0 }
 0x7b4   : > { %v9000_v27 = vpop.f32.mrb[25].mxu1  ;;  %v8830_v31 = vpop.f32.mrb[30].mxu0 }
 0x7b5   : > { %v14034_v22 = vpack.c.bf16 %v8830_v31, %v8826_v9  ;;  %v9002_v45 = vpop.f32.mrb[26].mxu1  ;;  %v8832_v46 = vpop.f32.mrb[31].mxu0  ;;  %v14478_v9 = vld [vmem:[#allocation6 + $0x128] ss:$16 sps:$4 sm:$0xff]  }
 0x7b6   : > { %v14040_v47 = vpack.c.bf16 %v9002_v45, %v8998_v10  ;;  %v14031_v48 = vpack.c.bf16 %v8832_v46, %v8828_v12  ;;  %v9004_v50 = vpop.f32.mrb[27].mxu1  ;;  %v14483_v10 = vld [vmem:[#allocation6 + $0x144] ss:$16 sps:$4 sm:$0xff]   ;;  %v14486_v12 = vld [vmem:[#allocation6 + $0x14c] ss:$16 sps:$4 sm:$0xff]  }
 0x7b7   : > { %v14037_v51 = vpack.c.bf16 %v9004_v50, %v9000_v27  ;;  %v14481_v27 = vld [vmem:[#allocation6 + $0x140] ss:$16 sps:$4 sm:$0xff]   ;;  %v14484_v31 = vld [vmem:[#allocation6 + $0x148] ss:$16 sps:$4 sm:$0xff]   ;;  %10303 = vmatprep.subr.bf16.mxu1 %v14483_v10  ;;  %v14492_v45 = vld [vmem:[#allocation6 + $0x16c] ss:$16 sps:$4 sm:$0xff]  }
 0x7b8   : > { %14033 = vmatprep.subr.msk.bf16.mxu0 %vm15623_vm4, %v14031_v48  ;;  %10304 = vmatpush1.bf16.msra.mxu1 %v14481_v27  ;;  %v14487_v46 = vld [vmem:[#allocation6 + $0x160] ss:$16 sps:$4 sm:$0xff]   ;;  %v14495_v48 = vld [vmem:[#allocation6 + $0x184] ss:$16 sps:$4 sm:$0xff]   ;;  %v14498_v50 = vld [vmem:[#allocation6 + $0x18c] ss:$16 sps:$4 sm:$0xff]  }
 0x7b9   : > { %14036 = vmatpush1.bf16.msk.msra.mxu0 %vm15623_vm4, %v14034_v22  ;;  %v14489_v22 = vld [vmem:[#allocation6 + $0x164] ss:$16 sps:$4 sm:$0xff]  }
 0x7ba   : > { %14039 = vmatprep.subr.msk.bf16.mxu0 %vm15623_vm4, %v14037_v51  ;;  %10305 = vmatprep.subr.bf16.mxu1 %v14489_v22  ;;  %v14493_v51 = vld [vmem:[#allocation6 + $0x180] ss:$16 sps:$4 sm:$0xff]  }
 0x7bb   : > { %v15680_v19 = vpop.f32.mrb[28].mxu1 }
 0x7bc   : > { %13392 = vmatmul.mubr.msk.f32.vlgmr.msra.gmra.mrb[32].mxu0 %vm9019_vm5, %v9013_v21  ;;  %v15682_v20 = vpop.f32.mrb[29].mxu1  ;;  %10306 = vmatpush1.bf16.msra.mxu1 %v14487_v46  ;;  %v14496_v21 = vld [vmem:[#allocation6 + $0x188] ss:$16 sps:$4 sm:$0xff]  }
 0x7bd   : > { %14042 = vmatpush1.bf16.msk.msra.mxu0 %vm15623_vm4, %v14040_v47  ;;  %9301 = vmatprep.mubr.f32.mxu0 %v15025_v52  ;;  %v14490_v47 = vld [vmem:[#allocation6 + $0x168] ss:$16 sps:$4 sm:$0xff]  }
 0x7be   : > { %10385 = vmatprep.subr.bf16.mxu0 %v14426_v58  ;;  %10307 = vmatprep.subr.bf16.mxu1 %v14495_v48  ;;  %v14505_v58 = vld [vmem:[#allocation6 + $0x1c0] ss:$16 sps:$4 sm:$0xff]  }
 0x7bf   : > { %v15684_v23 = vpop.f32.mrb[30].mxu1 }
 0x7c0   : > { %13393 = vmatmul.mubr.msk.f32.gmra.mrb[34].mxu0 %vm9019_vm5, %v9014_v54  ;;  %v15686_v24 = vpop.f32.mrb[31].mxu1  ;;  %10308 = vmatpush1.bf16.msra.mxu1 %v14493_v51  ;;  %v14501_v54 = vld [vmem:[#allocation6 + $0x1a4] ss:$16 sps:$4 sm:$0xff]  }
 0x7c1   : > { %9307 = vmatprep.mubr.f32.mxu0 %v15025_v52  ;;  %10309 = vmatprep.subr.bf16.mxu1 %v14501_v54 }
 0x7c3   : > { %v15688_v60 = vpop.f32.mrb[32].mxu1 }
 0x7c4   : > { %13394 = vmatmul.mubr.msk.f32.gmra.mrb[36].mxu0 %vm9019_vm5, %v9015_v55  ;;  %v15690_v61 = vpop.f32.mrb[33].mxu1  ;;  %v14504_v55 = vld [vmem:[#allocation6 + $0x1ac] ss:$16 sps:$4 sm:$0xff]  }
 0x7c5   : > { %9399 = vmatprep.mubr.f32.mxu0 %v15025_v52 }
 0x7c8   : > { %13397 = vmatmul.mubr.msk.f32.vlgmr.msra.gmra.mrb[32].mxu0 %vm9019_vm5, %v9016_v57  ;;  %v14499_v57 = vld [vmem:[#allocation6 + $0x1a0] ss:$16 sps:$4 sm:$0xff]  }
 0x7c9   : > { %9405 = vmatprep.mubr.f32.mxu0 %v15025_v52  ;;  %10386 = vmatpush1.bf16.msra.mxu0 %v14424_v59  ;;  %v14513_v59 = vld [vmem:[#allocation6 + $0x1e4] ss:$16 sps:$4 sm:$0xff]  }
 0x7ca   : > { %10387 = vmatprep.subr.bf16.mxu0 %v14432_v0  ;;  %10310 = vmatpush1.bf16.msra.mxu1 %v14499_v57  ;;  %v14514_v0 = vld [vmem:[#allocation6 + $0x1e8] ss:$16 sps:$4 sm:$0xff]  }
 0x7cc   : > { %13398 = vmatmul.mubr.msk.f32.gmra.mrb[34].mxu0 %vm9019_vm5, %v9017_v32  ;;  %v14502_v32 = vld [vmem:[#allocation6 + $0x1a8] ss:$16 sps:$4 sm:$0xff]  }
 0x7cd   : > { %9411 = vmatprep.mubr.f32.mxu0 %v15025_v52  ;;  %10388 = vmatpush1.bf16.msra.mxu0 %v14430_v5  ;;  %v14519_v5 = vld [vmem:[#allocation6 + $0x204] ss:$16 sps:$4 sm:$0xff]  }
 0x7ce   : > { %10389 = vmatprep.subr.bf16.mxu0 %v14438_v49 }
 0x7d0   : > { %13399 = vmatmul.mubr.msk.f32.gmra.mrb[36].mxu0 %vm9019_vm5, %v9018_v16  ;;  %v14507_v16 = vld [vmem:[#allocation6 + $0x1c4] ss:$16 sps:$4 sm:$0xff]  }
 0x7d1   : > { %10390 = vmatpush1.bf16.msra.mxu0 %v14436_v6  ;;  %10311 = vmatprep.subr.bf16.mxu1 %v14507_v16 }
 0x7d2   : > { %10391 = vmatprep.subr.bf16.mxu0 %v14444_v8  ;;  %10312 = vmatpush1.bf16.msra.mxu1 %v14505_v58 }
 0x7d3   : > { %10313 = vmatprep.subr.bf16.mxu1 %v14513_v59 }
 0x7d5   : > { %10392 = vmatpush1.bf16.msra.mxu0 %v14442_v25 }
 0x7d6   : > { %10393 = vmatprep.subr.bf16.mxu0 %v14450_v30  ;;  %10314 = vmatpush1.bf16.msra.mxu1 %v14511_v62 }
 0x7d7   : > { %10334 = vmatprep.subr.bf16.mxu1 %v14519_v5 }
 0x7d9   : > { %10394 = vmatpush1.bf16.msra.mxu0 %v14448_v34 }
 0x7da   : > { %10395 = vmatprep.subr.bf16.mxu0 %v14456_v36 }
 0x7dd   : > { %10396 = vmatpush1.bf16.msra.mxu0 %v14454_v38 }
 0x7de   : > { %10397 = vmatprep.subr.bf16.mxu0 %v14462_v39 }
 0x7e1   : > { %10398 = vmatpush1.bf16.msra.mxu0 %v14460_v35 }
 0x7e2   : > { %10399 = vmatprep.subr.bf16.mxu0 %v14468_v42 }
 0x7e5   : > { %10400 = vmatpush1.bf16.msra.mxu0 %v14466_v15 }
 0x7e6   : > { %10401 = vmatprep.subr.bf16.mxu0 %v14474_v56 }
 0x7e9   : > { %10402 = vmatpush1.bf16.msra.mxu0 %v14472_v3 }
 0x7ea   : > { %10403 = vmatprep.subr.bf16.mxu0 %v14480_v63 }
 0x7ed   : > { %10404 = vmatpush1.bf16.msra.mxu0 %v14478_v9 }
 0x7ee   : > { %10405 = vmatprep.subr.bf16.mxu0 %v14486_v12 }
 0x7f1   : > { %10406 = vmatpush1.bf16.msra.mxu0 %v14484_v31 }
 0x7f2   : > { %10407 = vmatprep.subr.bf16.mxu0 %v14492_v45 }
 0x7f5   : > { %10408 = vmatpush1.bf16.msra.mxu0 %v14490_v47 }
 0x7f6   : > { %10409 = vmatprep.subr.bf16.mxu0 %v14498_v50 }
 0x7f9   : > { %10410 = vmatpush1.bf16.msra.mxu0 %v14496_v21 }
 0x7fa   : > { %10411 = vmatprep.subr.bf16.mxu0 %v14504_v55 }
 0x7fd   : > { %10412 = vmatpush1.bf16.msra.mxu0 %v14502_v32 }
 0x7fe   : > { %10413 = vmatprep.subr.bf16.mxu0 %v14510_v17 }
 0x801   : > { %10414 = vmatpush1.bf16.msra.mxu0 %v14508_v18 }
 0x802   : > { %10415 = vmatprep.subr.bf16.mxu0 %v14516_v1 }
 0x805   : > { %10416 = vmatpush1.bf16.msra.mxu0 %v14514_v0 }
 0x806   : > { %10436 = vmatprep.subr.bf16.mxu0 %v14522_v53 }
 0x89b   : > { %v9401_v49 = vpop.f32.mrb[32].mxu0 }
 0x89c   : > { %v14091_v4 = vadd.f32 %v9401_v49, %v15680_v19  ;;  %v9403_v6 = vpop.f32.mrb[33].mxu0 }
 0x89d   : > { %v14092_v11 = vadd.f32 %v9403_v6, %v15682_v20 }
 0x89f   : > { %v9407_v8 = vpop.f32.mrb[34].mxu0 }
 0x8a0   : > { %v14093_v14 = vadd.f32 %v9407_v8, %v15684_v23  ;;  %v9409_v25 = vpop.f32.mrb[35].mxu0 }
 0x8a1   : > { %v14094_v19 = vadd.f32 %v9409_v25, %v15686_v24 }
 0x8a2   : > { %v9424_v26 = vadd.f32 %v14093_v14, %v14091_v4 }
 0x8a3   : > { %v9434_v30 = vadd.f32 %v14094_v19, %v14092_v11  ;;  %v9413_v20 = vpop.f32.mrb[36].mxu0 }
 0x8a4   : > { %v14095_v40 = vadd.f32 %v9413_v20, %v15688_v60  ;;  %v9415_v34 = vpop.f32.mrb[37].mxu0 }
 0x8a5   : > { %v14096_v41 = vadd.f32 %v9415_v34, %v15690_v61 }
 0x8a6   : > { %v9426_v36 = vsel %vm9425_vm6, %v14095_v40, 0.0 }
 0x8a7   : > { %v9427_v23 = vadd.f32 %v9426_v36, %v9424_v26  ;;  %v9435_v37 = vsel %vm9425_vm6, %v14096_v41, 0.0 }
 0x8a8   : > { %v9436_v38 = vadd.f32 %v9435_v37, %v9434_v30 }
 0x8a9   : > { %v9428_v33 = vrot.slane %v9427_v23, 4 }
 0x8aa   : > { %v9437_v39 = vrot.slane %v9436_v38, 4 }
 0x8ab   : > { %v9429_v28 = vadd.f32 %v9428_v33, %v9427_v23  ;;  %v14517_v33 = vld [vmem:[#allocation6 + $0x200] ss:$16 sps:$4 sm:$0xff]  }
 0x8ac   : > { %v9438_v35 = vadd.f32 %v9437_v39, %v9436_v38  ;;  %v14520_v39 = vld [vmem:[#allocation6 + $0x208] ss:$16 sps:$4 sm:$0xff]  }
 0x8ad   : > { %v9430_v24 = vrot.slane %v9429_v28, 2 }
 0x8ae   : > { %v9439_v29 = vrot.slane %v9438_v35, 2 }
 0x8af   : > { %v9431_v42 = vadd.f32 %v9430_v24, %v9429_v28  ;;  %v14525_v28 = vld [vmem:[#allocation6 + $0x224] ss:$16 sps:$4 sm:$0xff]  }
 0x8b0   : > { %v9440_v43 = vadd.f32 %v9439_v29, %v9438_v35  ;;  %v14528_v35 = vld [vmem:[#allocation6 + $0x22c] ss:$16 sps:$4 sm:$0xff]   ;;  %v14523_v29 = vld [vmem:[#allocation6 + $0x220] ss:$16 sps:$4 sm:$0xff]  }
 0x8b1   : > { %v9432_v15 = vrot.slane %v9431_v42, 1 }
 0x8b2   : > { %v9441_v44 = vrot.slane %v9440_v43, 1 }
 0x8b3   : > { %v9433_v60 = vadd.f32 %v9432_v15, %v9431_v42  ;;  %v14526_v42 = vld [vmem:[#allocation6 + $0x228] ss:$16 sps:$4 sm:$0xff]   ;;  %v14534_v15 = vld [vmem:[#allocation6 + $0x24c] ss:$16 sps:$4 sm:$0xff]  }
 0x8b4   : > { %v9442_v56 = vadd.f32 %v9441_v44, %v9440_v43  ;;  %v14531_v43 = vld [vmem:[#allocation6 + $0x244] ss:$16 sps:$4 sm:$0xff]  }
 0x8b5   : > { %v9444_v2 = vmul.f32 0.05, %v9433_v60  ;;  %v14529_v60 = vld [vmem:[#allocation6 + $0x240] ss:$16 sps:$4 sm:$0xff]  }
 0x8b6   : > { %v9445_v61 = vmul.f32 0.05, %v9442_v56  ;;  %v14532_v56 = vld [vmem:[#allocation6 + $0x248] ss:$16 sps:$4 sm:$0xff]  }
 0x8b7   : > { %v9446_v3 = vsub.f32 %v14091_v4, %v9444_v2  ;;  %v9448_v13 = vsub.f32 %v14093_v14, %v9444_v2  ;;  %v9450_v63 = vsub.f32 %v14095_v40, %v9444_v2 }
 0x8b8   : > { %v9447_v7 = vsub.f32 %v14092_v11, %v9445_v61  ;;  %v9449_v9 = vsub.f32 %v14094_v19, %v9445_v61  ;;  %v9451_v10 = vsub.f32 %v14096_v41, %v9445_v61  ;;  %v14537_v61 = vld [vmem:[#allocation6 + $0x264] ss:$16 sps:$4 sm:$0xff]  }
 0x8b9   : > { %v9452_v12 = vmul.f32 %v9446_v3, %v9446_v3  ;;  %v9454_v27 = vmul.f32 %v9448_v13, %v9448_v13  ;;  %v9456_v31 = vmul.f32 %v9450_v63, %v9450_v63 }
 0x8ba   : > { %v9453_v22 = vmul.f32 %v9447_v7, %v9447_v7  ;;  %v9455_v45 = vmul.f32 %v9449_v9, %v9449_v9  ;;  %v9457_v46 = vmul.f32 %v9451_v10, %v9451_v10 }
 0x8bb   : > { %v9458_v47 = vadd.f32 %v9454_v27, %v9452_v12  ;;  %v9459_v48 = vsel %vm9425_vm6, %v9456_v31, 0.0  ;;  %v14541_v12 = vld [vmem:[#allocation6 + $0x280] ss:$16 sps:$4 sm:$0xff]   ;;  %v14544_v27 = vld [vmem:[#allocation6 + $0x288] ss:$16 sps:$4 sm:$0xff]  }
 0x8bc   : > { %v9467_v50 = vadd.f32 %v9455_v45, %v9453_v22  ;;  %v9468_v51 = vsel %vm9425_vm6, %v9457_v46, 0.0  ;;  %v14549_v31 = vld [vmem:[#allocation6 + $0x2a4] ss:$16 sps:$4 sm:$0xff]   ;;  %v14552_v22 = vld [vmem:[#allocation6 + $0x2ac] ss:$16 sps:$4 sm:$0xff]  }
 0x8bd   : > { %v9460_v21 = vadd.f32 %v9459_v48, %v9458_v47  ;;  %v14547_v45 = vld [vmem:[#allocation6 + $0x2a0] ss:$16 sps:$4 sm:$0xff]   ;;  %v14550_v46 = vld [vmem:[#allocation6 + $0x2a8] ss:$16 sps:$4 sm:$0xff]   ;;  %v14555_v47 = vld [vmem:[#allocation6 + $0x2c4] ss:$16 sps:$4 sm:$0xff]  }
 0x8be   : > { %v9469_v54 = vadd.f32 %v9468_v51, %v9467_v50  ;;  %v14558_v48 = vld [vmem:[#allocation6 + $0x2cc] ss:$16 sps:$4 sm:$0xff]   ;;  %v14553_v50 = vld [vmem:[#allocation6 + $0x2c0] ss:$16 sps:$4 sm:$0xff]   ;;  %v14556_v51 = vld [vmem:[#allocation6 + $0x2c8] ss:$16 sps:$4 sm:$0xff]  }
 0x8bf   : > { %v9461_v55 = vrot.slane %v9460_v21, 4 }
 0x8c0   : > { %v9470_v57 = vrot.slane %v9469_v54, 4 }
 0x8c1   : > { %v9462_v32 = vadd.f32 %v9461_v55, %v9460_v21  ;;  %v14561_v21 = vld [vmem:[#allocation6 + $0x2e4] ss:$16 sps:$4 sm:$0xff]   ;;  %v14559_v55 = vld [vmem:[#allocation6 + $0x2e0] ss:$16 sps:$4 sm:$0xff]  }
 0x8c2   : > { %v9471_v16 = vadd.f32 %v9470_v57, %v9469_v54  ;;  %v14564_v54 = vld [vmem:[#allocation6 + $0x2ec] ss:$16 sps:$4 sm:$0xff]   ;;  %v14562_v57 = vld [vmem:[#allocation6 + $0x2e8] ss:$16 sps:$4 sm:$0xff]  }
 0x8c3   : > { %v9463_v17 = vrot.slane %v9462_v32, 2 }
 0x8c4   : > { %v9472_v58 = vrot.slane %v9471_v16, 2 }
 0x8c5   : > { %v9464_v18 = vadd.f32 %v9463_v17, %v9462_v32  ;;  %v14567_v32 = vld [vmem:[#allocation6 + $0x304] ss:$16 sps:$4 sm:$0xff]   ;;  %v14565_v17 = vld [vmem:[#allocation6 + $0x300] ss:$16 sps:$4 sm:$0xff]  }
 0x8c6   : > { %v9473_v59 = vadd.f32 %v9472_v58, %v9471_v16  ;;  %v14570_v16 = vld [vmem:[#allocation6 + $0x30c] ss:$16 sps:$4 sm:$0xff]   ;;  %v14568_v58 = vld [vmem:[#allocation6 + $0x308] ss:$16 sps:$4 sm:$0xff]  }
 0x8c7   : > { %v9465_v62 = vrot.slane %v9464_v18, 1 }
 0x8c8   : > { %v9474_v0 = vrot.slane %v9473_v59, 1 }
 0x8c9   : > { %v9466_v1 = vadd.f32 %v9465_v62, %v9464_v18  ;;  %v14573_v18 = vld [vmem:[#allocation6 + $0x324] ss:$16 sps:$4 sm:$0xff]   ;;  %v14571_v62 = vld [vmem:[#allocation6 + $0x320] ss:$16 sps:$4 sm:$0xff]  }
 0x8ca   : > { %v9475_v5 = vadd.f32 %v9474_v0, %v9473_v59  ;;  %v14576_v59 = vld [vmem:[#allocation6 + $0x32c] ss:$16 sps:$4 sm:$0xff]   ;;  %v14574_v0 = vld [vmem:[#allocation6 + $0x328] ss:$16 sps:$4 sm:$0xff]  }
 0x8cb   : > { %v9476_v53 = vmul.f32 0.05, %v9466_v1  ;;  %v14579_v1 = vld [vmem:[#allocation6 + $0x344] ss:$16 sps:$4 sm:$0xff]  }
 0x8cc   : > { %v9477_v49 = vmul.f32 0.05, %v9475_v5  ;;  %v14582_v5 = vld [vmem:[#allocation6 + $0x34c] ss:$16 sps:$4 sm:$0xff]  }
 0x8cd   : > { %v9478_v4 = vadd.f32 1e-05, %v9476_v53  ;;  %v14577_v53 = vld [vmem:[#allocation6 + $0x340] ss:$16 sps:$4 sm:$0xff]  }
 0x8ce   : > { %v9479_v6 = vadd.f32 1e-05, %v9477_v49  ;;  %v14580_v49 = vld [vmem:[#allocation6 + $0x348] ss:$16 sps:$4 sm:$0xff]  }
 0x8cf   : > { %14693 = vrsqrt.f32 %v9478_v4  ;;  %v14585_v4 = vld [vmem:[#allocation6 + $0x364] ss:$16 sps:$4 sm:$0xff]  }
 0x8d0   : > { %14695 = vrsqrt.f32 %v9479_v6  ;;  %v14588_v6 = vld [vmem:[#allocation6 + $0x36c] ss:$16 sps:$4 sm:$0xff]  }
 0x8d9   : > { %v14694_v11 = vpop.eup %14693 }
 0x8da   : > { %v14696_v8 = vpop.eup %14695  ;;  %v9482_v14 = vmul.f32 %v14694_v11, %v9446_v3  ;;  %v9484_v25 = vmul.f32 %v14694_v11, %v9448_v13  ;;  %v9486_v19 = vmul.f32 %v14694_v11, %v9450_v63  ;;  %v14540_v3 = vld [vmem:[#allocation6 + $0x26c] ss:$16 sps:$4 sm:$0xff]   ;;  %v14535_v63 = vld [vmem:[#allocation6 + $0x260] ss:$16 sps:$4 sm:$0xff]  }
 0x8db   : > { %v9487_v26 = vmul.f32 %v14696_v8, %v9451_v10  ;;  %v9483_v30 = vmul.f32 %v14696_v8, %v9447_v7  ;;  %v9485_v20 = vmul.f32 %v14696_v8, %v9449_v9  ;;  %v14615_v13 = vld [vmem:[%s15698_s14 + $0x4] ss:$8 sps:$4 sm:$0xff]   ;;  %v14538_v7 = vld [vmem:[#allocation6 + $0x268] ss:$16 sps:$4 sm:$0xff]   ;;  %v14583_v11 = vld [vmem:[#allocation6 + $0x360] ss:$16 sps:$4 sm:$0xff]  }
 0x8dc   : > { %v9488_v40 = vmax.f32 %v9482_v14, 0.0  ;;  %v9490_v34 = vmax.f32 %v9484_v25, 0.0  ;;  %v9492_v44 = vmax.f32 %v9486_v19, 0.0  ;;  %v14543_v9 = vld [vmem:[#allocation6 + $0x284] ss:$16 sps:$4 sm:$0xff]  }
 0x8dd   : > { %v9489_v41 = vmax.f32 %v9483_v30, 0.0  ;;  %v9491_v36 = vmax.f32 %v9485_v20, 0.0  ;;  %v9493_v37 = vmax.f32 %v9487_v26, 0.0  ;;  %v14546_v10 = vld [vmem:[#allocation6 + $0x28c] ss:$16 sps:$4 sm:$0xff]  }
 0x8de   : > { %v9494_v23 = vpack.c.bf16 %v9490_v34, %v9488_v40  ;;  %v9496_v2 = vpack.c.bf16 %v9492_v44, %v9492_v44  ;;  %v14586_v8 = vld [vmem:[#allocation6 + $0x368] ss:$16 sps:$4 sm:$0xff]   ;;  %v14591_v14 = vld [vmem:[#allocation6 + $0x384] ss:$16 sps:$4 sm:$0xff]   ;;  %v14594_v25 = vld [vmem:[#allocation6 + $0x38c] ss:$16 sps:$4 sm:$0xff]  }
 0x8df   : > { %v9495_v38 = vpack.c.bf16 %v9491_v36, %v9489_v41  ;;  %v9497_v24 = vpack.c.bf16 %v9493_v37, %v9493_v37  ;;  %v14589_v19 = vld [vmem:[#allocation6 + $0x380] ss:$16 sps:$4 sm:$0xff]   ;;  %v14592_v26 = vld [vmem:[#allocation6 + $0x388] ss:$16 sps:$4 sm:$0xff]   ;;  %v14597_v30 = vld [vmem:[#allocation6 + $0x3a4] ss:$16 sps:$4 sm:$0xff]  }
 0x8e0   : > { %v14600_v20 = vld [vmem:[#allocation6 + $0x3ac] ss:$16 sps:$4 sm:$0xff]   ;;  %v14595_v40 = vld [vmem:[#allocation6 + $0x3a0] ss:$16 sps:$4 sm:$0xff]   ;;  %v14598_v34 = vld [vmem:[#allocation6 + $0x3a8] ss:$16 sps:$4 sm:$0xff]  }
 0x8e1   : > { %10315 = vmatprep.mubr.bf16.mxu1 %v9495_v38  ;;  %10417 = vmatprep.mubr.bf16.mxu0 %v9495_v38  ;;  %v14603_v41 = vld [vmem:[#allocation6 + $0x3c4] ss:$16 sps:$4 sm:$0xff]   ;;  %v14606_v36 = vld [vmem:[#allocation6 + $0x3cc] ss:$16 sps:$4 sm:$0xff]   ;;  %v14604_v37 = vld [vmem:[#allocation6 + $0x3c8] ss:$16 sps:$4 sm:$0xff]  }
 0x8e2   : > { %10316 = vmatmul.mubr.bf16.vlgmr.msra.gmra.mrb[36].mxu1 %v9494_v23  ;;  %10418 = vmatmul.mubr.bf16.vlgmr.msra.gmra.mrb[40].mxu0 %v9494_v23  ;;  %v14601_v23 = vld [vmem:[#allocation6 + $0x3c0] ss:$16 sps:$4 sm:$0xff]   ;;  %v14609_v38 = vld [vmem:[#allocation6 + $0x3e4] ss:$16 sps:$4 sm:$0xff]  }
 0x8e3   : > { %10335 = vmatpush1.bf16.msra.mxu1 %v14517_v33  ;;  %10437 = vmatpush1.bf16.msra.mxu0 %v14520_v39  ;;  %v14612_v33 = vld [vmem:[#allocation6 + $0x3ec] ss:$16 sps:$4 sm:$0xff]   ;;  %v14607_v39 = vld [vmem:[#allocation6 + $0x3e0] ss:$16 sps:$4 sm:$0xff]  }
 0x8e4   : > { %10325 = vmatprep.mubr.bf16.mxu1 %v9497_v24  ;;  %10427 = vmatprep.mubr.bf16.mxu0 %v9497_v24  ;;  %v14613_v24 = vld [vmem:[%s15698_s14] ss:$8 sps:$4 sm:$0xff]  }
 0x8e5   : > { %10336 = vmatprep.subr.bf16.mxu1 %v14525_v28  ;;  %10438 = vmatprep.subr.bf16.mxu0 %v14528_v35  ;;  %v14610_v28 = vld [vmem:[#allocation6 + $0x3e8] ss:$16 sps:$4 sm:$0xff]   ;;  %v638_v35 = vld [vmem:[%s15698_s14 + $0x10] sm:$0x33] }
 0x8e7   : > { %10337 = vmatpush1.bf16.msra.mxu1 %v14523_v29  ;;  %10439 = vmatpush1.bf16.msra.mxu0 %v14526_v42  ;;  %v13403_v29 = vcombine.high %v638_v35, %v638_v35  ;;  %v13402_v42 = vcombine.low %v638_v35, %v638_v35  ;;  %v14639_v35 = vld [vmem:[#allocation7 + $0xa8] ss:$12 sps:$4 sm:$0xff]  }
 0x8e8   : > { %10338 = vmatprep.subr.bf16.mxu1 %v14531_v43  ;;  %10440 = vmatprep.subr.bf16.mxu0 %v14534_v15  ;;  %v10493_v43 = vld [vmem:[#allocation12 + $0x30] sm:$0xff] }
 0x8ea   : > { %10326 = vmatmul.mubr.bf16.gmra.mrb[40].mxu1 %v9496_v2  ;;  %10428 = vmatmul.mubr.bf16.gmra.mrb[44].mxu0 %v9496_v2 }
 0x8eb   : > { %10339 = vmatpush1.bf16.msra.mxu1 %v14529_v60  ;;  %10441 = vmatpush1.bf16.msra.mxu0 %v14532_v56 }
 0x8ec   : > { %10340 = vmatprep.subr.bf16.mxu1 %v14537_v61  ;;  %10442 = vmatprep.subr.bf16.mxu0 %v14540_v3 }
 0x8ed   : > { %10366 = vmatprep.mubr.bf16.mxu1 %v14615_v13  ;;  %10468 = vmatprep.mubr.bf16.mxu0 %v14615_v13 }
 0x8ef   : > { %10341 = vmatpush1.bf16.msra.mxu1 %v14535_v63  ;;  %10443 = vmatpush1.bf16.msra.mxu0 %v14538_v7 }
 0x8f0   : > { %10342 = vmatprep.subr.bf16.mxu1 %v14543_v9  ;;  %10444 = vmatprep.subr.bf16.mxu0 %v14546_v10 }
 0x8f3   : > { %10343 = vmatpush1.bf16.msra.mxu1 %v14541_v12  ;;  %10445 = vmatpush1.bf16.msra.mxu0 %v14544_v27 }
 0x8f4   : > { %10344 = vmatprep.subr.bf16.mxu1 %v14549_v31  ;;  %10446 = vmatprep.subr.bf16.mxu0 %v14552_v22 }
 0x8f7   : > { %10345 = vmatpush1.bf16.msra.mxu1 %v14547_v45  ;;  %10447 = vmatpush1.bf16.msra.mxu0 %v14550_v46  ;;  %v10494_v45 = vld [vmem:[#allocation12 + $0x38] sm:$0xff] }
 0x8f8   : > { %10346 = vmatprep.subr.bf16.mxu1 %v14555_v47  ;;  %10448 = vmatprep.subr.bf16.mxu0 %v14558_v48  ;;  %v10495_v48 = vld [vmem:[#allocation12 + $0x40] sm:$0xff] }
 0x8fb   : > { %10347 = vmatpush1.bf16.msra.mxu1 %v14553_v50  ;;  %10449 = vmatpush1.bf16.msra.mxu0 %v14556_v51 }
 0x8fc   : > { %10348 = vmatprep.subr.bf16.mxu1 %v14561_v21  ;;  %10450 = vmatprep.subr.bf16.mxu0 %v14564_v54  ;;  %v10496_v21 = vld [vmem:[#allocation12 + $0x48] sm:$0xff]  ;;  %v10497_v54 = vld [vmem:[#allocation12 + $0x50] sm:$0xff] }
 0x8ff   : > { %10349 = vmatpush1.bf16.msra.mxu1 %v14559_v55  ;;  %10451 = vmatpush1.bf16.msra.mxu0 %v14562_v57  ;;  %v10498_v55 = vld [vmem:[#allocation12 + $0x58] sm:$0x7]  ;;  %v10487_v57 = vld [vmem:[#allocation12] sm:$0xff] }
 0x900   : > { %10350 = vmatprep.subr.bf16.mxu1 %v14567_v32  ;;  %10452 = vmatprep.subr.bf16.mxu0 %v14570_v16  ;;  %v10488_v32 = vld [vmem:[#allocation12 + $0x8] sm:$0xff]  ;;  %v10489_v16 = vld [vmem:[#allocation12 + $0x10] sm:$0xff] }
 0x903   : > { %10351 = vmatpush1.bf16.msra.mxu1 %v14565_v17  ;;  %10453 = vmatpush1.bf16.msra.mxu0 %v14568_v58  ;;  %v10490_v17 = vld [vmem:[#allocation12 + $0x18] sm:$0xff]  ;;  %v10491_v58 = vld [vmem:[#allocation12 + $0x20] sm:$0xff] }
 0x904   : > { %10352 = vmatprep.subr.bf16.mxu1 %v14573_v18  ;;  %10454 = vmatprep.subr.bf16.mxu0 %v14576_v59  ;;  %v10492_v18 = vld [vmem:[#allocation12 + $0x28] sm:$0x7]  ;;  %v10499_v59 = vld [vmem:[#allocation12 + $0x60] sm:$0xff] }
 0x907   : > { %10353 = vmatpush1.bf16.msra.mxu1 %v14571_v62  ;;  %10455 = vmatpush1.bf16.msra.mxu0 %v14574_v0  ;;  %v10500_v62 = vld [vmem:[#allocation12 + $0x68] sm:$0xff]  ;;  %v10501_v0 = vld [vmem:[#allocation12 + $0x70] sm:$0xff] }
 0x908   : > { %10354 = vmatprep.subr.bf16.mxu1 %v14579_v1  ;;  %10456 = vmatprep.subr.bf16.mxu0 %v14582_v5  ;;  %v10502_v1 = vld [vmem:[#allocation12 + $0x78] sm:$0xff]  ;;  %v10503_v5 = vld [vmem:[#allocation12 + $0x80] sm:$0xff] }
 0x90b   : > { %10355 = vmatpush1.bf16.msra.mxu1 %v14577_v53  ;;  %10457 = vmatpush1.bf16.msra.mxu0 %v14580_v49  ;;  %v10504_v53 = vld [vmem:[#allocation12 + $0x88] sm:$0x7]  ;;  %v10505_v49 = vld [vmem:[#allocation12 + $0x90] sm:$0xff] }
 0x90c   : > { %10356 = vmatprep.subr.bf16.mxu1 %v14585_v4  ;;  %10458 = vmatprep.subr.bf16.mxu0 %v14588_v6  ;;  %v10506_v4 = vld [vmem:[#allocation12 + $0x98] sm:$0xff]  ;;  %v10507_v6 = vld [vmem:[#allocation12 + $0xa0] sm:$0xff] }
 0x90f   : > { %10357 = vmatpush1.bf16.msra.mxu1 %v14583_v11  ;;  %10459 = vmatpush1.bf16.msra.mxu0 %v14586_v8  ;;  %v10508_v11 = vld [vmem:[#allocation12 + $0xa8] sm:$0xff]  ;;  %v10509_v8 = vld [vmem:[#allocation12 + $0xb0] sm:$0xff] }
 0x910   : > { %10358 = vmatprep.subr.bf16.mxu1 %v14591_v14  ;;  %10460 = vmatprep.subr.bf16.mxu0 %v14594_v25  ;;  %v10510_v14 = vld [vmem:[#allocation12 + $0xb8] sm:$0x7]  ;;  %v14620_v25 = vld [vmem:[#allocation7 + $0x4] ss:$12 sps:$4 sm:$0xff]  }
 0x913   : > { %10359 = vmatpush1.bf16.msra.mxu1 %v14589_v19  ;;  %10461 = vmatpush1.bf16.msra.mxu0 %v14592_v26  ;;  %v14618_v19 = vld [vmem:[#allocation7] ss:$12 sps:$4 sm:$0xff]   ;;  %v14623_v26 = vld [vmem:[#allocation7 + $0x1c] ss:$12 sps:$4 sm:$0xff]  }
 0x914   : > { %10360 = vmatprep.subr.bf16.mxu1 %v14597_v30  ;;  %10462 = vmatprep.subr.bf16.mxu0 %v14600_v20  ;;  %v14621_v30 = vld [vmem:[#allocation7 + $0x18] ss:$12 sps:$4 sm:$0xff]   ;;  %v14626_v20 = vld [vmem:[#allocation7 + $0x34] ss:$12 sps:$4 sm:$0xff]  }
 0x917   : > { %10361 = vmatpush1.bf16.msra.mxu1 %v14595_v40  ;;  %10463 = vmatpush1.bf16.msra.mxu0 %v14598_v34  ;;  %v14624_v40 = vld [vmem:[#allocation7 + $0x30] ss:$12 sps:$4 sm:$0xff]   ;;  %v14629_v34 = vld [vmem:[#allocation7 + $0x4c] ss:$12 sps:$4 sm:$0xff]  }
 0x918   : > { %10362 = vmatprep.subr.bf16.mxu1 %v14603_v41  ;;  %10464 = vmatprep.subr.bf16.mxu0 %v14606_v36  ;;  %v14627_v41 = vld [vmem:[#allocation7 + $0x48] ss:$12 sps:$4 sm:$0xff]   ;;  %v14632_v36 = vld [vmem:[#allocation7 + $0x64] ss:$12 sps:$4 sm:$0xff]  }
 0x91b   : > { %10363 = vmatpush1.bf16.msra.mxu1 %v14601_v23  ;;  %10465 = vmatpush1.bf16.msra.mxu0 %v14604_v37  ;;  %v14630_v23 = vld [vmem:[#allocation7 + $0x60] ss:$12 sps:$4 sm:$0xff]   ;;  %v14635_v37 = vld [vmem:[#allocation7 + $0x7c] ss:$12 sps:$4 sm:$0xff]  }
 0x91c   : > { %10364 = vmatprep.subr.bf16.mxu1 %v14609_v38  ;;  %10466 = vmatprep.subr.bf16.mxu0 %v14612_v33  ;;  %v14633_v38 = vld [vmem:[#allocation7 + $0x78] ss:$12 sps:$4 sm:$0xff]   ;;  %v14638_v33 = vld [vmem:[#allocation7 + $0x94] ss:$12 sps:$4 sm:$0xff]  }
 0x91f   : > { %10365 = vmatpush1.bf16.msra.mxu1 %v14607_v39  ;;  %10467 = vmatpush1.bf16.msra.mxu0 %v14610_v28  ;;  %v14636_v39 = vld [vmem:[#allocation7 + $0x90] ss:$12 sps:$4 sm:$0xff]   ;;  %v14641_v28 = vld [vmem:[#allocation7 + $0xac] ss:$12 sps:$4 sm:$0xff]  }
 0x920   : > { %11382 = vmatprep.subr.bf16.mxu0 %v14620_v25 }
 0x922   : > { %10367 = vmatmul.mubr.bf16.vlgmr.msra.gmra.mrb[36].mxu1 %v14613_v24  ;;  %10469 = vmatmul.mubr.bf16.vlgmr.msra.gmra.mrb[40].mxu0 %v14613_v24  ;;  %v14644_v24 = vld [vmem:[#allocation7 + $0xc4] ss:$12 sps:$4 sm:$0xff]  }
 0x923   : > { %10376 = vmatprep.mubr.bf16.mxu1 %v13403_v29  ;;  %10478 = vmatprep.mubr.bf16.mxu0 %v13403_v29  ;;  %v14645_v29 = vld [vmem:[#allocation7 + $0xc8] ss:$12 sps:$4 sm:$0xff]  }
 0x924   : > { %11383 = vmatpush1.bf16.msra.mxu0 %v14618_v19 }
 0x925   : > { %11384 = vmatprep.subr.bf16.mxu0 %v14623_v26 }
 0x928   : > { %11385 = vmatpush1.bf16.msra.mxu0 %v14621_v30 }
 0x929   : > { %11386 = vmatprep.subr.bf16.mxu0 %v14626_v20 }
 0x92a   : > { %10377 = vmatmul.mubr.bf16.gmra.mrb[40].mxu1 %v13402_v42  ;;  %10479 = vmatmul.mubr.bf16.gmra.mrb[44].mxu0 %v13402_v42  ;;  %v14642_v42 = vld [vmem:[#allocation7 + $0xc0] ss:$12 sps:$4 sm:$0xff]  }
 0x92b   : > { %13830 = vmatprep.mubr.msk.f32.mxu1 %vm10511_vm7, %v10493_v43  ;;  %v14646_v43 = vld [vmem:[#allocation7 + $0x8] ss:$12 sps:$4 sm:$0xff]  }
 0x92c   : > { %11387 = vmatpush1.bf16.msra.mxu0 %v14624_v40 }
 0x92d   : > { %11388 = vmatprep.subr.bf16.mxu0 %v14629_v34 }
 0x930   : > { %11389 = vmatpush1.bf16.msra.mxu0 %v14627_v41 }
 0x931   : > { %11390 = vmatprep.subr.bf16.mxu0 %v14632_v36 }
 0x934   : > { %11391 = vmatpush1.bf16.msra.mxu0 %v14630_v23 }
 0x935   : > { %11392 = vmatprep.subr.bf16.mxu0 %v14635_v37 }
 0x938   : > { %11393 = vmatpush1.bf16.msra.mxu0 %v14633_v38 }
 0x939   : > { %11394 = vmatprep.subr.bf16.mxu0 %v14638_v33 }
 0x93c   : > { %11395 = vmatpush1.bf16.msra.mxu0 %v14636_v39 }
 0x93d   : > { %11396 = vmatprep.subr.bf16.mxu0 %v14641_v28 }
 0x940   : > { %11397 = vmatpush1.bf16.msra.mxu0 %v14639_v35 }
 0x941   : > { %11398 = vmatprep.subr.bf16.mxu0 %v14644_v24 }
 0x944   : > { %11399 = vmatpush1.bf16.msra.mxu0 %v14642_v42 }
 0x9f5   : > { %v10368_v15 = vpop.f32.mrb[36].mxu1  ;;  %v10470_v44 = vpop.f32.mrb[40].mxu0 }
 0x9f6   : > { %v10370_v60 = vpop.f32.mrb[37].mxu1  ;;  %v10472_v56 = vpop.f32.mrb[41].mxu0 }
 0x9f7   : > { %v10372_v2 = vpop.f32.mrb[38].mxu1  ;;  %v10474_v61 = vpop.f32.mrb[42].mxu0 }
 0x9f8   : > { %v14047_v3 = vpack.c.bf16 %v10372_v2, %v10368_v15  ;;  %v14051_v13 = vpack.c.bf16 %v10474_v61, %v10470_v44  ;;  %v10374_v63 = vpop.f32.mrb[39].mxu1  ;;  %v10476_v7 = vpop.f32.mrb[43].mxu0  ;;  %v14649_v15 = vld [vmem:[#allocation7 + $0xdc] ss:$12 sps:$4 sm:$0xff]   ;;  %v14650_v44 = vld [vmem:[#allocation7 + $0xe0] ss:$12 sps:$4 sm:$0xff]  }
 0x9f9   : > { %v14043_v9 = vpack.c.bf16 %v10374_v63, %v10370_v60  ;;  %v14055_v10 = vpack.c.bf16 %v10476_v7, %v10472_v56  ;;  %v14647_v60 = vld [vmem:[#allocation7 + $0xd8] ss:$12 sps:$4 sm:$0xff]   ;;  %v14651_v56 = vld [vmem:[#allocation7 + $0x20] ss:$12 sps:$4 sm:$0xff]   ;;  %11400 = vmatprep.subr.bf16.mxu0 %v14649_v15  ;;  %v14660_v7 = vld [vmem:[#allocation7 + $0x110] ss:$12 sps:$4 sm:$0xff]  }
 0x9fa   : > { %11401 = vmatpush1.bf16.msra.mxu0 %v14647_v60  ;;  %v14654_v2 = vld [vmem:[#allocation7 + $0xf4] ss:$12 sps:$4 sm:$0xff]   ;;  %v14655_v61 = vld [vmem:[#allocation7 + $0xf8] ss:$12 sps:$4 sm:$0xff]  }
 0x9fb   : > { %14044 = vmatprep.subr.bf16.mxu1 %v14043_v9  ;;  %11402 = vmatprep.subr.bf16.mxu0 %v14654_v2  ;;  %v14659_v63 = vld [vmem:[#allocation7 + $0x10c] ss:$12 sps:$4 sm:$0xff]  }
 0x9fc   : > { %14046 = vmatpush3.bf16.msra.mxu1 %v14043_v9  ;;  %v14657_v9 = vld [vmem:[#allocation7 + $0x108] ss:$12 sps:$4 sm:$0xff]  }
 0x9fd   : > { %v10378_v12 = vpop.f32.mrb[40].mxu1  ;;  %v10480_v27 = vpop.f32.mrb[44].mxu0 }
 0x9fe   : > { %v10380_v31 = vpop.f32.mrb[41].mxu1  ;;  %v10482_v22 = vpop.f32.mrb[45].mxu0 }
 0x9ff   : > { %v10382_v46 = vpop.f32.mrb[42].mxu1  ;;  %v10484_v47 = vpop.f32.mrb[46].mxu0  ;;  %13828 = vmatprep.subr.msk.mxu1 %vm9425_vm6, %v10380_v31 }
 0xa00   : > { %v10383_v50 = vpop.f32.mrb[43].mxu1  ;;  %v10485_v51 = vpop.f32.mrb[47].mxu0  ;;  %13829 = vmatpush3.msk.msra.mxu1 %vm9425_vm6, %v10380_v31  ;;  %v14662_v31 = vld [vmem:[#allocation7 + $0x120] ss:$12 sps:$4 sm:$0xff]   ;;  %v14667_v47 = vld [vmem:[#allocation7 + $0x138] ss:$12 sps:$4 sm:$0xff]  }
 0xa01   : > { %13831 = vmatmul.mubr.msk.f32.vlgmr.msra.gmra.mrb[34].mxu1 %vm10511_vm7, %v10494_v45  ;;  %14048 = vmatprep.subr.bf16.mxu1 %v14047_v3  ;;  %v14669_v45 = vld [vmem:[#allocation7 + $0x13c] ss:$12 sps:$4 sm:$0xff]   ;;  %v14670_v46 = vld [vmem:[#allocation7 + $0x140] ss:$12 sps:$4 sm:$0xff]   ;;  %v14675_v51 = vld [vmem:[#allocation7 + $0x158] ss:$12 sps:$4 sm:$0xff]  }
 0xa02   : > { %14050 = vmatpush3.bf16.msra.mxu1 %v14047_v3  ;;  %13833 = vmatprep.mubr.msk.f32.mxu1 %vm10511_vm7, %v10495_v48  ;;  %v14652_v3 = vld [vmem:[#allocation7 + $0xf0] ss:$12 sps:$4 sm:$0xff]   ;;  %v14671_v48 = vld [vmem:[#allocation7 + $0x80] ss:$12 sps:$4 sm:$0xff]  }
 0xa03   : > { %13843 = vmatprep.subr.msk.mxu1 %vm9425_vm6, %v10378_v12  ;;  %11403 = vmatpush1.bf16.msra.mxu0 %v14652_v3  ;;  %v14674_v50 = vld [vmem:[#allocation7 + $0x154] ss:$12 sps:$4 sm:$0xff]  }
 0xa04   : > { %11404 = vmatprep.subr.bf16.mxu0 %v14659_v63 }
 0xa05   : > { %13834 = vmatmul.mubr.msk.f32.gmra.mrb[44].mxu1 %vm10511_vm7, %v10496_v21  ;;  %v14672_v21 = vld [vmem:[#allocation7 + $0x150] ss:$12 sps:$4 sm:$0xff]  }
 0xa06   : > { %13844 = vmatpush3.msk.msra.mxu1 %vm9425_vm6, %v10378_v12  ;;  %13836 = vmatprep.mubr.msk.f32.mxu1 %vm10511_vm7, %v10497_v54  ;;  %v14664_v12 = vld [vmem:[#allocation7 + $0x124] ss:$12 sps:$4 sm:$0xff]  }
 0xa07   : > { %14052 = vmatprep.subr.bf16.mxu1 %v14051_v13  ;;  %11405 = vmatpush1.bf16.msra.mxu0 %v14657_v9  ;;  %v14676_v54 = vld [vmem:[#allocation7 + $0x98] ss:$12 sps:$4 sm:$0xff]  }
 0xa08   : > { %11406 = vmatprep.subr.bf16.mxu0 %v14664_v12 }
 0xa09   : > { %13837 = vmatmul.mubr.msk.f32.gmra.mrb[46].mxu1 %vm10511_vm7, %v10498_v55  ;;  %v14679_v55 = vld [vmem:[#allocation7 + $0x16c] ss:$12 sps:$4 sm:$0xff]  }
 0xa0a   : > { %13845 = vmatprep.mubr.msk.f32.mxu1 %vm10511_vm7, %v10487_v57  ;;  %v14680_v57 = vld [vmem:[#allocation7 + $0x170] ss:$12 sps:$4 sm:$0xff]  }
 0xa0b   : > { %11407 = vmatpush1.bf16.msra.mxu0 %v14662_v31 }
 0xa0c   : > { %11408 = vmatprep.subr.bf16.mxu0 %v14669_v45 }
 0xa0d   : > { %13846 = vmatmul.mubr.msk.f32.vlgmr.msra.gmra.mrb[34].mxu1 %vm10511_vm7, %v10488_v32  ;;  %v14677_v32 = vld [vmem:[#allocation7 + $0x168] ss:$12 sps:$4 sm:$0xff]  }
 0xa0e   : > { %14054 = vmatpush3.bf16.msra.mxu1 %v14051_v13  ;;  %13848 = vmatprep.mubr.msk.f32.mxu1 %vm10511_vm7, %v10489_v16  ;;  %v14656_v13 = vld [vmem:[#allocation7 + $0x38] ss:$12 sps:$4 sm:$0xff]   ;;  %v14681_v16 = vld [vmem:[#allocation7 + $0xb0] ss:$12 sps:$4 sm:$0xff]  }
 0xa0f   : > { %13858 = vmatprep.subr.msk.mxu1 %vm9425_vm6, %v10480_v27  ;;  %11409 = vmatpush1.bf16.msra.mxu0 %v14667_v47 }
 0xa10   : > { %11410 = vmatprep.subr.bf16.mxu0 %v14674_v50 }
 0xa11   : > { %13849 = vmatmul.mubr.msk.f32.gmra.mrb[44].mxu1 %vm10511_vm7, %v10490_v17  ;;  %v14682_v17 = vld [vmem:[%s15704_s16] sm:$0xff]  }
 0xa12   : > { %13859 = vmatpush3.msk.msra.mxu1 %vm9425_vm6, %v10480_v27  ;;  %13851 = vmatprep.mubr.msk.f32.mxu1 %vm10511_vm7, %v10491_v58  ;;  %v14665_v27 = vld [vmem:[#allocation7 + $0x128] ss:$12 sps:$4 sm:$0xff]  }
 0xa13   : > { %14056 = vmatprep.subr.bf16.mxu1 %v14055_v10  ;;  %11411 = vmatpush1.bf16.msra.mxu0 %v14672_v21  ;;  %v14683_v21 = vld [vmem:[%s15704_s16 + $0x8] sm:$0xff]  }
 0xa14   : > { %11412 = vmatprep.subr.bf16.mxu0 %v14679_v55  ;;  %11414 = vmatprep.mubr.bf16.mxu0 %v14682_v17 }
 0xa15   : > { %13852 = vmatmul.mubr.msk.f32.gmra.mrb[46].mxu1 %vm10511_vm7, %v10492_v18 }
 0xa16   : > { %13860 = vmatprep.mubr.msk.f32.mxu1 %vm10511_vm7, %v10499_v59 }
 0xa17   : > { %11413 = vmatpush1.bf16.msra.mxu0 %v14677_v32 }
 0xa19   : > { %13861 = vmatmul.mubr.msk.f32.vlgmr.msra.gmra.mrb[34].mxu1 %vm10511_vm7, %v10500_v62 }
 0xa1a   : > { %14058 = vmatpush3.bf16.msra.mxu1 %v14055_v10  ;;  %13863 = vmatprep.mubr.msk.f32.mxu1 %vm10511_vm7, %v10501_v0  ;;  %v14661_v10 = vld [vmem:[#allocation7 + $0x50] ss:$12 sps:$4 sm:$0xff]  }
 0xa1b   : > { %13873 = vmatprep.subr.msk.mxu1 %vm9425_vm6, %v10482_v22 }
 0xa1d   : > { %13864 = vmatmul.mubr.msk.f32.gmra.mrb[44].mxu1 %vm10511_vm7, %v10502_v1 }
 0xa1e   : > { %13874 = vmatpush3.msk.msra.mxu1 %vm9425_vm6, %v10482_v22  ;;  %13866 = vmatprep.mubr.msk.f32.mxu1 %vm10511_vm7, %v10503_v5  ;;  %v14666_v22 = vld [vmem:[#allocation7 + $0x68] ss:$12 sps:$4 sm:$0xff]  }
 0xa1f   : > { %13739 = vmatprep.subr.bf16.mxu1 %v14645_v29 }
 0xa21   : > { %13867 = vmatmul.mubr.msk.f32.gmra.mrb[46].mxu1 %vm10511_vm7, %v10504_v53 }
 0xa22   : > { %13875 = vmatprep.mubr.msk.f32.mxu1 %vm10511_vm7, %v10505_v49 }
 0xa25   : > { %13876 = vmatmul.mubr.msk.f32.vlgmr.msra.gmra.mrb[34].mxu1 %vm10511_vm7, %v10506_v4 }
 0xa26   : > { %13878 = vmatprep.mubr.msk.f32.mxu1 %vm10511_vm7, %v10507_v6  ;;  %13740 = vmatpush3.bf16.msra.mxu1 %v14646_v43 }
 0xa27   : > { %13741 = vmatprep.subr.bf16.mxu1 %v14650_v44 }
 0xa29   : > { %13879 = vmatmul.mubr.msk.f32.gmra.mrb[44].mxu1 %vm10511_vm7, %v10508_v11 }
 0xa2a   : > { %13881 = vmatprep.mubr.msk.f32.mxu1 %vm10511_vm7, %v10509_v8  ;;  %13742 = vmatpush3.bf16.msra.mxu1 %v14651_v56 }
 0xa2b   : > { %13743 = vmatprep.subr.bf16.mxu1 %v14655_v61 }
 0xa2d   : > { %13882 = vmatmul.mubr.msk.f32.gmra.mrb[46].mxu1 %vm10511_vm7, %v10510_v14 }
 0xa2e   : > { %13744 = vmatpush3.bf16.msra.mxu1 %v14656_v13  ;;  %11477 = vmatprep.mubr.bf16.mxu1 %v14682_v17  ;;  %v14684_v17 = vld [vmem:[%s15704_s16 + $0x10] sm:$0x3f]  }
 0xa2f   : > { %13745 = vmatprep.subr.bf16.mxu1 %v14660_v7 }
 0xa32   : > { %13746 = vmatpush3.bf16.msra.mxu1 %v14661_v10 }
 0xa33   : > { %13747 = vmatprep.subr.bf16.mxu1 %v14665_v27 }
 0xa36   : > { %13748 = vmatpush3.bf16.msra.mxu1 %v14666_v22 }
 0xa37   : > { %13749 = vmatprep.subr.bf16.mxu1 %v14670_v46 }
 0xa3a   : > { %13750 = vmatpush3.bf16.msra.mxu1 %v14671_v48 }
 0xa3b   : > { %13751 = vmatprep.subr.bf16.mxu1 %v14675_v51 }
 0xa3e   : > { %13752 = vmatpush3.bf16.msra.mxu1 %v14676_v54 }
 0xa3f   : > { %13753 = vmatprep.subr.bf16.mxu1 %v14680_v57 }
 0xa42   : > { %13754 = vmatpush3.bf16.msra.mxu1 %v14681_v16 }
 0xaf8   : > { %v13877_v58 = vpop.f32.mrb[34].mxu1 }
 0xaf9   : > { %v10953_v18 = vpop.f32.mrb[35].mxu1 }
 0xafa   : > { %v10988_v59 = vadd.f32 %v13877_v58, %v10953_v18 }
 0xafc   : > { %v13880_v62 = vpop.f32.mrb[44].mxu1 }
 0xafd   : > { %v10963_v0 = vpop.f32.mrb[45].mxu1 }
 0xafe   : > { %v10989_v1 = vadd.f32 %v10988_v59, %v10963_v0 }
 0xb00   : > { %v13883_v5 = vpop.f32.mrb[46].mxu1  ;;  %v10990_v53 = vadd.f32 %v13880_v62, %v10989_v1 }
 0xb01   : > { %v10973_v49 = vpop.f32.mrb[47].mxu1  ;;  %v10992_v6 = vsel %vm4410_vm0, %v13883_v5, 0.0 }
 0xb02   : > { %v10991_v4 = vadd.f32 %v10990_v53, %v10973_v49 }
 0xb04   : > { %v10993_v11 = vadd.f32 %v10992_v6, %v10991_v4 }
 0xb06   : > { %v10994_v8 = vrot.slane %v10993_v11, 4 }
 0xb08   : > { %v10995_v14 = vadd.f32 %v10994_v8, %v10993_v11 }
 0xb0a   : > { %v10996_v25 = vrot.slane %v10995_v14, 2 }
 0xb0c   : > { %v10997_v19 = vadd.f32 %v10996_v25, %v10995_v14 }
 0xb0e   : > { %v10998_v26 = vrot.slane %v10997_v19, 1 }
 0xb10   : > { %v10999_v30 = vadd.f32 %v10998_v26, %v10997_v19 }
 0xb12   : > { %v11001_v20 = vmul.f32 0.023255814, %v10999_v30 }
 0xb14   : > { %v11002_v40 = vsub.f32 %v10953_v18, %v11001_v20  ;;  %v11003_v34 = vsub.f32 %v13877_v58, %v11001_v20  ;;  %v11004_v41 = vsub.f32 %v10963_v0, %v11001_v20  ;;  %v11005_v36 = vsub.f32 %v13880_v62, %v11001_v20 }
 0xb15   : > { %v11006_v23 = vsub.f32 %v10973_v49, %v11001_v20  ;;  %v11007_v37 = vsub.f32 %v13883_v5, %v11001_v20  ;;  %v15027_v58 = vmov 0.0|0.0  }
 0xb16   : > { %v11008_v38 = vmul.f32 %v11002_v40, %v11002_v40  ;;  %v11009_v33 = vmul.f32 %v11003_v34, %v11003_v34  ;;  %v11010_v39 = vmul.f32 %v11004_v41, %v11004_v41  ;;  %v11011_v35 = vmul.f32 %v11005_v36, %v11005_v36  ;;  %14059 = vmatprep.subr.bf16.mxu1 %v15027_v58 }
 0xb17   : > { %v11013_v29 = vmul.f32 %v11007_v37, %v11007_v37  ;;  %v11012_v42 = vmul.f32 %v11006_v23, %v11006_v23 }
 0xb18   : > { %v11014_v28 = vadd.f32 %v11009_v33, %v11008_v38 }
 0xb19   : > { %v11018_v44 = vsel %vm4410_vm0, %v11013_v29, 0.0 }
 0xb1a   : > { %v11015_v24 = vadd.f32 %v11014_v28, %v11010_v39 }
 0xb1c   : > { %v11016_v43 = vadd.f32 %v11015_v24, %v11011_v35 }
 0xb1e   : > { %v11017_v15 = vadd.f32 %v11016_v43, %v11012_v42 }
 0xb20   : > { %v11019_v60 = vadd.f32 %v11018_v44, %v11017_v15 }
 0xb22   : > { %v11020_v56 = vrot.slane %v11019_v60, 4 }
 0xb24   : > { %v11021_v2 = vadd.f32 %v11020_v56, %v11019_v60 }
 0xb26   : > { %v11022_v61 = vrot.slane %v11021_v2, 2 }
 0xb28   : > { %v11023_v3 = vadd.f32 %v11022_v61, %v11021_v2 }
 0xb2a   : > { %v11024_v13 = vrot.slane %v11023_v3, 1 }
 0xb2c   : > { %v11025_v63 = vadd.f32 %v11024_v13, %v11023_v3  ;;  %v11502_v3 = vld [vmem:[#allocation13] sm:$0xff] }
 0xb2e   : > { %v11026_v7 = vmul.f32 0.023255814, %v11025_v63  ;;  %v11503_v63 = vld [vmem:[#allocation13 + $0x8] sm:$0xff] }
 0xb30   : > { %v11027_v9 = vadd.f32 1e-05, %v11026_v7  ;;  %v11504_v7 = vld [vmem:[#allocation13 + $0x10] sm:$0xff] }
 0xb32   : > { %14697 = vrsqrt.f32 %v11027_v9  ;;  %v11505_v9 = vld [vmem:[#allocation13 + $0x18] sm:$0xff] }
 0xb3c   : > { %v14698_v10 = vpop.eup %14697 }
 0xb3d   : > { %v11033_v12 = vmul.f32 %v14698_v10, %v11006_v23  ;;  %v11029_v27 = vmul.f32 %v14698_v10, %v11002_v40  ;;  %v11030_v31 = vmul.f32 %v14698_v10, %v11003_v34  ;;  %v11031_v22 = vmul.f32 %v14698_v10, %v11004_v41 }
 0xb3e   : > { %v11032_v45 = vmul.f32 %v14698_v10, %v11005_v36  ;;  %v11034_v46 = vmul.f32 %v14698_v10, %v11007_v37  ;;  %v11506_v10 = vld [vmem:[#allocation13 + $0x20] sm:$0xff] }
 0xb3f   : > { %v11039_v47 = vmax.f32 %v11033_v12, 0.0  ;;  %v11035_v48 = vmax.f32 %v11029_v27, 0.0  ;;  %v11036_v50 = vmax.f32 %v11030_v31, 0.0  ;;  %v11037_v51 = vmax.f32 %v11031_v22, 0.0  ;;  %v11507_v12 = vld [vmem:[#allocation13 + $0x28] sm:$0xff]  ;;  %v11508_v27 = vld [vmem:[#allocation13 + $0x30] sm:$0xff] }
 0xb40   : > { %v11038_v54 = vmax.f32 %v11032_v45, 0.0  ;;  %v11040_v55 = vmax.f32 %v11034_v46, 0.0  ;;  %v11509_v31 = vld [vmem:[#allocation13 + $0x38] sm:$0xff]  ;;  %v11510_v22 = vld [vmem:[#allocation13 + $0x40] sm:$0xff]  ;;  %v11511_v45 = vld [vmem:[#allocation13 + $0x48] sm:$0xff] }
 0xb41   : > { %v11041_v57 = vpack.c.bf16 %v11036_v50, %v11035_v48  ;;  %v11512_v46 = vld [vmem:[#allocation13 + $0x50] sm:$0xff]  ;;  %v11514_v48 = vld [vmem:[#allocation13 + $0x60] sm:$0xff]  ;;  %v11515_v50 = vld [vmem:[#allocation13 + $0x68] sm:$0xff] }
 0xb42   : > { %v11042_v32 = vpack.c.bf16 %v11038_v54, %v11037_v51  ;;  %v11043_v16 = vpack.c.bf16 %v11040_v55, %v11039_v47  ;;  %v11513_v47 = vld [vmem:[#allocation13 + $0x58] sm:$0xff]  ;;  %v11516_v51 = vld [vmem:[#allocation13 + $0x70] sm:$0xff]  ;;  %v11518_v54 = vld [vmem:[#allocation13 + $0x80] sm:$0xff] }
 0xb43   : > { %11415 = vmatmul.mubr.bf16.vlgmr.msra.gmra.mrb[48].mxu0 %v11041_v57  ;;  %11478 = vmatmul.mubr.bf16.vlgmr.msra.gmra.mrb[48].mxu1 %v11041_v57  ;;  %v11519_v55 = vld [vmem:[#allocation13 + $0x88] sm:$0xff]  ;;  %v11520_v57 = vld [vmem:[#allocation13 + $0x90] sm:$0xff] }
 0xb44   : > { %11424 = vmatprep.mubr.bf16.mxu0 %v14683_v21  ;;  %11485 = vmatprep.mubr.bf16.mxu1 %v14683_v21  ;;  %v11517_v21 = vld [vmem:[#allocation13 + $0x78] sm:$0xff] }
 0xb4b   : > { %11425 = vmatmul.mubr.bf16.gmra.mrb[52].mxu0 %v11042_v32  ;;  %11486 = vmatmul.mubr.bf16.gmra.mrb[52].mxu1 %v11042_v32  ;;  %v11521_v32 = vld [vmem:[#allocation13 + $0x98] sm:$0xff] }
 0xb4c   : > { %11434 = vmatprep.mubr.bf16.mxu0 %v14684_v17  ;;  %11493 = vmatprep.mubr.bf16.mxu1 %v14684_v17  ;;  %v11523_v17 = vld [vmem:[#allocation13 + $0xa8] sm:$0xff] }
 0xb53   : > { %11435 = vmatmul.mubr.bf16.gmra.mrb[56].mxu0 %v11043_v16  ;;  %11494 = vmatmul.mubr.bf16.gmra.mrb[56].mxu1 %v11043_v16  ;;  %v11522_v16 = vld [vmem:[#allocation13 + $0xa0] sm:$0xff] }
 0xb54   : > { %13896 = vmatprep.mubr.msk.f32.mxu1 %vm15028_vm8, %v15025_v52 }
 0xc16   : > { %v11416_v18 = vpop.f32.mrb[48].mxu0  ;;  %v13755_v59 = vpop.f32.mrb[48].mxu1 }
 0xc17   : > { %v11418_v62 = vpop.f32.mrb[49].mxu0  ;;  %v13756_v0 = vpop.f32.mrb[49].mxu1 }
 0xc18   : > { %v15756_v1 = vadd.f32 %v13756_v0, %v13755_v59  ;;  %v11420_v5 = vpop.f32.mrb[50].mxu0  ;;  %v13758_v53 = vpop.f32.mrb[50].mxu1  ;;  %v11526_v59 = vld [vmem:[#allocation13 + $0xc0] sm:$0xff]  ;;  %v11528_v0 = vld [vmem:[#allocation13 + $0xd0] sm:$0xff] }
 0xc19   : > { %v14060_v49 = vpack.c.bf16 %v11420_v5, %v11416_v18  ;;  %v11422_v4 = vpop.f32.mrb[51].mxu0  ;;  %v13759_v6 = vpop.f32.mrb[51].mxu1  ;;  %v11525_v18 = vld [vmem:[#allocation13 + $0xb8] sm:$0xff]  ;;  %v11530_v5 = vld [vmem:[#allocation13 + $0xe0] sm:$0xff] }
 0xc1a   : > { %v14070_v11 = vpack.c.bf16 %v11422_v4, %v11418_v62  ;;  %v15758_v8 = vadd.f32 %v13759_v6, %v13758_v53  ;;  %v11527_v62 = vld [vmem:[#allocation13 + $0xc8] sm:$0xff]  ;;  %v11533_v4 = vld [vmem:[#allocation13 + $0xf8] sm:$0xff]  ;;  %v11534_v6 = vld [vmem:[#allocation13 + $0x100] sm:$0xff] }
 0xc1b   : > { %14061 = vmatpush3.bf16.msra.mxu1 %v14060_v49  ;;  %v11531_v53 = vld [vmem:[#allocation13 + $0xe8] sm:$0xff]  ;;  %v11532_v49 = vld [vmem:[#allocation13 + $0xf0] sm:$0xff] }
 0xc1c   : > { %v14080_v14 = vpack.c.bf16 %v15758_v8, %v15756_v1  ;;  %14062 = vmatprep.subr.bf16.mxu1 %v15027_v58  ;;  %v11529_v1 = vld [vmem:[#allocation13 + $0xd8] sm:$0xff] }
 0xc1e   : > { %v11426_v25 = vpop.f32.mrb[52].mxu0  ;;  %v13761_v19 = vpop.f32.mrb[52].mxu1 }
 0xc1f   : > { %v11428_v26 = vpop.f32.mrb[53].mxu0  ;;  %v13762_v30 = vpop.f32.mrb[53].mxu1 }
 0xc20   : > { %v15763_v20 = vadd.f32 %v13762_v30, %v13761_v19  ;;  %v11430_v40 = vpop.f32.mrb[54].mxu0  ;;  %v13764_v34 = vpop.f32.mrb[54].mxu1 }
 0xc21   : > { %v14063_v41 = vpack.c.bf16 %v11430_v40, %v11426_v25  ;;  %v11432_v36 = vpop.f32.mrb[55].mxu0  ;;  %v13765_v23 = vpop.f32.mrb[55].mxu1 }
 0xc22   : > { %v14073_v37 = vpack.c.bf16 %v11432_v36, %v11428_v26  ;;  %v15765_v38 = vadd.f32 %v13765_v23, %v13764_v34 }
 0xc23   : > { %14064 = vmatpush3.bf16.msra.mxu1 %v14063_v41 }
 0xc24   : > { %v14083_v33 = vpack.c.bf16 %v15765_v38, %v15763_v20  ;;  %14065 = vmatprep.subr.bf16.mxu1 %v15027_v58 }
 0xc26   : > { %v11436_v39 = vpop.f32.mrb[56].mxu0  ;;  %v13767_v28 = vpop.f32.mrb[56].mxu1 }
 0xc27   : > { %v11438_v35 = vpop.f32.mrb[57].mxu0  ;;  %v13768_v24 = vpop.f32.mrb[57].mxu1 }
 0xc28   : > { %v15770_v29 = vadd.f32 %v13768_v24, %v13767_v28  ;;  %v11440_v42 = vpop.f32.mrb[58].mxu0  ;;  %v13770_v43 = vpop.f32.mrb[58].mxu1 }
 0xc29   : > { %v14066_v44 = vpack.c.bf16 %v11440_v42, %v11436_v39  ;;  %v11442_v60 = vpop.f32.mrb[59].mxu0  ;;  %v13771_v56 = vpop.f32.mrb[59].mxu1 }
 0xc2a   : > { %v14076_v2 = vpack.c.bf16 %v11442_v60, %v11438_v35  ;;  %v13772_v61 = vadd.f32 %v13771_v56, %v13770_v43 }
 0xc2b   : > { %14068 = vmatpush3.bf16.msk.msra.mxu1 %vm15774_vm9, %v14066_v44 }
 0xc2c   : > { %v14086_v13 = vpack.c.bf16 %v13772_v61, %v15770_v29  ;;  %14069 = vmatprep.subr.bf16.mxu1 %v15027_v58 }
 0xc2e   : > { %13897 = vmatmul.mubr.msk.f32.vlgmr.msra.gmra.mrb[60].mxu1 %vm11536_vm10, %v11502_v3 }
 0xc2f   : > { %14071 = vmatpush3.bf16.msra.mxu1 %v14070_v11  ;;  %13899 = vmatprep.mubr.msk.f32.mxu1 %vm15028_vm8, %v15025_v52  ;;  %v13623_v11 = vld [vmem:[#allocation15] ss:$0 sm:$0xff] }
 0xc30   : > { %14072 = vmatprep.subr.bf16.mxu1 %v15027_v58 }
 0xc32   : > { %13900 = vmatmul.mubr.msk.f32.gmra.mrb[62].mxu1 %vm11536_vm10, %v11503_v63 }
 0xc33   : > { %14074 = vmatpush3.bf16.msra.mxu1 %v14073_v37  ;;  %13902 = vmatprep.mubr.msk.f32.mxu1 %vm15028_vm8, %v15025_v52 }
 0xc34   : > { %14075 = vmatprep.subr.bf16.mxu1 %v15027_v58 }
 0xc36   : > { %13903 = vmatmul.mubr.msk.f32.gmra.mrb[64].mxu1 %vm11536_vm10, %v11504_v7 }
 0xc37   : > { %14078 = vmatpush3.bf16.msk.msra.mxu1 %vm15774_vm9, %v14076_v2  ;;  %13905 = vmatprep.mubr.msk.f32.mxu1 %vm15028_vm8, %v15025_v52 }
 0xc38   : > { %14079 = vmatprep.subr.bf16.mxu1 %v15027_v58 }
 0xc3a   : > { %13906 = vmatmul.mubr.msk.f32.gmra.mrb[66].mxu1 %vm11536_vm10, %v11505_v9 }
 0xc3b   : > { %13908 = vmatprep.mubr.msk.f32.mxu1 %vm15028_vm8, %v15025_v52 }
 0xc3e   : > { %13909 = vmatmul.mubr.msk.f32.gmra.mrb[68].mxu1 %vm11536_vm10, %v11506_v10 }
 0xc3f   : > { %13911 = vmatprep.mubr.msk.f32.mxu1 %vm15028_vm8, %v15025_v52 }
 0xc42   : > { %13912 = vmatmul.mubr.msk.f32.gmra.mrb[70].mxu1 %vm11536_vm10, %v11507_v12 }
 0xc43   : > { %13914 = vmatprep.mubr.msk.f32.mxu1 %vm15028_vm8, %v15025_v52 }
 0xc46   : > { %13915 = vmatmul.mubr.msk.f32.gmra.mrb[72].mxu1 %vm11536_vm10, %v11508_v27 }
 0xc47   : > { %13917 = vmatprep.mubr.msk.f32.mxu1 %vm15028_vm8, %v15025_v52 }
 0xc4a   : > { %13918 = vmatmul.mubr.msk.f32.gmra.mrb[74].mxu1 %vm11536_vm10, %v11509_v31 }
 0xc4b   : > { %13920 = vmatprep.mubr.msk.f32.mxu1 %vm15028_vm8, %v15025_v52 }
 0xc4e   : > { %13921 = vmatmul.mubr.msk.f32.gmra.mrb[76].mxu1 %vm11536_vm10, %v11510_v22 }
 0xc4f   : > { %13923 = vmatprep.mubr.msk.f32.mxu1 %vm15028_vm8, %v15025_v52 }
 0xc52   : > { %13924 = vmatmul.mubr.msk.f32.gmra.mrb[78].mxu1 %vm11536_vm10, %v11511_v45 }
 0xc53   : > { %13926 = vmatprep.mubr.msk.f32.mxu1 %vm15028_vm8, %v15025_v52 }
 0xc56   : > { %13927 = vmatmul.mubr.msk.f32.gmra.mrb[80].mxu1 %vm11536_vm10, %v11512_v46 }
 0xc57   : > { %13941 = vmatprep.mubr.msk.f32.mxu1 %vm15028_vm8, %v15025_v52 }
 0xc5a   : > { %13942 = vmatmul.mubr.msk.f32.vlgmr.msra.gmra.mrb[60].mxu1 %vm11536_vm10, %v11513_v47 }
 0xc5b   : > { %14081 = vmatpush3.bf16.msra.mxu1 %v14080_v14  ;;  %13944 = vmatprep.mubr.msk.f32.mxu1 %vm15028_vm8, %v15025_v52 }
 0xc5c   : > { %14082 = vmatprep.subr.bf16.mxu1 %v15027_v58 }
 0xc5e   : > { %13945 = vmatmul.mubr.msk.f32.gmra.mrb[62].mxu1 %vm11536_vm10, %v11514_v48 }
 0xc5f   : > { %14084 = vmatpush3.bf16.msra.mxu1 %v14083_v33  ;;  %13947 = vmatprep.mubr.msk.f32.mxu1 %vm15028_vm8, %v15025_v52 }
 0xc60   : > { %14085 = vmatprep.subr.bf16.mxu1 %v15027_v58  ;;  %v11524_v58 = vld [vmem:[#allocation13 + $0xb0] sm:$0xff] }
 0xc62   : > { %13948 = vmatmul.mubr.msk.f32.gmra.mrb[64].mxu1 %vm11536_vm10, %v11515_v50 }
 0xc63   : > { %14088 = vmatpush3.bf16.msk.msra.mxu1 %vm15774_vm9, %v14086_v13  ;;  %13950 = vmatprep.mubr.msk.f32.mxu1 %vm15028_vm8, %v15025_v52 }
 0xc66   : > { %13951 = vmatmul.mubr.msk.f32.gmra.mrb[66].mxu1 %vm11536_vm10, %v11516_v51 }
 0xc67   : > { %13953 = vmatprep.mubr.msk.f32.mxu1 %vm15028_vm8, %v15025_v52 }
 0xc6a   : > { %13954 = vmatmul.mubr.msk.f32.gmra.mrb[68].mxu1 %vm11536_vm10, %v11517_v21 }
 0xc6b   : > { %13956 = vmatprep.mubr.msk.f32.mxu1 %vm15028_vm8, %v15025_v52 }
 0xc6e   : > { %13957 = vmatmul.mubr.msk.f32.gmra.mrb[70].mxu1 %vm11536_vm10, %v11518_v54 }
 0xc6f   : > { %13959 = vmatprep.mubr.msk.f32.mxu1 %vm15028_vm8, %v15025_v52 }
 0xc72   : > { %13960 = vmatmul.mubr.msk.f32.gmra.mrb[72].mxu1 %vm11536_vm10, %v11519_v55 }
 0xc73   : > { %13962 = vmatprep.mubr.msk.f32.mxu1 %vm15028_vm8, %v15025_v52 }
 0xc76   : > { %13963 = vmatmul.mubr.msk.f32.gmra.mrb[74].mxu1 %vm11536_vm10, %v11520_v57 }
 0xc77   : > { %13965 = vmatprep.mubr.msk.f32.mxu1 %vm15028_vm8, %v15025_v52 }
 0xc7a   : > { %13966 = vmatmul.mubr.msk.f32.gmra.mrb[76].mxu1 %vm11536_vm10, %v11521_v32 }
 0xc7b   : > { %13968 = vmatprep.mubr.msk.f32.mxu1 %vm15028_vm8, %v15025_v52 }
 0xc7e   : > { %13969 = vmatmul.mubr.msk.f32.gmra.mrb[78].mxu1 %vm11536_vm10, %v11522_v16 }
 0xc7f   : > { %13971 = vmatprep.mubr.msk.f32.mxu1 %vm15028_vm8, %v15025_v52 }
 0xc82   : > { %13972 = vmatmul.mubr.msk.f32.gmra.mrb[80].mxu1 %vm11536_vm10, %v11523_v17 }
 0xc83   : > { %13986 = vmatprep.mubr.msk.f32.mxu1 %vm15028_vm8, %v15025_v52 }
 0xc86   : > { %13987 = vmatmul.mubr.msk.f32.vlgmr.msra.gmra.mrb[60].mxu1 %vm11536_vm10, %v11524_v58 }
 0xc87   : > { %13989 = vmatprep.mubr.msk.f32.mxu1 %vm15028_vm8, %v15025_v52 }
 0xc8a   : > { %13990 = vmatmul.mubr.msk.f32.gmra.mrb[62].mxu1 %vm11536_vm10, %v11525_v18 }
 0xc8b   : > { %13992 = vmatprep.mubr.msk.f32.mxu1 %vm15028_vm8, %v15025_v52 }
 0xc8e   : > { %13993 = vmatmul.mubr.msk.f32.gmra.mrb[64].mxu1 %vm11536_vm10, %v11526_v59 }
 0xc8f   : > { %13995 = vmatprep.mubr.msk.f32.mxu1 %vm15028_vm8, %v15025_v52 }
 0xc92   : > { %13996 = vmatmul.mubr.msk.f32.gmra.mrb[66].mxu1 %vm11536_vm10, %v11527_v62 }
 0xc93   : > { %13998 = vmatprep.mubr.msk.f32.mxu1 %vm15028_vm8, %v15025_v52 }
 0xc96   : > { %13999 = vmatmul.mubr.msk.f32.gmra.mrb[68].mxu1 %vm11536_vm10, %v11528_v0 }
 0xc97   : > { %14001 = vmatprep.mubr.msk.f32.mxu1 %vm15028_vm8, %v15025_v52 }
 0xc9a   : > { %14002 = vmatmul.mubr.msk.f32.gmra.mrb[70].mxu1 %vm11536_vm10, %v11529_v1 }
 0xc9b   : > { %14004 = vmatprep.mubr.msk.f32.mxu1 %vm15028_vm8, %v15025_v52 }
 0xc9e   : > { %14005 = vmatmul.mubr.msk.f32.gmra.mrb[72].mxu1 %vm11536_vm10, %v11530_v5 }
 0xc9f   : > { %14007 = vmatprep.mubr.msk.f32.mxu1 %vm15028_vm8, %v15025_v52 }
 0xca2   : > { %14008 = vmatmul.mubr.msk.f32.gmra.mrb[74].mxu1 %vm11536_vm10, %v11531_v53 }
 0xca3   : > { %14010 = vmatprep.mubr.msk.f32.mxu1 %vm15028_vm8, %v15025_v52 }
 0xca6   : > { %14011 = vmatmul.mubr.msk.f32.gmra.mrb[76].mxu1 %vm11536_vm10, %v11532_v49 }
 0xca7   : > { %14013 = vmatprep.mubr.msk.f32.mxu1 %vm15028_vm8, %v15025_v52 }
 0xcaa   : > { %14014 = vmatmul.mubr.msk.f32.gmra.mrb[78].mxu1 %vm11536_vm10, %v11533_v4 }
 0xcab   : > { %14016 = vmatprep.mubr.msk.f32.mxu1 %vm15028_vm8, %v15025_v52 }
 0xcae   : > { %14017 = vmatmul.mubr.msk.f32.gmra.mrb[80].mxu1 %vm11536_vm10, %v11534_v6 }
 0xd59   : > { %v11979_v8 = vpop.f32.mrb[60].mxu1 }
 0xd5a   : > { %v13988_v14 = vpop.f32.mrb[61].mxu1  ;;  %v14097_v25 = vadd.f32 %v13623_v11, %v11979_v8 }
 0xd5c   : > { %14699 = vtanh.f32 %v14097_v25 }
 0xd5d   : > { %v11984_v19 = vpop.f32.mrb[62].mxu1 }
 0xd5e   : > { %v14098_v26 = vadd.f32 %v13623_v11, %v11984_v19  ;;  %v13991_v30 = vpop.f32.mrb[63].mxu1 }
 0xd60   : > { %14701 = vtanh.f32 %v14098_v26 }
 0xd61   : > { %v11989_v20 = vpop.f32.mrb[64].mxu1 }
 0xd62   : > { %v13994_v40 = vpop.f32.mrb[65].mxu1  ;;  %v14099_v34 = vadd.f32 %v13623_v11, %v11989_v20 }
 0xd64   : > { %14703 = vtanh.f32 %v14099_v34 }
 0xd65   : > { %v11994_v41 = vpop.f32.mrb[66].mxu1 }
 0xd66   : > { %v14100_v36 = vadd.f32 %v13623_v11, %v11994_v41  ;;  %v13997_v52 = vpop.f32.mrb[67].mxu1  ;;  %v14700_v23 = vpop.eup %14699 }
 0xd68   : > { %14705 = vtanh.f32 %v14100_v36 }
 0xd69   : > { %v11999_v37 = vpop.f32.mrb[68].mxu1 }
 0xd6a   : > { %v14702_v38 = vpop.eup %14701  ;;  %v14000_v33 = vpop.f32.mrb[69].mxu1  ;;  %v14101_v28 = vadd.f32 %v13623_v11, %v11999_v37 }
 0xd6b   : > { %v13677_v39 = vpack.c.bf16 %v14702_v38, %v14700_v23 }
 0xd6c   : > { %14707 = vtanh.f32 %v14101_v28 }
 0xd6d   : > { %13678 = vst [vmem:[%s15898_s15] sm:$0xff] %v13677_v39   ;;  %v12004_v35 = vpop.f32.mrb[70].mxu1 }
 0xd6e   : > { %v14102_v24 = vadd.f32 %v13623_v11, %v12004_v35  ;;  %v14003_v29 = vpop.f32.mrb[71].mxu1  ;;  %v14704_v42 = vpop.eup %14703 }
 0xd70   : > { %14709 = vtanh.f32 %v14102_v24 }
 0xd71   : > { %v12009_v43 = vpop.f32.mrb[72].mxu1 }
 0xd72   : > { %v14706_v15 = vpop.eup %14705  ;;  %v14006_v44 = vpop.f32.mrb[73].mxu1  ;;  %v14103_v56 = vadd.f32 %v13623_v11, %v12009_v43 }
 0xd73   : > { %v13682_v60 = vpack.c.bf16 %v14706_v15, %v14704_v42 }
 0xd74   : > { %14711 = vtanh.f32 %v14103_v56 }
 0xd75   : > { %13699 = vst [vmem:[%s15898_s15 + $0x8] sm:$0xff] %v13682_v60   ;;  %v12014_v2 = vpop.f32.mrb[74].mxu1 }
 0xd76   : > { %v14104_v61 = vadd.f32 %v13623_v11, %v12014_v2  ;;  %v14009_v3 = vpop.f32.mrb[75].mxu1  ;;  %v14708_v13 = vpop.eup %14707 }
 0xd78   : > { %14713 = vtanh.f32 %v14104_v61 }
 0xd79   : > { %v12019_v63 = vpop.f32.mrb[76].mxu1 }
 0xd7a   : > { %v14710_v7 = vpop.eup %14709  ;;  %v14012_v9 = vpop.f32.mrb[77].mxu1  ;;  %v14105_v12 = vadd.f32 %v13623_v11, %v12019_v63 }
 0xd7b   : > { %v13687_v10 = vpack.c.bf16 %v14710_v7, %v14708_v13 }
 0xd7c   : > { %14715 = vtanh.f32 %v14105_v12 }
 0xd7d   : > { %13700 = vst [vmem:[%s15898_s15 + $0x10] sm:$0xff] %v13687_v10   ;;  %v12024_v27 = vpop.f32.mrb[78].mxu1 }
 0xd7e   : > { %v14106_v31 = vadd.f32 %v13623_v11, %v12024_v27  ;;  %v14015_v22 = vpop.f32.mrb[79].mxu1  ;;  %v14712_v45 = vpop.eup %14711 }
 0xd80   : > { %14717 = vtanh.f32 %v14106_v31 }
 0xd81   : > { %v12029_v46 = vpop.f32.mrb[80].mxu1 }
 0xd82   : > { %v14714_v47 = vpop.eup %14713  ;;  %v14107_v48 = vadd.f32 %v13623_v11, %v12029_v46  ;;  %v14018_v50 = vpop.f32.mrb[81].mxu1 }
 0xd83   : > { %v13692_v51 = vpack.c.bf16 %v14714_v47, %v14712_v45 }
 0xd84   : > { %14719 = vtanh.f32 %v14107_v48 }
 0xd85   : > { %13701 = vst [vmem:[%s15898_s15 + $0x18] sm:$0xff] %v13692_v51  }
 0xd86   : > { %v14716_v21 = vpop.eup %14715 }
 0xd8a   : > { %v14718_v54 = vpop.eup %14717 }
 0xd8b   : > { %v13697_v55 = vpack.c.bf16 %v14718_v54, %v14716_v21 }
 0xd8d   : > { %13702 = vst [vmem:[%s15898_s15 + $0x20] sm:$0xff] %v13697_v55  }
 0xd8e   : > { %v14720_v57 = vpop.eup %14719 }
 0xd8f   : > { %v13673_v32 = vpack.c.bf16 %v14720_v57, %v14720_v57 }
 0xd91   : > { %12110 = vst [vmem:[%s15898_s15 + $0x28] sm:$0xf] %v13673_v32 }
 0xd92 PF: > { %s15957_s28 = sld [smem:[#allocation21_spill]] }
 0xd98   : > { %s28_s25 = sadd.s32 1, %s15957_s28  }
 0xd99   : > { %p25_p9 = scmp.ge.s32.totalorder %s28_s25, 4  }
 0xd9b   :  { %27 = sbr.rel (!%p25_p9) target bundleno = 9 (0x9), region = 148 }
 0xda2   :  { %12132 = vsyncpa [#allocation3], 1 }
 0xda3   :  { %12134 = vsyncpa [#allocation3 + $0x1], 1 }
 0xda4   :  { %12135 = vsyncpa [#allocation5], 1 }
 0xda5   :  { %12136 = vsyncpa [#allocation8], 1 }
 0xda6   :  { %12137 = vsyncpa [#allocation11], 1 }
 0xda7   :  { %12138 = vsyncpa [#allocation14], 1 }

</bundles_post_ra>
